<compile_context>
chip_gen: v6e
topology: v6e:2x2x1
jax: 0.10.0
libtpu: 0.0.40
codegen_flags: <defaults>
</compile_context>

<pallas_src>
import functools

import jax
import jax.numpy as jnp
import numpy as np
from jax.experimental import pallas as pl
from jax.experimental.pallas import tpu as pltpu

# Row stride / GEMM row counts (multiples of 8; spatial (r, c) -> row r*16+c).
_RS = 16     # scratch row stride per spatial row
_M1 = 176    # conv1 GEMM rows (11*16; 10x10 valid blocks + zero padding)
_M2 = 144    # conv2 GEMM rows (valid outputs at oi*16+oj, oi,oj<=8)
_M3 = 104    # conv3 GEMM rows (valid outputs at p*16+q,  p,q<=6)


# ----------------------------------------------------------------------------
# Fused DQN kernel (one image per grid program)
# ----------------------------------------------------------------------------
def _dqn_kernel(x1_ref, w1_ref, b1_ref, w2_ref, b2_ref, w3_ref, b3_ref,
                wf1_ref, bf1_ref, wf2_ref, bf2_ref, out_ref,
                y1_ref, y2_ref, y3_ref, y3w_ref):
    f32 = jnp.float32
    bf16 = jnp.bfloat16

    # ---- conv1: one implicit GEMM [176,256]x[256,128].
    a1 = jnp.dot(x1_ref[0], w1_ref[...], preferred_element_type=f32)
    y1_ref[...] = jnp.maximum(a1 + b1_ref[...], 0.0).astype(bf16)

    # ---- conv2 (4x4/s2): 4 shift-grouped whole-map GEMMs, K=128.
    acc2 = jnp.zeros((_M2, 64), f32)
    for s in range(4):
        off = (s // 2) * _RS + (s % 2)
        acc2 = acc2 + jnp.dot(y1_ref[off:off + _M2, :],
                              w2_ref[s * 128:(s + 1) * 128, :],
                              preferred_element_type=f32)
    y2_ref[...] = jnp.maximum(acc2 + b2_ref[...], 0.0).astype(bf16)

    # ---- conv3 (3x3/s1): 9 per-tap whole-map GEMMs, K=64.
    acc3 = jnp.zeros((_M3, 64), f32)
    for di in range(3):
        for dj in range(3):
            t = di * 3 + dj
            off = di * _RS + dj
            acc3 = acc3 + jnp.dot(y2_ref[off:off + _M3, :],
                                  w3_ref[t * 64:(t + 1) * 64, :],
                                  preferred_element_type=f32)
    y3_ref[...] = jnp.maximum(acc3 + b3_ref[...], 0.0).astype(bf16)

    # ---- flatten for fc1: copy the 7 aligned row blocks (one per conv3 output
    #      row p) into an [8,512] slab whose lanes are (p, channel).
    y3w_ref[...] = jnp.zeros((8, 512), bf16)          # zero the K-padding lanes
    for p in range(7):
        y3w_ref[:, p * 64:(p + 1) * 64] = y3_ref[p * _RS:p * _RS + 8, :]

    # ---- fc1: 7 GEMMs with K=512 (448 real rows + 64 zero-padded), N=512.
    h = jnp.zeros((1, 512), f32)
    for q in range(7):
        h = h + jnp.dot(y3w_ref[q:q + 1, :],
                        wf1_ref[q * 512:(q + 1) * 512, :],
                        preferred_element_type=f32)
    h = jnp.maximum(h + bf1_ref[...], 0.0).astype(bf16)

    # ---- fc2 (output zero-padded to 128 lanes, broadcast for a dense store).
    o = jnp.dot(h, wf2_ref[...], preferred_element_type=f32) + bf2_ref[...]
    out_ref[0] = jnp.broadcast_to(o, (8, 128))


# ----------------------------------------------------------------------------
# Wrapper: conv1 im2col + pallas_call
# ----------------------------------------------------------------------------
def _prep_input(x):
    """NCHW [B,1,84,84] f32 -> conv1 im2col slab [B, 176, 256] bf16.

    Row ib*16+jb holds the four 8x8 patches feeding conv1 outputs
    (2*ib+rp, 2*jb+cp), packed along lanes as (rp*2+cp)*64 + (u*8+v).
    Rows with jb>=10 or ib==10 are zero padding (multiple-of-8 geometry).
    """
    B = x.shape[0]
    xs = x.reshape(B, 84, 84)
    # space-to-depth(4): xs4[b, I, J, a, e] = x[b, 4I+a, 4J+e]
    xs4 = xs.reshape(B, 21, 4, 21, 4).transpose(0, 1, 3, 2, 4)
    xs4 = xs4.reshape(B, 21, 21, 4, 4)
    # p[b, i, j, u1, v1, a, e] = x[b, 4i+4u1+a, 4j+4v1+e]
    p = jnp.stack([jnp.stack([xs4[:, u1:u1 + 20, v1:v1 + 20]
                              for v1 in range(2)], axis=3)
                   for u1 in range(2)], axis=3)
    # reorder to (u1, a, v1, e) == row-major 8x8 patch flatten (u*8 + v).
    p = p.transpose(0, 1, 2, 3, 5, 4, 6).reshape(B, 20, 20, 64)
    # group conv1 outputs 2x2 -> lanes (rp*2+cp)*64 + patch_flat
    t = p.reshape(B, 10, 2, 10, 2, 64).transpose(0, 1, 3, 2, 4, 5)
    t = t.reshape(B, 10, 10, 256)
    x1 = jnp.zeros((B, 11, 16, 256), jnp.float32).at[:, :10, :10, :].set(t)
    return x1.reshape(B, _M1, 256).astype(jnp.bfloat16)


def dqn_forward(params, x, *, action_space):
    assert action_space <= 128, "fc2 output is lane-padded to 128"
    B = x.shape[0]
    x1 = _prep_input(x)

    def _const(shape):
        nd = len(shape)
        return pl.BlockSpec(shape, lambda b, _nd=nd: (0,) * _nd)

    out = pl.pallas_call(
        _dqn_kernel,
        out_shape=jax.ShapeDtypeStruct((B, 8, 128), jnp.float32),
        grid=(B,),
        in_specs=[
            pl.BlockSpec((1, _M1, 256), lambda b: (b, 0, 0)),   # im2col'd input
            _const((256, 128)), _const((1, 128)),               # conv1
            _const((512, 64)), _const((1, 64)),                 # conv2
            _const((576, 64)), _const((1, 64)),                 # conv3
            _const((7 * 512, 512)), _const((1, 512)),           # fc1
            _const((512, 128)), _const((1, 128)),               # fc2
        ],
        out_specs=pl.BlockSpec((1, 8, 128), lambda b: (b, 0, 0)),
        scratch_shapes=[
            pltpu.VMEM((_M1, 128), jnp.bfloat16),   # conv1 out, parity-packed lanes
            pltpu.VMEM((_M2, 64), jnp.bfloat16),    # conv2 out
            pltpu.VMEM((_M3, 64), jnp.bfloat16),    # conv3 out
            pltpu.VMEM((8, 512), jnp.bfloat16),     # conv3 out, (p,c)-in-lanes
        ],
        compiler_params=pltpu.CompilerParams(
            dimension_semantics=("parallel",)),
    )(x1,
      params["w1"], params["b1"], params["w2"], params["b2"],
      params["w3"], params["b3"], params["wf1"], params["bf1"],
      params["wf2"], params["bf2"])
    return out[:, 0, :action_space]


# ----------------------------------------------------------------------------
# Parameters: raw PyTorch-layout init + one-time transformation to kernel layout
# ----------------------------------------------------------------------------
def init_raw_params(key, action_space):
    ks = jax.random.split(key, 10)

    def u(k, shape, fan_in):
        bound = 1.0 / np.sqrt(fan_in)
        return jax.random.uniform(k, shape, jnp.float32, -bound, bound)

    p = {}
    p["conv1_w"] = u(ks[0], (32, 1, 8, 8), 1 * 8 * 8)
    p["conv1_b"] = u(ks[1], (32,), 1 * 8 * 8)
    p["conv2_w"] = u(ks[2], (64, 32, 4, 4), 32 * 4 * 4)
    p["conv2_b"] = u(ks[3], (64,), 32 * 4 * 4)
    p["conv3_w"] = u(ks[4], (64, 64, 3, 3), 64 * 3 * 3)
    p["conv3_b"] = u(ks[5], (64,), 64 * 3 * 3)
    p["fc1_w"] = u(ks[6], (512, 64 * 7 * 7), 64 * 7 * 7)    # PyTorch [out, in]
    p["fc1_b"] = u(ks[7], (512,), 64 * 7 * 7)
    p["fc2_w"] = u(ks[8], (action_space, 512), 512)
    p["fc2_b"] = u(ks[9], (action_space,), 512)
    return p


def prepare_params(raw, action_space):
    """One-time weight re-layout (pre-transposed, bf16) for the fused kernel."""
    assert action_space <= 128, "fc2 lane-padding assumes action_space <= 128"
    bf16 = jnp.bfloat16
    f32 = jnp.float32
    p = {}

    # conv1: block-diagonal over the 4 output parities, so the single GEMM on
    # the lane-packed im2col input emits all 128 output lanes at once.
    w1 = raw["conv1_w"].reshape(32, 64).T                        # [u*8+v, cout]
    w1bd = jnp.zeros((256, 128), f32)
    for par in range(4):
        w1bd = w1bd.at[par * 64:(par + 1) * 64, par * 32:(par + 1) * 32].set(w1)
    p["w1"] = w1bd.astype(bf16)
    p["b1"] = jnp.tile(raw["conv1_b"], 4).reshape(1, 128)

    # conv2: taps grouped by spatial shift (sr,sc); the 4 parities of a shift
    # stack along K so each GEMM contracts K=128 against the packed y1.
    w2 = raw["conv2_w"].reshape(64, 32, 2, 2, 2, 2)              # o,i,sr,rp,sc,cp
    w2 = w2.transpose(2, 4, 3, 5, 1, 0).reshape(512, 64)         # [(s,par,cin), cout]
    p["w2"] = w2.astype(bf16)
    p["b2"] = raw["conv2_b"].reshape(1, 64)

    # conv3: one [64,64] block per tap, stacked along rows.
    p["w3"] = raw["conv3_w"].transpose(2, 3, 1, 0).reshape(9 * 64, 64).astype(bf16)
    p["b3"] = raw["conv3_b"].reshape(1, 64)

    # fc1: rows ordered (q, p, c) to match the kernel's lane-packed flatten of
    # conv3's output; each q-block zero-padded 448 -> 512 rows (K padding).
    wf1 = raw["fc1_w"].reshape(512, 64, 7, 7).transpose(3, 2, 1, 0)   # q,p,c,j
    wf1 = wf1.reshape(7, 448, 512)
    wf1 = jnp.zeros((7, 512, 512), f32).at[:, :448, :].set(wf1)
    p["wf1"] = wf1.reshape(7 * 512, 512).astype(bf16)
    p["bf1"] = raw["fc1_b"].reshape(1, 512)

    # fc2: zero-pad N to 128 for a lane-dense output store.
    wf2 = jnp.zeros((512, 128), f32).at[:, :action_space].set(raw["fc2_w"].T)
    p["wf2"] = wf2.astype(bf16)
    p["bf2"] = jnp.zeros((1, 128), f32).at[0, :action_space].set(raw["fc2_b"])
    return p


# Pure-JAX reference (XLA conv, f32, PyTorch layouts) for correctness check.
def dqn_forward_ref(raw, x):
    dn = ("NCHW", "OIHW", "NCHW")

    def conv(x, w, b, s):
        y = jax.lax.conv_general_dilated(x, w, (s, s), "VALID",
                                         dimension_numbers=dn)
        return jax.nn.relu(y + b[None, :, None, None])

    x = conv(x, raw["conv1_w"], raw["conv1_b"], 4)
    x = conv(x, raw["conv2_w"], raw["conv2_b"], 2)
    x = conv(x, raw["conv3_w"], raw["conv3_b"], 1)
    x = x.reshape(x.shape[0], -1)
    x = jax.nn.relu(x @ raw["fc1_w"].T + raw["fc1_b"])
    return x @ raw["fc2_w"].T + raw["fc2_b"]


if __name__ == "__main__":
    ACTION_SPACE = 6
    B = 2
    key = jax.random.PRNGKey(0)
    k_param, k_x = jax.random.split(key)

    raw = init_raw_params(k_param, ACTION_SPACE)
    params = prepare_params(raw, ACTION_SPACE)
    # fc1 expects 64*7*7 features => spatial input must be 84x84 (Atari frame).
    x = jax.random.uniform(k_x, (B, 1, 84, 84), jnp.float32)

    fwd = jax.jit(functools.partial(dqn_forward, action_space=ACTION_SPACE))
    out = jax.block_until_ready(fwd(params, x))
    ref = jax.block_until_ready(jax.jit(dqn_forward_ref)(raw, x))

    assert out.shape == (B, ACTION_SPACE), out.shape
    # bf16 matmul operands (f32 accumulation) -> relaxed tolerance vs f32 ref.
    # TODO(synk): keep activations f32 end-to-end if exact Q-targets are needed.
    np.testing.assert_allclose(np.asarray(out), np.asarray(ref),
                               rtol=5e-2, atol=2e-2)
    print("KERNEL_OK")
</pallas_src>

<mosaic_0001>
module attributes {stable_mosaic.version = 11 : i64} {
  func.func @_dqn_kernel(%arg0: i32, %arg1: memref<1x176x256xbf16, #tpu.memory_space<vmem>>, %arg2: memref<256x128xbf16, #tpu.memory_space<vmem>>, %arg3: memref<1x128xf32, #tpu.memory_space<vmem>>, %arg4: memref<512x64xbf16, #tpu.memory_space<vmem>>, %arg5: memref<1x64xf32, #tpu.memory_space<vmem>>, %arg6: memref<576x64xbf16, #tpu.memory_space<vmem>>, %arg7: memref<1x64xf32, #tpu.memory_space<vmem>>, %arg8: memref<3584x512xbf16, #tpu.memory_space<vmem>>, %arg9: memref<1x512xf32, #tpu.memory_space<vmem>>, %arg10: memref<512x128xbf16, #tpu.memory_space<vmem>>, %arg11: memref<1x128xf32, #tpu.memory_space<vmem>>, %arg12: memref<1x8x128xf32, #tpu.memory_space<vmem>>, %arg13: memref<176x128xbf16, #tpu.memory_space<vmem>>, %arg14: memref<144x64xbf16, #tpu.memory_space<vmem>>, %arg15: memref<104x64xbf16, #tpu.memory_space<vmem>>, %arg16: memref<8x512xbf16, #tpu.memory_space<vmem>>) attributes {dimension_semantics = [#tpu.dimension_semantics<parallel>], iteration_bounds = array<i64: 2>, scalar_prefetch = 0 : i64, scratch_operands = 4 : i64, tpu.core_type = #tpu.core_type<tc>, window_params = [{transform_indices = @transform_0, window_bounds = array<i64: 1, 176, 256>}, {pipeline_mode = #tpu.pipeline_mode<synchronous>, transform_indices = @transform_1, window_bounds = array<i64: 256, 128>}, {pipeline_mode = #tpu.pipeline_mode<synchronous>, transform_indices = @transform_2, window_bounds = array<i64: 1, 128>}, {pipeline_mode = #tpu.pipeline_mode<synchronous>, transform_indices = @transform_3, window_bounds = array<i64: 512, 64>}, {pipeline_mode = #tpu.pipeline_mode<synchronous>, transform_indices = @transform_4, window_bounds = array<i64: 1, 64>}, {pipeline_mode = #tpu.pipeline_mode<synchronous>, transform_indices = @transform_5, window_bounds = array<i64: 576, 64>}, {pipeline_mode = #tpu.pipeline_mode<synchronous>, transform_indices = @transform_6, window_bounds = array<i64: 1, 64>}, {pipeline_mode = #tpu.pipeline_mode<synchronous>, transform_indices = @transform_7, window_bounds = array<i64: 3584, 512>}, {pipeline_mode = #tpu.pipeline_mode<synchronous>, transform_indices = @transform_8, window_bounds = array<i64: 1, 512>}, {pipeline_mode = #tpu.pipeline_mode<synchronous>, transform_indices = @transform_9, window_bounds = array<i64: 512, 128>}, {pipeline_mode = #tpu.pipeline_mode<synchronous>, transform_indices = @transform_10, window_bounds = array<i64: 1, 128>}, {transform_indices = @transform_11, window_bounds = array<i64: 1, 8, 128>}]} {
    %c0 = arith.constant 0 : index
    %c0_0 = arith.constant 0 : index
    %c0_1 = arith.constant 0 : index
    %0 = vector.load %arg1[%c0, %c0_0, %c0_1] : memref<1x176x256xbf16, #tpu.memory_space<vmem>>, vector<1x176x256xbf16>
    %1 = vector.shape_cast %0 : vector<1x176x256xbf16> to vector<176x256xbf16>
    %c0_2 = arith.constant 0 : index
    %c0_3 = arith.constant 0 : index
    %2 = vector.load %arg2[%c0_2, %c0_3] : memref<256x128xbf16, #tpu.memory_space<vmem>>, vector<256x128xbf16>
    %cst = arith.constant dense<0.000000e+00> : vector<176x128xf32>
    %3 = tpu.matmul %1, %2, %cst {dimension_numbers = #tpu.dot_dimension_numbers<[1], [0], [0], [1], [0, 0, 1, 1], [], []>} : vector<176x256xbf16>, vector<256x128xbf16>, vector<176x128xf32> -> vector<176x128xf32>
    %c0_4 = arith.constant 0 : index
    %c0_5 = arith.constant 0 : index
    %4 = vector.load %arg3[%c0_4, %c0_5] : memref<1x128xf32, #tpu.memory_space<vmem>>, vector<1x128xf32>
    %5 = vector.broadcast %4 : vector<1x128xf32> to vector<176x128xf32>
    %6 = arith.addf %3, %5 : vector<176x128xf32>
    %cst_6 = arith.constant 0.000000e+00 : f32
    %7 = vector.broadcast %cst_6 : f32 to vector<176x128xf32>
    %8 = arith.maximumf %6, %7 : vector<176x128xf32>
    %9 = arith.truncf %8 : vector<176x128xf32> to vector<176x128xbf16>
    %c0_7 = arith.constant 0 : index
    %c0_8 = arith.constant 0 : index
    %10 = vector.load %arg13[%c0_7, %c0_8] : memref<176x128xbf16, #tpu.memory_space<vmem>>, vector<176x128xbf16>
    tpu.vector_store %arg13[%c0_7, %c0_8], %9 {strides = array<i32>} : memref<176x128xbf16, #tpu.memory_space<vmem>>, vector<176x128xbf16>,
    %cst_9 = arith.constant 0.000000e+00 : f32
    %11 = vector.broadcast %cst_9 : f32 to vector<144x64xf32>
    %c0_10 = arith.constant 0 : index
    %c0_11 = arith.constant 0 : index
    %12 = vector.load %arg13[%c0_10, %c0_11] : memref<176x128xbf16, #tpu.memory_space<vmem>>, vector<144x128xbf16>
    %c0_12 = arith.constant 0 : index
    %c0_13 = arith.constant 0 : index
    %13 = vector.load %arg4[%c0_12, %c0_13] : memref<512x64xbf16, #tpu.memory_space<vmem>>, vector<128x64xbf16>
    %cst_14 = arith.constant dense<0.000000e+00> : vector<144x64xf32>
    %14 = tpu.matmul %12, %13, %cst_14 {dimension_numbers = #tpu.dot_dimension_numbers<[1], [0], [0], [1], [0, 0, 1, 1], [], []>} : vector<144x128xbf16>, vector<128x64xbf16>, vector<144x64xf32> -> vector<144x64xf32>
    %15 = arith.addf %11, %14 : vector<144x64xf32>
    %c1 = arith.constant 1 : index
    %c0_15 = arith.constant 0 : index
    %16 = vector.load %arg13[%c1, %c0_15] : memref<176x128xbf16, #tpu.memory_space<vmem>>, vector<144x128xbf16>
    %c128 = arith.constant 128 : index
    %c0_16 = arith.constant 0 : index
    %17 = vector.load %arg4[%c128, %c0_16] : memref<512x64xbf16, #tpu.memory_space<vmem>>, vector<128x64xbf16>
    %cst_17 = arith.constant dense<0.000000e+00> : vector<144x64xf32>
    %18 = tpu.matmul %16, %17, %cst_17 {dimension_numbers = #tpu.dot_dimension_numbers<[1], [0], [0], [1], [0, 0, 1, 1], [], []>} : vector<144x128xbf16>, vector<128x64xbf16>, vector<144x64xf32> -> vector<144x64xf32>
    %19 = arith.addf %15, %18 : vector<144x64xf32>
    %c16 = arith.constant 16 : index
    %c0_18 = arith.constant 0 : index
    %20 = vector.load %arg13[%c16, %c0_18] : memref<176x128xbf16, #tpu.memory_space<vmem>>, vector<144x128xbf16>
    %c256 = arith.constant 256 : index
    %c0_19 = arith.constant 0 : index
    %21 = vector.load %arg4[%c256, %c0_19] : memref<512x64xbf16, #tpu.memory_space<vmem>>, vector<128x64xbf16>
    %cst_20 = arith.constant dense<0.000000e+00> : vector<144x64xf32>
    %22 = tpu.matmul %20, %21, %cst_20 {dimension_numbers = #tpu.dot_dimension_numbers<[1], [0], [0], [1], [0, 0, 1, 1], [], []>} : vector<144x128xbf16>, vector<128x64xbf16>, vector<144x64xf32> -> vector<144x64xf32>
    %23 = arith.addf %19, %22 : vector<144x64xf32>
    %c17 = arith.constant 17 : index
    %c0_21 = arith.constant 0 : index
    %24 = vector.load %arg13[%c17, %c0_21] : memref<176x128xbf16, #tpu.memory_space<vmem>>, vector<144x128xbf16>
    %c384 = arith.constant 384 : index
    %c0_22 = arith.constant 0 : index
    %25 = vector.load %arg4[%c384, %c0_22] : memref<512x64xbf16, #tpu.memory_space<vmem>>, vector<128x64xbf16>
    %cst_23 = arith.constant dense<0.000000e+00> : vector<144x64xf32>
    %26 = tpu.matmul %24, %25, %cst_23 {dimension_numbers = #tpu.dot_dimension_numbers<[1], [0], [0], [1], [0, 0, 1, 1], [], []>} : vector<144x128xbf16>, vector<128x64xbf16>, vector<144x64xf32> -> vector<144x64xf32>
    %27 = arith.addf %23, %26 : vector<144x64xf32>
    %c0_24 = arith.constant 0 : index
    %c0_25 = arith.constant 0 : index
    %28 = vector.load %arg5[%c0_24, %c0_25] : memref<1x64xf32, #tpu.memory_space<vmem>>, vector<1x64xf32>
    %29 = vector.broadcast %28 : vector<1x64xf32> to vector<144x64xf32>
    %30 = arith.addf %27, %29 : vector<144x64xf32>
    %cst_26 = arith.constant 0.000000e+00 : f32
    %31 = vector.broadcast %cst_26 : f32 to vector<144x64xf32>
    %32 = arith.maximumf %30, %31 : vector<144x64xf32>
    %33 = arith.truncf %32 : vector<144x64xf32> to vector<144x64xbf16>
    %c0_27 = arith.constant 0 : index
    %c0_28 = arith.constant 0 : index
    %34 = vector.load %arg14[%c0_27, %c0_28] : memref<144x64xbf16, #tpu.memory_space<vmem>>, vector<144x64xbf16>
    tpu.vector_store %arg14[%c0_27, %c0_28], %33 {strides = array<i32>} : memref<144x64xbf16, #tpu.memory_space<vmem>>, vector<144x64xbf16>,
    %cst_29 = arith.constant 0.000000e+00 : f32
    %35 = vector.broadcast %cst_29 : f32 to vector<104x64xf32>
    %c0_30 = arith.constant 0 : index
    %c0_31 = arith.constant 0 : index
    %36 = vector.load %arg14[%c0_30, %c0_31] : memref<144x64xbf16, #tpu.memory_space<vmem>>, vector<104x64xbf16>
    %c0_32 = arith.constant 0 : index
    %c0_33 = arith.constant 0 : index
    %37 = vector.load %arg6[%c0_32, %c0_33] : memref<576x64xbf16, #tpu.memory_space<vmem>>, vector<64x64xbf16>
    %cst_34 = arith.constant dense<0.000000e+00> : vector<104x64xf32>
    %38 = tpu.matmul %36, %37, %cst_34 {dimension_numbers = #tpu.dot_dimension_numbers<[1], [0], [0], [1], [0, 0, 1, 1], [], []>} : vector<104x64xbf16>, vector<64x64xbf16>, vector<104x64xf32> -> vector<104x64xf32>
    %39 = arith.addf %35, %38 : vector<104x64xf32>
    %c1_35 = arith.constant 1 : index
    %c0_36 = arith.constant 0 : index
    %40 = vector.load %arg14[%c1_35, %c0_36] : memref<144x64xbf16, #tpu.memory_space<vmem>>, vector<104x64xbf16>
    %c64 = arith.constant 64 : index
    %c0_37 = arith.constant 0 : index
    %41 = vector.load %arg6[%c64, %c0_37] : memref<576x64xbf16, #tpu.memory_space<vmem>>, vector<64x64xbf16>
    %cst_38 = arith.constant dense<0.000000e+00> : vector<104x64xf32>
    %42 = tpu.matmul %40, %41, %cst_38 {dimension_numbers = #tpu.dot_dimension_numbers<[1], [0], [0], [1], [0, 0, 1, 1], [], []>} : vector<104x64xbf16>, vector<64x64xbf16>, vector<104x64xf32> -> vector<104x64xf32>
    %43 = arith.addf %39, %42 : vector<104x64xf32>
    %c2 = arith.constant 2 : index
    %c0_39 = arith.constant 0 : index
    %44 = vector.load %arg14[%c2, %c0_39] : memref<144x64xbf16, #tpu.memory_space<vmem>>, vector<104x64xbf16>
    %c128_40 = arith.constant 128 : index
    %c0_41 = arith.constant 0 : index
    %45 = vector.load %arg6[%c128_40, %c0_41] : memref<576x64xbf16, #tpu.memory_space<vmem>>, vector<64x64xbf16>
    %cst_42 = arith.constant dense<0.000000e+00> : vector<104x64xf32>
    %46 = tpu.matmul %44, %45, %cst_42 {dimension_numbers = #tpu.dot_dimension_numbers<[1], [0], [0], [1], [0, 0, 1, 1], [], []>} : vector<104x64xbf16>, vector<64x64xbf16>, vector<104x64xf32> -> vector<104x64xf32>
    %47 = arith.addf %43, %46 : vector<104x64xf32>
    %c16_43 = arith.constant 16 : index
    %c0_44 = arith.constant 0 : index
    %48 = vector.load %arg14[%c16_43, %c0_44] : memref<144x64xbf16, #tpu.memory_space<vmem>>, vector<104x64xbf16>
    %c192 = arith.constant 192 : index
    %c0_45 = arith.constant 0 : index
    %49 = vector.load %arg6[%c192, %c0_45] : memref<576x64xbf16, #tpu.memory_space<vmem>>, vector<64x64xbf16>
    %cst_46 = arith.constant dense<0.000000e+00> : vector<104x64xf32>
    %50 = tpu.matmul %48, %49, %cst_46 {dimension_numbers = #tpu.dot_dimension_numbers<[1], [0], [0], [1], [0, 0, 1, 1], [], []>} : vector<104x64xbf16>, vector<64x64xbf16>, vector<104x64xf32> -> vector<104x64xf32>
    %51 = arith.addf %47, %50 : vector<104x64xf32>
    %c17_47 = arith.constant 17 : index
    %c0_48 = arith.constant 0 : index
    %52 = vector.load %arg14[%c17_47, %c0_48] : memref<144x64xbf16, #tpu.memory_space<vmem>>, vector<104x64xbf16>
    %c256_49 = arith.constant 256 : index
    %c0_50 = arith.constant 0 : index
    %53 = vector.load %arg6[%c256_49, %c0_50] : memref<576x64xbf16, #tpu.memory_space<vmem>>, vector<64x64xbf16>
    %cst_51 = arith.constant dense<0.000000e+00> : vector<104x64xf32>
    %54 = tpu.matmul %52, %53, %cst_51 {dimension_numbers = #tpu.dot_dimension_numbers<[1], [0], [0], [1], [0, 0, 1, 1], [], []>} : vector<104x64xbf16>, vector<64x64xbf16>, vector<104x64xf32> -> vector<104x64xf32>
    %55 = arith.addf %51, %54 : vector<104x64xf32>
    %c18 = arith.constant 18 : index
    %c0_52 = arith.constant 0 : index
    %56 = vector.load %arg14[%c18, %c0_52] : memref<144x64xbf16, #tpu.memory_space<vmem>>, vector<104x64xbf16>
    %c320 = arith.constant 320 : index
    %c0_53 = arith.constant 0 : index
    %57 = vector.load %arg6[%c320, %c0_53] : memref<576x64xbf16, #tpu.memory_space<vmem>>, vector<64x64xbf16>
    %cst_54 = arith.constant dense<0.000000e+00> : vector<104x64xf32>
    %58 = tpu.matmul %56, %57, %cst_54 {dimension_numbers = #tpu.dot_dimension_numbers<[1], [0], [0], [1], [0, 0, 1, 1], [], []>} : vector<104x64xbf16>, vector<64x64xbf16>, vector<104x64xf32> -> vector<104x64xf32>
    %59 = arith.addf %55, %58 : vector<104x64xf32>
    %c32 = arith.constant 32 : index
    %c0_55 = arith.constant 0 : index
    %60 = vector.load %arg14[%c32, %c0_55] : memref<144x64xbf16, #tpu.memory_space<vmem>>, vector<104x64xbf16>
    %c384_56 = arith.constant 384 : index
    %c0_57 = arith.constant 0 : index
    %61 = vector.load %arg6[%c384_56, %c0_57] : memref<576x64xbf16, #tpu.memory_space<vmem>>, vector<64x64xbf16>
    %cst_58 = arith.constant dense<0.000000e+00> : vector<104x64xf32>
    %62 = tpu.matmul %60, %61, %cst_58 {dimension_numbers = #tpu.dot_dimension_numbers<[1], [0], [0], [1], [0, 0, 1, 1], [], []>} : vector<104x64xbf16>, vector<64x64xbf16>, vector<104x64xf32> -> vector<104x64xf32>
    %63 = arith.addf %59, %62 : vector<104x64xf32>
    %c33 = arith.constant 33 : index
    %c0_59 = arith.constant 0 : index
    %64 = vector.load %arg14[%c33, %c0_59] : memref<144x64xbf16, #tpu.memory_space<vmem>>, vector<104x64xbf16>
    %c448 = arith.constant 448 : index
    %c0_60 = arith.constant 0 : index
    %65 = vector.load %arg6[%c448, %c0_60] : memref<576x64xbf16, #tpu.memory_space<vmem>>, vector<64x64xbf16>
    %cst_61 = arith.constant dense<0.000000e+00> : vector<104x64xf32>
    %66 = tpu.matmul %64, %65, %cst_61 {dimension_numbers = #tpu.dot_dimension_numbers<[1], [0], [0], [1], [0, 0, 1, 1], [], []>} : vector<104x64xbf16>, vector<64x64xbf16>, vector<104x64xf32> -> vector<104x64xf32>
    %67 = arith.addf %63, %66 : vector<104x64xf32>
    %c34 = arith.constant 34 : index
    %c0_62 = arith.constant 0 : index
    %68 = vector.load %arg14[%c34, %c0_62] : memref<144x64xbf16, #tpu.memory_space<vmem>>, vector<104x64xbf16>
    %c512 = arith.constant 512 : index
    %c0_63 = arith.constant 0 : index
    %69 = vector.load %arg6[%c512, %c0_63] : memref<576x64xbf16, #tpu.memory_space<vmem>>, vector<64x64xbf16>
    %cst_64 = arith.constant dense<0.000000e+00> : vector<104x64xf32>
    %70 = tpu.matmul %68, %69, %cst_64 {dimension_numbers = #tpu.dot_dimension_numbers<[1], [0], [0], [1], [0, 0, 1, 1], [], []>} : vector<104x64xbf16>, vector<64x64xbf16>, vector<104x64xf32> -> vector<104x64xf32>
    %71 = arith.addf %67, %70 : vector<104x64xf32>
    %c0_65 = arith.constant 0 : index
    %c0_66 = arith.constant 0 : index
    %72 = vector.load %arg7[%c0_65, %c0_66] : memref<1x64xf32, #tpu.memory_space<vmem>>, vector<1x64xf32>
    %73 = vector.broadcast %72 : vector<1x64xf32> to vector<104x64xf32>
    %74 = arith.addf %71, %73 : vector<104x64xf32>
    %cst_67 = arith.constant 0.000000e+00 : f32
    %75 = vector.broadcast %cst_67 : f32 to vector<104x64xf32>
    %76 = arith.maximumf %74, %75 : vector<104x64xf32>
    %77 = arith.truncf %76 : vector<104x64xf32> to vector<104x64xbf16>
    %c0_68 = arith.constant 0 : index
    %c0_69 = arith.constant 0 : index
    %78 = vector.load %arg15[%c0_68, %c0_69] : memref<104x64xbf16, #tpu.memory_space<vmem>>, vector<104x64xbf16>
    tpu.vector_store %arg15[%c0_68, %c0_69], %77 {strides = array<i32>} : memref<104x64xbf16, #tpu.memory_space<vmem>>, vector<104x64xbf16>,
    %cst_70 = arith.constant 0.000000e+00 : bf16
    %79 = vector.broadcast %cst_70 : bf16 to vector<8x512xbf16>
    %c0_71 = arith.constant 0 : index
    %c0_72 = arith.constant 0 : index
    %80 = vector.load %arg16[%c0_71, %c0_72] : memref<8x512xbf16, #tpu.memory_space<vmem>>, vector<8x512xbf16>
    tpu.vector_store %arg16[%c0_71, %c0_72], %79 {strides = array<i32>} : memref<8x512xbf16, #tpu.memory_space<vmem>>, vector<8x512xbf16>,
    %c0_73 = arith.constant 0 : index
    %c0_74 = arith.constant 0 : index
    %81 = vector.load %arg15[%c0_73, %c0_74] : memref<104x64xbf16, #tpu.memory_space<vmem>>, vector<8x64xbf16>
    %c0_75 = arith.constant 0 : index
    %c0_76 = arith.constant 0 : index
    %82 = vector.load %arg16[%c0_75, %c0_76] : memref<8x512xbf16, #tpu.memory_space<vmem>>, vector<8x64xbf16>
    tpu.vector_store %arg16[%c0_75, %c0_76], %81 {strides = array<i32>} : memref<8x512xbf16, #tpu.memory_space<vmem>>, vector<8x64xbf16>,
    %c16_77 = arith.constant 16 : index
    %c0_78 = arith.constant 0 : index
    %83 = vector.load %arg15[%c16_77, %c0_78] : memref<104x64xbf16, #tpu.memory_space<vmem>>, vector<8x64xbf16>
    %c0_79 = arith.constant 0 : index
    %c64_80 = arith.constant 64 : index
    %84 = vector.load %arg16[%c0_79, %c64_80] : memref<8x512xbf16, #tpu.memory_space<vmem>>, vector<8x64xbf16>
    tpu.vector_store %arg16[%c0_79, %c64_80], %83 {strides = array<i32>} : memref<8x512xbf16, #tpu.memory_space<vmem>>, vector<8x64xbf16>,
    %c32_81 = arith.constant 32 : index
    %c0_82 = arith.constant 0 : index
    %85 = vector.load %arg15[%c32_81, %c0_82] : memref<104x64xbf16, #tpu.memory_space<vmem>>, vector<8x64xbf16>
    %c0_83 = arith.constant 0 : index
    %c128_84 = arith.constant 128 : index
    %86 = vector.load %arg16[%c0_83, %c128_84] : memref<8x512xbf16, #tpu.memory_space<vmem>>, vector<8x64xbf16>
    tpu.vector_store %arg16[%c0_83, %c128_84], %85 {strides = array<i32>} : memref<8x512xbf16, #tpu.memory_space<vmem>>, vector<8x64xbf16>,
    %c48 = arith.constant 48 : index
    %c0_85 = arith.constant 0 : index
    %87 = vector.load %arg15[%c48, %c0_85] : memref<104x64xbf16, #tpu.memory_space<vmem>>, vector<8x64xbf16>
    %c0_86 = arith.constant 0 : index
    %c192_87 = arith.constant 192 : index
    %88 = vector.load %arg16[%c0_86, %c192_87] : memref<8x512xbf16, #tpu.memory_space<vmem>>, vector<8x64xbf16>
    tpu.vector_store %arg16[%c0_86, %c192_87], %87 {strides = array<i32>} : memref<8x512xbf16, #tpu.memory_space<vmem>>, vector<8x64xbf16>,
    %c64_88 = arith.constant 64 : index
    %c0_89 = arith.constant 0 : index
    %89 = vector.load %arg15[%c64_88, %c0_89] : memref<104x64xbf16, #tpu.memory_space<vmem>>, vector<8x64xbf16>
    %c0_90 = arith.constant 0 : index
    %c256_91 = arith.constant 256 : index
    %90 = vector.load %arg16[%c0_90, %c256_91] : memref<8x512xbf16, #tpu.memory_space<vmem>>, vector<8x64xbf16>
    tpu.vector_store %arg16[%c0_90, %c256_91], %89 {strides = array<i32>} : memref<8x512xbf16, #tpu.memory_space<vmem>>, vector<8x64xbf16>,
    %c80 = arith.constant 80 : index
    %c0_92 = arith.constant 0 : index
    %91 = vector.load %arg15[%c80, %c0_92] : memref<104x64xbf16, #tpu.memory_space<vmem>>, vector<8x64xbf16>
    %c0_93 = arith.constant 0 : index
    %c320_94 = arith.constant 320 : index
    %92 = vector.load %arg16[%c0_93, %c320_94] : memref<8x512xbf16, #tpu.memory_space<vmem>>, vector<8x64xbf16>
    tpu.vector_store %arg16[%c0_93, %c320_94], %91 {strides = array<i32>} : memref<8x512xbf16, #tpu.memory_space<vmem>>, vector<8x64xbf16>,
    %c96 = arith.constant 96 : index
    %c0_95 = arith.constant 0 : index
    %93 = vector.load %arg15[%c96, %c0_95] : memref<104x64xbf16, #tpu.memory_space<vmem>>, vector<8x64xbf16>
    %c0_96 = arith.constant 0 : index
    %c384_97 = arith.constant 384 : index
    %94 = vector.load %arg16[%c0_96, %c384_97] : memref<8x512xbf16, #tpu.memory_space<vmem>>, vector<8x64xbf16>
    tpu.vector_store %arg16[%c0_96, %c384_97], %93 {strides = array<i32>} : memref<8x512xbf16, #tpu.memory_space<vmem>>, vector<8x64xbf16>,
    %cst_98 = arith.constant 0.000000e+00 : f32
    %95 = vector.broadcast %cst_98 : f32 to vector<1x512xf32>
    %c0_99 = arith.constant 0 : index
    %c0_100 = arith.constant 0 : index
    %96 = vector.load %arg16[%c0_99, %c0_100] : memref<8x512xbf16, #tpu.memory_space<vmem>>, vector<1x512xbf16>
    %c0_101 = arith.constant 0 : index
    %c0_102 = arith.constant 0 : index
    %97 = vector.load %arg8[%c0_101, %c0_102] : memref<3584x512xbf16, #tpu.memory_space<vmem>>, vector<512x512xbf16>
    %cst_103 = arith.constant dense<0.000000e+00> : vector<1x512xf32>
    %98 = tpu.matmul %96, %97, %cst_103 {dimension_numbers = #tpu.dot_dimension_numbers<[1], [0], [0], [1], [0, 0, 1, 1], [], []>} : vector<1x512xbf16>, vector<512x512xbf16>, vector<1x512xf32> -> vector<1x512xf32>
    %99 = arith.addf %95, %98 : vector<1x512xf32>
    %c1_104 = arith.constant 1 : index
    %c0_105 = arith.constant 0 : index
    %100 = vector.load %arg16[%c1_104, %c0_105] : memref<8x512xbf16, #tpu.memory_space<vmem>>, vector<1x512xbf16>
    %c512_106 = arith.constant 512 : index
    %c0_107 = arith.constant 0 : index
    %101 = vector.load %arg8[%c512_106, %c0_107] : memref<3584x512xbf16, #tpu.memory_space<vmem>>, vector<512x512xbf16>
    %cst_108 = arith.constant dense<0.000000e+00> : vector<1x512xf32>
    %102 = tpu.matmul %100, %101, %cst_108 {dimension_numbers = #tpu.dot_dimension_numbers<[1], [0], [0], [1], [0, 0, 1, 1], [], []>} : vector<1x512xbf16>, vector<512x512xbf16>, vector<1x512xf32> -> vector<1x512xf32>
    %103 = arith.addf %99, %102 : vector<1x512xf32>
    %c2_109 = arith.constant 2 : index
    %c0_110 = arith.constant 0 : index
    %104 = vector.load %arg16[%c2_109, %c0_110] : memref<8x512xbf16, #tpu.memory_space<vmem>>, vector<1x512xbf16>
    %c1024 = arith.constant 1024 : index
    %c0_111 = arith.constant 0 : index
    %105 = vector.load %arg8[%c1024, %c0_111] : memref<3584x512xbf16, #tpu.memory_space<vmem>>, vector<512x512xbf16>
    %cst_112 = arith.constant dense<0.000000e+00> : vector<1x512xf32>
    %106 = tpu.matmul %104, %105, %cst_112 {dimension_numbers = #tpu.dot_dimension_numbers<[1], [0], [0], [1], [0, 0, 1, 1], [], []>} : vector<1x512xbf16>, vector<512x512xbf16>, vector<1x512xf32> -> vector<1x512xf32>
    %107 = arith.addf %103, %106 : vector<1x512xf32>
    %c3 = arith.constant 3 : index
    %c0_113 = arith.constant 0 : index
    %108 = vector.load %arg16[%c3, %c0_113] : memref<8x512xbf16, #tpu.memory_space<vmem>>, vector<1x512xbf16>
    %c1536 = arith.constant 1536 : index
    %c0_114 = arith.constant 0 : index
    %109 = vector.load %arg8[%c1536, %c0_114] : memref<3584x512xbf16, #tpu.memory_space<vmem>>, vector<512x512xbf16>
    %cst_115 = arith.constant dense<0.000000e+00> : vector<1x512xf32>
    %110 = tpu.matmul %108, %109, %cst_115 {dimension_numbers = #tpu.dot_dimension_numbers<[1], [0], [0], [1], [0, 0, 1, 1], [], []>} : vector<1x512xbf16>, vector<512x512xbf16>, vector<1x512xf32> -> vector<1x512xf32>
    %111 = arith.addf %107, %110 : vector<1x512xf32>
    %c4 = arith.constant 4 : index
    %c0_116 = arith.constant 0 : index
    %112 = vector.load %arg16[%c4, %c0_116] : memref<8x512xbf16, #tpu.memory_space<vmem>>, vector<1x512xbf16>
    %c2048 = arith.constant 2048 : index
    %c0_117 = arith.constant 0 : index
    %113 = vector.load %arg8[%c2048, %c0_117] : memref<3584x512xbf16, #tpu.memory_space<vmem>>, vector<512x512xbf16>
    %cst_118 = arith.constant dense<0.000000e+00> : vector<1x512xf32>
    %114 = tpu.matmul %112, %113, %cst_118 {dimension_numbers = #tpu.dot_dimension_numbers<[1], [0], [0], [1], [0, 0, 1, 1], [], []>} : vector<1x512xbf16>, vector<512x512xbf16>, vector<1x512xf32> -> vector<1x512xf32>
    %115 = arith.addf %111, %114 : vector<1x512xf32>
    %c5 = arith.constant 5 : index
    %c0_119 = arith.constant 0 : index
    %116 = vector.load %arg16[%c5, %c0_119] : memref<8x512xbf16, #tpu.memory_space<vmem>>, vector<1x512xbf16>
    %c2560 = arith.constant 2560 : index
    %c0_120 = arith.constant 0 : index
    %117 = vector.load %arg8[%c2560, %c0_120] : memref<3584x512xbf16, #tpu.memory_space<vmem>>, vector<512x512xbf16>
    %cst_121 = arith.constant dense<0.000000e+00> : vector<1x512xf32>
    %118 = tpu.matmul %116, %117, %cst_121 {dimension_numbers = #tpu.dot_dimension_numbers<[1], [0], [0], [1], [0, 0, 1, 1], [], []>} : vector<1x512xbf16>, vector<512x512xbf16>, vector<1x512xf32> -> vector<1x512xf32>
    %119 = arith.addf %115, %118 : vector<1x512xf32>
    %c6 = arith.constant 6 : index
    %c0_122 = arith.constant 0 : index
    %120 = vector.load %arg16[%c6, %c0_122] : memref<8x512xbf16, #tpu.memory_space<vmem>>, vector<1x512xbf16>
    %c3072 = arith.constant 3072 : index
    %c0_123 = arith.constant 0 : index
    %121 = vector.load %arg8[%c3072, %c0_123] : memref<3584x512xbf16, #tpu.memory_space<vmem>>, vector<512x512xbf16>
    %cst_124 = arith.constant dense<0.000000e+00> : vector<1x512xf32>
    %122 = tpu.matmul %120, %121, %cst_124 {dimension_numbers = #tpu.dot_dimension_numbers<[1], [0], [0], [1], [0, 0, 1, 1], [], []>} : vector<1x512xbf16>, vector<512x512xbf16>, vector<1x512xf32> -> vector<1x512xf32>
    %123 = arith.addf %119, %122 : vector<1x512xf32>
    %c0_125 = arith.constant 0 : index
    %c0_126 = arith.constant 0 : index
    %124 = vector.load %arg9[%c0_125, %c0_126] : memref<1x512xf32, #tpu.memory_space<vmem>>, vector<1x512xf32>
    %125 = arith.addf %123, %124 : vector<1x512xf32>
    %cst_127 = arith.constant 0.000000e+00 : f32
    %126 = vector.broadcast %cst_127 : f32 to vector<1x512xf32>
    %127 = arith.maximumf %125, %126 : vector<1x512xf32>
    %128 = arith.truncf %127 : vector<1x512xf32> to vector<1x512xbf16>
    %c0_128 = arith.constant 0 : index
    %c0_129 = arith.constant 0 : index
    %129 = vector.load %arg10[%c0_128, %c0_129] : memref<512x128xbf16, #tpu.memory_space<vmem>>, vector<512x128xbf16>
    %cst_130 = arith.constant dense<0.000000e+00> : vector<1x128xf32>
    %130 = tpu.matmul %128, %129, %cst_130 {dimension_numbers = #tpu.dot_dimension_numbers<[1], [0], [0], [1], [0, 0, 1, 1], [], []>} : vector<1x512xbf16>, vector<512x128xbf16>, vector<1x128xf32> -> vector<1x128xf32>
    %c0_131 = arith.constant 0 : index
    %c0_132 = arith.constant 0 : index
    %131 = vector.load %arg11[%c0_131, %c0_132] : memref<1x128xf32, #tpu.memory_space<vmem>>, vector<1x128xf32>
    %132 = arith.addf %130, %131 : vector<1x128xf32>
    %133 = vector.shape_cast %132 : vector<1x128xf32> to vector<1x128xf32>
    %134 = vector.broadcast %133 : vector<1x128xf32> to vector<8x128xf32>
    %c0_133 = arith.constant 0 : index
    %c0_134 = arith.constant 0 : index
    %c0_135 = arith.constant 0 : index
    %135 = vector.load %arg12[%c0_133, %c0_134, %c0_135] : memref<1x8x128xf32, #tpu.memory_space<vmem>>, vector<1x8x128xf32>
    %136 = vector.shape_cast %135 : vector<1x8x128xf32> to vector<8x128xf32>
    %137 = vector.shape_cast %134 : vector<8x128xf32> to vector<1x8x128xf32>
    tpu.vector_store %arg12[%c0_133, %c0_134, %c0_135], %137 {strides = array<i32>} : memref<1x8x128xf32, #tpu.memory_space<vmem>>, vector<1x8x128xf32>,
    return
  }
  func.func @transform_0(%arg0: i32) -> (i32, i32, i32) {
    %c0_i32 = arith.constant 0 : i32
    %c0_i32_0 = arith.constant 0 : i32
    %c0_i32_1 = arith.constant 0 : i32
    return %arg0, %c0_i32, %c0_i32_0 : i32, i32, i32
  }
  func.func @transform_1(%arg0: i32) -> (i32, i32) {
    %c0_i32 = arith.constant 0 : i32
    %c0_i32_0 = arith.constant 0 : i32
    %c0_i32_1 = arith.constant 0 : i32
    return %c0_i32, %c0_i32_0 : i32, i32
  }
  func.func @transform_2(%arg0: i32) -> (i32, i32) {
    %c0_i32 = arith.constant 0 : i32
    %c0_i32_0 = arith.constant 0 : i32
    %c0_i32_1 = arith.constant 0 : i32
    return %c0_i32, %c0_i32_0 : i32, i32
  }
  func.func @transform_3(%arg0: i32) -> (i32, i32) {
    %c0_i32 = arith.constant 0 : i32
    %c0_i32_0 = arith.constant 0 : i32
    %c0_i32_1 = arith.constant 0 : i32
    return %c0_i32, %c0_i32_0 : i32, i32
  }
  func.func @transform_4(%arg0: i32) -> (i32, i32) {
    %c0_i32 = arith.constant 0 : i32
    %c0_i32_0 = arith.constant 0 : i32
    %c0_i32_1 = arith.constant 0 : i32
    return %c0_i32, %c0_i32_0 : i32, i32
  }
  func.func @transform_5(%arg0: i32) -> (i32, i32) {
    %c0_i32 = arith.constant 0 : i32
    %c0_i32_0 = arith.constant 0 : i32
    %c0_i32_1 = arith.constant 0 : i32
    return %c0_i32, %c0_i32_0 : i32, i32
  }
  func.func @transform_6(%arg0: i32) -> (i32, i32) {
    %c0_i32 = arith.constant 0 : i32
    %c0_i32_0 = arith.constant 0 : i32
    %c0_i32_1 = arith.constant 0 : i32
    return %c0_i32, %c0_i32_0 : i32, i32
  }
  func.func @transform_7(%arg0: i32) -> (i32, i32) {
    %c0_i32 = arith.constant 0 : i32
    %c0_i32_0 = arith.constant 0 : i32
    %c0_i32_1 = arith.constant 0 : i32
    return %c0_i32, %c0_i32_0 : i32, i32
  }
  func.func @transform_8(%arg0: i32) -> (i32, i32) {
    %c0_i32 = arith.constant 0 : i32
    %c0_i32_0 = arith.constant 0 : i32
    %c0_i32_1 = arith.constant 0 : i32
    return %c0_i32, %c0_i32_0 : i32, i32
  }
  func.func @transform_9(%arg0: i32) -> (i32, i32) {
    %c0_i32 = arith.constant 0 : i32
    %c0_i32_0 = arith.constant 0 : i32
    %c0_i32_1 = arith.constant 0 : i32
    return %c0_i32, %c0_i32_0 : i32, i32
  }
  func.func @transform_10(%arg0: i32) -> (i32, i32) {
    %c0_i32 = arith.constant 0 : i32
    %c0_i32_0 = arith.constant 0 : i32
    %c0_i32_1 = arith.constant 0 : i32
    return %c0_i32, %c0_i32_0 : i32, i32
  }
  func.func @transform_11(%arg0: i32) -> (i32, i32, i32) {
    %c0_i32 = arith.constant 0 : i32
    %c0_i32_0 = arith.constant 0 : i32
    %c0_i32_1 = arith.constant 0 : i32
    return %arg0, %c0_i32, %c0_i32_0 : i32, i32, i32
  }
}

</mosaic_0001>

<bundles_post_ra>
// kernel: dqn_forward.1
= control target key start
LH: loop header
LB: loop body
LE: loop exit
PB: predicated region body
PF: predicated region fallthrough
CT: control target
= control target key end

     0   :  { %s15034_s17 = smov 0   ;;  %s19330_s0 = inlined_call_operand.vmem [shape: bf16[2,176,256], index: 0, kind: input, shape index: {}]   ;;  %s19331_s1 = inlined_call_operand.vmem [shape: bf16[256,128], index: 1, kind: input, shape index: {}]   ;;  %s19332_s2 = inlined_call_operand.vmem [shape: f32[1,128], index: 2, kind: input, shape index: {}]   ;;  %s19333_s3 = inlined_call_operand.vmem [shape: bf16[512,64], index: 3, kind: input, shape index: {}]   ;;  %s19334_s4 = inlined_call_operand.vmem [shape: f32[1,64], index: 4, kind: input, shape index: {}]   ;;  %s19335_s5 = inlined_call_operand.vmem [shape: bf16[576,64], index: 5, kind: input, shape index: {}]   ;;  %s19336_s6 = inlined_call_operand.vmem [shape: f32[1,64], index: 6, kind: input, shape index: {}]   ;;  %s19337_s7 = inlined_call_operand.vmem [shape: bf16[3584,512], index: 7, kind: input, shape index: {}]   ;;  %s19338_s8 = inlined_call_operand.vmem [shape: f32[1,512], index: 8, kind: input, shape index: {}]   ;;  %s19339_s9 = inlined_call_operand.vmem [shape: bf16[512,128], index: 9, kind: input, shape index: {}]   ;;  %s19340_s10 = inlined_call_operand.vmem [shape: f32[1,128], index: 10, kind: input, shape index: {}]   ;;  %s19341_s11 = inlined_call_operand.vmem [shape: f32[2,8,128], index: 11, kind: output, shape index: {}]  }
   0x1 LB: > { %s11183_s18 = sadd.s32 4294967295, %s14968_s17   ;;  %p11187_p0 = scmp.ge.s32.totalorder %s14968_s17, 1  ;;  %s14968_s17 = sphi %s15034_s17, %s21_s17  }
   0x2   : > { %p337_p1 = scmp.lt.s32.totalorder %s14968_s17, 3 }
   0x4   : > { %p338_p2 = pnand %p11187_p0, %p337_p1 }
   0x6   : > { %341 = sbr.rel (%p338_p2) target bundleno = 2488 (0x9b8), region = 64 }
   0xb   : > { %v13385_v0 = vld [vmem:[%s19331_s1 + $0x78] sm:$0xff]   ;;  %v13387_v2 = vld [vmem:[%s19331_s1 + $0x70] sm:$0xff]   ;;  %p376_p3 = scmp.lt.s32.totalorder %s11183_s18, 1  ;;  %v13389_v4 = vld [vmem:[%s19331_s1 + $0x68] sm:$0xff]   ;;  %v19342_v36 = vmov 0.0   ;;  %vm14971_vm0 = vmmov 0  }
   0xc   : > { %v13386_v1 = vld [vmem:[%s19331_s1 + $0x38] sm:$0xff]   ;;  %12547 = vmatprep.subr.bf16.mxu0 %v13385_v0  ;;  %v13388_v3 = vld [vmem:[%s19331_s1 + $0x30] sm:$0xff]   ;;  %v13390_v5 = vld [vmem:[%s19331_s1 + $0x28] sm:$0xff]   ;;  %12840 = vmatprep.subr.bf16.mxu1 %v19342_v36  ;;  %vm1005_vm1 = vsmask.f32 7424  ;;  %vm2119_vm2 = vcmask 519168  }
   0xd   : > { %12548 = vmatpush3.bf16.msra.mxu0 %v13386_v1  ;;  %s19350_s18 = smov (!%p376_p3, %s11183_s18), 1  ;;  %v13391_v6 = vld [vmem:[%s19331_s1 + $0x60] sm:$0xff]   ;;  %v13393_v8 = vld [vmem:[%s19331_s1 + $0x58] sm:$0xff]   ;;  %v13395_v10 = vld [vmem:[%s19331_s1 + $0x50] sm:$0xff]   ;;  %12856 = vmatprep.mubr.msk.bf16.mxu1 %vm14971_vm0, %v19342_v36  ;;  %vm2532_vm3 = vcmask 1046528   ;;  %vm2282_vm4 = vcmask 523264  }
   0xe   : > { %12549 = vmatprep.subr.bf16.mxu0 %v13387_v2  ;;  %s13372_s14 = smul.u32 176, %s19350_s18  ;;  %v13392_v7 = vld [vmem:[%s19331_s1 + $0x20] sm:$0xff]   ;;  %v13394_v9 = vld [vmem:[%s19331_s1 + $0x18] sm:$0xff]   ;;  %v13396_v12 = vld [vmem:[%s19331_s1 + $0x10] sm:$0xff]   ;;  %s14973_s12 = smov 64   ;;  %vm4058_vm5 = vcmask 1043968  }
   0xf   : > { %v13397_v13 = vld [vmem:[%s19331_s1 + $0x48] sm:$0xff]   ;;  %v13399_v15 = vld [vmem:[%s19331_s1 + $0x40] sm:$0xff]   ;;  %v13434_v35 = vld [vmem:[%s19333_s3 + $0xb8] sm:$0xff]   ;;  %s11189_s20 = sshll.u32 %s19350_s18, 3 }
  0x10   : > { %s15075_s23 = scalar_lea.vmem %s19330_s0, %s13372_s14  ;;  %v13398_v14 = vld [vmem:[%s19331_s1 + $0x8] sm:$0xff]   ;;  %v13400_v16 = vld [vmem:[%s19331_s1] sm:$0xff]   ;;  %v13436_v39 = vld [vmem:[%s19333_s3 + $0xb0] sm:$0xff]   ;;  %s384_s24 = scalar_lea.vmem %s19341_s11, %s11189_s20 }
  0x11   : > { %12550 = vmatpush3.bf16.msra.mxu0 %v13388_v3  ;;  %v13403_v11 = vld [vmem:[%s15075_s23 + $0x4] ss:$8 sps:$4 sm:$0xff]   ;;  %v13401_v17 = vld [vmem:[%s15075_s23] ss:$8 sps:$4 sm:$0xff]   ;;  %v13404_v18 = vld [vmem:[%s15075_s23 + $0x14] ss:$8 sps:$4 sm:$0xff]  }
  0x12   : > { %12551 = vmatprep.subr.bf16.mxu0 %v13389_v4  ;;  %685 = vmatprep.mubr.bf16.mxu0 %v13403_v11  ;;  %v13406_v19 = vld [vmem:[%s15075_s23 + $0x10] ss:$8 sps:$4 sm:$0xff]   ;;  %v13407_v20 = vld [vmem:[%s15075_s23 + $0x24] ss:$8 sps:$4 sm:$0xff]   ;;  %v13409_v21 = vld [vmem:[%s15075_s23 + $0x20] ss:$8 sps:$4 sm:$0xff]  }
  0x13   : > { %v13410_v22 = vld [vmem:[%s15075_s23 + $0x34] ss:$8 sps:$4 sm:$0xff]   ;;  %v13412_v23 = vld [vmem:[%s15075_s23 + $0x30] ss:$8 sps:$4 sm:$0xff]   ;;  %v13413_v24 = vld [vmem:[%s15075_s23 + $0x44] ss:$8 sps:$4 sm:$0xff]  }
  0x14   : > { %v13415_v25 = vld [vmem:[%s15075_s23 + $0x40] ss:$8 sps:$4 sm:$0xff]   ;;  %v13416_v26 = vld [vmem:[%s15075_s23 + $0x54] ss:$8 sps:$4 sm:$0xff]   ;;  %v13418_v27 = vld [vmem:[%s15075_s23 + $0x50] ss:$8 sps:$4 sm:$0xff]  }
  0x15   : > { %12552 = vmatpush3.bf16.msra.mxu0 %v13390_v5  ;;  %v13419_v28 = vld [vmem:[%s15075_s23 + $0x64] ss:$8 sps:$4 sm:$0xff]   ;;  %v13421_v29 = vld [vmem:[%s15075_s23 + $0x60] ss:$8 sps:$4 sm:$0xff]   ;;  %v13422_v30 = vld [vmem:[%s15075_s23 + $0x74] ss:$8 sps:$4 sm:$0xff]  }
  0x16   : > { %12553 = vmatprep.subr.bf16.mxu0 %v13391_v6  ;;  %v13424_v31 = vld [vmem:[%s15075_s23 + $0x70] ss:$8 sps:$4 sm:$0xff]   ;;  %v13425_v32 = vld [vmem:[%s15075_s23 + $0x84] ss:$8 sps:$4 sm:$0xff]   ;;  %v13427_v33 = vld [vmem:[%s15075_s23 + $0x80] ss:$8 sps:$4 sm:$0xff]  }
  0x17   : > { %v13428_v34 = vld [vmem:[%s15075_s23 + $0x94] ss:$8 sps:$4 sm:$0xff]   ;;  %v13430_v37 = vld [vmem:[%s15075_s23 + $0x90] ss:$8 sps:$4 sm:$0xff]   ;;  %v13431_v38 = vld [vmem:[%s15075_s23 + $0xa4] ss:$8 sps:$4 sm:$0xff]  }
  0x18   : > { %v13435_v40 = vld [vmem:[%s19333_s3 + $0x78] sm:$0xff]   ;;  %v13438_v41 = vld [vmem:[%s19333_s3 + $0xa8] sm:$0xff]   ;;  %v13437_v42 = vld [vmem:[%s19333_s3 + $0x70] sm:$0xff]  }
  0x19   : > { %12554 = vmatpush3.bf16.msra.mxu0 %v13392_v7  ;;  %12841 = vmatpush3.bf16.msra.mxu1 %v13435_v40  ;;  %v13433_v43 = vld [vmem:[%s15075_s23 + $0xa0] ss:$8 sps:$4 sm:$0xff]   ;;  %v13442_v46 = vld [vmem:[%s19333_s3 + $0x98] sm:$0xff]   ;;  %v13444_v48 = vld [vmem:[%s19333_s3 + $0x90] sm:$0xff]  }
  0x1a   : > { %12555 = vmatprep.subr.bf16.mxu0 %v13393_v8  ;;  %12842 = vmatprep.subr.bf16.mxu1 %v19342_v36  ;;  %v13440_v44 = vld [vmem:[%s19333_s3 + $0xa0] sm:$0xff]   ;;  %v13439_v45 = vld [vmem:[%s19333_s3 + $0x68] sm:$0xff]   ;;  %v13443_v49 = vld [vmem:[%s19333_s3 + $0x58] sm:$0xff]  }
  0x1b   : > { %v13441_v47 = vld [vmem:[%s19333_s3 + $0x60] sm:$0xff]   ;;  %v13446_v50 = vld [vmem:[%s19333_s3 + $0x88] sm:$0xff]   ;;  %v13445_v51 = vld [vmem:[%s19333_s3 + $0x50] sm:$0xff]  }
  0x1c   : > { %v13448_v52 = vld [vmem:[%s19333_s3 + $0x80] sm:$0xff]   ;;  %v13447_v53 = vld [vmem:[%s19333_s3 + $0x48] sm:$0xff]  }
  0x1d   : > { %12556 = vmatpush3.bf16.msra.mxu0 %v13394_v9  ;;  %12843 = vmatpush3.bf16.msra.mxu1 %v13437_v42  ;;  %v13450_v54 = vld [vmem:[%s19333_s3 + $0x40] sm:$0xff]   ;;  %v13453_v42 = vld [vmem:[%s19333_s3 + $0x38] sm:$0xff]  }
  0x1e   : > { %12557 = vmatprep.subr.bf16.mxu0 %v13395_v10  ;;  %12844 = vmatprep.subr.bf16.mxu1 %v19342_v36  ;;  %v15193_v56 = vld [vmem:[%s19332_s2] ss:$0 sm:$0xff] }
  0x21   : > { %12558 = vmatpush3.bf16.msra.mxu0 %v13396_v12  ;;  %12845 = vmatpush3.bf16.msra.mxu1 %v13439_v45 }
  0x22   : > { %12559 = vmatprep.subr.bf16.mxu0 %v13397_v13  ;;  %12846 = vmatprep.subr.bf16.mxu1 %v19342_v36 }
  0x25   : > { %12560 = vmatpush3.bf16.msra.mxu0 %v13398_v14  ;;  %12847 = vmatpush3.bf16.msra.mxu1 %v13441_v47 }
  0x26   : > { %12561 = vmatprep.subr.bf16.mxu0 %v13399_v15  ;;  %12848 = vmatprep.subr.bf16.mxu1 %v19342_v36 }
  0x29   : > { %12562 = vmatpush3.bf16.msra.mxu0 %v13400_v16  ;;  %12849 = vmatpush3.bf16.msra.mxu1 %v13443_v49 }
  0x2a   : > { %12944 = vmatprep.subr.bf16.mxu0 %v19342_v36  ;;  %12850 = vmatprep.subr.bf16.mxu1 %v19342_v36 }
  0x2c   : > { %686 = vmatmul.mubr.bf16.vlgmr.msra.gmra.mxu0 %v13401_v17 }
  0x2d   : > { %693 = vmatprep.mubr.bf16.mxu0 %v13404_v18  ;;  %12945 = vmatpush3.bf16.msra.mxu0 %v13434_v35 }
  0x2e   : > { %12946 = vmatprep.subr.bf16.mxu0 %v19342_v36  ;;  %12851 = vmatpush3.bf16.msra.mxu1 %v13445_v51 }
  0x2f   : > { %12852 = vmatprep.subr.bf16.mxu1 %v19342_v36 }
  0x31   : > { %12947 = vmatpush3.bf16.msra.mxu0 %v13436_v39 }
  0x32   : > { %12948 = vmatprep.subr.bf16.mxu0 %v19342_v36  ;;  %12853 = vmatpush3.bf16.msra.mxu1 %v13447_v53 }
  0x33   : > { %12854 = vmatprep.subr.bf16.mxu1 %v19342_v36 }
  0x34   : > { %694 = vmatmul.mubr.bf16.gmra.mxu0 %v13406_v19 }
  0x35   : > { %701 = vmatprep.mubr.bf16.mxu0 %v13407_v20  ;;  %12949 = vmatpush3.bf16.msra.mxu0 %v13438_v41 }
  0x36   : > { %12950 = vmatprep.subr.bf16.mxu0 %v19342_v36  ;;  %12855 = vmatpush3.bf16.msra.mxu1 %v13450_v54 }
  0x37   : > { %12892 = vmatprep.subr.bf16.mxu1 %v19342_v36 }
  0x39   : > { %12951 = vmatpush3.bf16.msra.mxu0 %v13440_v44 }
  0x3a   : > { %12952 = vmatprep.subr.bf16.mxu0 %v19342_v36 }
  0x3c   : > { %702 = vmatmul.mubr.bf16.gmra.mxu0 %v13409_v21 }
  0x3d   : > { %709 = vmatprep.mubr.bf16.mxu0 %v13410_v22  ;;  %12953 = vmatpush3.bf16.msra.mxu0 %v13442_v46 }
  0x3e   : > { %12954 = vmatprep.subr.bf16.mxu0 %v19342_v36 }
  0x41   : > { %12955 = vmatpush3.bf16.msra.mxu0 %v13444_v48 }
  0x42   : > { %12956 = vmatprep.subr.bf16.mxu0 %v19342_v36 }
  0x44   : > { %710 = vmatmul.mubr.bf16.gmra.mxu0 %v13412_v23 }
  0x45   : > { %717 = vmatprep.mubr.bf16.mxu0 %v13413_v24  ;;  %12957 = vmatpush3.bf16.msra.mxu0 %v13446_v50 }
  0x46   : > { %12958 = vmatprep.subr.bf16.mxu0 %v19342_v36 }
  0x49   : > { %12959 = vmatpush3.bf16.msra.mxu0 %v13448_v52  ;;  %v13456_v52 = vld [vmem:[%s19333_s3 + $0x30] sm:$0xff]  }
  0x4a   : > { %13048 = vmatprep.subr.bf16.mxu0 %v19342_v36 }
  0x4c   : > { %718 = vmatmul.mubr.bf16.gmra.mxu0 %v13415_v25 }
  0x4d   : > { %725 = vmatprep.mubr.bf16.mxu0 %v13416_v26 }
  0x54   : > { %726 = vmatmul.mubr.bf16.gmra.mxu0 %v13418_v27 }
  0x55   : > { %733 = vmatprep.mubr.bf16.mxu0 %v13419_v28 }
  0x5c   : > { %734 = vmatmul.mubr.bf16.gmra.mxu0 %v13421_v29 }
  0x5d   : > { %741 = vmatprep.mubr.bf16.mxu0 %v13422_v30 }
  0x64   : > { %742 = vmatmul.mubr.bf16.gmra.mxu0 %v13424_v31 }
  0x65   : > { %749 = vmatprep.mubr.bf16.mxu0 %v13425_v32 }
  0x6c   : > { %750 = vmatmul.mubr.bf16.gmra.mxu0 %v13427_v33 }
  0x6d   : > { %757 = vmatprep.mubr.bf16.mxu0 %v13428_v34 }
  0x74   : > { %758 = vmatmul.mubr.bf16.gmra.mxu0 %v13430_v37 }
  0x75   : > { %765 = vmatprep.mubr.bf16.mxu0 %v13431_v38 }
  0x7c   : > { %766 = vmatmul.mubr.bf16.gmra.mxu0 %v13433_v43 }
  0x7d   : > { %12960 = vmatprep.mubr.msk.bf16.mxu0 %vm14971_vm0, %v19342_v36 }
  0xec   : > { %v12563_v55 = vpop.f32.mrf.mxu0 }
  0xee   : > { %v12564_v57 = vpop.f32.mrf.mxu0 }
  0xef   : > { %v12565_v58 = vadd.f32 %v12564_v57, %v12563_v55 }
  0xf0   : > { %v12566_v59 = vpop.f32.mrf.mxu0 }
  0xf1   : > { %v688_v61 = vadd.f32 %v12565_v58, %v15193_v56 }
  0xf2   : > { %v12567_v60 = vpop.f32.mrf.mxu0 }
  0xf3   : > { %v12568_v62 = vadd.f32 %v12567_v60, %v12566_v59  ;;  %v774_v2 = vmax.f32 %v688_v61, 0.0 }
  0xf4   : > { %v12569_v63 = vpop.f32.mrf.mxu0 }
  0xf5   : > { %v691_v0 = vadd.f32 %v12568_v62, %v15193_v56 }
  0xf6   : > { %v12570_v1 = vpop.f32.mrf.mxu0 }
  0xf7   : > { %v775_v3 = vmax.f32 %v691_v0, 0.0  ;;  %v12571_v4 = vadd.f32 %v12570_v1, %v12569_v63  ;;  %v13459_v63 = vld [vmem:[%s19333_s3 + $0x28] sm:$0xff]  }
  0xf8   : > { %v12572_v5 = vpop.f32.mrf.mxu0 }
  0xf9   : > { %v12485_v6 = vpack.c.bf16 %v775_v3, %v774_v2  ;;  %v696_v8 = vadd.f32 %v12571_v4, %v15193_v56 }
  0xfa   : > { %v12573_v7 = vpop.f32.mrf.mxu0 }
  0xfb   : > { %12486 = vst [vmem:[#allocation2] sm:$0xff] %v12485_v6   ;;  %v12574_v9 = vadd.f32 %v12573_v7, %v12572_v5  ;;  %v776_v13 = vmax.f32 %v696_v8, 0.0 }
  0xfc   : > { %v12575_v10 = vpop.f32.mrf.mxu0 }
  0xfd   : > { %v699_v11 = vadd.f32 %v12574_v9, %v15193_v56  ;;  %v13462_v9 = vld [vmem:[%s19333_s3 + $0x20] sm:$0xff]  }
  0xfe   : > { %v12576_v12 = vpop.f32.mrf.mxu0 }
  0xff   : > { %v777_v14 = vmax.f32 %v699_v11, 0.0  ;;  %v12577_v15 = vadd.f32 %v12576_v12, %v12575_v10 }
 0x100   : > { %v12578_v16 = vpop.f32.mrf.mxu0 }
 0x101   : > { %v12490_v17 = vpack.c.bf16 %v777_v14, %v776_v13  ;;  %v704_v20 = vadd.f32 %v12577_v15, %v15193_v56 }
 0x102   : > { %v12579_v18 = vpop.f32.mrf.mxu0  ;;  %v15199_v19 = vld [vmem:[#allocation2] sm:$0xff]  }
 0x103   : > { %12537 = vst [vmem:[#allocation2 + $0x8] sm:$0xff] %v12490_v17   ;;  %v12580_v21 = vadd.f32 %v12579_v18, %v12578_v16  ;;  %v1009_v25 = vshll.u32 %v15199_v19, 16  ;;  %v778_v26 = vmax.f32 %v704_v20, 0.0  ;;  %v1007_v39 = vshrl.u32 %v15199_v19, 16  ;;  %v13466_v20 = vld [vmem:[%s19333_s3 + $0x18] sm:$0xff]  }
 0x104   : > { %v12581_v22 = vpop.f32.mrf.mxu0 }
 0x105   : > { %v707_v23 = vadd.f32 %v12580_v21, %v15193_v56  ;;  %v1011_v33 = vrot.slane %v1009_v25, 1 }
 0x106   : > { %v12582_v24 = vpop.f32.mrf.mxu0 }
 0x107   : > { %v779_v27 = vmax.f32 %v707_v23, 0.0  ;;  %v12583_v28 = vadd.f32 %v12582_v24, %v12581_v22  ;;  %v1012_v44 = vor.u32 %v1011_v33, %v1007_v39 }
 0x108   : > { %v12584_v29 = vpop.f32.mrf.mxu0 }
 0x109   : > { %v12495_v30 = vpack.c.bf16 %v779_v27, %v778_v26  ;;  %v712_v34 = vadd.f32 %v12583_v28, %v15193_v56 }
 0x10a   : > { %v12585_v31 = vpop.f32.mrf.mxu0  ;;  %v13449_v32 = vld [vmem:[#allocation2 + $0x8] sm:$0xff]  }
 0x10b   : > { %12538 = vst [vmem:[#allocation2 + $0x10] sm:$0xff] %v12495_v30   ;;  %v12586_v35 = vadd.f32 %v12585_v31, %v12584_v29  ;;  %v15205_v37 = vld [vmem:[#allocation2 + $0x8] sm:$0xff]   ;;  %12961 = vmatmul.mubr.bf16.vlgmr.msra.gmra.mxu0 %v13449_v32  ;;  %v780_v45 = vmax.f32 %v712_v34, 0.0  ;;  %v13469_v30 = vld [vmem:[%s19333_s3 + $0x10] sm:$0xff]  }
 0x10c   : > { %v12587_v38 = vpop.f32.mrf.mxu0  ;;  %v1014_v41 = vshll.u32 %v15205_v37, 16  ;;  %12964 = vmatprep.mubr.msk.bf16.mxu0 %vm14971_vm0, %v19342_v36  ;;  %v1018_v60 = vshrl.u32 %v15205_v37, 16 }
 0x10d   : > { %v715_v40 = vadd.f32 %v12586_v35, %v15193_v56 }
 0x10e   : > { %v12588_v43 = vpop.f32.mrf.mxu0  ;;  %v1016_v48 = vrot.slane %v1014_v41, 1 }
 0x10f   : > { %v781_v46 = vmax.f32 %v715_v40, 0.0  ;;  %v12589_v47 = vadd.f32 %v12588_v43, %v12587_v38 }
 0x110   : > { %v12590_v49 = vpop.f32.mrf.mxu0  ;;  %v1017_v51 = vsel %vm1005_vm1, %v1012_v44, %v1016_v48  ;;  %v1020_v1 = vor.u32 %v1018_v60, %v1016_v48 }
 0x111   : > { %v12500_v50 = vpack.c.bf16 %v781_v46, %v780_v45  ;;  %12857 = vmatmul.mubr.bf16.vlgmr.msra.gmra.mxu1 %v1017_v51  ;;  %v720_v55 = vadd.f32 %v12589_v47, %v15193_v56 }
 0x112   : > { %v12591_v53 = vpop.f32.mrf.mxu0  ;;  %v13454_v54 = vld [vmem:[#allocation2 + $0x10] sm:$0xff]   ;;  %12893 = vmatpush3.bf16.msra.mxu1 %v13453_v42  ;;  %12860 = vmatprep.mubr.msk.bf16.mxu1 %vm14971_vm0, %v19342_v36  ;;  %v13472_v42 = vld [vmem:[%s19333_s3 + $0x8] sm:$0xff]  }
 0x113   : > { %12539 = vst [vmem:[#allocation2 + $0x18] sm:$0xff] %v12500_v50   ;;  %v12592_v57 = vadd.f32 %v12591_v53, %v12590_v49  ;;  %v15222_v58 = vld [vmem:[#allocation2 + $0x10] sm:$0xff]   ;;  %12965 = vmatmul.mubr.bf16.gmra.mxu0 %v13454_v54  ;;  %12894 = vmatprep.subr.bf16.mxu1 %v19342_v36  ;;  %v782_v2 = vmax.f32 %v720_v55, 0.0 }
 0x114   : > { %v12593_v59 = vpop.f32.mrf.mxu0  ;;  %v1022_v62 = vshll.u32 %v15222_v58, 16  ;;  %12968 = vmatprep.mubr.msk.bf16.mxu0 %vm14971_vm0, %v19342_v36  ;;  %v1026_v16 = vshrl.u32 %v15222_v58, 16 }
 0x115   : > { %v723_v61 = vadd.f32 %v12592_v57, %v15193_v56 }
 0x116   : > { %v12594_v0 = vpop.f32.mrf.mxu0  ;;  %v1024_v5 = vrot.slane %v1022_v62, 1  ;;  %12895 = vmatpush3.bf16.msra.mxu1 %v13456_v52  ;;  %v13475_v52 = vld [vmem:[%s19333_s3] sm:$0xff]  }
 0x117   : > { %v783_v3 = vmax.f32 %v723_v61, 0.0  ;;  %v12595_v4 = vadd.f32 %v12594_v0, %v12593_v59  ;;  %12896 = vmatprep.subr.bf16.mxu1 %v19342_v36 }
 0x118   : > { %v12596_v6 = vpop.f32.mrf.mxu0  ;;  %v1025_v8 = vsel %vm1005_vm1, %v1020_v1, %v1024_v5  ;;  %v1028_v22 = vor.u32 %v1026_v16, %v1024_v5 }
 0x119   : > { %v12505_v7 = vpack.c.bf16 %v783_v3, %v782_v2  ;;  %12861 = vmatmul.mubr.bf16.gmra.mxu1 %v1025_v8  ;;  %v728_v12 = vadd.f32 %v12595_v4, %v15193_v56 }
 0x11a   : > { %v12597_v10 = vpop.f32.mrf.mxu0  ;;  %v13457_v11 = vld [vmem:[#allocation2 + $0x18] sm:$0xff]   ;;  %12864 = vmatprep.mubr.msk.bf16.mxu1 %vm14971_vm0, %v19342_v36  ;;  %12897 = vmatpush3.bf16.msra.mxu1 %v13459_v63 }
 0x11b   : > { %12540 = vst [vmem:[#allocation2 + $0x20] sm:$0xff] %v12505_v7   ;;  %v12598_v13 = vadd.f32 %v12597_v10, %v12596_v6  ;;  %v15241_v14 = vld [vmem:[#allocation2 + $0x18] sm:$0xff]   ;;  %12969 = vmatmul.mubr.bf16.gmra.mxu0 %v13457_v11  ;;  %12898 = vmatprep.subr.bf16.mxu1 %v19342_v36  ;;  %v784_v23 = vmax.f32 %v728_v12, 0.0 }
 0x11c   : > { %v12599_v15 = vpop.f32.mrf.mxu0  ;;  %v1030_v18 = vshll.u32 %v15241_v14, 16  ;;  %12972 = vmatprep.mubr.msk.bf16.mxu0 %vm14971_vm0, %v19342_v36  ;;  %v1034_v39 = vshrl.u32 %v15241_v14, 16 }
 0x11d   : > { %v731_v17 = vadd.f32 %v12598_v13, %v15193_v56 }
 0x11e   : > { %v12600_v21 = vpop.f32.mrf.mxu0  ;;  %v1032_v26 = vrot.slane %v1030_v18, 1  ;;  %12899 = vmatpush3.bf16.msra.mxu1 %v13462_v9 }
 0x11f   : > { %v785_v24 = vmax.f32 %v731_v17, 0.0  ;;  %v12601_v25 = vadd.f32 %v12600_v21, %v12599_v15  ;;  %12900 = vmatprep.subr.bf16.mxu1 %v19342_v36 }
 0x120   : > { %v12602_v27 = vpop.f32.mrf.mxu0  ;;  %v1033_v29 = vsel %vm1005_vm1, %v1028_v22, %v1032_v26  ;;  %v1036_v44 = vor.u32 %v1034_v39, %v1032_v26 }
 0x121   : > { %v12510_v28 = vpack.c.bf16 %v785_v24, %v784_v23  ;;  %12865 = vmatmul.mubr.bf16.gmra.mxu1 %v1033_v29  ;;  %v736_v33 = vadd.f32 %v12601_v25, %v15193_v56 }
 0x122   : > { %v12603_v31 = vpop.f32.mrf.mxu0  ;;  %v13460_v32 = vld [vmem:[#allocation2 + $0x20] sm:$0xff]   ;;  %12868 = vmatprep.mubr.msk.bf16.mxu1 %vm14971_vm0, %v19342_v36  ;;  %12901 = vmatpush3.bf16.msra.mxu1 %v13466_v20 }
 0x123   : > { %12541 = vst [vmem:[#allocation2 + $0x28] sm:$0xff] %v12510_v28   ;;  %v12604_v34 = vadd.f32 %v12603_v31, %v12602_v27  ;;  %v15260_v35 = vld [vmem:[#allocation2 + $0x20] sm:$0xff]   ;;  %12973 = vmatmul.mubr.bf16.gmra.mxu0 %v13460_v32  ;;  %12902 = vmatprep.subr.bf16.mxu1 %v19342_v36  ;;  %v786_v45 = vmax.f32 %v736_v33, 0.0 }
 0x124   : > { %v12605_v38 = vpop.f32.mrf.mxu0  ;;  %v1038_v41 = vshll.u32 %v15260_v35, 16  ;;  %12976 = vmatprep.mubr.msk.bf16.mxu0 %vm14971_vm0, %v19342_v36  ;;  %v1042_v61 = vshrl.u32 %v15260_v35, 16 }
 0x125   : > { %v739_v40 = vadd.f32 %v12604_v34, %v15193_v56 }
 0x126   : > { %v12606_v43 = vpop.f32.mrf.mxu0  ;;  %v1040_v48 = vrot.slane %v1038_v41, 1  ;;  %12903 = vmatpush3.bf16.msra.mxu1 %v13469_v30 }
 0x127   : > { %v787_v46 = vmax.f32 %v739_v40, 0.0  ;;  %v12607_v47 = vadd.f32 %v12606_v43, %v12605_v38  ;;  %12904 = vmatprep.subr.bf16.mxu1 %v19342_v36 }
 0x128   : > { %v12608_v49 = vpop.f32.mrf.mxu0  ;;  %v1041_v51 = vsel %vm1005_vm1, %v1036_v44, %v1040_v48  ;;  %v1044_v1 = vor.u32 %v1042_v61, %v1040_v48 }
 0x129   : > { %v12515_v50 = vpack.c.bf16 %v787_v46, %v786_v45  ;;  %12869 = vmatmul.mubr.bf16.gmra.mxu1 %v1041_v51  ;;  %v744_v55 = vadd.f32 %v12607_v47, %v15193_v56 }
 0x12a   : > { %v12609_v53 = vpop.f32.mrf.mxu0  ;;  %v13463_v54 = vld [vmem:[#allocation2 + $0x28] sm:$0xff]   ;;  %12872 = vmatprep.mubr.msk.bf16.mxu1 %vm14971_vm0, %v19342_v36  ;;  %12905 = vmatpush3.bf16.msra.mxu1 %v13472_v42 }
 0x12b   : > { %12542 = vst [vmem:[#allocation2 + $0x30] sm:$0xff] %v12515_v50   ;;  %v12610_v57 = vadd.f32 %v12609_v53, %v12608_v49  ;;  %v15279_v59 = vld [vmem:[#allocation2 + $0x28] sm:$0xff]   ;;  %12977 = vmatmul.mubr.bf16.gmra.mxu0 %v13463_v54  ;;  %12906 = vmatprep.subr.bf16.mxu1 %v19342_v36  ;;  %v788_v2 = vmax.f32 %v744_v55, 0.0 }
 0x12c   : > { %v12611_v60 = vpop.f32.mrf.mxu0  ;;  %v1046_v63 = vshll.u32 %v15279_v59, 16  ;;  %12980 = vmatprep.mubr.msk.bf16.mxu0 %vm14971_vm0, %v19342_v36  ;;  %v1050_v16 = vshrl.u32 %v15279_v59, 16 }
 0x12d   : > { %v747_v62 = vadd.f32 %v12610_v57, %v15193_v56 }
 0x12e   : > { %v12612_v0 = vpop.f32.mrf.mxu0  ;;  %v1048_v5 = vrot.slane %v1046_v63, 1  ;;  %12907 = vmatpush3.bf16.msra.mxu1 %v13475_v52 }
 0x12f   : > { %v789_v3 = vmax.f32 %v747_v62, 0.0  ;;  %v12613_v4 = vadd.f32 %v12612_v0, %v12611_v60  ;;  %12996 = vmatprep.subr.bf16.mxu1 %v19342_v36 }
 0x130   : > { %v12614_v6 = vpop.f32.mrf.mxu0  ;;  %v1049_v8 = vsel %vm1005_vm1, %v1044_v1, %v1048_v5  ;;  %v1052_v21 = vor.u32 %v1050_v16, %v1048_v5  ;;  %v13484_v16 = vld [vmem:[%s19333_s3 + $0xc0] sm:$0xff]  }
 0x131   : > { %v12520_v7 = vpack.c.bf16 %v789_v3, %v788_v2  ;;  %12873 = vmatmul.mubr.bf16.gmra.mxu1 %v1049_v8  ;;  %v752_v11 = vadd.f32 %v12613_v4, %v15193_v56 }
 0x132   : > { %v12615_v9 = vpop.f32.mrf.mxu0  ;;  %v13465_v10 = vld [vmem:[#allocation2 + $0x30] sm:$0xff]   ;;  %12876 = vmatprep.mubr.msk.bf16.mxu1 %vm14971_vm0, %v19342_v36 }
 0x133   : > { %12543 = vst [vmem:[#allocation2 + $0x38] sm:$0xff] %v12520_v7   ;;  %v12616_v12 = vadd.f32 %v12615_v9, %v12614_v6  ;;  %v15292_v13 = vld [vmem:[#allocation2 + $0x30] sm:$0xff]   ;;  %12981 = vmatmul.mubr.bf16.gmra.mxu0 %v13465_v10  ;;  %v790_v22 = vmax.f32 %v752_v11, 0.0  ;;  %v13477_v9 = vld [vmem:[%s19333_s3 + $0xf8] sm:$0xff]   ;;  %v13479_v11 = vld [vmem:[%s19333_s3 + $0xe8] sm:$0xff]  }
 0x134   : > { %v12617_v15 = vpop.f32.mrf.mxu0  ;;  %v1054_v18 = vshll.u32 %v15292_v13, 16  ;;  %12984 = vmatprep.mubr.msk.bf16.mxu0 %vm14971_vm0, %v19342_v36  ;;  %v1058_v38 = vshrl.u32 %v15292_v13, 16  ;;  %v13478_v10 = vld [vmem:[%s19333_s3 + $0xf0] sm:$0xff]  }
 0x135   : > { %v755_v17 = vadd.f32 %v12616_v12, %v15193_v56  ;;  %v13480_v12 = vld [vmem:[%s19333_s3 + $0xe0] sm:$0xff]  }
 0x136   : > { %v12618_v20 = vpop.f32.mrf.mxu0  ;;  %v1056_v25 = vrot.slane %v1054_v18, 1  ;;  %v13487_v18 = vld [vmem:[#allocation2 + $0x18] sm:$0xff]  }
 0x137   : > { %v791_v23 = vmax.f32 %v755_v17, 0.0  ;;  %v12619_v24 = vadd.f32 %v12618_v20, %v12617_v15  ;;  %v13482_v15 = vld [vmem:[%s19333_s3 + $0xd0] sm:$0xff]  }
 0x138   : > { %v12620_v26 = vpop.f32.mrf.mxu0  ;;  %v1057_v28 = vsel %vm1005_vm1, %v1052_v21, %v1056_v25  ;;  %v1060_v42 = vor.u32 %v1058_v38, %v1056_v25  ;;  %v13488_v21 = vld [vmem:[#allocation2 + $0x20] sm:$0xff]   ;;  %v1764_v25 = vshll.u32 %v13487_v18, 16 }
 0x139   : > { %v12525_v27 = vpack.c.bf16 %v791_v23, %v790_v22  ;;  %12877 = vmatmul.mubr.bf16.gmra.mxu1 %v1057_v28  ;;  %v760_v31 = vadd.f32 %v12619_v24, %v15193_v56  ;;  %v13489_v22 = vld [vmem:[#allocation2 + $0x28] sm:$0xff]  }
 0x13a   : > { %v12621_v29 = vpop.f32.mrf.mxu0  ;;  %v13468_v30 = vld [vmem:[#allocation2 + $0x38] sm:$0xff]   ;;  %12880 = vmatprep.mubr.msk.bf16.mxu1 %vm14971_vm0, %v19342_v36  ;;  %v1780_v28 = vshll.u32 %v13489_v22, 16 }
 0x13b   : > { %12544 = vst [vmem:[#allocation2 + $0x40] sm:$0xff] %v12525_v27   ;;  %v12622_v32 = vadd.f32 %v12621_v29, %v12620_v26  ;;  %v15303_v33 = vld [vmem:[#allocation2 + $0x38] sm:$0xff]   ;;  %12985 = vmatmul.mubr.bf16.gmra.mxu0 %v13468_v30  ;;  %v792_v43 = vmax.f32 %v760_v31, 0.0  ;;  %v13490_v26 = vld [vmem:[#allocation2 + $0x30] sm:$0xff]   ;;  %v1772_v27 = vshll.u32 %v13488_v21, 16  ;;  %v1766_v30 = vrot.slane %v1764_v25, 1 }
 0x13c   : > { %v12623_v34 = vpop.f32.mrf.mxu0  ;;  %v1062_v40 = vshll.u32 %v15303_v33, 16  ;;  %12988 = vmatprep.mubr.msk.bf16.mxu0 %vm14971_vm0, %v19342_v36  ;;  %v1066_v60 = vshrl.u32 %v15303_v33, 16  ;;  %v1768_v31 = vshrl.u32 %v13487_v18, 16  ;;  %v1782_v38 = vrot.slane %v1780_v28, 1 }
 0x13d   : > { %v763_v39 = vadd.f32 %v12622_v32, %v15193_v56  ;;  %v1776_v32 = vshrl.u32 %v13488_v21, 16 }
 0x13e   : > { %v12624_v41 = vpop.f32.mrf.mxu0  ;;  %v1064_v46 = vrot.slane %v1062_v40, 1 }
 0x13f   : > { %v793_v44 = vmax.f32 %v763_v39, 0.0  ;;  %v12625_v45 = vadd.f32 %v12624_v41, %v12623_v34  ;;  %v1774_v34 = vrot.slane %v1772_v27, 1  ;;  %v1788_v39 = vshll.u32 %v13490_v26, 16 }
 0x140   : > { %v12626_v47 = vpop.f32.mrf.mxu0  ;;  %v1065_v50 = vsel %vm1005_vm1, %v1060_v42, %v1064_v46  ;;  %v1068_v63 = vor.u32 %v1066_v60, %v1064_v46  ;;  %v1770_v41 = vor.u32 %v1768_v31, %v1766_v30 }
 0x141   : > { %v12530_v48 = vpack.c.bf16 %v793_v44, %v792_v43  ;;  %v768_v49 = vadd.f32 %v12625_v45, %v15193_v56  ;;  %12881 = vmatmul.mubr.bf16.gmra.mxu1 %v1065_v50  ;;  %v1778_v43 = vor.u32 %v1776_v32, %v1774_v34  ;;  %v1784_v45 = vshrl.u32 %v13489_v22, 16 }
 0x142   : > { %v12627_v51 = vpop.f32.mrf.mxu0  ;;  %v13471_v52 = vld [vmem:[#allocation2 + $0x40] sm:$0xff]   ;;  %12884 = vmatprep.mubr.msk.bf16.mxu1 %vm14971_vm0, %v19342_v36  ;;  %v1775_v42 = vsel %vm1005_vm1, %v1770_v41, %v1774_v34  ;;  %v1790_v46 = vrot.slane %v1788_v39, 1  ;;  %v13497_v41 = vld [vmem:[%s19335_s5 + $0x28] sm:$0xff]  }
 0x143   : > { %12545 = vst [vmem:[#allocation2 + $0x48] sm:$0xff] %v12530_v48   ;;  %v12628_v53 = vadd.f32 %v12627_v51, %v12626_v47  ;;  %v15314_v54 = vld [vmem:[#allocation2 + $0x40] sm:$0xff]   ;;  %12989 = vmatmul.mubr.bf16.gmra.mxu0 %v13471_v52  ;;  %v794_v55 = vmax.f32 %v768_v49, 0.0  ;;  %v1783_v44 = vsel %vm1005_vm1, %v1778_v43, %v1782_v38  ;;  %v13491_v47 = vld [vmem:[#allocation2 + $0x38] sm:$0xff]   ;;  %v1786_v48 = vor.u32 %v1784_v45, %v1782_v38 }
 0x144   : > { %v1070_v61 = vshll.u32 %v15314_v54, 16  ;;  %12992 = vmatprep.mubr.msk.bf16.mxu0 %vm14971_vm0, %v19342_v36  ;;  %v1074_v4 = vshrl.u32 %v15314_v54, 16  ;;  %v13495_v49 = vld [vmem:[%s19335_s5 + $0x38] sm:$0xff]   ;;  %v1796_v51 = vshll.u32 %v13491_v47, 16  ;;  %v1792_v52 = vshrl.u32 %v13490_v26, 16 }
 0x145   : > { %v771_v57 = vadd.f32 %v12628_v53, %v15193_v56  ;;  %v1791_v50 = vsel %vm1005_vm1, %v1786_v48, %v1790_v46  ;;  %13049 = vmatpush3.bf16.msra.mxu0 %v13495_v49 }
 0x146   : > { %v1072_v0 = vrot.slane %v1070_v61, 1  ;;  %13050 = vmatprep.subr.bf16.mxu0 %v19342_v36  ;;  %v1798_v53 = vrot.slane %v1796_v51, 1 }
 0x147   : > { %v795_v62 = vmax.f32 %v771_v57, 0.0 }
 0x148   : > { %v1073_v2 = vsel %vm1005_vm1, %v1068_v63, %v1072_v0  ;;  %v1076_v6 = vor.u32 %v1074_v4, %v1072_v0 }
 0x149   : > { %v12535_v1 = vpack.c.bf16 %v795_v62, %v794_v55  ;;  %12885 = vmatmul.mubr.bf16.gmra.mxu1 %v1073_v2  ;;  %v1794_v55 = vor.u32 %v1792_v52, %v1790_v46  ;;  %v1800_v62 = vshrl.u32 %v13491_v47, 16  ;;  %v13499_v52 = vld [vmem:[%s19335_s5 + $0x58] sm:$0xff]  }
 0x14a   : > { %v13474_v3 = vld [vmem:[#allocation2 + $0x48] sm:$0xff]   ;;  %12888 = vmatprep.mubr.msk.bf16.mxu1 %vm14971_vm0, %v19342_v36 }
 0x14b   : > { %12546 = vst [vmem:[#allocation2 + $0x50] sm:$0xff] %v12535_v1   ;;  %v13476_v56 = vld [vmem:[#allocation2 + $0x48] ss:$0 sps:$4 sm:$0x11]   ;;  %12993 = vmatmul.mubr.bf16.gmra.mxu0 %v13474_v3  ;;  %v1799_v57 = vsel %vm1005_vm1, %v1794_v55, %v1798_v53  ;;  %v1802_v2 = vor.u32 %v1800_v62, %v1798_v53 }
 0x14c   : > { %v1078_v5 = vshll.u32 %v13476_v56, 16  ;;  %13056 = vmatprep.mubr.msk.bf16.mxu0 %vm14971_vm0, %v19342_v36  ;;  %v13493_v0 = vld [vmem:[#allocation2 + $0x48] sm:$0xff]   ;;  %v13496_v56 = vld [vmem:[%s19335_s5 + $0x30] sm:$0xff]  }
 0x14d   : > { %13051 = vmatpush3.bf16.msra.mxu0 %v13496_v56  ;;  %v13501_v56 = vld [vmem:[%s19335_s5 + $0x48] sm:$0xff]  }
 0x14e   : > { %v1080_v7 = vrot.slane %v1078_v5, 1  ;;  %v1812_v5 = vshll.u32 %v13493_v0, 16  ;;  %13052 = vmatprep.subr.bf16.mxu0 %v19342_v36 }
 0x150   : > { %v1081_v8 = vsel %vm1005_vm1, %v1076_v6, %v1080_v7 }
 0x151   : > { %12889 = vmatmul.mubr.bf16.gmra.mxu1 %v1081_v8  ;;  %13053 = vmatpush3.bf16.msra.mxu0 %v13497_v41 }
 0x152   : > { %12908 = vmatprep.mubr.msk.bf16.mxu1 %vm14971_vm0, %v19342_v36  ;;  %13054 = vmatprep.subr.bf16.mxu0 %v19342_v36 }
 0x159   : > { %12909 = vmatmul.mubr.bf16.vlgmr.msra.gmra.mxu1 %v15199_v19  ;;  %v13481_v19 = vld [vmem:[%s19333_s3 + $0xd8] sm:$0xff]  }
 0x15a   : > { %12997 = vmatpush3.bf16.msra.mxu1 %v13477_v9  ;;  %12912 = vmatprep.mubr.msk.bf16.mxu1 %vm14971_vm0, %v19342_v36 }
 0x15b   : > { %12998 = vmatprep.subr.bf16.mxu1 %v19342_v36 }
 0x15e   : > { %12999 = vmatpush3.bf16.msra.mxu1 %v13478_v10 }
 0x15f   : > { %13000 = vmatprep.subr.bf16.mxu1 %v19342_v36 }
 0x161   : > { %12913 = vmatmul.mubr.bf16.gmra.mxu1 %v15205_v37  ;;  %v13483_v37 = vld [vmem:[%s19333_s3 + $0xc8] sm:$0xff]  }
 0x162   : > { %12916 = vmatprep.mubr.msk.bf16.mxu1 %vm14971_vm0, %v19342_v36  ;;  %13001 = vmatpush3.bf16.msra.mxu1 %v13479_v11  ;;  %v1814_v11 = vrot.slane %v1812_v5, 1 }
 0x163   : > { %13002 = vmatprep.subr.bf16.mxu1 %v19342_v36 }
 0x166   : > { %13003 = vmatpush3.bf16.msra.mxu1 %v13480_v12  ;;  %v13494_v12 = vld [vmem:[#allocation2 + $0x50] ss:$0 sps:$4 sm:$0x11]  }
 0x167   : > { %13004 = vmatprep.subr.bf16.mxu1 %v19342_v36 }
 0x169   : > { %12917 = vmatmul.mubr.bf16.gmra.mxu1 %v15222_v58  ;;  %v13485_v58 = vld [vmem:[#allocation2 + $0x8] sm:$0xff]  }
 0x16a   : > { %12920 = vmatprep.mubr.msk.bf16.mxu1 %vm14971_vm0, %v19342_v36  ;;  %13005 = vmatpush3.bf16.msra.mxu1 %v13481_v19 }
 0x16b   : > { %13006 = vmatprep.subr.bf16.mxu1 %v19342_v36 }
 0x16e   : > { %13007 = vmatpush3.bf16.msra.mxu1 %v13482_v15 }
 0x16f   : > { %13008 = vmatprep.subr.bf16.mxu1 %v19342_v36 }
 0x171   : > { %12921 = vmatmul.mubr.bf16.gmra.mxu1 %v15241_v14  ;;  %v13486_v14 = vld [vmem:[#allocation2 + $0x10] sm:$0xff]  }
 0x172   : > { %12924 = vmatprep.mubr.msk.bf16.mxu1 %vm14971_vm0, %v19342_v36  ;;  %13009 = vmatpush3.bf16.msra.mxu1 %v13483_v37  ;;  %v1756_v17 = vshll.u32 %v13486_v14, 16  ;;  %v1760_v29 = vshrl.u32 %v13486_v14, 16 }
 0x173   : > { %13010 = vmatprep.subr.bf16.mxu1 %v19342_v36 }
 0x174   : > { %v1758_v20 = vrot.slane %v1756_v17, 1 }
 0x176   : > { %13011 = vmatpush3.bf16.msra.mxu1 %v13484_v16 }
 0x177   : > { %13120 = vmatprep.subr.bf16.mxu1 %v19342_v36 }
 0x179   : > { %12925 = vmatmul.mubr.bf16.gmra.mxu1 %v15260_v35  ;;  %v1751_v35 = vshll.u32 %v13485_v58, 16 }
 0x17a   : > { %12928 = vmatprep.mubr.msk.bf16.mxu1 %vm14971_vm0, %v19342_v36 }
 0x181   : > { %12929 = vmatmul.mubr.bf16.gmra.mxu1 %v15279_v59  ;;  %v1753_v59 = vrot.slane %v1751_v35, 1  ;;  %v1820_v35 = vshll.u32 %v13494_v12, 16 }
 0x182   : > { %12932 = vmatprep.mubr.msk.bf16.mxu1 %vm14971_vm0, %v19342_v36 }
 0x183   : > { %v1822_v21 = vrot.slane %v1820_v35, 1 }
 0x189   : > { %12933 = vmatmul.mubr.bf16.gmra.mxu1 %v15292_v13  ;;  %v1749_v13 = vshrl.u32 %v13485_v58, 16 }
 0x18a   : > { %12936 = vmatprep.mubr.msk.bf16.mxu1 %vm14971_vm0, %v19342_v36 }
 0x18b   : > { %v1754_v23 = vor.u32 %v1753_v59, %v1749_v13 }
 0x18d   : > { %v1759_v24 = vsel %vm1005_vm1, %v1754_v23, %v1758_v20 }
 0x191   : > { %12937 = vmatmul.mubr.bf16.gmra.mxu1 %v15303_v33  ;;  %v1762_v33 = vor.u32 %v1760_v29, %v1758_v20  ;;  %v1816_v20 = vshrl.u32 %v13493_v0, 16  ;;  %v13498_v0 = vld [vmem:[%s19335_s5 + $0x20] sm:$0xff]  }
 0x192   : > { %12940 = vmatprep.mubr.msk.bf16.mxu1 %vm14971_vm0, %v19342_v36  ;;  %13055 = vmatpush3.bf16.msra.mxu0 %v13498_v0 }
 0x193   : > { %v1767_v40 = vsel %vm1005_vm1, %v1762_v33, %v1766_v30  ;;  %13084 = vmatprep.subr.bf16.mxu0 %v19342_v36 }
 0x199   : > { %12941 = vmatmul.mubr.bf16.gmra.mxu1 %v15314_v54  ;;  %v13492_v54 = vld [vmem:[#allocation2 + $0x40] sm:$0xff]  }
 0x19a   : > { %13012 = vmatprep.mubr.msk.bf16.mxu1 %vm14971_vm0, %v19342_v36  ;;  %v1804_v60 = vshll.u32 %v13492_v54, 16  ;;  %v1808_v10 = vshrl.u32 %v13492_v54, 16 }
 0x19c   : > { %v1806_v63 = vrot.slane %v1804_v60, 1  ;;  %v13500_v60 = vld [vmem:[%s19335_s5 + $0x50] sm:$0xff]  }
 0x19e   : > { %v1807_v4 = vsel %vm1005_vm1, %v1802_v2, %v1806_v63  ;;  %v1810_v37 = vor.u32 %v1808_v10, %v1806_v63  ;;  %v13502_v10 = vld [vmem:[%s19335_s5 + $0x40] sm:$0xff]  }
 0x1a0   : > { %v1815_v14 = vsel %vm1005_vm1, %v1810_v37, %v1814_v11 }
 0x1a1   : > { %13013 = vmatmul.mubr.bf16.vlgmr.msra.gmra.mxu1 %v1759_v24  ;;  %v1818_v24 = vor.u32 %v1816_v20, %v1814_v11 }
 0x1a2   : > { %13016 = vmatprep.mubr.msk.bf16.mxu1 %vm14971_vm0, %v19342_v36  ;;  %13121 = vmatpush3.bf16.msra.mxu1 %v13499_v52 }
 0x1a3   : > { %v1823_v27 = vsel %vm1005_vm1, %v1818_v24, %v1822_v21  ;;  %13122 = vmatprep.subr.bf16.mxu1 %v19342_v36 }
 0x1a6   : > { %13123 = vmatpush3.bf16.msra.mxu1 %v13500_v60 }
 0x1a7   : > { %13124 = vmatprep.subr.bf16.mxu1 %v19342_v36 }
 0x1a9   : > { %13017 = vmatmul.mubr.bf16.gmra.mxu1 %v1767_v40 }
 0x1aa   : > { %13020 = vmatprep.mubr.msk.bf16.mxu1 %vm14971_vm0, %v19342_v36  ;;  %13125 = vmatpush3.bf16.msra.mxu1 %v13501_v56 }
 0x1ab   : > { %13126 = vmatprep.subr.bf16.mxu1 %v19342_v36 }
 0x1ae   : > { %13127 = vmatpush3.bf16.msra.mxu1 %v13502_v10 }
 0x1af   : > { %13192 = vmatprep.subr.bf16.mxu1 %v19342_v36 }
 0x1b1   : > { %13021 = vmatmul.mubr.bf16.gmra.mxu1 %v1775_v42 }
 0x1b2   : > { %13024 = vmatprep.mubr.msk.bf16.mxu1 %vm14971_vm0, %v19342_v36 }
 0x1b9   : > { %13025 = vmatmul.mubr.bf16.gmra.mxu1 %v1783_v44 }
 0x1ba   : > { %13028 = vmatprep.mubr.msk.bf16.mxu1 %vm14971_vm0, %v19342_v36 }
 0x1c1   : > { %13029 = vmatmul.mubr.bf16.gmra.mxu1 %v1791_v50 }
 0x1c2   : > { %13032 = vmatprep.mubr.msk.bf16.mxu1 %vm14971_vm0, %v19342_v36 }
 0x1c9   : > { %13033 = vmatmul.mubr.bf16.gmra.mxu1 %v1799_v57 }
 0x1ca   : > { %13036 = vmatprep.mubr.msk.bf16.mxu1 %vm14971_vm0, %v19342_v36 }
 0x1cb   : > { %v15411_v61 = vpop.f32.mrf.mxu0 }
 0x1cd   : > { %v12962_v1 = vpop.f32.mrf.mxu0 }
 0x1cf   : > { %v15413_v3 = vpop.f32.mrf.mxu0 }
 0x1d1   : > { %v15419_v6 = vpop.f32.mrf.mxu1  ;;  %13037 = vmatmul.mubr.bf16.gmra.mxu1 %v1807_v4  ;;  %v12963_v7 = vpop.f32.mrf.mxu0 }
 0x1d2   : > { %13040 = vmatprep.mubr.msk.bf16.mxu1 %vm14971_vm0, %v19342_v36 }
 0x1d3   : > { %v12858_v8 = vpop.f32.mrf.mxu1  ;;  %v15424_v9 = vpop.f32.mrf.mxu0 }
 0x1d5   : > { %v15426_v19 = vpop.f32.mrf.mxu1  ;;  %v12966_v15 = vpop.f32.mrf.mxu0 }
 0x1d7   : > { %v12859_v16 = vpop.f32.mrf.mxu1  ;;  %v15428_v58 = vpop.f32.mrf.mxu0 }
 0x1d9   : > { %v15431_v17 = vpop.f32.mrf.mxu1  ;;  %13041 = vmatmul.mubr.bf16.gmra.mxu1 %v1815_v14  ;;  %v12967_v59 = vpop.f32.mrf.mxu0 }
 0x1da   : > { %13044 = vmatprep.mubr.msk.bf16.mxu1 %vm14971_vm0, %v19342_v36 }
 0x1db   : > { %v12862_v18 = vpop.f32.mrf.mxu1  ;;  %v15435_v13 = vpop.f32.mrf.mxu0 }
 0x1dd   : > { %v15437_v22 = vpop.f32.mrf.mxu1  ;;  %v12970_v23 = vpop.f32.mrf.mxu0 }
 0x1df   : > { %v12863_v25 = vpop.f32.mrf.mxu1  ;;  %v15439_v26 = vpop.f32.mrf.mxu0 }
 0x1e1   : > { %v15442_v28 = vpop.f32.mrf.mxu1  ;;  %13045 = vmatmul.mubr.bf16.gmra.mxu1 %v1823_v27  ;;  %v12971_v29 = vpop.f32.mrf.mxu0 }
 0x1e2   : > { %13128 = vmatprep.mubr.msk.bf16.mxu1 %vm14971_vm0, %v19342_v36 }
 0x1e3   : > { %v12866_v30 = vpop.f32.mrf.mxu1  ;;  %v15446_v31 = vpop.f32.mrf.mxu0 }
 0x1e5   : > { %v15448_v32 = vpop.f32.mrf.mxu1  ;;  %v12974_v33 = vpop.f32.mrf.mxu0 }
 0x1e7   : > { %v12867_v34 = vpop.f32.mrf.mxu1  ;;  %v15450_v38 = vpop.f32.mrf.mxu0 }
 0x1e9   : > { %v15452_v39 = vpop.f32.mrf.mxu1  ;;  %v12975_v40 = vpop.f32.mrf.mxu0 }
 0x1eb   : > { %v12870_v42 = vpop.f32.mrf.mxu1  ;;  %v15457_v43 = vpop.f32.mrf.mxu0 }
 0x1ed   : > { %v15459_v44 = vpop.f32.mrf.mxu1  ;;  %v12978_v45 = vpop.f32.mrf.mxu0 }
 0x1ef   : > { %v12871_v46 = vpop.f32.mrf.mxu1  ;;  %v15462_v47 = vpop.f32.mrf.mxu0 }
 0x1f1   : > { %v15464_v48 = vpop.f32.mrf.mxu1  ;;  %v12979_v49 = vpop.f32.mrf.mxu0 }
 0x1f3   : > { %v12874_v50 = vpop.f32.mrf.mxu1  ;;  %v15466_v51 = vpop.f32.mrf.mxu0 }
 0x1f5   : > { %v15471_v53 = vpop.f32.mrf.mxu1  ;;  %v12982_v54 = vpop.f32.mrf.mxu0 }
 0x1f7   : > { %v12875_v55 = vpop.f32.mrf.mxu1  ;;  %v15473_v57 = vpop.f32.mrf.mxu0 }
 0x1f9   : > { %v15479_v62 = vpop.f32.mrf.mxu1  ;;  %v12983_v63 = vpop.f32.mrf.mxu0 }
 0x1fb   : > { %v12878_v1 = vpop.f32.mrf.mxu1  ;;  %v15484_v2 = vpop.f32.mrf.mxu0 }
 0x1fd   : > { %v15490_v4 = vpop.f32.mrf.mxu1  ;;  %v12986_v5 = vpop.f32.mrf.mxu0 }
 0x1ff   : > { %v12879_v7 = vpop.f32.mrf.mxu1  ;;  %v15493_v8 = vpop.f32.mrf.mxu0 }
 0x201   : > { %v15499_v11 = vpop.f32.mrf.mxu1  ;;  %v12987_v12 = vpop.f32.mrf.mxu0 }
 0x203   : > { %v12882_v15 = vpop.f32.mrf.mxu1  ;;  %v15501_v37 = vpop.f32.mrf.mxu0 }
 0x205   : > { %v15504_v16 = vpop.f32.mrf.mxu1  ;;  %v12990_v14 = vpop.f32.mrf.mxu0 }
 0x207   : > { %v12883_v35 = vpop.f32.mrf.mxu1  ;;  %v15506_v59 = vpop.f32.mrf.mxu0 }
 0x209   : > { %v15508_v18 = vpop.f32.mrf.mxu1  ;;  %v12991_v20 = vpop.f32.mrf.mxu0 }
 0x20b   : > { %v12886_v21 = vpop.f32.mrf.mxu1  ;;  %v15510_v23 = vpop.f32.mrf.mxu0 }
 0x20c   : > { %19344 = vst [vmem:[#allocation6_spill] sm:$0xff] %v15510_v23 }
 0x20d   : > { %v15512_v24 = vpop.f32.mrf.mxu1  ;;  %v12994_v25 = vpop.f32.mrf.mxu0 }
 0x20f   : > { %v12887_v27 = vpop.f32.mrf.mxu1  ;;  %v15514_v29 = vpop.f32.mrf.mxu0 }
 0x210   : > { %19345 = vst [vmem:[#allocation7_spill] sm:$0xff] %v15514_v29 }
 0x211   : > { %v15516_v30 = vpop.f32.mrf.mxu1  ;;  %v12995_v33 = vpop.f32.mrf.mxu0 }
 0x213   : > { %v12890_v34 = vpop.f32.mrf.mxu1 }
 0x215   : > { %v15518_v40 = vpop.f32.mrf.mxu1 }
 0x217   : > { %v12891_v41 = vpop.f32.mrf.mxu1 }
 0x219   : > { %v1335_v42 = vpop.f32.mrf.mxu1 }
 0x21b   : > { %v12910_v45 = vpop.f32.mrf.mxu1 }
 0x21d   : > { %v1338_v46 = vpop.f32.mrf.mxu1 }
 0x21f   : > { %v12911_v49 = vpop.f32.mrf.mxu1 }
 0x221   : > { %v1343_v50 = vpop.f32.mrf.mxu1 }
 0x222   : > { %v1344_v36 = vadd.f32 %v1343_v50, %v15431_v17 }
 0x223   : > { %v12914_v52 = vpop.f32.mrf.mxu1 }
 0x224   : > { %v1649_v23 = vadd.f32 %v15424_v9, %v1344_v36 }
 0x225   : > { %v1346_v54 = vpop.f32.mrf.mxu1 }
 0x227   : > { %v12915_v55 = vpop.f32.mrf.mxu1 }
 0x229   : > { %v1351_v60 = vpop.f32.mrf.mxu1 }
 0x22b   : > { %v12918_v63 = vpop.f32.mrf.mxu1 }
 0x22d   : > { %v1354_v0 = vpop.f32.mrf.mxu1 }
 0x22e   : > { %v1355_v36 = vadd.f32 %v1354_v0, %v15448_v32 }
 0x22f   : > { %v12919_v1 = vpop.f32.mrf.mxu1 }
 0x231   : > { %v15520_v56 = vpop.f32.mrf.mxu1 }
 0x233   : > { %v12922_v5 = vpop.f32.mrf.mxu1 }
 0x235   : > { %v15522_v7 = vpop.f32.mrf.mxu1 }
 0x237   : > { %v12923_v10 = vpop.f32.mrf.mxu1 }
 0x238   : > { %v1336_v10 = vadd.f32 %v1335_v42, %v15419_v6 }
 0x239   : > { %v15524_v12 = vpop.f32.mrf.mxu1 }
 0x23b   : > { %v12926_v15 = vpop.f32.mrf.mxu1 }
 0x23d   : > { %v15526_v14 = vpop.f32.mrf.mxu1 }
 0x23f   : > { %v12927_v35 = vpop.f32.mrf.mxu1 }
 0x241   : > { %v15528_v20 = vpop.f32.mrf.mxu1 }
 0x243   : > { %v12930_v21 = vpop.f32.mrf.mxu1 }
 0x244   : > { %v1339_v21 = vadd.f32 %v1338_v46, %v15426_v19 }
 0x245   : > { %v15530_v25 = vpop.f32.mrf.mxu1 }
 0x246   : > { %v1648_v6 = vadd.f32 %v15413_v3, %v1339_v21  ;;  %v1352_v3 = vadd.f32 %v1351_v60, %v15442_v28 }
 0x247   : > { %v12931_v27 = vpop.f32.mrf.mxu1 }
 0x248   : > { %v1647_v27 = vadd.f32 %v15411_v61, %v1336_v10  ;;  %v1347_v61 = vadd.f32 %v1346_v54, %v15437_v22 }
 0x249   : > { %v15532_v33 = vpop.f32.mrf.mxu1 }
 0x24b   : > { %v12934_v34 = vpop.f32.mrf.mxu1 }
 0x24d   : > { %v15534_v41 = vpop.f32.mrf.mxu1 }
 0x24f   : > { %v12935_v45 = vpop.f32.mrf.mxu1 }
 0x250   : > { %v15550_v45 = vld [vmem:[%s19334_s4] ss:$0 sm:$0xff] }
 0x251   : > { %v15536_v49 = vpop.f32.mrf.mxu1 }
 0x253   : > { %v12938_v52 = vpop.f32.mrf.mxu1 }
 0x255   : > { %v15538_v55 = vpop.f32.mrf.mxu1 }
 0x257   : > { %v12939_v63 = vpop.f32.mrf.mxu1 }
 0x259   : > { %v15540_v1 = vpop.f32.mrf.mxu1 }
 0x25b   : > { %v12942_v5 = vpop.f32.mrf.mxu1 }
 0x25d   : > { %v15543_v15 = vpop.f32.mrf.mxu1 }
 0x25f   : > { %v12943_v35 = vpop.f32.mrf.mxu1 }
 0x261   : > { %v1915_v34 = vpop.f32.mrf.mxu1 }
 0x262   : > { %v1986_v52 = vadd.f32 %v1915_v34, %v1647_v27 }
 0x263   : > { %v13014_v63 = vpop.f32.mrf.mxu1 }
 0x264   : > { %v2011_v5 = vadd.f32 %v15550_v45, %v1986_v52  ;;  %v1650_v63 = vadd.f32 %v15428_v58, %v1347_v61  ;;  %v1360_v58 = vadd.f32 %v15520_v56, %v15452_v39 }
 0x265   : > { %v1918_v42 = vpop.f32.mrf.mxu1 }
 0x266   : > { %v2029_v35 = vmax.f32 %v2011_v5, 0.0  ;;  %v1987_v29 = vadd.f32 %v1918_v42, %v1648_v6  ;;  %v1653_v56 = vadd.f32 %v15446_v31, %v1360_v58  ;;  %v13514_v58 = vld [vmem:[%s19335_s5 + $0x98] sm:$0xff]  }
 0x267   : > { %v13015_v19 = vpop.f32.mrf.mxu1 }
 0x268   : > { %v12451_v46 = vpack.c.bf16 %v2029_v35, %v2029_v35  ;;  %v2012_v10 = vadd.f32 %v15550_v45, %v1987_v29 }
 0x269   : > { %v1923_v27 = vpop.f32.mrf.mxu1 }
 0x26a   : > { %2120 = vst.msk [vmem:[#allocation3] sm:$0xf] %vm2119_vm2, %v12451_v46  ;;  %v2030_v17 = vmax.f32 %v2012_v10, 0.0  ;;  %v1988_v50 = vadd.f32 %v1923_v27, %v1649_v23  ;;  %v1651_v23 = vadd.f32 %v15435_v13, %v1352_v3  ;;  %v1652_v46 = vadd.f32 %v15439_v26, %v1355_v36 }
 0x26b   : > { %v13018_v34 = vpop.f32.mrf.mxu1 }
 0x26c   : > { %v12452_v21 = vpack.c.bf16 %v2030_v17, %v2030_v17  ;;  %v2013_v52 = vadd.f32 %v15550_v45, %v1988_v50  ;;  %v1363_v34 = vadd.f32 %v15522_v7, %v15459_v44 }
 0x26d   : > { %v1926_v5 = vpop.f32.mrf.mxu1 }
 0x26e   : > { %2121 = vst.msk [vmem:[#allocation3 + $0x4] sm:$0xf] %vm2119_vm2, %v12452_v21  ;;  %v2031_v22 = vmax.f32 %v2013_v52, 0.0  ;;  %v1989_v29 = vadd.f32 %v1926_v5, %v1650_v63  ;;  %v1654_v7 = vadd.f32 %v15450_v38, %v1363_v34 }
 0x26f   : > { %v13019_v54 = vpop.f32.mrf.mxu1 }
 0x270   : > { %v12453_v9 = vpack.c.bf16 %v2031_v22, %v2031_v22  ;;  %v2014_v6 = vadd.f32 %v15550_v45, %v1989_v29  ;;  %v1368_v54 = vadd.f32 %v15524_v12, %v15464_v48 }
 0x271   : > { %v1931_v42 = vpop.f32.mrf.mxu1  ;;  %v2138_v0 = vld [vmem:[#allocation3] sm:$0xf] }
 0x272   : > { %2122 = vst.msk [vmem:[#allocation3 + $0x8] sm:$0xf] %vm2119_vm2, %v12453_v9  ;;  %v2032_v28 = vmax.f32 %v2014_v6, 0.0  ;;  %v1990_v60 = vadd.f32 %v1931_v42, %v1651_v23  ;;  %v2520_v5 = vld [vmem:[#allocation3] sm:$0xe]  ;;  %v1371_v23 = vadd.f32 %v15526_v14, %v15471_v53  ;;  %v1655_v14 = vadd.f32 %v15457_v43, %v1368_v54 }
 0x273   : > { %v13022_v35 = vpop.f32.mrf.mxu1 }
 0x274   : > { %v12454_v19 = vpack.c.bf16 %v2032_v28, %v2032_v28  ;;  %v2015_v61 = vadd.f32 %v15550_v45, %v1990_v60  ;;  %v1656_v34 = vadd.f32 %v15462_v47, %v1371_v23  ;;  %v13508_v47 = vld [vmem:[%s19335_s5 + $0x10] sm:$0xff]  }
 0x275   : > { %v1934_v32 = vpop.f32.mrf.mxu1  ;;  %v2139_v10 = vld [vmem:[#allocation3 + $0x4] sm:$0xf] }
 0x276   : > { %2123 = vst.msk [vmem:[#allocation3 + $0xc] sm:$0xf] %vm2119_vm2, %v12454_v19  ;;  %v2033_v13 = vmax.f32 %v2015_v61, 0.0  ;;  %v1991_v27 = vadd.f32 %v1934_v32, %v1652_v46  ;;  %v15572_v17 = vcombine.low %v2138_v0, %v2139_v10  ;;  %v11361_v29 = vcombine.low %v2520_v5, %v2139_v10  ;;  %v13506_v10 = vld [vmem:[%s19335_s5 + $0x18] sm:$0xff]  }
 0x277   : > { %v13023_v50 = vpop.f32.mrf.mxu1 }
 0x278   : > { %v12455_v3 = vpack.c.bf16 %v2033_v13, %v2033_v13  ;;  %v2016_v39 = vadd.f32 %v15550_v45, %v1991_v27  ;;  %v2206_v26 = vshll.u32 %v15572_v17, 16  ;;  %v2533_v48 = vrot.slane %v11361_v29, 1  ;;  %v13517_v29 = vld [vmem:[%s19335_s5 + $0x88] sm:$0xff]  }
 0x279   : > { %v1939_v21 = vpop.f32.mrf.mxu1  ;;  %v2204_v35 = vshrl.u32 %v15572_v17, 16  ;;  %v3150_v54 = vld [vmem:[#allocation3 + $0x8] sm:$0xe] }
 0x27a   : > { %2124 = vst.msk [vmem:[#allocation3 + $0x10] sm:$0xf] %vm2119_vm2, %v12455_v3  ;;  %v2034_v52 = vmax.f32 %v2016_v39, 0.0  ;;  %v1992_v63 = vadd.f32 %v1939_v21, %v1653_v56  ;;  %v2208_v6 = vrot.slane %v2206_v26, 1  ;;  %v19346_v3 = vmov 0.0   ;;  %v13516_v39 = vld [vmem:[%s19335_s5 + $0x90] sm:$0xff]  }
 0x27b   : > { %v13026_v22 = vpop.f32.mrf.mxu1  ;;  %v1376_v56 = vadd.f32 %v15528_v20, %v15479_v62  ;;  %v1379_v62 = vadd.f32 %v15530_v25, %v15490_v4 }
 0x27c   : > { %v12456_v36 = vpack.c.bf16 %v2034_v52, %v2034_v52  ;;  %v2017_v44 = vadd.f32 %v15550_v45, %v1992_v63  ;;  %v2209_v32 = vor.u32 %v2208_v6, %v2204_v35 }
 0x27d   : > { %v1942_v9 = vpop.f32.mrf.mxu1  ;;  %v15584_v31 = vld [vmem:[#allocation3 + $0x8] sm:$0xff]  }
 0x27e   : > { %2125 = vst.msk [vmem:[#allocation3 + $0x14] sm:$0xf] %vm2119_vm2, %v12456_v36  ;;  %v2035_v42 = vmax.f32 %v2017_v44, 0.0  ;;  %v1993_v28 = vadd.f32 %v1942_v9, %v1654_v7  ;;  %v2534_v12 = vrot.slane %v15584_v31, 1  ;;  %v2211_v38 = vshll.u32 %v15584_v31, 16 }
 0x27f   : > { %v13027_v60 = vpop.f32.mrf.mxu1  ;;  %v15618_v52 = vld [vmem:[#allocation3 + $0xc] sm:$0xf]  ;;  %v2215_v7 = vshrl.u32 %v15584_v31, 16 }
 0x280   : > { %v12457_v19 = vpack.c.bf16 %v2035_v42, %v2035_v42  ;;  %v2018_v53 = vadd.f32 %v15550_v45, %v1993_v28  ;;  %v2535_v46 = vsel %vm2532_vm3, %v2533_v48, %v2534_v12  ;;  %v2213_v0 = vrot.slane %v2211_v38, 1  ;;  %v13511_v38 = vld [vmem:[%s19335_s5 + $0x8] sm:$0xff]  }
 0x281   : > { %v1947_v61 = vpop.f32.mrf.mxu1  ;;  %13129 = vmatmul.mubr.msk.bf16.vlgmr.msra.gmra.mxu1 %vm2282_vm4, %v2535_v46  ;;  %v11409_v25 = vcombine.low %v3150_v54, %v15618_v52  ;;  %v1657_v42 = vadd.f32 %v15466_v51, %v1376_v56 }
 0x282   : > { %2126 = vst.msk [vmem:[#allocation3 + $0x18] sm:$0xf] %vm2119_vm2, %v12457_v19  ;;  %v2036_v13 = vmax.f32 %v2018_v53, 0.0  ;;  %v1994_v27 = vadd.f32 %v1947_v61, %v1655_v14  ;;  %v2214_v43 = vsel %vm1005_vm1, %v2209_v32, %v2213_v0  ;;  %13132 = vmatprep.mubr.msk.bf16.mxu1 %vm14971_vm0, %v19346_v3  ;;  %13193 = vmatpush3.bf16.msra.mxu1 %v13514_v58  ;;  %v13518_v14 = vld [vmem:[%s19335_s5 + $0x80] sm:$0xff]  }
 0x283   : > { %v13030_v50 = vpop.f32.mrf.mxu1  ;;  %13057 = vmatmul.mubr.msk.bf16.vlgmr.msra.gmra.mxu0 %vm2282_vm4, %v2214_v43  ;;  %13194 = vmatprep.subr.bf16.mxu1 %v19346_v3  ;;  %v2217_v48 = vor.u32 %v2215_v7, %v2213_v0  ;;  %v1658_v53 = vadd.f32 %v15473_v57, %v1379_v62  ;;  %v3162_v61 = vrot.slane %v11409_v25, 1  ;;  %v1384_v32 = vadd.f32 %v15532_v33, %v15499_v11  ;;  %v13515_v57 = vld [vmem:[%s19335_s5] sm:$0xff]  }
 0x284   : > { %v12458_v21 = vpack.c.bf16 %v2036_v13, %v2036_v13  ;;  %v2019_v26 = vadd.f32 %v15550_v45, %v1994_v27  ;;  %13085 = vmatpush3.bf16.msra.mxu0 %v13506_v10  ;;  %13060 = vmatprep.mubr.msk.bf16.mxu0 %vm14971_vm0, %v19346_v3 }
 0x285   : > { %v1950_v63 = vpop.f32.mrf.mxu1  ;;  %v15620_v5 = vld [vmem:[#allocation3 + $0x10] sm:$0xff]   ;;  %13086 = vmatprep.subr.bf16.mxu0 %v19346_v3  ;;  %v1659_v62 = vadd.f32 %v15484_v2, %v1384_v32 }
 0x286   : > { %2127 = vst.msk [vmem:[#allocation3 + $0x1c] sm:$0xf] %vm2119_vm2, %v12458_v21  ;;  %v2037_v20 = vmax.f32 %v2019_v26, 0.0  ;;  %v1995_v22 = vadd.f32 %v1950_v63, %v1656_v34  ;;  %v2536_v44 = vrot.slane %v15620_v5, 1  ;;  %v2219_v9 = vshll.u32 %v15620_v5, 16  ;;  %13195 = vmatpush3.bf16.msra.mxu1 %v13516_v39  ;;  %v15634_v4 = vld [vmem:[#allocation3 + $0x10] sm:$0xff]  }
 0x287   : > { %v13031_v36 = vpop.f32.mrf.mxu1  ;;  %13196 = vmatprep.subr.bf16.mxu1 %v19346_v3  ;;  %v3163_v46 = vrot.slane %v15634_v4, 1  ;;  %v2223_v56 = vshrl.u32 %v15620_v5, 16  ;;  %v1387_v26 = vadd.f32 %v15534_v41, %v15504_v16 }
 0x288   : > { %v12459_v6 = vpack.c.bf16 %v2037_v20, %v2037_v20  ;;  %v2020_v23 = vadd.f32 %v15550_v45, %v1995_v22  ;;  %v2537_v60 = vsel %vm2532_vm3, %v2534_v12, %v2536_v44  ;;  %v2221_v35 = vrot.slane %v2219_v9, 1  ;;  %13087 = vmatpush3.bf16.msra.mxu0 %v13508_v47 }
 0x289   : > { %v1955_v28 = vpop.f32.mrf.mxu1  ;;  %13133 = vmatmul.mubr.msk.bf16.gmra.mxu1 %vm2282_vm4, %v2537_v60  ;;  %13088 = vmatprep.subr.bf16.mxu0 %v19346_v3  ;;  %v15668_v11 = vsel %vm2532_vm3, %v3162_v61, %v3163_v46 }
 0x28a   : > { %2128 = vst.msk [vmem:[#allocation3 + $0x20] sm:$0xf] %vm2119_vm2, %v12459_v6  ;;  %v2038_v58 = vmax.f32 %v2020_v23, 0.0  ;;  %v1996_v19 = vadd.f32 %v1955_v28, %v1657_v42  ;;  %v2222_v12 = vsel %vm1005_vm1, %v2217_v48, %v2221_v35  ;;  %13136 = vmatprep.mubr.msk.bf16.mxu1 %vm14971_vm0, %v19346_v3  ;;  %13197 = vmatpush3.bf16.msra.mxu1 %v13517_v29 }
 0x28b   : > { %v13034_v51 = vpop.f32.mrf.mxu1  ;;  %13061 = vmatmul.mubr.msk.bf16.gmra.mxu0 %vm2282_vm4, %v2222_v12  ;;  %13198 = vmatprep.subr.bf16.mxu1 %v19346_v3  ;;  %v2225_v29 = vor.u32 %v2223_v56, %v2221_v35  ;;  %v1660_v23 = vadd.f32 %v15493_v8, %v1387_v26 }
 0x28c   : > { %v12460_v0 = vpack.c.bf16 %v2038_v58, %v2038_v58  ;;  %v2021_v10 = vadd.f32 %v15550_v45, %v1996_v19  ;;  %13064 = vmatprep.mubr.msk.bf16.mxu0 %vm14971_vm0, %v19346_v3  ;;  %13089 = vmatpush3.bf16.msra.mxu0 %v13511_v38  ;;  %v1395_v58 = vadd.f32 %v15538_v55, %v15512_v24 }
 0x28d   : > { %v1958_v13 = vpop.f32.mrf.mxu1  ;;  %v15663_v27 = vld [vmem:[#allocation3 + $0x18] sm:$0xff]   ;;  %13090 = vmatprep.subr.bf16.mxu0 %v19346_v3  ;;  %v1400_v55 = vadd.f32 %v15540_v1, %v15516_v30 }
 0x28e   : > { %2129 = vst.msk [vmem:[#allocation3 + $0x24] sm:$0xf] %vm2119_vm2, %v12460_v0  ;;  %v2039_v33 = vmax.f32 %v2021_v10, 0.0  ;;  %v1997_v50 = vadd.f32 %v1958_v13, %v1658_v53  ;;  %v15672_v34 = vld [vmem:[#allocation3 + $0x18] sm:$0xff]   ;;  %v2538_v39 = vrot.slane %v15663_v27, 1  ;;  %v2227_v21 = vshll.u32 %v15663_v27, 16  ;;  %13199 = vmatpush3.bf16.msra.mxu1 %v13518_v14 }
 0x28f   : > { %v13035_v43 = vpop.f32.mrf.mxu1  ;;  %13264 = vmatprep.subr.bf16.mxu1 %v19346_v3  ;;  %v3165_v36 = vrot.slane %v15672_v34, 1  ;;  %v2231_v38 = vshrl.u32 %v15663_v27, 16 }
 0x290   : > { %v12461_v47 = vpack.c.bf16 %v2039_v33, %v2039_v33  ;;  %v2022_v63 = vadd.f32 %v15550_v45, %v1997_v50  ;;  %v2539_v22 = vsel %vm2532_vm3, %v2536_v44, %v2538_v39  ;;  %v2229_v54 = vrot.slane %v2227_v21, 1  ;;  %13091 = vmatpush3.bf16.msra.mxu0 %v13515_v57 }
 0x291   : > { %v1963_v20 = vpop.f32.mrf.mxu1  ;;  %13137 = vmatmul.mubr.msk.bf16.gmra.mxu1 %vm2282_vm4, %v2539_v22  ;;  %13156 = vmatprep.subr.bf16.mxu0 %v19346_v3  ;;  %v15691_v41 = vsel %vm2532_vm3, %v3163_v46, %v3165_v36  ;;  %v1392_v44 = vadd.f32 %v15536_v49, %v15508_v18  ;;  %v1662_v50 = vadd.f32 %v15506_v59, %v1395_v58  ;;  %v19347_v22 = vld [vmem:[#allocation6_spill] sm:$0xff] }
 0x292   : > { %2130 = vst.msk [vmem:[#allocation3 + $0x28] sm:$0xf] %vm2119_vm2, %v12461_v47  ;;  %v2040_v7 = vmax.f32 %v2022_v63, 0.0  ;;  %v1998_v9 = vadd.f32 %v1963_v20, %v1659_v62  ;;  %v2230_v2 = vsel %vm1005_vm1, %v2225_v29, %v2229_v54  ;;  %13140 = vmatprep.mubr.msk.bf16.mxu1 %vm14971_vm0, %v19346_v3  ;;  %v2233_v61 = vor.u32 %v2231_v38, %v2229_v54 }
 0x293   : > { %v13038_v16 = vpop.f32.mrf.mxu1  ;;  %13065 = vmatmul.mubr.msk.bf16.gmra.mxu0 %vm2282_vm4, %v2230_v2  ;;  %v1661_v53 = vadd.f32 %v15501_v37, %v1392_v44  ;;  %v1403_v63 = vadd.f32 %v15543_v15, %v15518_v40  ;;  %v1663_v29 = vadd.f32 %v19347_v22, %v1400_v55  ;;  %v13529_v22 = vld [vmem:[%s19335_s5 + $0xd8] sm:$0xff]  }
 0x294   : > { %v12462_v25 = vpack.c.bf16 %v2040_v7, %v2040_v7  ;;  %v2023_v6 = vadd.f32 %v15550_v45, %v1998_v9  ;;  %13068 = vmatprep.mubr.msk.bf16.mxu0 %vm14971_vm0, %v19346_v3 }
 0x295   : > { %v1966_v42 = vpop.f32.mrf.mxu1  ;;  %v15698_v28 = vld [vmem:[#allocation3 + $0x20] sm:$0xff]  }
 0x296   : > { %2131 = vst.msk [vmem:[#allocation3 + $0x2c] sm:$0xf] %vm2119_vm2, %v12462_v25  ;;  %v2041_v60 = vmax.f32 %v2023_v6, 0.0  ;;  %v1999_v48 = vadd.f32 %v1966_v42, %v1660_v23  ;;  %v15703_v35 = vld [vmem:[#allocation3 + $0x20] sm:$0xff]   ;;  %v2540_v49 = vrot.slane %v15698_v28, 1  ;;  %v2235_v8 = vshll.u32 %v15698_v28, 16 }
 0x297   : > { %v13039_v18 = vpop.f32.mrf.mxu1  ;;  %v3167_v32 = vrot.slane %v15703_v35, 1  ;;  %v2239_v1 = vshrl.u32 %v15698_v28, 16  ;;  %v19348_v23 = vld [vmem:[#allocation7_spill] sm:$0xff] }
 0x298   : > { %v12463_v19 = vpack.c.bf16 %v2041_v60, %v2041_v60  ;;  %v2024_v51 = vadd.f32 %v15550_v45, %v1999_v48  ;;  %v2541_v14 = vsel %vm2532_vm3, %v2538_v39, %v2540_v49  ;;  %v2237_v46 = vrot.slane %v2235_v8, 1 }
 0x299   : > { %v1971_v12 = vpop.f32.mrf.mxu1  ;;  %13141 = vmatmul.mubr.msk.bf16.gmra.mxu1 %vm2282_vm4, %v2541_v14  ;;  %v15720_v37 = vsel %vm2532_vm3, %v3165_v36, %v3167_v32  ;;  %v1664_v42 = vadd.f32 %v19348_v23, %v1403_v63 }
 0x29a   : > { %2132 = vst.msk [vmem:[#allocation3 + $0x30] sm:$0xf] %vm2119_vm2, %v12463_v19  ;;  %v2042_v0 = vmax.f32 %v2024_v51, 0.0  ;;  %v2000_v10 = vadd.f32 %v1971_v12, %v1661_v53  ;;  %v2238_v24 = vsel %vm1005_vm1, %v2233_v61, %v2237_v46  ;;  %13144 = vmatprep.mubr.msk.bf16.mxu1 %vm14971_vm0, %v19346_v3  ;;  %v2241_v7 = vor.u32 %v2239_v1, %v2237_v46 }
 0x29b   : > { %v13042_v57 = vpop.f32.mrf.mxu1  ;;  %13069 = vmatmul.mubr.msk.bf16.gmra.mxu0 %vm2282_vm4, %v2238_v24  ;;  %v2892_v24 = vld [vmem:[#allocation3 + $0x8] sm:$0xf] }
 0x29c   : > { %v12464_v13 = vpack.c.bf16 %v2042_v0, %v2042_v0  ;;  %v2025_v33 = vadd.f32 %v15550_v45, %v2000_v10  ;;  %13072 = vmatprep.mubr.msk.bf16.mxu0 %vm14971_vm0, %v19346_v3 }
 0x29d   : > { %v1974_v43 = vpop.f32.mrf.mxu1  ;;  %v15727_v39 = vld [vmem:[#allocation3 + $0x28] sm:$0xff]  }
 0x29e   : > { %2133 = vst.msk [vmem:[#allocation3 + $0x34] sm:$0xf] %vm2119_vm2, %v12464_v13  ;;  %v2043_v56 = vmax.f32 %v2025_v33, 0.0  ;;  %v2001_v21 = vadd.f32 %v1974_v43, %v1662_v50  ;;  %v2542_v30 = vrot.slane %v15727_v39, 1  ;;  %v2243_v47 = vshll.u32 %v15727_v39, 16  ;;  %v15735_v59 = vld [vmem:[#allocation3 + $0x28] sm:$0xff]  }
 0x29f   : > { %v13043_v26 = vpop.f32.mrf.mxu1  ;;  %v3169_v40 = vrot.slane %v15735_v59, 1  ;;  %v2247_v51 = vshrl.u32 %v15727_v39, 16 }
 0x2a0   : > { %v12465_v62 = vpack.c.bf16 %v2043_v56, %v2043_v56  ;;  %v2026_v20 = vadd.f32 %v15550_v45, %v2001_v21  ;;  %v2543_v36 = vsel %vm2532_vm3, %v2540_v49, %v2542_v30  ;;  %v2245_v9 = vrot.slane %v2243_v47, 1 }
 0x2a1   : > { %v1979_v54 = vpop.f32.mrf.mxu1  ;;  %13145 = vmatmul.mubr.msk.bf16.gmra.mxu1 %vm2282_vm4, %v2543_v36  ;;  %v15751_v48 = vld [vmem:[#allocation3 + $0x30] sm:$0xf]  ;;  %v15756_v49 = vsel %vm2532_vm3, %v3167_v32, %v3169_v40  ;;  %v2965_v36 = vshll.u32 %v15672_v34, 16 }
 0x2a2   : > { %2134 = vst.msk [vmem:[#allocation3 + $0x38] sm:$0xf] %vm2119_vm2, %v12465_v62  ;;  %v2044_v16 = vmax.f32 %v2026_v20, 0.0  ;;  %v2002_v2 = vadd.f32 %v1979_v54, %v1663_v29  ;;  %v2246_v25 = vsel %vm1005_vm1, %v2241_v7, %v2245_v9  ;;  %13148 = vmatprep.mubr.msk.bf16.mxu1 %vm14971_vm0, %v19346_v3  ;;  %v2249_v10 = vor.u32 %v2247_v51, %v2245_v9  ;;  %v13521_v54 = vld [vmem:[%s19335_s5 + $0x78] sm:$0xff]   ;;  %v13531_v7 = vld [vmem:[%s19335_s5 + $0xd0] sm:$0xff]  }
 0x2a3   : > { %v13046_v44 = vpop.f32.mrf.mxu1  ;;  %13073 = vmatmul.mubr.msk.bf16.gmra.mxu0 %vm2282_vm4, %v2246_v25  ;;  %v2961_v9 = vshrl.u32 %v15634_v4, 16  ;;  %v2973_v25 = vshll.u32 %v15703_v35, 16 }
 0x2a4   : > { %v12466_v15 = vpack.c.bf16 %v2044_v16, %v2044_v16  ;;  %v2027_v6 = vadd.f32 %v15550_v45, %v2002_v2  ;;  %13076 = vmatprep.mubr.msk.bf16.mxu0 %vm14971_vm0, %v19346_v3  ;;  %v2967_v16 = vrot.slane %v2965_v36, 1  ;;  %v13523_v2 = vld [vmem:[%s19335_s5 + $0x70] sm:$0xff]   ;;  %v15960_v36 = vld [vmem:[#allocation3 + $0x14] sm:$0xf] }
 0x2a5   : > { %v1982_v60 = vpop.f32.mrf.mxu1  ;;  %v2159_v18 = vld [vmem:[#allocation3 + $0x34] sm:$0x1]  ;;  %v2975_v23 = vrot.slane %v2973_v25, 1  ;;  %v13561_v25 = vld [vmem:[%s19335_s5 + $0xf8] sm:$0xff]  }
 0x2a6   : > { %2135 = vst.msk [vmem:[#allocation3 + $0x3c] sm:$0xf] %vm2119_vm2, %v12466_v15  ;;  %v2045_v38 = vmax.f32 %v2027_v6, 0.0  ;;  %v2003_v8 = vadd.f32 %v1982_v60, %v1664_v42  ;;  %v11337_v58 = vcombine.low %v15751_v48, %v2159_v18  ;;  %v15761_v53 = vld [vmem:[#allocation3 + $0x30] sm:$0xff]   ;;  %v13534_v15 = vld [vmem:[%s19335_s5 + $0xc0] sm:$0xff]   ;;  %v2969_v6 = vshrl.u32 %v15672_v34, 16 }
 0x2a7   : > { %v13047_v19 = vpop.f32.mrf.mxu1  ;;  %v3171_v55 = vrot.slane %v15761_v53, 1  ;;  %v13530_v42 = vld [vmem:[%s19335_s5 + $0x60] sm:$0xff]   ;;  %v2981_v18 = vshll.u32 %v15735_v59, 16  ;;  %v2977_v34 = vshrl.u32 %v15703_v35, 16 }
 0x2a8   : > { %v12467_v12 = vpack.c.bf16 %v2045_v38, %v2045_v38  ;;  %v2028_v14 = vadd.f32 %v15550_v45, %v2003_v8  ;;  %v2544_v61 = vrot.slane %v11337_v58, 1  ;;  %v2251_v46 = vshll.u32 %v11337_v58, 16 }
 0x2a9   : > { %v11391_v45 = vcombine.low %v2892_v24, %v15618_v52  ;;  %v15776_v43 = vsel %vm2532_vm3, %v3169_v40, %v3171_v55  ;;  %v2255_v26 = vshrl.u32 %v11337_v58, 16  ;;  %v13526_v40 = vld [vmem:[%s19335_s5 + $0x68] sm:$0xff]   ;;  %v2971_v60 = vor.u32 %v2969_v6, %v2967_v16  ;;  %v13540_v24 = vld [vmem:[%s19335_s5 + $0xb0] sm:$0xff]  }
 0x2aa   : > { %2136 = vst.msk [vmem:[#allocation3 + $0x40] sm:$0xf] %vm2119_vm2, %v12467_v12  ;;  %v2046_v32 = vmax.f32 %v2028_v14, 0.0  ;;  %v2545_v0 = vsel %vm2532_vm3, %v2542_v30, %v2544_v61  ;;  %v2253_v57 = vrot.slane %v2251_v46, 1  ;;  %v2957_v30 = vshll.u32 %v15634_v4, 16  ;;  %v13563_v6 = vld [vmem:[%s19335_s5 + $0xf0] sm:$0xff]  }
 0x2ab   : > { %13149 = vmatmul.mubr.msk.bf16.gmra.mxu1 %vm2282_vm4, %v2545_v0  ;;  %v2952_v21 = vshll.u32 %v11391_v45, 16  ;;  %v2950_v63 = vshrl.u32 %v11391_v45, 16  ;;  %v2983_v38 = vrot.slane %v2981_v18, 1  ;;  %v2979_v8 = vor.u32 %v2977_v34, %v2975_v23  ;;  %v13535_v0 = vld [vmem:[#allocation3 + $0x10] sm:$0xff]  }
 0x2ac   : > { %v12468_v13 = vpack.c.bf16 %v2046_v32, %v2046_v32  ;;  %v2254_v33 = vsel %vm1005_vm1, %v2249_v10, %v2253_v57  ;;  %13152 = vmatprep.mubr.msk.bf16.mxu1 %vm14971_vm0, %v19346_v3  ;;  %v2257_v1 = vor.u32 %v2255_v26, %v2253_v57  ;;  %v2959_v62 = vrot.slane %v2957_v30, 1  ;;  %v13537_v10 = vld [vmem:[%s19335_s5 + $0xb8] sm:$0xff]   ;;  %v13552_v57 = vld [vmem:[%s19335_s5 + $0x110] sm:$0xff]   ;;  %v13539_v45 = vld [vmem:[#allocation3 + $0x10] sm:$0xff]  }
 0x2ad   : > { %13077 = vmatmul.mubr.msk.bf16.gmra.mxu0 %vm2282_vm4, %v2254_v33  ;;  %v15773_v50 = vld [vmem:[#allocation3 + $0x38] sm:$0x1f]   ;;  %v2954_v47 = vrot.slane %v2952_v21, 1  ;;  %v2984_v58 = vsel %vm1005_vm1, %v2979_v8, %v2983_v38  ;;  %v2989_v19 = vshll.u32 %v15761_v53, 16  ;;  %v11349_v32 = vcombine.low %v15751_v48, %v15751_v48  ;;  %v13536_v48 = vld [vmem:[#allocation3 + $0x8] sm:$0xff]   ;;  %v13545_v33 = vld [vmem:[%s19335_s5 + $0xa8] sm:$0xff]  }
 0x2ae   : > { %2137 = vst.msk [vmem:[#allocation3 + $0x44] sm:$0xf] %vm2119_vm2, %v12468_v13  ;;  %13080 = vmatprep.mubr.msk.bf16.mxu0 %vm14971_vm0, %v19346_v3  ;;  %v3173_v56 = vrot.slane %v15773_v50, 1  ;;  %v2963_v44 = vor.u32 %v2961_v9, %v2959_v62  ;;  %v2997_v14 = vshll.u32 %v15773_v50, 16  ;;  %v13538_v13 = vld [vmem:[#allocation3 + $0x18] sm:$0xff]   ;;  %v13556_v21 = vld [vmem:[%s19335_s5 + $0x100] sm:$0xff]  }
 0x2af   : > { %v2955_v20 = vor.u32 %v2954_v47, %v2950_v63  ;;  %v2991_v35 = vrot.slane %v2989_v19, 1  ;;  %v13551_v26 = vld [vmem:[%s19335_s5 + $0xa0] sm:$0xff]   ;;  %v13541_v30 = vld [vmem:[#allocation3 + $0x20] sm:$0xff]   ;;  %v13555_v9 = vld [vmem:[#allocation3 + $0x38] ss:$0 sps:$4 sm:$0xff]  }
 0x2b0   : > { %v15785_v52 = vsel %vm2532_vm3, %v3171_v55, %v3173_v56  ;;  %v2968_v4 = vsel %vm1005_vm1, %v2963_v44, %v2967_v16  ;;  %v13554_v55 = vld [vmem:[%s19335_s5 + $0x108] sm:$0xff]   ;;  %v13543_v47 = vld [vmem:[#allocation3 + $0x28] sm:$0xff]   ;;  %v13544_v63 = vld [vmem:[#allocation3 + $0x20] sm:$0xff]  }
 0x2b1   : > { %v2960_v29 = vsel %vm1005_vm1, %v2955_v20, %v2959_v62  ;;  %v13546_v62 = vld [vmem:[#allocation3 + $0x30] sm:$0xff]   ;;  %v13547_v20 = vld [vmem:[#allocation3 + $0x28] sm:$0xff]  }
 0x2b2   : > { %v3779_v16 = vld [vmem:[#allocation3 + $0x10] sm:$0xe] }
 0x2b3   : > { %13153 = vmatmul.mubr.msk.bf16.gmra.mxu1 %vm2282_vm4, %v2544_v61  ;;  %v16010_v34 = vld [vmem:[#allocation3 + $0x30] sm:$0xff]  }
 0x2b4   : > { %13200 = vmatprep.mubr.msk.bf16.mxu1 %vm14971_vm0, %v19346_v3 }
 0x2b5   : > { %13081 = vmatmul.mubr.msk.bf16.gmra.mxu0 %vm2282_vm4, %v2257_v1  ;;  %v13542_v1 = vld [vmem:[#allocation3 + $0x18] sm:$0xff]  }
 0x2b6   : > { %13092 = vmatprep.mubr.msk.bf16.mxu0 %vm14971_vm0, %v19346_v3 }
 0x2bb   : > { %13201 = vmatmul.mubr.msk.bf16.vlgmr.msra.gmra.mxu1 %vm2282_vm4, %v2960_v29  ;;  %v13550_v29 = vld [vmem:[#allocation3 + $0x30] sm:$0xff]  }
 0x2bc   : > { %13204 = vmatprep.mubr.msk.bf16.mxu1 %vm14971_vm0, %v19346_v3  ;;  %13265 = vmatpush3.bf16.msra.mxu1 %v13529_v22  ;;  %v13548_v22 = vld [vmem:[#allocation3 + $0x38] sm:$0xff]  }
 0x2bd   : > { %13093 = vmatmul.mubr.msk.bf16.vlgmr.msra.gmra.mxu0 %vm2282_vm4, %v15572_v17  ;;  %13266 = vmatprep.subr.bf16.mxu1 %v19346_v3  ;;  %v13532_v17 = vld [vmem:[%s19335_s5 + $0xc8] sm:$0xff]  }
 0x2be   : > { %13157 = vmatpush3.bf16.msra.mxu0 %v13521_v54  ;;  %13096 = vmatprep.mubr.msk.bf16.mxu0 %vm14971_vm0, %v19346_v3  ;;  %v13553_v54 = vld [vmem:[#allocation3 + $0x40] ss:$0 sps:$4 sm:$0xff]  }
 0x2bf   : > { %13158 = vmatprep.subr.bf16.mxu0 %v19346_v3 }
 0x2c0   : > { %13267 = vmatpush3.bf16.msra.mxu1 %v13531_v7  ;;  %v15962_v7 = vld [vmem:[#allocation3 + $0x18] sm:$0xff]  }
 0x2c1   : > { %13268 = vmatprep.subr.bf16.mxu1 %v19346_v3  ;;  %v3792_v44 = vrot.slane %v15962_v7, 1 }
 0x2c2   : > { %13159 = vmatpush3.bf16.msra.mxu0 %v13523_v2  ;;  %v11457_v2 = vcombine.low %v3779_v16, %v15960_v36 }
 0x2c3   : > { %13205 = vmatmul.mubr.msk.bf16.gmra.mxu1 %vm2282_vm4, %v2968_v4  ;;  %13160 = vmatprep.subr.bf16.mxu0 %v19346_v3 }
 0x2c4   : > { %13208 = vmatprep.mubr.msk.bf16.mxu1 %vm14971_vm0, %v19346_v3  ;;  %13269 = vmatpush3.bf16.msra.mxu1 %v13532_v17  ;;  %v3791_v17 = vrot.slane %v11457_v2, 1 }
 0x2c5   : > { %13097 = vmatmul.mubr.msk.bf16.gmra.mxu0 %vm2282_vm4, %v15584_v31  ;;  %13270 = vmatprep.subr.bf16.mxu1 %v19346_v3  ;;  %v2976_v31 = vsel %vm1005_vm1, %v2971_v60, %v2975_v23 }
 0x2c6   : > { %13100 = vmatprep.mubr.msk.bf16.mxu0 %vm14971_vm0, %v19346_v3  ;;  %13161 = vmatpush3.bf16.msra.mxu0 %v13526_v40  ;;  %v3793_v4 = vsel %vm2532_vm3, %v3791_v17, %v3792_v44  ;;  %v15976_v40 = vld [vmem:[#allocation3 + $0x20] sm:$0xff]  }
 0x2c7   : > { %13162 = vmatprep.subr.bf16.mxu0 %v19346_v3 }
 0x2c8   : > { %13271 = vmatpush3.bf16.msra.mxu1 %v13534_v15  ;;  %v3794_v15 = vrot.slane %v15976_v40, 1 }
 0x2c9   : > { %13336 = vmatprep.subr.bf16.mxu1 %v19346_v3 }
 0x2ca   : > { %13163 = vmatpush3.bf16.msra.mxu0 %v13530_v42  ;;  %v3795_v23 = vsel %vm2532_vm3, %v3792_v44, %v3794_v15  ;;  %v15991_v42 = vld [vmem:[#allocation3 + $0x28] sm:$0xff]  }
 0x2cb   : > { %13209 = vmatmul.mubr.msk.bf16.gmra.mxu1 %vm2282_vm4, %v2976_v31  ;;  %13228 = vmatprep.subr.bf16.mxu0 %v19346_v3  ;;  %v3796_v60 = vrot.slane %v15991_v42, 1  ;;  %v13569_v31 = vld [vmem:[%s19335_s5 + $0xe0] sm:$0xff]  }
 0x2cc   : > { %13212 = vmatprep.mubr.msk.bf16.mxu1 %vm14971_vm0, %v19346_v3 }
 0x2cd   : > { %13101 = vmatmul.mubr.msk.bf16.gmra.mxu0 %vm2282_vm4, %v15620_v5  ;;  %v2985_v5 = vshrl.u32 %v15735_v59, 16  ;;  %v2999_v59 = vrot.slane %v2997_v14, 1  ;;  %v3797_v18 = vsel %vm2532_vm3, %v3794_v15, %v3796_v60 }
 0x2ce   : > { %13104 = vmatprep.mubr.msk.bf16.mxu0 %vm14971_vm0, %v19346_v3 }
 0x2cf   : > { %v2987_v51 = vor.u32 %v2985_v5, %v2983_v38 }
 0x2d1   : > { %v2992_v12 = vsel %vm1005_vm1, %v2987_v51, %v2991_v35 }
 0x2d3   : > { %13213 = vmatmul.mubr.msk.bf16.gmra.mxu1 %vm2282_vm4, %v2984_v58  ;;  %v16023_v58 = vld [vmem:[#allocation3 + $0x38] sm:$0xff]  }
 0x2d4   : > { %13216 = vmatprep.mubr.msk.bf16.mxu1 %vm14971_vm0, %v19346_v3  ;;  %v3800_v51 = vrot.slane %v16023_v58, 1 }
 0x2d5   : > { %13105 = vmatmul.mubr.msk.bf16.gmra.mxu0 %vm2282_vm4, %v15663_v27  ;;  %v2993_v27 = vshrl.u32 %v15761_v53, 16 }
 0x2d6   : > { %13108 = vmatprep.mubr.msk.bf16.mxu0 %vm14971_vm0, %v19346_v3 }
 0x2d7   : > { %v2995_v61 = vor.u32 %v2993_v27, %v2991_v35 }
 0x2d9   : > { %v3000_v46 = vsel %vm1005_vm1, %v2995_v61, %v2999_v59 }
 0x2db   : > { %13217 = vmatmul.mubr.msk.bf16.gmra.mxu1 %vm2282_vm4, %v2992_v12 }
 0x2dc   : > { %13220 = vmatprep.mubr.msk.bf16.mxu1 %vm14971_vm0, %v19346_v3 }
 0x2dd   : > { %13109 = vmatmul.mubr.msk.bf16.gmra.mxu0 %vm2282_vm4, %v15698_v28  ;;  %v3001_v28 = vshrl.u32 %v15773_v50, 16 }
 0x2de   : > { %13112 = vmatprep.mubr.msk.bf16.mxu0 %vm14971_vm0, %v19346_v3 }
 0x2df   : > { %v3003_v53 = vor.u32 %v3001_v28, %v2999_v59 }
 0x2e3   : > { %13221 = vmatmul.mubr.msk.bf16.gmra.mxu1 %vm2282_vm4, %v3000_v46  ;;  %v16038_v46 = vld [vmem:[#allocation3 + $0x40] sm:$0x1f]  }
 0x2e4   : > { %13224 = vmatprep.mubr.msk.bf16.mxu1 %vm14971_vm0, %v19346_v3 }
 0x2e5   : > { %13113 = vmatmul.mubr.msk.bf16.gmra.mxu0 %vm2282_vm4, %v15727_v39  ;;  %v13549_v39 = vld [vmem:[%s19335_s5 + $0x118] sm:$0xff]  }
 0x2e6   : > { %13116 = vmatprep.mubr.msk.bf16.mxu0 %vm14971_vm0, %v19346_v3 }
 0x2eb   : > { %13225 = vmatmul.mubr.msk.bf16.gmra.mxu1 %vm2282_vm4, %v3003_v53 }
 0x2ec   : > { %13272 = vmatprep.mubr.msk.bf16.mxu1 %vm14971_vm0, %v19346_v3 }
 0x2ed   : > { %13117 = vmatmul.mubr.msk.bf16.gmra.mxu0 %vm2282_vm4, %v11349_v32 }
 0x2ee   : > { %13164 = vmatprep.mubr.msk.bf16.mxu0 %vm14971_vm0, %v19346_v3 }
 0x2f3   : > { %13273 = vmatmul.mubr.msk.bf16.vlgmr.msra.gmra.mxu1 %vm2282_vm4, %v13535_v0 }
 0x2f4   : > { %13276 = vmatprep.mubr.msk.bf16.mxu1 %vm14971_vm0, %v19346_v3  ;;  %13337 = vmatpush3.bf16.msra.mxu1 %v13549_v39  ;;  %v3802_v39 = vrot.slane %v16038_v46, 1 }
 0x2f5   : > { %13165 = vmatmul.mubr.msk.bf16.vlgmr.msra.gmra.mxu0 %vm2282_vm4, %v13536_v48  ;;  %13338 = vmatprep.subr.bf16.mxu1 %v19346_v3 }
 0x2f6   : > { %13229 = vmatpush3.bf16.msra.mxu0 %v13537_v10  ;;  %13168 = vmatprep.mubr.msk.bf16.mxu0 %vm14971_vm0, %v19346_v3 }
 0x2f7   : > { %13230 = vmatprep.subr.bf16.mxu0 %v19346_v3 }
 0x2f8   : > { %13339 = vmatpush3.bf16.msra.mxu1 %v13552_v57 }
 0x2f9   : > { %13340 = vmatprep.subr.bf16.mxu1 %v19346_v3 }
 0x2fa   : > { %13231 = vmatpush3.bf16.msra.mxu0 %v13540_v24  ;;  %v3803_v24 = vsel %vm2532_vm3, %v3800_v51, %v3802_v39 }
 0x2fb   : > { %13277 = vmatmul.mubr.msk.bf16.gmra.mxu1 %vm2282_vm4, %v13538_v13  ;;  %13232 = vmatprep.subr.bf16.mxu0 %v19346_v3 }
 0x2fc   : > { %13280 = vmatprep.mubr.msk.bf16.mxu1 %vm14971_vm0, %v19346_v3  ;;  %13341 = vmatpush3.bf16.msra.mxu1 %v13554_v55 }
 0x2fd   : > { %13169 = vmatmul.mubr.msk.bf16.gmra.mxu0 %vm2282_vm4, %v13539_v45  ;;  %13342 = vmatprep.subr.bf16.mxu1 %v19346_v3 }
 0x2fe   : > { %13172 = vmatprep.mubr.msk.bf16.mxu0 %vm14971_vm0, %v19346_v3  ;;  %13233 = vmatpush3.bf16.msra.mxu0 %v13545_v33 }
 0x2ff   : > { %13234 = vmatprep.subr.bf16.mxu0 %v19346_v3 }
 0x300   : > { %13343 = vmatpush3.bf16.msra.mxu1 %v13556_v21 }
 0x302   : > { %13235 = vmatpush3.bf16.msra.mxu0 %v13551_v26 }
 0x303   : > { %13281 = vmatmul.mubr.msk.bf16.gmra.mxu1 %vm2282_vm4, %v13541_v30  ;;  %13300 = vmatprep.subr.bf16.mxu0 %v19346_v3 }
 0x304   : > { %13284 = vmatprep.mubr.msk.bf16.mxu1 %vm14971_vm0, %v19346_v3 }
 0x305   : > { %13173 = vmatmul.mubr.msk.bf16.gmra.mxu0 %vm2282_vm4, %v13542_v1 }
 0x306   : > { %13176 = vmatprep.mubr.msk.bf16.mxu0 %vm14971_vm0, %v19346_v3 }
 0x30b   : > { %13285 = vmatmul.mubr.msk.bf16.gmra.mxu1 %vm2282_vm4, %v13543_v47 }
 0x30c   : > { %13288 = vmatprep.mubr.msk.bf16.mxu1 %vm14971_vm0, %v19346_v3 }
 0x30d   : > { %13177 = vmatmul.mubr.msk.bf16.gmra.mxu0 %vm2282_vm4, %v13544_v63 }
 0x30e   : > { %13180 = vmatprep.mubr.msk.bf16.mxu0 %vm14971_vm0, %v19346_v3 }
 0x313   : > { %13289 = vmatmul.mubr.msk.bf16.gmra.mxu1 %vm2282_vm4, %v13546_v62 }
 0x314   : > { %13292 = vmatprep.mubr.msk.bf16.mxu1 %vm14971_vm0, %v19346_v3 }
 0x315   : > { %13181 = vmatmul.mubr.msk.bf16.gmra.mxu0 %vm2282_vm4, %v13547_v20 }
 0x316   : > { %13184 = vmatprep.mubr.msk.bf16.mxu0 %vm14971_vm0, %v19346_v3 }
 0x31b   : > { %13293 = vmatmul.mubr.msk.bf16.gmra.mxu1 %vm2282_vm4, %v13548_v22 }
 0x31c   : > { %13296 = vmatprep.mubr.msk.bf16.mxu1 %vm14971_vm0, %v19346_v3 }
 0x31d   : > { %13185 = vmatmul.mubr.msk.bf16.gmra.mxu0 %vm2282_vm4, %v13550_v29 }
 0x31e   : > { %13188 = vmatprep.mubr.msk.bf16.mxu0 %vm14971_vm0, %v19346_v3 }
 0x323   : > { %13297 = vmatmul.mubr.msk.bf16.gmra.mxu1 %vm2282_vm4, %v13553_v54 }
 0x324   : > { %13344 = vmatprep.mubr.msk.bf16.mxu1 %vm14971_vm0, %v19346_v3 }
 0x325   : > { %13189 = vmatmul.mubr.msk.bf16.gmra.mxu0 %vm2282_vm4, %v13555_v9 }
 0x326   : > { %13236 = vmatprep.mubr.msk.bf16.mxu0 %vm14971_vm0, %v19346_v3 }
 0x32b   : > { %13345 = vmatmul.mubr.msk.bf16.vlgmr.msra.gmra.mxu1 %vm2282_vm4, %v3793_v4 }
 0x32c   : > { %13348 = vmatprep.mubr.msk.bf16.mxu1 %vm14971_vm0, %v19346_v3 }
 0x32d   : > { %13237 = vmatmul.mubr.msk.bf16.vlgmr.msra.gmra.mxu0 %vm2282_vm4, %v15668_v11  ;;  %v13566_v11 = vld [vmem:[%s19335_s5 + $0xe8] sm:$0xff]  }
 0x32e   : > { %13301 = vmatpush3.bf16.msra.mxu0 %v13561_v25  ;;  %13240 = vmatprep.mubr.msk.bf16.mxu0 %vm14971_vm0, %v19346_v3 }
 0x32f   : > { %13302 = vmatprep.subr.bf16.mxu0 %v19346_v3 }
 0x332   : > { %13303 = vmatpush3.bf16.msra.mxu0 %v13563_v6 }
 0x333   : > { %13349 = vmatmul.mubr.msk.bf16.gmra.mxu1 %vm2282_vm4, %v3795_v23  ;;  %13304 = vmatprep.subr.bf16.mxu0 %v19346_v3 }
 0x334   : > { %13352 = vmatprep.mubr.msk.bf16.mxu1 %vm14971_vm0, %v19346_v3 }
 0x335   : > { %13241 = vmatmul.mubr.msk.bf16.gmra.mxu0 %vm2282_vm4, %v15691_v41  ;;  %v3798_v41 = vrot.slane %v16010_v34, 1 }
 0x336   : > { %13244 = vmatprep.mubr.msk.bf16.mxu0 %vm14971_vm0, %v19346_v3  ;;  %13305 = vmatpush3.bf16.msra.mxu0 %v13566_v11 }
 0x337   : > { %13306 = vmatprep.subr.bf16.mxu0 %v19346_v3  ;;  %v3799_v8 = vsel %vm2532_vm3, %v3796_v60, %v3798_v41  ;;  %v3801_v61 = vsel %vm2532_vm3, %v3798_v41, %v3800_v51 }
 0x33a   : > { %13307 = vmatpush3.bf16.msra.mxu0 %v13569_v31  ;;  %v3590_v31 = vshrl.u32 %v15962_v7, 16 }
 0x33b   : > { %13353 = vmatmul.mubr.msk.bf16.gmra.mxu1 %vm2282_vm4, %v3797_v18 }
 0x33c   : > { %13356 = vmatprep.mubr.msk.bf16.mxu1 %vm14971_vm0, %v19346_v3 }
 0x33d   : > { %13245 = vmatmul.mubr.msk.bf16.gmra.mxu0 %vm2282_vm4, %v15720_v37 }
 0x33e   : > { %13248 = vmatprep.mubr.msk.bf16.mxu0 %vm14971_vm0, %v19346_v3 }
 0x341   : > { %v16020_v38 = vpop.f32.mrf.mxu1 }
 0x343   : > { %13357 = vmatmul.mubr.msk.bf16.gmra.mxu1 %vm2282_vm4, %v3799_v8  ;;  %v16026_v19 = vpop.f32.mrf.mxu0  ;;  %v13130_v5 = vpop.f32.mrf.mxu1 }
 0x344   : > { %13360 = vmatprep.mubr.msk.bf16.mxu1 %vm14971_vm0, %v19346_v3 }
 0x345   : > { %13249 = vmatmul.mubr.msk.bf16.gmra.mxu0 %vm2282_vm4, %v15756_v49  ;;  %v13058_v37 = vpop.f32.mrf.mxu0  ;;  %v2628_v35 = vpop.f32.mrf.mxu1 }
 0x346   : > { %13252 = vmatprep.mubr.msk.bf16.mxu0 %vm14971_vm0, %v19346_v3  ;;  %v3602_v35 = vshll.u32 %v15991_v42, 16 }
 0x347   : > { %v2341_v12 = vpop.f32.mrf.mxu0  ;;  %v13131_v14 = vpop.f32.mrf.mxu1 }
 0x349   : > { %v13059_v27 = vpop.f32.mrf.mxu0  ;;  %v16035_v59 = vpop.f32.mrf.mxu1 }
 0x34b   : > { %13361 = vmatmul.mubr.msk.bf16.gmra.mxu1 %vm2282_vm4, %v3801_v61  ;;  %v16041_v28 = vpop.f32.mrf.mxu0  ;;  %v13134_v49 = vpop.f32.mrf.mxu1  ;;  %v3604_v61 = vrot.slane %v3602_v35, 1 }
 0x34c   : > { %13364 = vmatprep.mubr.msk.bf16.mxu1 %vm14971_vm0, %v19346_v3 }
 0x34d   : > { %13253 = vmatmul.mubr.msk.bf16.gmra.mxu0 %vm2282_vm4, %v15776_v43  ;;  %v13062_v53 = vpop.f32.mrf.mxu0  ;;  %v2636_v32 = vpop.f32.mrf.mxu1  ;;  %v3521_v43 = vld [vmem:[#allocation3 + $0x10] sm:$0xf] }
 0x34e   : > { %13256 = vmatprep.mubr.msk.bf16.mxu0 %vm14971_vm0, %v19346_v3  ;;  %v11439_v33 = vcombine.low %v3521_v43, %v15960_v36 }
 0x34f   : > { %v2349_v0 = vpop.f32.mrf.mxu0  ;;  %v13135_v10 = vpop.f32.mrf.mxu1 }
 0x350   : > { %v3581_v63 = vshll.u32 %v11439_v33, 16  ;;  %v3579_v16 = vshrl.u32 %v11439_v33, 16  ;;  %v3606_v33 = vshrl.u32 %v15991_v42, 16 }
 0x351   : > { %v13063_v48 = vpop.f32.mrf.mxu0  ;;  %v16050_v57 = vpop.f32.mrf.mxu1 }
 0x352   : > { %v3583_v54 = vrot.slane %v3581_v63, 1  ;;  %v3610_v48 = vshll.u32 %v16010_v34, 16 }
 0x353   : > { %13365 = vmatmul.mubr.msk.bf16.gmra.mxu1 %vm2282_vm4, %v3803_v24  ;;  %v16054_v55 = vpop.f32.mrf.mxu0  ;;  %v13138_v13 = vpop.f32.mrf.mxu1 }
 0x354   : > { %13368 = vmatprep.mubr.msk.bf16.mxu1 %vm14971_vm0, %v19346_v3  ;;  %v3584_v4 = vor.u32 %v3583_v54, %v3579_v16 }
 0x355   : > { %13257 = vmatmul.mubr.msk.bf16.gmra.mxu0 %vm2282_vm4, %v15785_v52  ;;  %v13066_v45 = vpop.f32.mrf.mxu0  ;;  %v2644_v21 = vpop.f32.mrf.mxu1  ;;  %v3586_v52 = vshll.u32 %v15962_v7, 16  ;;  %v3598_v7 = vshrl.u32 %v15976_v40, 16 }
 0x356   : > { %13260 = vmatprep.mubr.msk.bf16.mxu0 %vm14971_vm0, %v19346_v3  ;;  %v3612_v45 = vrot.slane %v3610_v48, 1 }
 0x357   : > { %v2357_v26 = vpop.f32.mrf.mxu0  ;;  %v13139_v30 = vpop.f32.mrf.mxu1  ;;  %v3588_v2 = vrot.slane %v3586_v52, 1  ;;  %v3618_v52 = vshll.u32 %v16023_v58, 16 }
 0x358   : > { %v3608_v30 = vor.u32 %v3606_v33, %v3604_v61 }
 0x359   : > { %v13067_v1 = vpop.f32.mrf.mxu0  ;;  %v16063_v47 = vpop.f32.mrf.mxu1  ;;  %v3589_v50 = vsel %vm1005_vm1, %v3584_v4, %v3588_v2  ;;  %v3592_v8 = vor.u32 %v3590_v31, %v3588_v2  ;;  %v3620_v16 = vrot.slane %v3618_v52, 1  ;;  %v3622_v31 = vshrl.u32 %v16023_v58, 16 }
 0x35b   : > { %13369 = vmatmul.mubr.msk.bf16.gmra.mxu1 %vm2282_vm4, %v3802_v39  ;;  %v16066_v62 = vpop.f32.mrf.mxu0  ;;  %v13142_v20 = vpop.f32.mrf.mxu1  ;;  %v3624_v35 = vor.u32 %v3622_v31, %v3620_v16 }
 0x35c   : > { %v3613_v20 = vsel %vm1005_vm1, %v3608_v30, %v3612_v45 }
 0x35d   : > { %13261 = vmatmul.mubr.msk.bf16.gmra.mxu0 %vm2282_vm4, %v3173_v56  ;;  %v13070_v22 = vpop.f32.mrf.mxu0  ;;  %v2652_v29 = vpop.f32.mrf.mxu1  ;;  %v3594_v56 = vshll.u32 %v15976_v40, 16 }
 0x35e   : > { %13308 = vmatprep.mubr.msk.bf16.mxu0 %vm14971_vm0, %v19346_v3 }
 0x35f   : > { %v2365_v36 = vpop.f32.mrf.mxu0  ;;  %v13143_v9 = vpop.f32.mrf.mxu1  ;;  %v3596_v18 = vrot.slane %v3594_v56, 1 }
 0x360   : > { %v3614_v9 = vshrl.u32 %v16010_v34, 16 }
 0x361   : > { %v13071_v44 = vpop.f32.mrf.mxu0  ;;  %v16074_v17 = vpop.f32.mrf.mxu1  ;;  %v3597_v37 = vsel %vm1005_vm1, %v3592_v8, %v3596_v18  ;;  %v3600_v32 = vor.u32 %v3598_v7, %v3596_v18 }
 0x363   : > { %v16076_v25 = vpop.f32.mrf.mxu0  ;;  %v13146_v15 = vpop.f32.mrf.mxu1  ;;  %v3605_v10 = vsel %vm1005_vm1, %v3600_v32, %v3604_v61 }
 0x364   : > { %v3616_v15 = vor.u32 %v3614_v9, %v3612_v45 }
 0x365   : > { %13309 = vmatmul.mubr.msk.bf16.vlgmr.msra.gmra.mxu0 %vm2282_vm4, %v3589_v50  ;;  %v13074_v6 = vpop.f32.mrf.mxu0  ;;  %v2660_v23 = vpop.f32.mrf.mxu1 }
 0x366   : > { %13312 = vmatprep.mubr.msk.bf16.mxu0 %vm14971_vm0, %v19346_v3  ;;  %v3621_v6 = vsel %vm1005_vm1, %v3616_v15, %v3620_v16 }
 0x367   : > { %v2373_v11 = vpop.f32.mrf.mxu0  ;;  %v13147_v60 = vpop.f32.mrf.mxu1 }
 0x369   : > { %v13075_v41 = vpop.f32.mrf.mxu0 }
 0x36b   : > { %v16084_v5 = vpop.f32.mrf.mxu1 }
 0x36d   : > { %v16088_v51 = vpop.f32.mrf.mxu0  ;;  %v13150_v12 = vpop.f32.mrf.mxu1  ;;  %13313 = vmatmul.mubr.msk.bf16.gmra.mxu0 %vm2282_vm4, %v3597_v37 }
 0x36e   : > { %13316 = vmatprep.mubr.msk.bf16.mxu0 %vm14971_vm0, %v19346_v3 }
 0x36f   : > { %v13078_v14 = vpop.f32.mrf.mxu0  ;;  %v2668_v27 = vpop.f32.mrf.mxu1 }
 0x371   : > { %v2381_v49 = vpop.f32.mrf.mxu0  ;;  %v13151_v53 = vpop.f32.mrf.mxu1 }
 0x373   : > { %v13079_v39 = vpop.f32.mrf.mxu0  ;;  %v16094_v0 = vpop.f32.mrf.mxu1 }
 0x374   : > { %v3630_v39 = vshrl.u32 %v16038_v46, 16 }
 0x375   : > { %v16098_v24 = vpop.f32.mrf.mxu0  ;;  %v13154_v13 = vpop.f32.mrf.mxu1  ;;  %13317 = vmatmul.mubr.msk.bf16.gmra.mxu0 %vm2282_vm4, %v3605_v10 }
 0x376   : > { %13320 = vmatprep.mubr.msk.bf16.mxu0 %vm14971_vm0, %v19346_v3 }
 0x377   : > { %v13082_v40 = vpop.f32.mrf.mxu0  ;;  %v2676_v43 = vpop.f32.mrf.mxu1 }
 0x379   : > { %v2389_v21 = vpop.f32.mrf.mxu0  ;;  %v13155_v26 = vpop.f32.mrf.mxu1 }
 0x37b   : > { %v13083_v1 = vpop.f32.mrf.mxu0  ;;  %v16104_v63 = vpop.f32.mrf.mxu1 }
 0x37d   : > { %v2466_v22 = vpop.f32.mrf.mxu0  ;;  %v13202_v29 = vpop.f32.mrf.mxu1  ;;  %13321 = vmatmul.mubr.msk.bf16.gmra.mxu0 %vm2282_vm4, %v3613_v20 }
 0x37e   : > { %v2467_v54 = vadd.f32 %v2466_v22, %v16026_v19  ;;  %13324 = vmatprep.mubr.msk.bf16.mxu0 %vm14971_vm0, %v19346_v3  ;;  %v3626_v19 = vshll.u32 %v16038_v46, 16 }
 0x37f   : > { %v13094_v42 = vpop.f32.mrf.mxu0  ;;  %v3086_v36 = vpop.f32.mrf.mxu1 }
 0x380   : > { %v16114_v2 = vadd.f32 %v16020_v38, %v2467_v54  ;;  %v3628_v18 = vrot.slane %v3626_v19, 1 }
 0x381   : > { %v2469_v44 = vpop.f32.mrf.mxu0  ;;  %v13203_v4 = vpop.f32.mrf.mxu1 }
 0x382   : > { %v3629_v27 = vsel %vm1005_vm1, %v3624_v35, %v3628_v18  ;;  %v3632_v13 = vor.u32 %v3630_v39, %v3628_v18 }
 0x383   : > { %v13095_v50 = vpop.f32.mrf.mxu0  ;;  %v16116_v56 = vpop.f32.mrf.mxu1 }
 0x385   : > { %v2474_v23 = vpop.f32.mrf.mxu0  ;;  %v13206_v11 = vpop.f32.mrf.mxu1  ;;  %13325 = vmatmul.mubr.msk.bf16.gmra.mxu0 %vm2282_vm4, %v3621_v6 }
 0x386   : > { %v2475_v34 = vadd.f32 %v2474_v23, %v16041_v28  ;;  %13328 = vmatprep.mubr.msk.bf16.mxu0 %vm14971_vm0, %v19346_v3 }
 0x387   : > { %v13098_v38 = vpop.f32.mrf.mxu0  ;;  %v3094_v60 = vpop.f32.mrf.mxu1 }
 0x388   : > { %v16126_v41 = vadd.f32 %v16035_v59, %v2475_v34 }
 0x389   : > { %v2477_v8 = vpop.f32.mrf.mxu0  ;;  %v13207_v37 = vpop.f32.mrf.mxu1 }
 0x38b   : > { %v13099_v12 = vpop.f32.mrf.mxu0  ;;  %v16128_v14 = vpop.f32.mrf.mxu1 }
 0x38d   : > { %v2482_v28 = vpop.f32.mrf.mxu0  ;;  %v13210_v7 = vpop.f32.mrf.mxu1  ;;  %13329 = vmatmul.mubr.msk.bf16.gmra.mxu0 %vm2282_vm4, %v3629_v27 }
 0x38e   : > { %v2483_v61 = vadd.f32 %v2482_v28, %v16054_v55  ;;  %13332 = vmatprep.mubr.msk.bf16.mxu0 %vm14971_vm0, %v19346_v3 }
 0x38f   : > { %v13102_v58 = vpop.f32.mrf.mxu0  ;;  %v3102_v59 = vpop.f32.mrf.mxu1 }
 0x390   : > { %v16136_v49 = vadd.f32 %v16050_v57, %v2483_v61 }
 0x391   : > { %v2485_v53 = vpop.f32.mrf.mxu0  ;;  %v13211_v32 = vpop.f32.mrf.mxu1 }
 0x393   : > { %v13103_v10 = vpop.f32.mrf.mxu0  ;;  %v16139_v48 = vpop.f32.mrf.mxu1 }
 0x395   : > { %v2490_v40 = vpop.f32.mrf.mxu0  ;;  %v13214_v43 = vpop.f32.mrf.mxu1  ;;  %13333 = vmatmul.mubr.msk.bf16.gmra.mxu0 %vm2282_vm4, %v3632_v13 }
 0x396   : > { %v2491_v55 = vadd.f32 %v2490_v40, %v16066_v62 }
 0x397   : > { %v13106_v3 = vpop.f32.mrf.mxu0  ;;  %v3110_v33 = vpop.f32.mrf.mxu1 }
 0x398   : > { %v16144_v45 = vadd.f32 %v16063_v47, %v2491_v55 }
 0x399   : > { %v2493_v57 = vpop.f32.mrf.mxu0  ;;  %v13215_v21 = vpop.f32.mrf.mxu1 }
 0x39b   : > { %v13107_v26 = vpop.f32.mrf.mxu0  ;;  %v16146_v30 = vpop.f32.mrf.mxu1 }
 0x39d   : > { %v2498_v46 = vpop.f32.mrf.mxu0  ;;  %v13218_v1 = vpop.f32.mrf.mxu1 }
 0x39e   : > { %v2499_v20 = vadd.f32 %v2498_v46, %v16076_v25 }
 0x39f   : > { %v13110_v52 = vpop.f32.mrf.mxu0  ;;  %v3118_v22 = vpop.f32.mrf.mxu1 }
 0x3a0   : > { %v16150_v29 = vadd.f32 %v16074_v17, %v2499_v20  ;;  %v14972_v22 = vmov 0  }
 0x3a1   : > { %v2501_v62 = vpop.f32.mrf.mxu0  ;;  %v13219_v54 = vpop.f32.mrf.mxu1  ;;  %4049 = vst [vmem:[#allocation5] sm:$0xff] %v14972_v22  ;;  %4050 = vst [vmem:[#allocation5 + $0x8] sm:$0xff] %v14972_v22  ;;  %v13603_v22 = vld [vmem:[%s19337_s7 + $0x680] ss:$16 sps:$4 sm:$0xff]  }
 0x3a3   : > { %v13111_v42 = vpop.f32.mrf.mxu0  ;;  %v16152_v36 = vpop.f32.mrf.mxu1 }
 0x3a5   : > { %v2506_v47 = vpop.f32.mrf.mxu0  ;;  %v13222_v9 = vpop.f32.mrf.mxu1 }
 0x3a6   : > { %v2507_v16 = vadd.f32 %v2506_v47, %v16088_v51 }
 0x3a7   : > { %v13114_v44 = vpop.f32.mrf.mxu0  ;;  %v3126_v4 = vpop.f32.mrf.mxu1 }
 0x3a8   : > { %v16156_v15 = vadd.f32 %v16084_v5, %v2507_v16 }
 0x3a9   : > { %v2509_v25 = vpop.f32.mrf.mxu0  ;;  %v13223_v50 = vpop.f32.mrf.mxu1 }
 0x3ab   : > { %v13115_v6 = vpop.f32.mrf.mxu0  ;;  %v16158_v19 = vpop.f32.mrf.mxu1 }
 0x3ad   : > { %v2514_v17 = vpop.f32.mrf.mxu0  ;;  %v13226_v23 = vpop.f32.mrf.mxu1 }
 0x3ae   : > { %v2515_v11 = vadd.f32 %v2514_v17, %v16098_v24 }
 0x3af   : > { %v13118_v34 = vpop.f32.mrf.mxu0  ;;  %v3134_v38 = vpop.f32.mrf.mxu1 }
 0x3b0   : > { %v16162_v60 = vadd.f32 %v16094_v0, %v2515_v11 }
 0x3b1   : > { %v2517_v51 = vpop.f32.mrf.mxu0  ;;  %v13227_v31 = vpop.f32.mrf.mxu1 }
 0x3b3   : > { %v13119_v18 = vpop.f32.mrf.mxu0  ;;  %v16164_v8 = vpop.f32.mrf.mxu1 }
 0x3b5   : > { %v2825_v5 = vpop.f32.mrf.mxu0  ;;  %v13274_v37 = vpop.f32.mrf.mxu1 }
 0x3b6   : > { %v2879_v35 = vadd.f32 %v2825_v5, %v16114_v2 }
 0x3b7   : > { %v13166_v12 = vpop.f32.mrf.mxu0  ;;  %v3457_v27 = vpop.f32.mrf.mxu1 }
 0x3b8   : > { %v16168_v28 = vadd.f32 %v16104_v63, %v2879_v35  ;;  %v13575_v35 = vld [vmem:[%s19337_s7 + $0x4c4] ss:$16 sps:$4 sm:$0xff]   ;;  %v13585_v27 = vld [vmem:[%s19337_s7 + $0x6e0] ss:$16 sps:$4 sm:$0xff]  }
 0x3b9   : > { %v2828_v24 = vpop.f32.mrf.mxu0  ;;  %v13275_v7 = vpop.f32.mrf.mxu1 }
 0x3ba   : > { %v13587_v24 = vld [vmem:[%s19337_s7 + $0x6e4] ss:$16 sps:$4 sm:$0xff]  }
 0x3bb   : > { %v13167_v61 = vpop.f32.mrf.mxu0  ;;  %v16170_v58 = vpop.f32.mrf.mxu1  ;;  %v13578_v7 = vld [vmem:[%s19337_s7 + $0x4a4] ss:$16 sps:$4 sm:$0xff]   ;;  %5043 = vmatprep.subr.bf16.mxu1 %v13587_v24 }
 0x3bc   : > { %5044 = vmatpush1.bf16.msra.mxu1 %v13585_v27 }
 0x3bd   : > { %v2833_v0 = vpop.f32.mrf.mxu0  ;;  %v13278_v59 = vpop.f32.mrf.mxu1 }
 0x3be   : > { %v2881_v53 = vadd.f32 %v2833_v0, %v16126_v41  ;;  %v13593_v59 = vld [vmem:[%s19337_s7 + $0x6c4] ss:$16 sps:$4 sm:$0xff]  }
 0x3bf   : > { %v13170_v32 = vpop.f32.mrf.mxu0  ;;  %v3465_v39 = vpop.f32.mrf.mxu1  ;;  %5045 = vmatprep.subr.bf16.mxu1 %v13593_v59 }
 0x3c0   : > { %v16174_v10 = vadd.f32 %v16116_v56, %v2881_v53  ;;  %v13591_v32 = vld [vmem:[%s19337_s7 + $0x6c0] ss:$16 sps:$4 sm:$0xff]  }
 0x3c1   : > { %v2836_v2 = vpop.f32.mrf.mxu0  ;;  %v13279_v13 = vpop.f32.mrf.mxu1  ;;  %5046 = vmatpush1.bf16.msra.mxu1 %v13591_v32 }
 0x3c2   : > { %v13576_v13 = vld [vmem:[%s19337_s7 + $0x4a0] ss:$16 sps:$4 sm:$0xff]  }
 0x3c3   : > { %v13171_v40 = vpop.f32.mrf.mxu0  ;;  %v16176_v43 = vpop.f32.mrf.mxu1 }
 0x3c4   : > { %v13599_v40 = vld [vmem:[%s19337_s7 + $0x6a4] ss:$16 sps:$4 sm:$0xff]  }
 0x3c5   : > { %v2841_v63 = vpop.f32.mrf.mxu0  ;;  %v13282_v55 = vpop.f32.mrf.mxu1  ;;  %5047 = vmatprep.subr.bf16.mxu1 %v13599_v40 }
 0x3c6   : > { %v2883_v3 = vadd.f32 %v2841_v63, %v16136_v49 }
 0x3c7   : > { %v13174_v33 = vpop.f32.mrf.mxu0  ;;  %v3473_v57 = vpop.f32.mrf.mxu1 }
 0x3c8   : > { %v16180_v21 = vadd.f32 %v16128_v14, %v2883_v3  ;;  %v13597_v33 = vld [vmem:[%s19337_s7 + $0x6a0] ss:$16 sps:$4 sm:$0xff]  }
 0x3c9   : > { %v2844_v41 = vpop.f32.mrf.mxu0  ;;  %v13283_v26 = vpop.f32.mrf.mxu1  ;;  %5048 = vmatpush1.bf16.msra.mxu1 %v13597_v33 }
 0x3ca   : > { %v13605_v26 = vld [vmem:[%s19337_s7 + $0x684] ss:$16 sps:$4 sm:$0xff]  }
 0x3cb   : > { %v13175_v46 = vpop.f32.mrf.mxu0  ;;  %v16182_v1 = vpop.f32.mrf.mxu1  ;;  %5049 = vmatprep.subr.bf16.mxu1 %v13605_v26 }
 0x3cc   : > { %v13584_v46 = vld [vmem:[%s19337_s7 + $0x464] ss:$16 sps:$4 sm:$0xff]  }
 0x3cd   : > { %v2849_v56 = vpop.f32.mrf.mxu0  ;;  %v13286_v20 = vpop.f32.mrf.mxu1  ;;  %5050 = vmatpush1.bf16.msra.mxu1 %v13603_v22 }
 0x3ce   : > { %v2885_v52 = vadd.f32 %v2849_v56, %v16144_v45 }
 0x3cf   : > { %v13178_v62 = vpop.f32.mrf.mxu0  ;;  %v3481_v54 = vpop.f32.mrf.mxu1 }
 0x3d0   : > { %v16186_v49 = vadd.f32 %v16139_v48, %v2885_v52 }
 0x3d1   : > { %v2852_v42 = vpop.f32.mrf.mxu0  ;;  %v13287_v14 = vpop.f32.mrf.mxu1 }
 0x3d2   : > { %v13582_v42 = vld [vmem:[%s19337_s7 + $0x460] ss:$16 sps:$4 sm:$0xff]   ;;  %v13611_v14 = vld [vmem:[%s19337_s7 + $0x664] ss:$16 sps:$4 sm:$0xff]  }
 0x3d3   : > { %v13179_v47 = vpop.f32.mrf.mxu0  ;;  %v16188_v9 = vpop.f32.mrf.mxu1  ;;  %5051 = vmatprep.subr.bf16.mxu1 %v13611_v14 }
 0x3d5   : > { %v2857_v16 = vpop.f32.mrf.mxu0  ;;  %v13290_v44 = vpop.f32.mrf.mxu1 }
 0x3d6   : > { %v2887_v4 = vadd.f32 %v2857_v16, %v16150_v29  ;;  %v13570_v29 = vld [vmem:[%s19337_s7 + $0x4e0] ss:$16 sps:$4 sm:$0xff]  }
 0x3d7   : > { %v13182_v25 = vpop.f32.mrf.mxu0  ;;  %v3489_v50 = vpop.f32.mrf.mxu1 }
 0x3d8   : > { %v16192_v45 = vadd.f32 %v16146_v30, %v2887_v4  ;;  %v13572_v30 = vld [vmem:[%s19337_s7 + $0x4e4] ss:$16 sps:$4 sm:$0xff]   ;;  %v13609_v4 = vld [vmem:[%s19337_s7 + $0x660] ss:$16 sps:$4 sm:$0xff]  }
 0x3d9   : > { %v2860_v6 = vpop.f32.mrf.mxu0  ;;  %v13291_v17 = vpop.f32.mrf.mxu1  ;;  %5002 = vmatprep.subr.bf16.mxu0 %v13572_v30  ;;  %5052 = vmatpush1.bf16.msra.mxu1 %v13609_v4 }
 0x3da   : > { %5003 = vmatpush1.bf16.msra.mxu0 %v13570_v29  ;;  %v13596_v6 = vld [vmem:[%s19337_s7 + $0x424] ss:$16 sps:$4 sm:$0xff]  }
 0x3db   : > { %v13183_v23 = vpop.f32.mrf.mxu0  ;;  %v16194_v11 = vpop.f32.mrf.mxu1  ;;  %5004 = vmatprep.subr.bf16.mxu0 %v13575_v35  ;;  %v13602_v29 = vld [vmem:[%s19337_s7 + $0x404] ss:$16 sps:$4 sm:$0xff]   ;;  %v13600_v35 = vld [vmem:[%s19337_s7 + $0x400] ss:$16 sps:$4 sm:$0xff]  }
 0x3dd   : > { %v2865_v48 = vpop.f32.mrf.mxu0  ;;  %v13294_v34 = vpop.f32.mrf.mxu1 }
 0x3de   : > { %v2889_v38 = vadd.f32 %v2865_v48, %v16156_v15 }
 0x3df   : > { %v13186_v51 = vpop.f32.mrf.mxu0  ;;  %v3497_v31 = vpop.f32.mrf.mxu1 }
 0x3e0   : > { %v16198_v18 = vadd.f32 %v16152_v36, %v2889_v38  ;;  %v13573_v36 = vld [vmem:[%s19337_s7 + $0x4c0] ss:$16 sps:$4 sm:$0xff]  }
 0x3e1   : > { %v2868_v5 = vpop.f32.mrf.mxu0  ;;  %v13295_v37 = vpop.f32.mrf.mxu1  ;;  %5005 = vmatpush1.bf16.msra.mxu0 %v13573_v36  ;;  %v13594_v51 = vld [vmem:[%s19337_s7 + $0x420] ss:$16 sps:$4 sm:$0xff]  }
 0x3e2   : > { %5006 = vmatprep.subr.bf16.mxu0 %v13578_v7 }
 0x3e3   : > { %v13187_v15 = vpop.f32.mrf.mxu0  ;;  %v16209_v12 = vpop.f32.mrf.mxu1 }
 0x3e5   : > { %v2873_v61 = vpop.f32.mrf.mxu0  ;;  %v13298_v0 = vpop.f32.mrf.mxu1  ;;  %5007 = vmatpush1.bf16.msra.mxu0 %v13576_v13 }
 0x3e6   : > { %v2891_v53 = vadd.f32 %v2873_v61, %v16162_v60  ;;  %v13581_v60 = vld [vmem:[%s19337_s7 + $0x484] ss:$16 sps:$4 sm:$0xff]   ;;  %v13606_v61 = vld [vmem:[%s19337_s7 + $0x5e0] ss:$16 sps:$4 sm:$0xff]  }
 0x3e7   : > { %v13190_v39 = vpop.f32.mrf.mxu0  ;;  %v3505_v2 = vpop.f32.mrf.mxu1  ;;  %5008 = vmatprep.subr.bf16.mxu0 %v13581_v60 }
 0x3e8   : > { %v16237_v63 = vadd.f32 %v16158_v19, %v2891_v53  ;;  %v13579_v19 = vld [vmem:[%s19337_s7 + $0x480] ss:$16 sps:$4 sm:$0xff]  }
 0x3e9   : > { %v2876_v55 = vpop.f32.mrf.mxu0  ;;  %v13299_v3 = vpop.f32.mrf.mxu1  ;;  %5009 = vmatpush1.bf16.msra.mxu0 %v13579_v19 }
 0x3ea   : > { %5010 = vmatprep.subr.bf16.mxu0 %v13584_v46 }
 0x3eb   : > { %v13191_v57 = vpop.f32.mrf.mxu0  ;;  %v16245_v41 = vpop.f32.mrf.mxu1 }
 0x3ed   : > { %v3254_v56 = vpop.f32.mrf.mxu0  ;;  %v13346_v20 = vpop.f32.mrf.mxu1  ;;  %5011 = vmatpush1.bf16.msra.mxu0 %v13582_v42 }
 0x3ee   : > { %v3308_v52 = vadd.f32 %v3254_v56, %v16168_v28  ;;  %v13590_v28 = vld [vmem:[%s19337_s7 + $0x444] ss:$16 sps:$4 sm:$0xff]  }
 0x3ef   : > { %v13238_v62 = vpop.f32.mrf.mxu0  ;;  %v3886_v54 = vpop.f32.mrf.mxu1  ;;  %5012 = vmatprep.subr.bf16.mxu0 %v13590_v28 }
 0x3f0   : > { %v16267_v47 = vadd.f32 %v16164_v8, %v3308_v52  ;;  %v13588_v8 = vld [vmem:[%s19337_s7 + $0x440] ss:$16 sps:$4 sm:$0xff]  }
 0x3f1   : > { %v3257_v16 = vpop.f32.mrf.mxu0  ;;  %v13347_v44 = vpop.f32.mrf.mxu1  ;;  %5013 = vmatpush1.bf16.msra.mxu0 %v13588_v8 }
 0x3f2   : > { %5014 = vmatprep.subr.bf16.mxu0 %v13596_v6 }
 0x3f3   : > { %v13239_v25 = vpop.f32.mrf.mxu0  ;;  %v16275_v50 = vpop.f32.mrf.mxu1 }
 0x3f5   : > { %v3262_v17 = vpop.f32.mrf.mxu0  ;;  %v13350_v23 = vpop.f32.mrf.mxu1  ;;  %5015 = vmatpush1.bf16.msra.mxu0 %v13594_v51 }
 0x3f6   : > { %v3310_v48 = vadd.f32 %v3262_v17, %v16174_v10  ;;  %5016 = vmatprep.subr.bf16.mxu0 %v13602_v29 }
 0x3f7   : > { %v13242_v34 = vpop.f32.mrf.mxu0  ;;  %v3894_v38 = vpop.f32.mrf.mxu1 }
 0x3f8   : > { %v16288_v31 = vadd.f32 %v16170_v58, %v3310_v48  ;;  %v13608_v58 = vld [vmem:[%s19337_s7 + $0x5e4] ss:$16 sps:$4 sm:$0xff]  }
 0x3f9   : > { %v3265_v30 = vpop.f32.mrf.mxu0  ;;  %v13351_v5 = vpop.f32.mrf.mxu1  ;;  %5017 = vmatpush1.bf16.msra.mxu0 %v13600_v35 }
 0x3fa   : > { %5018 = vmatprep.subr.bf16.mxu0 %v13608_v58  ;;  %v16336_v30 = vld [vmem:[%s19336_s6] ss:$0 sm:$0xff] }
 0x3fb   : > { %v13243_v37 = vpop.f32.mrf.mxu0  ;;  %v16293_v10 = vpop.f32.mrf.mxu1 }
 0x3fd   : > { %v3270_v15 = vpop.f32.mrf.mxu0  ;;  %v13354_v36 = vpop.f32.mrf.mxu1  ;;  %5019 = vmatpush2.bf16.msra.mxu0 %v13606_v61 }
 0x3fe   : > { %v3312_v27 = vadd.f32 %v3270_v15, %v16180_v21 }
 0x3ff   : > { %v13246_v24 = vpop.f32.mrf.mxu0  ;;  %v3902_v7 = vpop.f32.mrf.mxu1 }
 0x400   : > { %v16306_v0 = vadd.f32 %v16176_v43, %v3312_v27 }
 0x401   : > { %v3273_v59 = vpop.f32.mrf.mxu0  ;;  %v13355_v53 = vpop.f32.mrf.mxu1 }
 0x402   : > { %v13614_v53 = vld [vmem:[%s19337_s7 + $0x5c4] ss:$16 sps:$4 sm:$0xff]  }
 0x403   : > { %v13247_v32 = vpop.f32.mrf.mxu0  ;;  %v16308_v39 = vpop.f32.mrf.mxu1  ;;  %5020 = vmatprep.subr.bf16.mxu0 %v13614_v53 }
 0x405   : > { %v3278_v2 = vpop.f32.mrf.mxu0  ;;  %v13358_v13 = vpop.f32.mrf.mxu1 }
 0x406   : > { %v3314_v21 = vadd.f32 %v3278_v2, %v16186_v49  ;;  %v13620_v13 = vld [vmem:[%s19337_s7 + $0x5a4] ss:$16 sps:$4 sm:$0xff]  }
 0x407   : > { %v13250_v40 = vpop.f32.mrf.mxu0  ;;  %v3910_v60 = vpop.f32.mrf.mxu1 }
 0x408   : > { %v16312_v55 = vadd.f32 %v16182_v1, %v3314_v21  ;;  %v13623_v21 = vld [vmem:[%s19337_s7 + $0x624] ss:$16 sps:$4 sm:$0xff]  }
 0x409   : > { %v3281_v3 = vpop.f32.mrf.mxu0  ;;  %v13359_v33 = vpop.f32.mrf.mxu1 }
 0x40a   : > { %v13618_v3 = vld [vmem:[%s19337_s7 + $0x5a0] ss:$16 sps:$4 sm:$0xff]  }
 0x40b   : > { %v13251_v43 = vpop.f32.mrf.mxu0  ;;  %v16314_v57 = vpop.f32.mrf.mxu1 }
 0x40d   : > { %v3286_v19 = vpop.f32.mrf.mxu0  ;;  %v13362_v26 = vpop.f32.mrf.mxu1 }
 0x40e   : > { %v3316_v46 = vadd.f32 %v3286_v19, %v16192_v45  ;;  %v13621_v19 = vld [vmem:[%s19337_s7 + $0x620] ss:$16 sps:$4 sm:$0xff]   ;;  %v13626_v26 = vld [vmem:[%s19337_s7 + $0x584] ss:$16 sps:$4 sm:$0xff]  }
 0x40f   : > { %v13254_v56 = vpop.f32.mrf.mxu0  ;;  %v3918_v20 = vpop.f32.mrf.mxu1 }
 0x410   : > { %v16318_v52 = vadd.f32 %v16188_v9, %v3316_v46  ;;  %v13629_v46 = vld [vmem:[%s19337_s7 + $0x604] ss:$16 sps:$4 sm:$0xff]  }
 0x411   : > { %v3289_v49 = vpop.f32.mrf.mxu0  ;;  %v13363_v22 = vpop.f32.mrf.mxu1 }
 0x412   : > { %v13624_v49 = vld [vmem:[%s19337_s7 + $0x580] ss:$16 sps:$4 sm:$0xff]  }
 0x413   : > { %v13255_v62 = vpop.f32.mrf.mxu0  ;;  %v16320_v54 = vpop.f32.mrf.mxu1 }
 0x414   : > { %v13632_v62 = vld [vmem:[%s19337_s7 + $0x564] ss:$16 sps:$4 sm:$0xff]  }
 0x415   : > { %v3294_v1 = vpop.f32.mrf.mxu0  ;;  %v13366_v42 = vpop.f32.mrf.mxu1 }
 0x416   : > { %v3318_v14 = vadd.f32 %v3294_v1, %v16198_v18  ;;  %v13635_v42 = vld [vmem:[%s19337_s7 + $0x7e4] ss:$16 sps:$4 sm:$0xff]  }
 0x417   : > { %v13258_v28 = vpop.f32.mrf.mxu0  ;;  %v3926_v16 = vpop.f32.mrf.mxu1 }
 0x418   : > { %v16324_v44 = vadd.f32 %v16194_v11, %v3318_v14 }
 0x419   : > { %v3297_v45 = vpop.f32.mrf.mxu0  ;;  %v13367_v4 = vpop.f32.mrf.mxu1 }
 0x41a   : > { %v13630_v45 = vld [vmem:[%s19337_s7 + $0x560] ss:$16 sps:$4 sm:$0xff]  }
 0x41b   : > { %v13259_v25 = vpop.f32.mrf.mxu0  ;;  %v16326_v8 = vpop.f32.mrf.mxu1 }
 0x41d   : > { %v3302_v9 = vpop.f32.mrf.mxu0  ;;  %v13370_v6 = vpop.f32.mrf.mxu1 }
 0x41e   : > { %v3320_v17 = vadd.f32 %v3302_v9, %v16237_v63  ;;  %v13633_v9 = vld [vmem:[%s19337_s7 + $0x7e0] ss:$16 sps:$4 sm:$0xff]  }
 0x41f   : > { %v13262_v23 = vpop.f32.mrf.mxu0  ;;  %v3934_v48 = vpop.f32.mrf.mxu1 }
 0x420   : > { %v16330_v34 = vadd.f32 %v16209_v12, %v3320_v17  ;;  %v13636_v48 = vld [vmem:[%s19337_s7 + $0x540] ss:$16 sps:$4 sm:$0xff]  }
 0x421   : > { %v3305_v18 = vpop.f32.mrf.mxu0  ;;  %v13371_v38 = vpop.f32.mrf.mxu1 }
 0x422   : > { %v13638_v18 = vld [vmem:[%s19337_s7 + $0x544] ss:$16 sps:$4 sm:$0xff]  }
 0x423   : > { %v13263_v51 = vpop.f32.mrf.mxu0 }
 0x424   : > { %v13641_v51 = vld [vmem:[%s19337_s7 + $0x7c4] ss:$16 sps:$4 sm:$0xff]  }
 0x425   : > { %v3712_v29 = vpop.f32.mrf.mxu0 }
 0x426   : > { %v3766_v11 = vadd.f32 %v3712_v29, %v16267_v47 }
 0x427   : > { %v13310_v5 = vpop.f32.mrf.mxu0 }
 0x428   : > { %v3937_v37 = vadd.f32 %v16245_v41, %v3766_v11  ;;  %v13612_v41 = vld [vmem:[%s19337_s7 + $0x5c0] ss:$16 sps:$4 sm:$0xff]   ;;  %v13644_v11 = vld [vmem:[%s19337_s7 + $0x524] ss:$16 sps:$4 sm:$0xff]  }
 0x429   : > { %v3715_v63 = vpop.f32.mrf.mxu0  ;;  %5021 = vmatpush2.bf16.msra.mxu0 %v13612_v41  ;;  %v13647_v5 = vld [vmem:[%s19337_s7 + $0x7a4] ss:$16 sps:$4 sm:$0xff]  }
 0x42a   : > { %v3957_v35 = vadd.f32 %v16336_v30, %v3937_v37  ;;  %5022 = vmatprep.subr.bf16.mxu0 %v13620_v13  ;;  %v13658_v13 = vld [vmem:[%s19337_s7 + $0x764] ss:$16 sps:$4 sm:$0xff]  }
 0x42b   : > { %v13311_v58 = vpop.f32.mrf.mxu0 }
 0x42c   : > { %v3970_v12 = vmax.f32 %v3957_v35, 0.0  ;;  %v13642_v35 = vld [vmem:[%s19337_s7 + $0x520] ss:$16 sps:$4 sm:$0xff]  }
 0x42d   : > { %v3720_v15 = vpop.f32.mrf.mxu0  ;;  %5023 = vmatpush2.bf16.msra.mxu0 %v13618_v3 }
 0x42e   : > { %v12469_v36 = vpack.c.bf16 %v3970_v12, %v3970_v12  ;;  %v3768_v27 = vadd.f32 %v3720_v15, %v16288_v31  ;;  %v13615_v31 = vld [vmem:[%s19337_s7 + $0x640] ss:$16 sps:$4 sm:$0xff]   ;;  %5024 = vmatprep.subr.bf16.mxu0 %v13626_v26  ;;  %v13670_v26 = vld [vmem:[%s19337_s7 + $0x724] ss:$16 sps:$4 sm:$0xff]  }
 0x42f   : > { %v13314_v24 = vpop.f32.mrf.mxu0  ;;  %v13645_v15 = vld [vmem:[%s19337_s7 + $0x7a0] ss:$16 sps:$4 sm:$0xff]  }
 0x430   : > { %4036 = vst.msk [vmem:[#allocation4] sm:$0xf] %vm2119_vm2, %v12469_v36  ;;  %v3939_v47 = vadd.f32 %v16275_v50, %v3768_v27  ;;  %v13617_v50 = vld [vmem:[%s19337_s7 + $0x644] ss:$16 sps:$4 sm:$0xff]  }
 0x431   : > { %v3723_v7 = vpop.f32.mrf.mxu0  ;;  %5053 = vmatprep.subr.bf16.mxu1 %v13617_v50  ;;  %5025 = vmatpush2.bf16.msra.mxu0 %v13624_v49  ;;  %v13650_v36 = vld [vmem:[%s19337_s7 + $0x504] ss:$16 sps:$4 sm:$0xff]   ;;  %v13668_v49 = vld [vmem:[%s19337_s7 + $0x720] ss:$16 sps:$4 sm:$0xff]  }
 0x432   : > { %v3959_v61 = vadd.f32 %v16336_v30, %v3939_v47  ;;  %5054 = vmatpush1.bf16.msra.mxu1 %v13615_v31  ;;  %5026 = vmatprep.subr.bf16.mxu0 %v13632_v62  ;;  %v13653_v27 = vld [vmem:[%s19337_s7 + $0x784] ss:$16 sps:$4 sm:$0xff]   ;;  %v13648_v7 = vld [vmem:[%s19337_s7 + $0x500] ss:$16 sps:$4 sm:$0xff]  }
 0x433   : > { %v13315_v59 = vpop.f32.mrf.mxu0  ;;  %5055 = vmatprep.subr.bf16.mxu1 %v13623_v21  ;;  %v13676_v62 = vld [vmem:[%s19337_s7 + $0x704] ss:$16 sps:$4 sm:$0xff]  }
 0x434   : > { %v3972_v32 = vmax.f32 %v3959_v61, 0.0 }
 0x435   : > { %v3728_v2 = vpop.f32.mrf.mxu0  ;;  %5027 = vmatpush2.bf16.msra.mxu0 %v13630_v45 }
 0x436   : > { %v12471_v40 = vpack.c.bf16 %v3972_v32, %v3972_v32  ;;  %v3770_v60 = vadd.f32 %v3728_v2, %v16306_v0  ;;  %5056 = vmatpush1.bf16.msra.mxu1 %v13621_v19  ;;  %5028 = vmatprep.subr.bf16.mxu0 %v13638_v18  ;;  %v13656_v2 = vld [vmem:[%s19337_s7 + $0x760] ss:$16 sps:$4 sm:$0xff]   ;;  %v13665_v18 = vld [vmem:[%s19337_s7 + $0x4c8] ss:$16 sps:$4 sm:$0xff]  }
 0x437   : > { %v13318_v33 = vpop.f32.mrf.mxu0  ;;  %v4051_v43 = vld [vmem:[#allocation4] sm:$0xf]  ;;  %5057 = vmatprep.subr.bf16.mxu1 %v13629_v46 }
 0x438   : > { %4038 = vst.msk [vmem:[#allocation4 + $0x8] sm:$0xf] %vm2119_vm2, %v12471_v40  ;;  %v3941_v0 = vadd.f32 %v16293_v10, %v3770_v60  ;;  %4052 = vst.msk [vmem:[#allocation5] sm:$0xf] %vm2119_vm2, %v4051_v43  ;;  %v13627_v10 = vld [vmem:[%s19337_s7 + $0x600] ss:$16 sps:$4 sm:$0xff]  }
 0x439   : > { %v3731_v56 = vpop.f32.mrf.mxu0  ;;  %5029 = vmatpush2.bf16.msra.mxu0 %v13636_v48  ;;  %v13662_v33 = vld [vmem:[%s19337_s7 + $0x740] ss:$16 sps:$4 sm:$0xff]   ;;  %v13667_v48 = vld [vmem:[%s19337_s7 + $0x4cc] ss:$16 sps:$4 sm:$0xff]  }
 0x43a   : > { %v3961_v20 = vadd.f32 %v16336_v30, %v3941_v0  ;;  %5058 = vmatpush1.bf16.msra.mxu1 %v13627_v10  ;;  %5030 = vmatprep.subr.bf16.mxu0 %v13644_v11  ;;  %v13677_v11 = vld [vmem:[%s19337_s7 + $0x488] ss:$16 sps:$4 sm:$0xff]  }
 0x43b   : > { %v13319_v22 = vpop.f32.mrf.mxu0  ;;  %5059 = vmatprep.subr.bf16.mxu1 %v13635_v42  ;;  %v13674_v42 = vld [vmem:[%s19337_s7 + $0x700] ss:$16 sps:$4 sm:$0xff]  }
 0x43c   : > { %v3974_v1 = vmax.f32 %v3961_v20, 0.0 }
 0x43d   : > { %v3736_v14 = vpop.f32.mrf.mxu0  ;;  %5031 = vmatpush2.bf16.msra.mxu0 %v13642_v35 }
 0x43e   : > { %v12473_v28 = vpack.c.bf16 %v3974_v1, %v3974_v1  ;;  %v3772_v16 = vadd.f32 %v3736_v14, %v16312_v55  ;;  %5060 = vmatpush2.bf16.msra.mxu1 %v13633_v9  ;;  %5032 = vmatprep.subr.bf16.mxu0 %v13650_v36  ;;  %v13685_v36 = vld [vmem:[%s19337_s7 + $0x6e8] ss:$16 sps:$4 sm:$0xff]  }
 0x43f   : > { %v13322_v4 = vpop.f32.mrf.mxu0  ;;  %v4053_v25 = vld [vmem:[#allocation4 + $0x8] sm:$0xf]  ;;  %5061 = vmatprep.subr.bf16.mxu1 %v13641_v51 }
 0x440   : > { %4040 = vst.msk [vmem:[#allocation4 + $0x10] sm:$0xf] %vm2119_vm2, %v12473_v28  ;;  %v3943_v6 = vadd.f32 %v16308_v39, %v3772_v16  ;;  %4055 = vrot.lane.b32.xlu0 %v4053_v25, %s14973_s12  ;;  %v13639_v39 = vld [vmem:[%s19337_s7 + $0x7c0] ss:$16 sps:$4 sm:$0xff]   ;;  %v13687_v16 = vld [vmem:[%s19337_s7 + $0x6ec] ss:$16 sps:$4 sm:$0xff]  }
 0x441   : > { %v3739_v55 = vpop.f32.mrf.mxu0  ;;  %5033 = vmatpush2.bf16.msra.mxu0 %v13648_v7  ;;  %v13671_v51 = vld [vmem:[%s19337_s7 + $0x4a8] ss:$16 sps:$4 sm:$0xff]   ;;  %v13696_v7 = vld [vmem:[%s19337_s7 + $0x42c] ss:$16 sps:$4 sm:$0xff]  }
 0x442   : > { %v3963_v17 = vadd.f32 %v16336_v30, %v3943_v6  ;;  %5062 = vmatpush2.bf16.msra.mxu1 %v13639_v39 }
 0x443   : > { %v13323_v23 = vpop.f32.mrf.mxu0  ;;  %5063 = vmatprep.subr.bf16.mxu1 %v13647_v5 }
 0x444   : > { %v3976_v38 = vmax.f32 %v3963_v17, 0.0  ;;  %v13659_v23 = vld [vmem:[%s19337_s7 + $0x4e8] ss:$16 sps:$4 sm:$0xff]  }
 0x445   : > { %v3744_v29 = vpop.f32.mrf.mxu0 }
 0x446   : > { %v12475_v37 = vpack.c.bf16 %v3976_v38, %v3976_v38  ;;  %v3774_v63 = vadd.f32 %v3744_v29, %v16318_v52  ;;  %5064 = vmatpush2.bf16.msra.mxu1 %v13645_v15  ;;  %v13673_v38 = vld [vmem:[%s19337_s7 + $0x4ac] ss:$16 sps:$4 sm:$0xff]   ;;  %v13682_v15 = vld [vmem:[%s19337_s7 + $0x468] ss:$16 sps:$4 sm:$0xff]  }
 0x447   : > { %v13326_v58 = vpop.f32.mrf.mxu0  ;;  %v4060_v12 = vld [vmem:[#allocation4 + $0x10] sm:$0xf]  ;;  %5065 = vmatprep.subr.bf16.mxu1 %v13653_v27  ;;  %v13679_v29 = vld [vmem:[%s19337_s7 + $0x48c] ss:$16 sps:$4 sm:$0xff]  }
 0x448   : > { %4042 = vst.msk [vmem:[#allocation4 + $0x18] sm:$0xf] %vm2119_vm2, %v12475_v37  ;;  %v3945_v52 = vadd.f32 %v16314_v57, %v3774_v63  ;;  %4061 = vst.msk [vmem:[#allocation5 + $0x4] sm:$0xf] %vm2119_vm2, %v4060_v12  ;;  %v13651_v57 = vld [vmem:[%s19337_s7 + $0x780] ss:$16 sps:$4 sm:$0xff]  }
 0x449   : > { %v3747_v24 = vpop.f32.mrf.mxu0  ;;  %v13684_v37 = vld [vmem:[%s19337_s7 + $0x46c] ss:$16 sps:$4 sm:$0xff]  }
 0x44a   : > { %v3965_v47 = vadd.f32 %v16336_v30, %v3945_v52  ;;  %5066 = vmatpush2.bf16.msra.mxu1 %v13651_v57  ;;  %v13690_v52 = vld [vmem:[%s19337_s7 + $0x44c] ss:$16 sps:$4 sm:$0xff]   ;;  %v13688_v24 = vld [vmem:[%s19337_s7 + $0x448] ss:$16 sps:$4 sm:$0xff]  }
 0x44b   : > { %v13327_v61 = vpop.f32.mrf.mxu0  ;;  %5067 = vmatprep.subr.bf16.mxu1 %v13658_v13  ;;  %v13693_v27 = vld [vmem:[%s19337_s7 + $0x6cc] ss:$16 sps:$4 sm:$0xff]   ;;  %v13694_v57 = vld [vmem:[%s19337_s7 + $0x428] ss:$16 sps:$4 sm:$0xff]  }
 0x44c   : > { %v3978_v59 = vmax.f32 %v3965_v47, 0.0  ;;  %v13691_v47 = vld [vmem:[%s19337_s7 + $0x6c8] ss:$16 sps:$4 sm:$0xff]   ;;  %v13699_v61 = vld [vmem:[%s19337_s7 + $0x6ac] ss:$16 sps:$4 sm:$0xff]  }
 0x44d   : > { %v3752_v41 = vpop.f32.mrf.mxu0  ;;  %v13706_v13 = vld [vmem:[%s19337_s7 + $0x5e8] ss:$16 sps:$4 sm:$0xff]  }
 0x44e   : > { %v12477_v53 = vpack.c.bf16 %v3978_v59, %v3978_v59  ;;  %v3776_v31 = vadd.f32 %v3752_v41, %v16324_v44  ;;  %v13661_v44 = vld [vmem:[%s19337_s7 + $0x4ec] ss:$16 sps:$4 sm:$0xff]   ;;  %5068 = vmatpush2.bf16.msra.mxu1 %v13656_v2  ;;  %v13697_v59 = vld [vmem:[%s19337_s7 + $0x6a8] ss:$16 sps:$4 sm:$0xff]  }
 0x44f   : > { %v13330_v32 = vpop.f32.mrf.mxu0  ;;  %v4062_v50 = vld [vmem:[#allocation4 + $0x18] sm:$0xf]  ;;  %5084 = vmatprep.subr.bf16.mxu0 %v13661_v44  ;;  %v13702_v41 = vld [vmem:[%s19337_s7 + $0x40c] ss:$16 sps:$4 sm:$0xff]  }
 0x450   : > { %4044 = vst.msk [vmem:[#allocation4 + $0x20] sm:$0xf] %vm2119_vm2, %v12477_v53  ;;  %v3947_v21 = vadd.f32 %v16320_v54, %v3776_v31  ;;  %4064 = vrot.lane.b32.xlu0 %v4062_v50, %s14973_s12  ;;  %v13664_v54 = vld [vmem:[%s19337_s7 + $0x744] ss:$16 sps:$4 sm:$0xff]   ;;  %v13705_v53 = vld [vmem:[%s19337_s7 + $0x68c] ss:$16 sps:$4 sm:$0xff]  }
 0x451   : > { %v3755_v40 = vpop.f32.mrf.mxu0  ;;  %5069 = vmatprep.subr.bf16.mxu1 %v13664_v54  ;;  %v13700_v31 = vld [vmem:[%s19337_s7 + $0x408] ss:$16 sps:$4 sm:$0xff]   ;;  %v13708_v50 = vld [vmem:[%s19337_s7 + $0x5ec] ss:$16 sps:$4 sm:$0xff]  }
 0x452   : > { %v3967_v60 = vadd.f32 %v16336_v30, %v3947_v21  ;;  %5070 = vmatpush2.bf16.msra.mxu1 %v13662_v33  ;;  %v13703_v32 = vld [vmem:[%s19337_s7 + $0x688] ss:$16 sps:$4 sm:$0xff]   ;;  %v13711_v2 = vld [vmem:[%s19337_s7 + $0x66c] ss:$16 sps:$4 sm:$0xff]  }
 0x453   : > { %v13331_v3 = vpop.f32.mrf.mxu0  ;;  %5071 = vmatprep.subr.bf16.mxu1 %v13670_v26  ;;  %v13709_v21 = vld [vmem:[%s19337_s7 + $0x668] ss:$16 sps:$4 sm:$0xff]   ;;  %v13714_v44 = vld [vmem:[%s19337_s7 + $0x5cc] ss:$16 sps:$4 sm:$0xff]  }
 0x454   : > { %v3980_v43 = vmax.f32 %v3967_v60, 0.0  ;;  %v13717_v40 = vld [vmem:[%s19337_s7 + $0x64c] ss:$16 sps:$4 sm:$0xff]   ;;  %v13712_v60 = vld [vmem:[%s19337_s7 + $0x5c8] ss:$16 sps:$4 sm:$0xff]  }
 0x455   : > { %v3760_v19 = vpop.f32.mrf.mxu0  ;;  %v13715_v3 = vld [vmem:[%s19337_s7 + $0x648] ss:$16 sps:$4 sm:$0xff]   ;;  %v13720_v33 = vld [vmem:[%s19337_s7 + $0x5ac] ss:$16 sps:$4 sm:$0xff]  }
 0x456   : > { %v12479_v0 = vpack.c.bf16 %v3980_v43, %v3980_v43  ;;  %v3778_v46 = vadd.f32 %v3760_v19, %v16330_v34  ;;  %5072 = vmatpush2.bf16.msra.mxu1 %v13668_v49  ;;  %v13723_v54 = vld [vmem:[%s19337_s7 + $0x62c] ss:$16 sps:$4 sm:$0xff]   ;;  %v13718_v43 = vld [vmem:[%s19337_s7 + $0x5a8] ss:$16 sps:$4 sm:$0xff]  }
 0x457   : > { %v13334_v56 = vpop.f32.mrf.mxu0  ;;  %v4068_v20 = vld [vmem:[#allocation4 + $0x20] sm:$0xf]  ;;  %5073 = vmatprep.subr.bf16.mxu1 %v13676_v62  ;;  %v13721_v19 = vld [vmem:[%s19337_s7 + $0x628] ss:$16 sps:$4 sm:$0xff]   ;;  %v13726_v26 = vld [vmem:[%s19337_s7 + $0x58c] ss:$16 sps:$4 sm:$0xff]  }
 0x458   : > { %4046 = vst.msk [vmem:[#allocation4 + $0x28] sm:$0xf] %vm2119_vm2, %v12479_v0  ;;  %v3949_v22 = vadd.f32 %v16326_v8, %v3778_v46  ;;  %4069 = vst.msk [vmem:[#allocation5 + $0x8] sm:$0xf] %vm2119_vm2, %v4068_v20  ;;  %v13729_v0 = vld [vmem:[%s19337_s7 + $0x60c] ss:$16 sps:$4 sm:$0xff]  }
 0x459   : > { %v3763_v10 = vpop.f32.mrf.mxu0  ;;  %v13724_v46 = vld [vmem:[%s19337_s7 + $0x588] ss:$16 sps:$4 sm:$0xff]   ;;  %v13732_v20 = vld [vmem:[%s19337_s7 + $0x56c] ss:$16 sps:$4 sm:$0xff]  }
 0x45a   : > { %v3969_v34 = vadd.f32 %v16336_v30, %v3949_v22  ;;  %5074 = vmatpush2.bf16.msra.mxu1 %v13674_v42  ;;  %v13727_v56 = vld [vmem:[%s19337_s7 + $0x608] ss:$16 sps:$4 sm:$0xff]   ;;  %v13735_v49 = vld [vmem:[%s19337_s7 + $0x7ec] ss:$16 sps:$4 sm:$0xff]  }
 0x45b   : > { %v13335_v1 = vpop.f32.mrf.mxu0  ;;  %5125 = vmatprep.subr.bf16.mxu1 %v13687_v16  ;;  %v13730_v22 = vld [vmem:[%s19337_s7 + $0x568] ss:$16 sps:$4 sm:$0xff]   ;;  %v13738_v62 = vld [vmem:[%s19337_s7 + $0x54c] ss:$16 sps:$4 sm:$0xff]  }
 0x45c   : > { %v3982_v14 = vmax.f32 %v3969_v34, 0.0  ;;  %v13733_v10 = vld [vmem:[%s19337_s7 + $0x7e8] ss:$16 sps:$4 sm:$0xff]   ;;  %v13741_v34 = vld [vmem:[%s19337_s7 + $0x7cc] ss:$16 sps:$4 sm:$0xff]  }
 0x45d   : > { %v13736_v1 = vld [vmem:[%s19337_s7 + $0x548] ss:$16 sps:$4 sm:$0xff]  }
 0x45e   : > { %v12481_v28 = vpack.c.bf16 %v3982_v14, %v3982_v14  ;;  %v13739_v42 = vld [vmem:[%s19337_s7 + $0x7c8] ss:$16 sps:$4 sm:$0xff]   ;;  %v13744_v14 = vld [vmem:[%s19337_s7 + $0x52c] ss:$16 sps:$4 sm:$0xff]  }
 0x45f   : > { %v4070_v8 = vld [vmem:[#allocation4 + $0x28] sm:$0xf] }
 0x460   : > { %4048 = vst.msk [vmem:[#allocation4 + $0x30] sm:$0xf] %vm2119_vm2, %v12481_v28  ;;  %4072 = vrot.lane.b32.xlu1 %v4070_v8, %s14973_s12  ;;  %v13747_v28 = vld [vmem:[%s19337_s7 + $0x7ac] ss:$16 sps:$4 sm:$0xff]   ;;  %v13742_v8 = vld [vmem:[%s19337_s7 + $0x528] ss:$16 sps:$4 sm:$0xff]  }
 0x461   : > { %v13745_v16 = vld [vmem:[%s19337_s7 + $0x7a8] ss:$16 sps:$4 sm:$0xff]  }
 0x467   : > { %v4076_v30 = vld [vmem:[#allocation4 + $0x30] sm:$0xf] }
 0x468   : > { %4077 = vst.msk [vmem:[#allocation5 + $0xc] sm:$0xf] %vm2119_vm2, %v4076_v30  ;;  %v13750_v30 = vld [vmem:[%s19337_s7 + $0x50c] ss:$16 sps:$4 sm:$0xff]  }
 0x4b2   : > { %v4056_v45 = vpop.permute.xlu0 %4055 }
 0x4b3   : > { %4059 = vst.msk [vmem:[#allocation5] sm:$0xf] %vm4058_vm5, %v4056_v45  ;;  %v13753_v45 = vld [vmem:[%s19337_s7 + $0x78c] ss:$16 sps:$4 sm:$0xff]  }
 0x4c2   : > { %v4065_v4 = vpop.permute.xlu0 %4064 }
 0x4c3   : > { %4067 = vst.msk [vmem:[#allocation5 + $0x4] sm:$0xf] %vm4058_vm5, %v4065_v4  ;;  %v13748_v4 = vld [vmem:[%s19337_s7 + $0x508] ss:$16 sps:$4 sm:$0xff]  }
 0x4ca   : > { %v4078_v25 = vld [vmem:[#allocation5] sm:$0x11] }
 0x4cb   : > { %v16488_v9 = vcombine.low %v4078_v25, %v4078_v25  ;;  %v16490_v6 = vcombine.high %v4078_v25, %v4078_v25  ;;  %v13751_v25 = vld [vmem:[%s19337_s7 + $0x788] ss:$16 sps:$4 sm:$0xff]  }
 0x4cd   : > { %v4347_v55 = vshrl.u32 %v16488_v9, 16  ;;  %v4350_v17 = vshrl.u32 %v16490_v6, 16 }
 0x4cf   : > { %5034 = vmatprep.mubr.bf16.mxu0 %v4350_v17 }
 0x4d0   : > { %5035 = vmatmul.mubr.bf16.vlgmr.msra.gmra.mxu0 %v4347_v55 }
 0x4d1   : > { %5085 = vmatpush1.bf16.msra.mxu0 %v13659_v23  ;;  %5116 = vmatprep.mubr.bf16.mxu0 %v4350_v17  ;;  %v13756_v17 = vld [vmem:[%s19337_s7 + $0x76c] ss:$16 sps:$4 sm:$0xff]   ;;  %v13759_v23 = vld [vmem:[%s19337_s7 + $0xe4] ss:$16 sps:$4 sm:$0xff]  }
 0x4d2   : > { %v4073_v39 = vpop.permute.xlu1 %4072  ;;  %5086 = vmatprep.subr.bf16.mxu0 %v13667_v48  ;;  %v13754_v48 = vld [vmem:[%s19337_s7 + $0x768] ss:$16 sps:$4 sm:$0xff]  }
 0x4d3   : > { %4075 = vst.msk [vmem:[#allocation5 + $0x8] sm:$0xf] %vm4058_vm5, %v4073_v39  ;;  %v13762_v39 = vld [vmem:[%s19337_s7 + $0x74c] ss:$16 sps:$4 sm:$0xff]  }
 0x4d5   : > { %5087 = vmatpush1.bf16.msra.mxu0 %v13665_v18  ;;  %v13757_v18 = vld [vmem:[%s19337_s7 + $0xe0] ss:$16 sps:$4 sm:$0xff]  }
 0x4d6   : > { %5088 = vmatprep.subr.bf16.mxu0 %v13673_v38  ;;  %v13765_v38 = vld [vmem:[%s19337_s7 + $0xc4] ss:$16 sps:$4 sm:$0xff]  }
 0x4d9   : > { %5089 = vmatpush1.bf16.msra.mxu0 %v13671_v51  ;;  %v13760_v51 = vld [vmem:[%s19337_s7 + $0x748] ss:$16 sps:$4 sm:$0xff]  }
 0x4da   : > { %5090 = vmatprep.subr.bf16.mxu0 %v13679_v29  ;;  %v4079_v5 = vld [vmem:[#allocation5 + $0x8] sm:$0x11] }
 0x4db   : > { %v16521_v63 = vcombine.low %v4079_v5, %v4079_v5  ;;  %v16523_v35 = vcombine.high %v4079_v5, %v4079_v5  ;;  %v13763_v29 = vld [vmem:[%s19337_s7 + $0xc0] ss:$16 sps:$4 sm:$0xff]   ;;  %v13766_v5 = vld [vmem:[%s19337_s7 + $0x728] ss:$16 sps:$4 sm:$0xff]  }
 0x4dd   : > { %5091 = vmatpush1.bf16.msra.mxu0 %v13677_v11  ;;  %v4353_v58 = vshrl.u32 %v16521_v63, 16  ;;  %v4356_v12 = vshrl.u32 %v16523_v35, 16  ;;  %v13768_v11 = vld [vmem:[%s19337_s7 + $0x72c] ss:$16 sps:$4 sm:$0xff]  }
 0x4de   : > { %5092 = vmatprep.subr.bf16.mxu0 %v13684_v37  ;;  %v13769_v37 = vld [vmem:[%s19337_s7 + $0xa0] ss:$16 sps:$4 sm:$0xff]  }
 0x4df   : > { %5075 = vmatprep.mubr.bf16.mxu1 %v4356_v12 }
 0x4e0   : > { %5076 = vmatmul.mubr.bf16.vlgmr.msra.gmra.mxu1 %v4353_v58 }
 0x4e1   : > { %5093 = vmatpush1.bf16.msra.mxu0 %v13682_v15  ;;  %5126 = vmatpush1.bf16.msra.mxu1 %v13685_v36  ;;  %v13777_v15 = vld [vmem:[%s19337_s7 + $0x84] ss:$16 sps:$4 sm:$0xff]   ;;  %v13772_v36 = vld [vmem:[%s19337_s7 + $0x708] ss:$16 sps:$4 sm:$0xff]  }
 0x4e2   : > { %5157 = vmatprep.mubr.bf16.mxu1 %v4356_v12  ;;  %5094 = vmatprep.subr.bf16.mxu0 %v13690_v52  ;;  %v13774_v12 = vld [vmem:[%s19337_s7 + $0x70c] ss:$16 sps:$4 sm:$0xff]   ;;  %v13775_v52 = vld [vmem:[%s19337_s7 + $0x80] ss:$16 sps:$4 sm:$0xff]  }
 0x4e3   : > { %5127 = vmatprep.subr.bf16.mxu1 %v13693_v27  ;;  %v13780_v27 = vld [vmem:[%s19337_s7 + $0x64] ss:$16 sps:$4 sm:$0xff]  }
 0x4e5   : > { %5095 = vmatpush1.bf16.msra.mxu0 %v13688_v24  ;;  %5128 = vmatpush1.bf16.msra.mxu1 %v13691_v47  ;;  %v13783_v24 = vld [vmem:[%s19337_s7 + $0x2e4] ss:$16 sps:$4 sm:$0xff]   ;;  %v13778_v47 = vld [vmem:[%s19337_s7 + $0x60] ss:$16 sps:$4 sm:$0xff]  }
 0x4e6   : > { %5096 = vmatprep.subr.bf16.mxu0 %v13696_v7  ;;  %5129 = vmatprep.subr.bf16.mxu1 %v13699_v61  ;;  %v13781_v7 = vld [vmem:[%s19337_s7 + $0x2e0] ss:$16 sps:$4 sm:$0xff]   ;;  %v13786_v61 = vld [vmem:[%s19337_s7 + $0x44] ss:$16 sps:$4 sm:$0xff]  }
 0x4e9   : > { %5097 = vmatpush1.bf16.msra.mxu0 %v13694_v57  ;;  %5130 = vmatpush1.bf16.msra.mxu1 %v13697_v59  ;;  %v13789_v57 = vld [vmem:[%s19337_s7 + $0x2c4] ss:$16 sps:$4 sm:$0xff]   ;;  %v13784_v59 = vld [vmem:[%s19337_s7 + $0x40] ss:$16 sps:$4 sm:$0xff]  }
 0x4ea   : > { %5098 = vmatprep.subr.bf16.mxu0 %v13702_v41  ;;  %5131 = vmatprep.subr.bf16.mxu1 %v13705_v53  ;;  %v13787_v41 = vld [vmem:[%s19337_s7 + $0x2c0] ss:$16 sps:$4 sm:$0xff]   ;;  %v13792_v53 = vld [vmem:[%s19337_s7 + $0x24] ss:$16 sps:$4 sm:$0xff]  }
 0x4ed   : > { %5099 = vmatpush1.bf16.msra.mxu0 %v13700_v31  ;;  %5132 = vmatpush1.bf16.msra.mxu1 %v13703_v32  ;;  %v13790_v31 = vld [vmem:[%s19337_s7 + $0x20] ss:$16 sps:$4 sm:$0xff]  }
 0x4ee   : > { %5100 = vmatprep.subr.bf16.mxu0 %v13708_v50  ;;  %5133 = vmatprep.subr.bf16.mxu1 %v13711_v2  ;;  %v13793_v32 = vld [vmem:[%s19337_s7 + $0x2a0] ss:$16 sps:$4 sm:$0xff]   ;;  %v13798_v50 = vld [vmem:[%s19337_s7 + $0x4] ss:$16 sps:$4 sm:$0xff]  }
 0x4ef   : > { %v13801_v2 = vld [vmem:[%s19337_s7 + $0x284] ss:$16 sps:$4 sm:$0xff]  }
 0x4f1   : > { %5101 = vmatpush2.bf16.msra.mxu0 %v13706_v13  ;;  %5134 = vmatpush1.bf16.msra.mxu1 %v13709_v21  ;;  %v13796_v13 = vld [vmem:[%s19337_s7] ss:$16 sps:$4 sm:$0xff]  }
 0x4f2   : > { %5102 = vmatprep.subr.bf16.mxu0 %v13714_v44  ;;  %5135 = vmatprep.subr.bf16.mxu1 %v13717_v40  ;;  %v13799_v21 = vld [vmem:[%s19337_s7 + $0x280] ss:$16 sps:$4 sm:$0xff]   ;;  %v13804_v44 = vld [vmem:[%s19337_s7 + $0x1e4] ss:$16 sps:$4 sm:$0xff]  }
 0x4f3   : > { %v13807_v40 = vld [vmem:[%s19337_s7 + $0x264] ss:$16 sps:$4 sm:$0xff]  }
 0x4f5   : > { %5103 = vmatpush2.bf16.msra.mxu0 %v13712_v60  ;;  %5136 = vmatpush1.bf16.msra.mxu1 %v13715_v3  ;;  %v13802_v60 = vld [vmem:[%s19337_s7 + $0x1e0] ss:$16 sps:$4 sm:$0xff]  }
 0x4f6   : > { %5104 = vmatprep.subr.bf16.mxu0 %v13720_v33  ;;  %5137 = vmatprep.subr.bf16.mxu1 %v13723_v54  ;;  %v13805_v3 = vld [vmem:[%s19337_s7 + $0x260] ss:$16 sps:$4 sm:$0xff]   ;;  %v13810_v33 = vld [vmem:[%s19337_s7 + $0x1c4] ss:$16 sps:$4 sm:$0xff]  }
 0x4f7   : > { %v13813_v54 = vld [vmem:[%s19337_s7 + $0x244] ss:$16 sps:$4 sm:$0xff]  }
 0x4f9   : > { %5105 = vmatpush2.bf16.msra.mxu0 %v13718_v43  ;;  %5138 = vmatpush1.bf16.msra.mxu1 %v13721_v19  ;;  %v13808_v43 = vld [vmem:[%s19337_s7 + $0x1c0] ss:$16 sps:$4 sm:$0xff]  }
 0x4fa   : > { %5106 = vmatprep.subr.bf16.mxu0 %v13726_v26  ;;  %5139 = vmatprep.subr.bf16.mxu1 %v13729_v0  ;;  %v13811_v19 = vld [vmem:[%s19337_s7 + $0x240] ss:$16 sps:$4 sm:$0xff]   ;;  %v13816_v26 = vld [vmem:[%s19337_s7 + $0x1a4] ss:$16 sps:$4 sm:$0xff]  }
 0x4fb   : > { %v13819_v0 = vld [vmem:[%s19337_s7 + $0x224] ss:$16 sps:$4 sm:$0xff]  }
 0x4fd   : > { %5107 = vmatpush2.bf16.msra.mxu0 %v13724_v46  ;;  %5140 = vmatpush1.bf16.msra.mxu1 %v13727_v56  ;;  %v13814_v46 = vld [vmem:[%s19337_s7 + $0x1a0] ss:$16 sps:$4 sm:$0xff]  }
 0x4fe   : > { %5108 = vmatprep.subr.bf16.mxu0 %v13732_v20  ;;  %5141 = vmatprep.subr.bf16.mxu1 %v13735_v49  ;;  %v13817_v56 = vld [vmem:[%s19337_s7 + $0x220] ss:$16 sps:$4 sm:$0xff]   ;;  %v13822_v20 = vld [vmem:[%s19337_s7 + $0x184] ss:$16 sps:$4 sm:$0xff]  }
 0x4ff   : > { %v13825_v49 = vld [vmem:[%s19337_s7 + $0x204] ss:$16 sps:$4 sm:$0xff]  }
 0x501   : > { %5109 = vmatpush2.bf16.msra.mxu0 %v13730_v22  ;;  %5142 = vmatpush2.bf16.msra.mxu1 %v13733_v10  ;;  %v13820_v22 = vld [vmem:[%s19337_s7 + $0x180] ss:$16 sps:$4 sm:$0xff]  }
 0x502   : > { %5110 = vmatprep.subr.bf16.mxu0 %v13738_v62  ;;  %5143 = vmatprep.subr.bf16.mxu1 %v13741_v34  ;;  %v13823_v10 = vld [vmem:[%s19337_s7 + $0x200] ss:$16 sps:$4 sm:$0xff]   ;;  %v13828_v62 = vld [vmem:[%s19337_s7 + $0x164] ss:$16 sps:$4 sm:$0xff]  }
 0x503   : > { %v13831_v34 = vld [vmem:[%s19337_s7 + $0x3e4] ss:$16 sps:$4 sm:$0xff]  }
 0x505   : > { %5111 = vmatpush2.bf16.msra.mxu0 %v13736_v1  ;;  %5144 = vmatpush2.bf16.msra.mxu1 %v13739_v42  ;;  %v13826_v1 = vld [vmem:[%s19337_s7 + $0x160] ss:$16 sps:$4 sm:$0xff]  }
 0x506   : > { %5112 = vmatprep.subr.bf16.mxu0 %v13744_v14  ;;  %5145 = vmatprep.subr.bf16.mxu1 %v13747_v28  ;;  %v13829_v42 = vld [vmem:[%s19337_s7 + $0x3e0] ss:$16 sps:$4 sm:$0xff]   ;;  %v13834_v14 = vld [vmem:[%s19337_s7 + $0x144] ss:$16 sps:$4 sm:$0xff]  }
 0x507   : > { %v13837_v28 = vld [vmem:[%s19337_s7 + $0x3c4] ss:$16 sps:$4 sm:$0xff]  }
 0x509   : > { %5113 = vmatpush2.bf16.msra.mxu0 %v13742_v8  ;;  %5146 = vmatpush2.bf16.msra.mxu1 %v13745_v16  ;;  %v13832_v8 = vld [vmem:[%s19337_s7 + $0x140] ss:$16 sps:$4 sm:$0xff]  }
 0x50a   : > { %5114 = vmatprep.subr.bf16.mxu0 %v13750_v30  ;;  %5147 = vmatprep.subr.bf16.mxu1 %v13753_v45  ;;  %v13835_v16 = vld [vmem:[%s19337_s7 + $0x3c0] ss:$16 sps:$4 sm:$0xff]   ;;  %v13840_v30 = vld [vmem:[%s19337_s7 + $0x124] ss:$16 sps:$4 sm:$0xff]  }
 0x50b   : > { %v13843_v45 = vld [vmem:[%s19337_s7 + $0x3a4] ss:$16 sps:$4 sm:$0xff]  }
 0x50d   : > { %5115 = vmatpush2.bf16.msra.mxu0 %v13748_v4  ;;  %5148 = vmatpush2.bf16.msra.mxu1 %v13751_v25  ;;  %v13838_v4 = vld [vmem:[%s19337_s7 + $0x120] ss:$16 sps:$4 sm:$0xff]  }
 0x50e   : > { %5149 = vmatprep.subr.bf16.mxu1 %v13756_v17  ;;  %5810 = vmatprep.subr.bf16.mxu0 %v13759_v23  ;;  %v13841_v25 = vld [vmem:[%s19337_s7 + $0x3a0] ss:$16 sps:$4 sm:$0xff]   ;;  %v13846_v17 = vld [vmem:[%s19337_s7 + $0x104] ss:$16 sps:$4 sm:$0xff]  }
 0x50f   : > { %v13849_v23 = vld [vmem:[%s19337_s7 + $0x384] ss:$16 sps:$4 sm:$0xff]  }
 0x510   : > { %5117 = vmatmul.mubr.bf16.vlgmr.msra.gmra.mxu0 %v4347_v55  ;;  %v13771_v55 = vld [vmem:[%s19337_s7 + $0xa4] ss:$16 sps:$4 sm:$0xff]  }
 0x511   : > { %5150 = vmatpush2.bf16.msra.mxu1 %v13754_v48  ;;  %5811 = vmatpush1.bf16.msra.mxu0 %v13757_v18  ;;  %v13844_v48 = vld [vmem:[%s19337_s7 + $0x100] ss:$16 sps:$4 sm:$0xff]  }
 0x512   : > { %5842 = vmatprep.mubr.bf16.mxu0 %v16490_v6  ;;  %5151 = vmatprep.subr.bf16.mxu1 %v13762_v39  ;;  %v13847_v18 = vld [vmem:[%s19337_s7 + $0x380] ss:$16 sps:$4 sm:$0xff]   ;;  %v13852_v39 = vld [vmem:[%s19337_s7 + $0x364] ss:$16 sps:$4 sm:$0xff]  }
 0x513   : > { %5812 = vmatprep.subr.bf16.mxu0 %v13765_v38  ;;  %v13855_v38 = vld [vmem:[%s19337_s7 + $0xec] ss:$16 sps:$4 sm:$0xff]  }
 0x515   : > { %5152 = vmatpush2.bf16.msra.mxu1 %v13760_v51  ;;  %5813 = vmatpush1.bf16.msra.mxu0 %v13763_v29  ;;  %v13850_v51 = vld [vmem:[%s19337_s7 + $0x360] ss:$16 sps:$4 sm:$0xff]   ;;  %v13853_v29 = vld [vmem:[%s19337_s7 + $0xe8] ss:$16 sps:$4 sm:$0xff]  }
 0x516   : > { %5153 = vmatprep.subr.bf16.mxu1 %v13768_v11  ;;  %5814 = vmatprep.subr.bf16.mxu0 %v13771_v55  ;;  %v13858_v11 = vld [vmem:[%s19337_s7 + $0x344] ss:$16 sps:$4 sm:$0xff]   ;;  %v13861_v55 = vld [vmem:[%s19337_s7 + $0xcc] ss:$16 sps:$4 sm:$0xff]  }
 0x519   : > { %5154 = vmatpush2.bf16.msra.mxu1 %v13766_v5  ;;  %5815 = vmatpush1.bf16.msra.mxu0 %v13769_v37  ;;  %v13856_v5 = vld [vmem:[%s19337_s7 + $0x340] ss:$16 sps:$4 sm:$0xff]   ;;  %v13859_v37 = vld [vmem:[%s19337_s7 + $0xc8] ss:$16 sps:$4 sm:$0xff]  }
 0x51a   : > { %5155 = vmatprep.subr.bf16.mxu1 %v13774_v12  ;;  %5816 = vmatprep.subr.bf16.mxu0 %v13777_v15  ;;  %v13864_v12 = vld [vmem:[%s19337_s7 + $0x324] ss:$16 sps:$4 sm:$0xff]   ;;  %v13867_v15 = vld [vmem:[%s19337_s7 + $0xac] ss:$16 sps:$4 sm:$0xff]  }
 0x51d   : > { %5156 = vmatpush2.bf16.msra.mxu1 %v13772_v36  ;;  %5817 = vmatpush1.bf16.msra.mxu0 %v13775_v52  ;;  %v13862_v36 = vld [vmem:[%s19337_s7 + $0x320] ss:$16 sps:$4 sm:$0xff]   ;;  %v13870_v52 = vld [vmem:[%s19337_s7 + $0x304] ss:$16 sps:$4 sm:$0xff]  }
 0x51e   : > { %5818 = vmatprep.subr.bf16.mxu0 %v13780_v27  ;;  %5851 = vmatprep.subr.bf16.mxu1 %v13783_v24  ;;  %v13873_v27 = vld [vmem:[%s19337_s7 + $0x8c] ss:$16 sps:$4 sm:$0xff]   ;;  %v13868_v24 = vld [vmem:[%s19337_s7 + $0x300] ss:$16 sps:$4 sm:$0xff]  }
 0x520   : > { %5158 = vmatmul.mubr.bf16.vlgmr.msra.gmra.mxu1 %v4353_v58  ;;  %v13795_v58 = vld [vmem:[%s19337_s7 + $0x2a4] ss:$16 sps:$4 sm:$0xff]  }
 0x521   : > { %5819 = vmatpush1.bf16.msra.mxu0 %v13778_v47  ;;  %5852 = vmatpush1.bf16.msra.mxu1 %v13781_v7  ;;  %v13871_v47 = vld [vmem:[%s19337_s7 + $0x88] ss:$16 sps:$4 sm:$0xff]   ;;  %v13876_v7 = vld [vmem:[%s19337_s7 + $0x6c] ss:$16 sps:$4 sm:$0xff]  }
 0x522   : > { %5883 = vmatprep.mubr.bf16.mxu1 %v16523_v35  ;;  %5820 = vmatprep.subr.bf16.mxu0 %v13786_v61  ;;  %v13879_v61 = vld [vmem:[%s19337_s7 + $0x2ec] ss:$16 sps:$4 sm:$0xff]  }
 0x523   : > { %5853 = vmatprep.subr.bf16.mxu1 %v13789_v57  ;;  %v13874_v57 = vld [vmem:[%s19337_s7 + $0x68] ss:$16 sps:$4 sm:$0xff]  }
 0x525   : > { %5821 = vmatpush1.bf16.msra.mxu0 %v13784_v59  ;;  %5854 = vmatpush1.bf16.msra.mxu1 %v13787_v41  ;;  %v13877_v59 = vld [vmem:[%s19337_s7 + $0x2e8] ss:$16 sps:$4 sm:$0xff]   ;;  %v13882_v41 = vld [vmem:[%s19337_s7 + $0x4c] ss:$16 sps:$4 sm:$0xff]  }
 0x526   : > { %5822 = vmatprep.subr.bf16.mxu0 %v13792_v53  ;;  %5855 = vmatprep.subr.bf16.mxu1 %v13795_v58  ;;  %v13885_v53 = vld [vmem:[%s19337_s7 + $0x2cc] ss:$16 sps:$4 sm:$0xff]   ;;  %v13880_v58 = vld [vmem:[%s19337_s7 + $0x48] ss:$16 sps:$4 sm:$0xff]  }
 0x529   : > { %5823 = vmatpush1.bf16.msra.mxu0 %v13790_v31  ;;  %5856 = vmatpush1.bf16.msra.mxu1 %v13793_v32  ;;  %v13883_v31 = vld [vmem:[%s19337_s7 + $0x2c8] ss:$16 sps:$4 sm:$0xff]   ;;  %v13888_v32 = vld [vmem:[%s19337_s7 + $0x2c] ss:$16 sps:$4 sm:$0xff]  }
 0x52a   : > { %5824 = vmatprep.subr.bf16.mxu0 %v13798_v50  ;;  %5857 = vmatprep.subr.bf16.mxu1 %v13801_v2  ;;  %v13891_v50 = vld [vmem:[%s19337_s7 + $0x2ac] ss:$16 sps:$4 sm:$0xff]   ;;  %v13886_v2 = vld [vmem:[%s19337_s7 + $0x28] ss:$16 sps:$4 sm:$0xff]  }
 0x52d   : > { %5825 = vmatpush1.bf16.msra.mxu0 %v13796_v13  ;;  %5858 = vmatpush1.bf16.msra.mxu1 %v13799_v21  ;;  %v13894_v13 = vld [vmem:[%s19337_s7 + $0xc] ss:$16 sps:$4 sm:$0xff]  }
 0x52e   : > { %5826 = vmatprep.subr.bf16.mxu0 %v13804_v44  ;;  %5859 = vmatprep.subr.bf16.mxu1 %v13807_v40  ;;  %v13897_v21 = vld [vmem:[%s19337_s7 + $0x28c] ss:$16 sps:$4 sm:$0xff]   ;;  %v13892_v44 = vld [vmem:[%s19337_s7 + $0x8] ss:$16 sps:$4 sm:$0xff]  }
 0x52f   : > { %v13895_v40 = vld [vmem:[%s19337_s7 + $0x288] ss:$16 sps:$4 sm:$0xff]  }
 0x531   : > { %5827 = vmatpush2.bf16.msra.mxu0 %v13802_v60  ;;  %5860 = vmatpush1.bf16.msra.mxu1 %v13805_v3  ;;  %v13900_v60 = vld [vmem:[%s19337_s7 + $0x1ec] ss:$16 sps:$4 sm:$0xff]  }
 0x532   : > { %5828 = vmatprep.subr.bf16.mxu0 %v13810_v33  ;;  %5861 = vmatprep.subr.bf16.mxu1 %v13813_v54  ;;  %v13903_v3 = vld [vmem:[%s19337_s7 + $0x26c] ss:$16 sps:$4 sm:$0xff]   ;;  %v13898_v33 = vld [vmem:[%s19337_s7 + $0x1e8] ss:$16 sps:$4 sm:$0xff]  }
 0x533   : > { %v13901_v54 = vld [vmem:[%s19337_s7 + $0x268] ss:$16 sps:$4 sm:$0xff]  }
 0x535   : > { %5829 = vmatpush2.bf16.msra.mxu0 %v13808_v43  ;;  %5862 = vmatpush1.bf16.msra.mxu1 %v13811_v19  ;;  %v13906_v43 = vld [vmem:[%s19337_s7 + $0x1cc] ss:$16 sps:$4 sm:$0xff]  }
 0x536   : > { %5830 = vmatprep.subr.bf16.mxu0 %v13816_v26  ;;  %5863 = vmatprep.subr.bf16.mxu1 %v13819_v0  ;;  %v13909_v19 = vld [vmem:[%s19337_s7 + $0x24c] ss:$16 sps:$4 sm:$0xff]   ;;  %v13904_v26 = vld [vmem:[%s19337_s7 + $0x1c8] ss:$16 sps:$4 sm:$0xff]  }
 0x537   : > { %v13907_v0 = vld [vmem:[%s19337_s7 + $0x248] ss:$16 sps:$4 sm:$0xff]  }
 0x539   : > { %5831 = vmatpush2.bf16.msra.mxu0 %v13814_v46  ;;  %5864 = vmatpush1.bf16.msra.mxu1 %v13817_v56  ;;  %v13912_v46 = vld [vmem:[%s19337_s7 + $0x1ac] ss:$16 sps:$4 sm:$0xff]  }
 0x53a   : > { %5832 = vmatprep.subr.bf16.mxu0 %v13822_v20  ;;  %5865 = vmatprep.subr.bf16.mxu1 %v13825_v49  ;;  %v13915_v56 = vld [vmem:[%s19337_s7 + $0x22c] ss:$16 sps:$4 sm:$0xff]   ;;  %v13910_v20 = vld [vmem:[%s19337_s7 + $0x1a8] ss:$16 sps:$4 sm:$0xff]  }
 0x53b   : > { %v13913_v49 = vld [vmem:[%s19337_s7 + $0x228] ss:$16 sps:$4 sm:$0xff]  }
 0x53d   : > { %5833 = vmatpush2.bf16.msra.mxu0 %v13820_v22  ;;  %5866 = vmatpush1.bf16.msra.mxu1 %v13823_v10  ;;  %v13918_v22 = vld [vmem:[%s19337_s7 + $0x18c] ss:$16 sps:$4 sm:$0xff]  }
 0x53e   : > { %5834 = vmatprep.subr.bf16.mxu0 %v13828_v62  ;;  %5867 = vmatprep.subr.bf16.mxu1 %v13831_v34  ;;  %v13921_v10 = vld [vmem:[%s19337_s7 + $0x20c] ss:$16 sps:$4 sm:$0xff]   ;;  %v13916_v62 = vld [vmem:[%s19337_s7 + $0x188] ss:$16 sps:$4 sm:$0xff]  }
 0x53f   : > { %v13919_v34 = vld [vmem:[%s19337_s7 + $0x208] ss:$16 sps:$4 sm:$0xff]  }
 0x541   : > { %5835 = vmatpush2.bf16.msra.mxu0 %v13826_v1  ;;  %5868 = vmatpush2.bf16.msra.mxu1 %v13829_v42  ;;  %v13924_v1 = vld [vmem:[%s19337_s7 + $0x16c] ss:$16 sps:$4 sm:$0xff]  }
 0x542   : > { %5836 = vmatprep.subr.bf16.mxu0 %v13834_v14  ;;  %5869 = vmatprep.subr.bf16.mxu1 %v13837_v28  ;;  %v13927_v42 = vld [vmem:[%s19337_s7 + $0x3ec] ss:$16 sps:$4 sm:$0xff]   ;;  %v13922_v14 = vld [vmem:[%s19337_s7 + $0x168] ss:$16 sps:$4 sm:$0xff]  }
 0x543   : > { %v13925_v28 = vld [vmem:[%s19337_s7 + $0x3e8] ss:$16 sps:$4 sm:$0xff]  }
 0x545   : > { %5837 = vmatpush2.bf16.msra.mxu0 %v13832_v8  ;;  %5870 = vmatpush2.bf16.msra.mxu1 %v13835_v16  ;;  %v13930_v8 = vld [vmem:[%s19337_s7 + $0x14c] ss:$16 sps:$4 sm:$0xff]  }
 0x546   : > { %5838 = vmatprep.subr.bf16.mxu0 %v13840_v30  ;;  %5871 = vmatprep.subr.bf16.mxu1 %v13843_v45  ;;  %v13933_v16 = vld [vmem:[%s19337_s7 + $0x3cc] ss:$16 sps:$4 sm:$0xff]   ;;  %v13928_v30 = vld [vmem:[%s19337_s7 + $0x148] ss:$16 sps:$4 sm:$0xff]  }
 0x547   : > { %v13931_v45 = vld [vmem:[%s19337_s7 + $0x3c8] ss:$16 sps:$4 sm:$0xff]  }
 0x549   : > { %5839 = vmatpush2.bf16.msra.mxu0 %v13838_v4  ;;  %5872 = vmatpush2.bf16.msra.mxu1 %v13841_v25  ;;  %v13936_v4 = vld [vmem:[%s19337_s7 + $0x12c] ss:$16 sps:$4 sm:$0xff]  }
 0x54a   : > { %5840 = vmatprep.subr.bf16.mxu0 %v13846_v17  ;;  %5873 = vmatprep.subr.bf16.mxu1 %v13849_v23  ;;  %v13939_v25 = vld [vmem:[%s19337_s7 + $0x3ac] ss:$16 sps:$4 sm:$0xff]   ;;  %v13934_v17 = vld [vmem:[%s19337_s7 + $0x128] ss:$16 sps:$4 sm:$0xff]  }
 0x54b   : > { %v13937_v23 = vld [vmem:[%s19337_s7 + $0x3a8] ss:$16 sps:$4 sm:$0xff]  }
 0x54d   : > { %5841 = vmatpush2.bf16.msra.mxu0 %v13844_v48  ;;  %5874 = vmatpush2.bf16.msra.mxu1 %v13847_v18  ;;  %v13942_v48 = vld [vmem:[%s19337_s7 + $0x10c] ss:$16 sps:$4 sm:$0xff]  }
 0x54e   : > { %5875 = vmatprep.subr.bf16.mxu1 %v13852_v39  ;;  %5892 = vmatprep.subr.bf16.mxu0 %v13855_v38  ;;  %v13945_v18 = vld [vmem:[%s19337_s7 + $0x38c] ss:$16 sps:$4 sm:$0xff]   ;;  %v13940_v39 = vld [vmem:[%s19337_s7 + $0x108] ss:$16 sps:$4 sm:$0xff]  }
 0x54f   : > { %v13943_v38 = vld [vmem:[%s19337_s7 + $0x388] ss:$16 sps:$4 sm:$0xff]  }
 0x550   : > { %5843 = vmatmul.mubr.bf16.vlgmr.msra.gmra.mxu0 %v16488_v9 }
 0x551   : > { %5876 = vmatpush2.bf16.msra.mxu1 %v13850_v51  ;;  %5893 = vmatpush1.bf16.msra.mxu0 %v13853_v29  ;;  %v17061_v51 = vld [vmem:[#allocation5] sm:$0x22]  ;;  %v13948_v29 = vld [vmem:[%s19337_s7 + $0x36c] ss:$16 sps:$4 sm:$0xff]  }
 0x552   : > { %5924 = vmatprep.mubr.bf16.mxu0 %v16490_v6  ;;  %5877 = vmatprep.subr.bf16.mxu1 %v13858_v11  ;;  %v13865_v6 = vld [vmem:[%s19337_s7 + $0xa8] ss:$16 sps:$4 sm:$0xff]   ;;  %v13951_v11 = vld [vmem:[%s19337_s7 + $0x8e4] ss:$16 sps:$4 sm:$0xff]  }
 0x553   : > { %5894 = vmatprep.subr.bf16.mxu0 %v13861_v55  ;;  %v17071_v55 = vcombine.high %v17061_v51, %v17061_v51 }
 0x555   : > { %5878 = vmatpush2.bf16.msra.mxu1 %v13856_v5  ;;  %5895 = vmatpush1.bf16.msra.mxu0 %v13859_v37  ;;  %v13946_v5 = vld [vmem:[%s19337_s7 + $0x368] ss:$16 sps:$4 sm:$0xff]   ;;  %v13949_v37 = vld [vmem:[%s19337_s7 + $0x8e0] ss:$16 sps:$4 sm:$0xff]  }
 0x556   : > { %5879 = vmatprep.subr.bf16.mxu1 %v13864_v12  ;;  %5896 = vmatprep.subr.bf16.mxu0 %v13867_v15  ;;  %v13956_v12 = vld [vmem:[%s19337_s7 + $0x34c] ss:$16 sps:$4 sm:$0xff]   ;;  %v13959_v15 = vld [vmem:[%s19337_s7 + $0x8c4] ss:$16 sps:$4 sm:$0xff]  }
 0x559   : > { %5880 = vmatpush2.bf16.msra.mxu1 %v13862_v36  ;;  %5897 = vmatpush1.bf16.msra.mxu0 %v13865_v6  ;;  %v6115_v6 = vrot.slane %v17071_v55, 1 }
 0x55a   : > { %5881 = vmatprep.subr.bf16.mxu1 %v13870_v52  ;;  %5898 = vmatprep.subr.bf16.mxu0 %v13873_v27  ;;  %v13954_v52 = vld [vmem:[%s19337_s7 + $0x348] ss:$16 sps:$4 sm:$0xff]   ;;  %v13957_v27 = vld [vmem:[%s19337_s7 + $0x8c0] ss:$16 sps:$4 sm:$0xff]  }
 0x55d   : > { %5882 = vmatpush2.bf16.msra.mxu1 %v13868_v24  ;;  %5899 = vmatpush1.bf16.msra.mxu0 %v13871_v47  ;;  %v13965_v47 = vld [vmem:[%s19337_s7 + $0x8a4] ss:$16 sps:$4 sm:$0xff]  }
 0x55e   : > { %5900 = vmatprep.subr.bf16.mxu0 %v13876_v7  ;;  %5933 = vmatprep.subr.bf16.mxu1 %v13879_v61  ;;  %v13960_v61 = vld [vmem:[%s19337_s7 + $0x328] ss:$16 sps:$4 sm:$0xff]  }
 0x560   : > { %5884 = vmatmul.mubr.bf16.vlgmr.msra.gmra.mxu1 %v16521_v63 }
 0x561   : > { %5901 = vmatpush1.bf16.msra.mxu0 %v13874_v57  ;;  %5934 = vmatpush1.bf16.msra.mxu1 %v13877_v59  ;;  %v13963_v57 = vld [vmem:[%s19337_s7 + $0x8a0] ss:$16 sps:$4 sm:$0xff]  }
 0x562   : > { %5965 = vmatprep.mubr.bf16.mxu1 %v16523_v35  ;;  %5902 = vmatprep.subr.bf16.mxu0 %v13882_v41  ;;  %v13889_v35 = vld [vmem:[%s19337_s7 + $0x2a8] ss:$16 sps:$4 sm:$0xff]   ;;  %v13968_v41 = vld [vmem:[%s19337_s7 + $0x30c] ss:$16 sps:$4 sm:$0xff]  }
 0x563   : > { %5935 = vmatprep.subr.bf16.mxu1 %v13885_v53  ;;  %v13971_v53 = vld [vmem:[%s19337_s7 + $0x884] ss:$16 sps:$4 sm:$0xff]  }
 0x565   : > { %5903 = vmatpush1.bf16.msra.mxu0 %v13880_v58  ;;  %5936 = vmatpush1.bf16.msra.mxu1 %v13883_v31  ;;  %v13966_v58 = vld [vmem:[%s19337_s7 + $0x308] ss:$16 sps:$4 sm:$0xff]   ;;  %v13969_v31 = vld [vmem:[%s19337_s7 + $0x880] ss:$16 sps:$4 sm:$0xff]  }
 0x566   : > { %5904 = vmatprep.subr.bf16.mxu0 %v13888_v32  ;;  %5937 = vmatprep.subr.bf16.mxu1 %v13891_v50  ;;  %v17119_v32 = vld [vmem:[#allocation5 + $0x8] sm:$0x22]  ;;  %v13974_v50 = vld [vmem:[%s19337_s7 + $0x864] ss:$16 sps:$4 sm:$0xff]  }
 0x569   : > { %5905 = vmatpush1.bf16.msra.mxu0 %v13886_v2  ;;  %5938 = vmatpush1.bf16.msra.mxu1 %v13889_v35  ;;  %v13977_v2 = vld [vmem:[%s19337_s7 + $0xae4] ss:$16 sps:$4 sm:$0xff]   ;;  %v17129_v35 = vcombine.high %v17119_v32, %v17119_v32 }
 0x56a   : > { %5906 = vmatprep.subr.bf16.mxu0 %v13894_v13  ;;  %5939 = vmatprep.subr.bf16.mxu1 %v13897_v21  ;;  %v13972_v13 = vld [vmem:[%s19337_s7 + $0x860] ss:$16 sps:$4 sm:$0xff]  }
 0x56b   : > { %v13975_v21 = vld [vmem:[%s19337_s7 + $0xae0] ss:$16 sps:$4 sm:$0xff]  }
 0x56d   : > { %5907 = vmatpush1.bf16.msra.mxu0 %v13892_v44  ;;  %5940 = vmatpush1.bf16.msra.mxu1 %v13895_v40  ;;  %v13982_v44 = vld [vmem:[%s19337_s7 + $0x844] ss:$16 sps:$4 sm:$0xff]  }
 0x56e   : > { %5908 = vmatprep.subr.bf16.mxu0 %v13900_v60  ;;  %5941 = vmatprep.subr.bf16.mxu1 %v13903_v3  ;;  %v13985_v40 = vld [vmem:[%s19337_s7 + $0xac4] ss:$16 sps:$4 sm:$0xff]   ;;  %v6117_v3 = vrot.slane %v17129_v35, 1 }
 0x571   : > { %5909 = vmatpush2.bf16.msra.mxu0 %v13898_v33  ;;  %5942 = vmatpush1.bf16.msra.mxu1 %v13901_v54  ;;  %v13980_v54 = vld [vmem:[%s19337_s7 + $0x840] ss:$16 sps:$4 sm:$0xff]  }
 0x572   : > { %5910 = vmatprep.subr.bf16.mxu0 %v13906_v43  ;;  %5943 = vmatprep.subr.bf16.mxu1 %v13909_v19  ;;  %v13983_v43 = vld [vmem:[%s19337_s7 + $0xac0] ss:$16 sps:$4 sm:$0xff]  }
 0x575   : > { %5911 = vmatpush2.bf16.msra.mxu0 %v13904_v26  ;;  %5944 = vmatpush1.bf16.msra.mxu1 %v13907_v0  ;;  %v13991_v26 = vld [vmem:[%s19337_s7 + $0xaa4] ss:$16 sps:$4 sm:$0xff]  }
 0x576   : > { %5912 = vmatprep.subr.bf16.mxu0 %v13912_v46  ;;  %5945 = vmatprep.subr.bf16.mxu1 %v13915_v56  ;;  %v13986_v56 = vld [vmem:[%s19337_s7 + $0x820] ss:$16 sps:$4 sm:$0xff]  }
 0x579   : > { %5913 = vmatpush2.bf16.msra.mxu0 %v13910_v20  ;;  %5946 = vmatpush1.bf16.msra.mxu1 %v13913_v49  ;;  %v13989_v20 = vld [vmem:[%s19337_s7 + $0xaa0] ss:$16 sps:$4 sm:$0xff]  }
 0x57a   : > { %5914 = vmatprep.subr.bf16.mxu0 %v13918_v22  ;;  %5947 = vmatprep.subr.bf16.mxu1 %v13921_v10  ;;  %v13994_v22 = vld [vmem:[%s19337_s7 + $0x804] ss:$16 sps:$4 sm:$0xff]  }
 0x57b   : > { %v13997_v10 = vld [vmem:[%s19337_s7 + $0xa84] ss:$16 sps:$4 sm:$0xff]  }
 0x57d   : > { %5915 = vmatpush2.bf16.msra.mxu0 %v13916_v62  ;;  %5948 = vmatpush1.bf16.msra.mxu1 %v13919_v34  ;;  %v13992_v62 = vld [vmem:[%s19337_s7 + $0x800] ss:$16 sps:$4 sm:$0xff]  }
 0x57e   : > { %5916 = vmatprep.subr.bf16.mxu0 %v13924_v1  ;;  %5949 = vmatprep.subr.bf16.mxu1 %v13927_v42  ;;  %v13995_v34 = vld [vmem:[%s19337_s7 + $0xa80] ss:$16 sps:$4 sm:$0xff]   ;;  %v14000_v1 = vld [vmem:[%s19337_s7 + $0x9e4] ss:$16 sps:$4 sm:$0xff]  }
 0x57f   : > { %v14003_v42 = vld [vmem:[%s19337_s7 + $0xa64] ss:$16 sps:$4 sm:$0xff]  }
 0x581   : > { %5917 = vmatpush2.bf16.msra.mxu0 %v13922_v14  ;;  %5950 = vmatpush2.bf16.msra.mxu1 %v13925_v28  ;;  %v13998_v14 = vld [vmem:[%s19337_s7 + $0x9e0] ss:$16 sps:$4 sm:$0xff]  }
 0x582   : > { %5918 = vmatprep.subr.bf16.mxu0 %v13930_v8  ;;  %5951 = vmatprep.subr.bf16.mxu1 %v13933_v16  ;;  %v14001_v28 = vld [vmem:[%s19337_s7 + $0xa60] ss:$16 sps:$4 sm:$0xff]   ;;  %v14006_v8 = vld [vmem:[%s19337_s7 + $0x9c4] ss:$16 sps:$4 sm:$0xff]  }
 0x583   : > { %v14009_v16 = vld [vmem:[%s19337_s7 + $0xa44] ss:$16 sps:$4 sm:$0xff]  }
 0x585   : > { %5919 = vmatpush2.bf16.msra.mxu0 %v13928_v30  ;;  %5952 = vmatpush2.bf16.msra.mxu1 %v13931_v45  ;;  %v14004_v30 = vld [vmem:[%s19337_s7 + $0x9c0] ss:$16 sps:$4 sm:$0xff]  }
 0x586   : > { %5920 = vmatprep.subr.bf16.mxu0 %v13936_v4  ;;  %5953 = vmatprep.subr.bf16.mxu1 %v13939_v25  ;;  %v14007_v45 = vld [vmem:[%s19337_s7 + $0xa40] ss:$16 sps:$4 sm:$0xff]   ;;  %v14012_v4 = vld [vmem:[%s19337_s7 + $0x9a4] ss:$16 sps:$4 sm:$0xff]  }
 0x587   : > { %v14015_v25 = vld [vmem:[%s19337_s7 + $0xa24] ss:$16 sps:$4 sm:$0xff]  }
 0x589   : > { %5921 = vmatpush2.bf16.msra.mxu0 %v13934_v17  ;;  %5954 = vmatpush2.bf16.msra.mxu1 %v13937_v23  ;;  %v14010_v17 = vld [vmem:[%s19337_s7 + $0x9a0] ss:$16 sps:$4 sm:$0xff]  }
 0x58a   : > { %5922 = vmatprep.subr.bf16.mxu0 %v13942_v48  ;;  %5955 = vmatprep.subr.bf16.mxu1 %v13945_v18  ;;  %v14013_v23 = vld [vmem:[%s19337_s7 + $0xa20] ss:$16 sps:$4 sm:$0xff]   ;;  %v14018_v48 = vld [vmem:[%s19337_s7 + $0x984] ss:$16 sps:$4 sm:$0xff]  }
 0x58b   : > { %v14021_v18 = vld [vmem:[%s19337_s7 + $0xa04] ss:$16 sps:$4 sm:$0xff]  }
 0x58d   : > { %5923 = vmatpush2.bf16.msra.mxu0 %v13940_v39  ;;  %5956 = vmatpush2.bf16.msra.mxu1 %v13943_v38  ;;  %v14016_v39 = vld [vmem:[%s19337_s7 + $0x980] ss:$16 sps:$4 sm:$0xff]  }
 0x58e   : > { %5957 = vmatprep.subr.bf16.mxu1 %v13948_v29  ;;  %6762 = vmatprep.subr.bf16.mxu0 %v13951_v11  ;;  %v14019_v38 = vld [vmem:[%s19337_s7 + $0xa00] ss:$16 sps:$4 sm:$0xff]   ;;  %v14024_v29 = vld [vmem:[%s19337_s7 + $0x964] ss:$16 sps:$4 sm:$0xff]  }
 0x58f   : > { %v14027_v11 = vld [vmem:[%s19337_s7 + $0xbe4] ss:$16 sps:$4 sm:$0xff]  }
 0x590   : > { %5925 = vmatmul.mubr.bf16.vlgmr.msra.gmra.mxu0 %v16488_v9  ;;  %v5036_v36 = vpop.f32.mrf.mxu0  ;;  %v13962_v9 = vld [vmem:[%s19337_s7 + $0x32c] ss:$16 sps:$4 sm:$0xff]  }
 0x591   : > { %5958 = vmatpush2.bf16.msra.mxu1 %v13946_v5  ;;  %6763 = vmatpush1.bf16.msra.mxu0 %v13949_v37  ;;  %v14022_v5 = vld [vmem:[%s19337_s7 + $0x960] ss:$16 sps:$4 sm:$0xff]  }
 0x592   : > { %6794 = vmatprep.mubr.bf16.mxu0 %v6115_v6  ;;  %v5038_v24 = vpop.f32.mrf.mxu0  ;;  %5959 = vmatprep.subr.bf16.mxu1 %v13956_v12  ;;  %v14025_v37 = vld [vmem:[%s19337_s7 + $0xbe0] ss:$16 sps:$4 sm:$0xff]   ;;  %v14030_v12 = vld [vmem:[%s19337_s7 + $0x944] ss:$16 sps:$4 sm:$0xff]  }
 0x593   : > { %6764 = vmatprep.subr.bf16.mxu0 %v13959_v15  ;;  %v14033_v15 = vld [vmem:[%s19337_s7 + $0xbc4] ss:$16 sps:$4 sm:$0xff]  }
 0x594   : > { %v5040_v7 = vpop.f32.mrf.mxu0 }
 0x595   : > { %5960 = vmatpush2.bf16.msra.mxu1 %v13954_v52  ;;  %6765 = vmatpush1.bf16.msra.mxu0 %v13957_v27  ;;  %v14031_v52 = vld [vmem:[%s19337_s7 + $0xbc0] ss:$16 sps:$4 sm:$0xff]   ;;  %v14036_v27 = vld [vmem:[%s19337_s7 + $0x924] ss:$16 sps:$4 sm:$0xff]  }
 0x596   : > { %v5041_v59 = vpop.f32.mrf.mxu0  ;;  %5961 = vmatprep.subr.bf16.mxu1 %v13962_v9  ;;  %6766 = vmatprep.subr.bf16.mxu0 %v13965_v47  ;;  %v14034_v9 = vld [vmem:[%s19337_s7 + $0x920] ss:$16 sps:$4 sm:$0xff]   ;;  %v14042_v7 = vld [vmem:[%s19337_s7 + $0x904] ss:$16 sps:$4 sm:$0xff]  }
 0x597   : > { %v14037_v47 = vld [vmem:[%s19337_s7 + $0xba0] ss:$16 sps:$4 sm:$0xff]  }
 0x598   : > { %v14043_v59 = vld [vmem:[%s19337_s7 + $0xb80] ss:$16 sps:$4 sm:$0xff]  }
 0x599   : > { %5962 = vmatpush2.bf16.msra.mxu1 %v13960_v61  ;;  %6767 = vmatpush1.bf16.msra.mxu0 %v13963_v57  ;;  %v14045_v61 = vld [vmem:[%s19337_s7 + $0xb84] ss:$16 sps:$4 sm:$0xff]   ;;  %v14040_v57 = vld [vmem:[%s19337_s7 + $0x900] ss:$16 sps:$4 sm:$0xff]  }
 0x59a   : > { %5963 = vmatprep.subr.bf16.mxu1 %v13968_v41  ;;  %6768 = vmatprep.subr.bf16.mxu0 %v13971_v53  ;;  %v17279_v41 = vcombine.low %v17061_v51, %v17061_v51  ;;  %v14048_v53 = vld [vmem:[%s19337_s7 + $0xb64] ss:$16 sps:$4 sm:$0xff]   ;;  %v14049_v51 = vld [vmem:[%s19337_s7 + $0x8e8] ss:$16 sps:$4 sm:$0xff]  }
 0x59d   : > { %5964 = vmatpush2.bf16.msra.mxu1 %v13966_v58  ;;  %6769 = vmatpush1.bf16.msra.mxu0 %v13969_v31  ;;  %v14051_v58 = vld [vmem:[%s19337_s7 + $0x8ec] ss:$16 sps:$4 sm:$0xff]   ;;  %v14046_v31 = vld [vmem:[%s19337_s7 + $0xb60] ss:$16 sps:$4 sm:$0xff]  }
 0x59e   : > { %6770 = vmatprep.subr.bf16.mxu0 %v13974_v50  ;;  %6803 = vmatprep.subr.bf16.mxu1 %v13977_v2  ;;  %v6114_v50 = vrot.slane %v17279_v41, 1  ;;  %v14054_v2 = vld [vmem:[%s19337_s7 + $0xb44] ss:$16 sps:$4 sm:$0xff]  }
 0x5a0   : > { %5966 = vmatmul.mubr.bf16.vlgmr.msra.gmra.mxu1 %v16521_v63  ;;  %v5077_v60 = vpop.f32.mrf.mxu1  ;;  %v13988_v63 = vld [vmem:[%s19337_s7 + $0x824] ss:$16 sps:$4 sm:$0xff]  }
 0x5a1   : > { %v17145_v33 = vadd.f32 %v5077_v60, %v5036_v36  ;;  %6771 = vmatpush1.bf16.msra.mxu0 %v13972_v13  ;;  %6804 = vmatpush1.bf16.msra.mxu1 %v13975_v21  ;;  %v14028_v36 = vld [vmem:[%s19337_s7 + $0x940] ss:$16 sps:$4 sm:$0xff]   ;;  %v14057_v13 = vld [vmem:[%s19337_s7 + $0x8cc] ss:$16 sps:$4 sm:$0xff]  }
 0x5a2   : > { %6835 = vmatprep.mubr.bf16.mxu1 %v6117_v3  ;;  %v5079_v19 = vpop.f32.mrf.mxu1  ;;  %6772 = vmatprep.subr.bf16.mxu0 %v13982_v44  ;;  %v14052_v44 = vld [vmem:[%s19337_s7 + $0xb40] ss:$16 sps:$4 sm:$0xff]  }
 0x5a3   : > { %v17161_v0 = vadd.f32 %v5079_v19, %v5038_v24  ;;  %6805 = vmatprep.subr.bf16.mxu1 %v13985_v40  ;;  %v14039_v24 = vld [vmem:[%s19337_s7 + $0xba4] ss:$16 sps:$4 sm:$0xff]   ;;  %v14055_v40 = vld [vmem:[%s19337_s7 + $0x8c8] ss:$16 sps:$4 sm:$0xff]  }
 0x5a4   : > { %v5081_v46 = vpop.f32.mrf.mxu1 }
 0x5a5   : > { %6773 = vmatpush1.bf16.msra.mxu0 %v13980_v54  ;;  %6806 = vmatpush1.bf16.msra.mxu1 %v13983_v43  ;;  %v14060_v54 = vld [vmem:[%s19337_s7 + $0xb24] ss:$16 sps:$4 sm:$0xff]   ;;  %v14063_v43 = vld [vmem:[%s19337_s7 + $0x8ac] ss:$16 sps:$4 sm:$0xff]  }
 0x5a6   : > { %v5082_v49 = vpop.f32.mrf.mxu1  ;;  %6774 = vmatprep.subr.bf16.mxu0 %v13988_v63  ;;  %6807 = vmatprep.subr.bf16.mxu1 %v13991_v26  ;;  %v14058_v63 = vld [vmem:[%s19337_s7 + $0xb20] ss:$16 sps:$4 sm:$0xff]   ;;  %v14066_v46 = vld [vmem:[%s19337_s7 + $0xb04] ss:$16 sps:$4 sm:$0xff]  }
 0x5a7   : > { %v14067_v49 = vld [vmem:[%s19337_s7 + $0x888] ss:$16 sps:$4 sm:$0xff]  }
 0x5a9   : > { %6775 = vmatpush1.bf16.msra.mxu0 %v13986_v56  ;;  %6808 = vmatpush1.bf16.msra.mxu1 %v13989_v20  ;;  %v14069_v56 = vld [vmem:[%s19337_s7 + $0x88c] ss:$16 sps:$4 sm:$0xff]   ;;  %v14064_v20 = vld [vmem:[%s19337_s7 + $0xb00] ss:$16 sps:$4 sm:$0xff]  }
 0x5aa   : > { %6776 = vmatprep.subr.bf16.mxu0 %v13994_v22  ;;  %6809 = vmatprep.subr.bf16.mxu1 %v13997_v10  ;;  %v17336_v22 = vcombine.low %v17119_v32, %v17119_v32  ;;  %v14072_v10 = vld [vmem:[%s19337_s7 + $0x86c] ss:$16 sps:$4 sm:$0xff]   ;;  %v14073_v32 = vld [vmem:[%s19337_s7 + $0xae8] ss:$16 sps:$4 sm:$0xff]  }
 0x5ad   : > { %6777 = vmatpush1.bf16.msra.mxu0 %v13992_v62  ;;  %6810 = vmatpush1.bf16.msra.mxu1 %v13995_v34  ;;  %v14075_v62 = vld [vmem:[%s19337_s7 + $0xaec] ss:$16 sps:$4 sm:$0xff]   ;;  %v14070_v34 = vld [vmem:[%s19337_s7 + $0x868] ss:$16 sps:$4 sm:$0xff]  }
 0x5ae   : > { %6778 = vmatprep.subr.bf16.mxu0 %v14000_v1  ;;  %6811 = vmatprep.subr.bf16.mxu1 %v14003_v42  ;;  %v6116_v1 = vrot.slane %v17336_v22, 1  ;;  %v14078_v42 = vld [vmem:[%s19337_s7 + $0x84c] ss:$16 sps:$4 sm:$0xff]  }
 0x5b1   : > { %6779 = vmatpush2.bf16.msra.mxu0 %v13998_v14  ;;  %6812 = vmatpush1.bf16.msra.mxu1 %v14001_v28  ;;  %v14081_v14 = vld [vmem:[%s19337_s7 + $0xacc] ss:$16 sps:$4 sm:$0xff]  }
 0x5b2   : > { %6780 = vmatprep.subr.bf16.mxu0 %v14006_v8  ;;  %6813 = vmatprep.subr.bf16.mxu1 %v14009_v16  ;;  %v14076_v16 = vld [vmem:[%s19337_s7 + $0x848] ss:$16 sps:$4 sm:$0xff]  }
 0x5b5   : > { %6781 = vmatpush2.bf16.msra.mxu0 %v14004_v30  ;;  %6814 = vmatpush1.bf16.msra.mxu1 %v14007_v45  ;;  %v14079_v30 = vld [vmem:[%s19337_s7 + $0xac8] ss:$16 sps:$4 sm:$0xff]  }
 0x5b6   : > { %6782 = vmatprep.subr.bf16.mxu0 %v14012_v4  ;;  %6815 = vmatprep.subr.bf16.mxu1 %v14015_v25  ;;  %v14084_v4 = vld [vmem:[%s19337_s7 + $0x82c] ss:$16 sps:$4 sm:$0xff]  }
 0x5b7   : > { %v14087_v25 = vld [vmem:[%s19337_s7 + $0xaac] ss:$16 sps:$4 sm:$0xff]  }
 0x5b9   : > { %6783 = vmatpush2.bf16.msra.mxu0 %v14010_v17  ;;  %6816 = vmatpush1.bf16.msra.mxu1 %v14013_v23 }
 0x5ba   : > { %6784 = vmatprep.subr.bf16.mxu0 %v14018_v48  ;;  %6817 = vmatprep.subr.bf16.mxu1 %v14021_v18  ;;  %v14085_v48 = vld [vmem:[%s19337_s7 + $0xaa8] ss:$16 sps:$4 sm:$0xff]  }
 0x5bd   : > { %6785 = vmatpush2.bf16.msra.mxu0 %v14016_v39  ;;  %6818 = vmatpush1.bf16.msra.mxu1 %v14019_v38  ;;  %v14090_v39 = vld [vmem:[%s19337_s7 + $0x80c] ss:$16 sps:$4 sm:$0xff]  }
 0x5be   : > { %6786 = vmatprep.subr.bf16.mxu0 %v14024_v29  ;;  %6819 = vmatprep.subr.bf16.mxu1 %v14027_v11  ;;  %v14093_v38 = vld [vmem:[%s19337_s7 + $0xa8c] ss:$16 sps:$4 sm:$0xff]   ;;  %v14088_v29 = vld [vmem:[%s19337_s7 + $0x808] ss:$16 sps:$4 sm:$0xff]  }
 0x5bf   : > { %v14091_v11 = vld [vmem:[%s19337_s7 + $0xa88] ss:$16 sps:$4 sm:$0xff]  }
 0x5c1   : > { %6787 = vmatpush2.bf16.msra.mxu0 %v14022_v5  ;;  %6820 = vmatpush2.bf16.msra.mxu1 %v14025_v37  ;;  %v14096_v5 = vld [vmem:[%s19337_s7 + $0x9ec] ss:$16 sps:$4 sm:$0xff]  }
 0x5c2   : > { %6788 = vmatprep.subr.bf16.mxu0 %v14030_v12  ;;  %6821 = vmatprep.subr.bf16.mxu1 %v14033_v15  ;;  %v14099_v37 = vld [vmem:[%s19337_s7 + $0xa6c] ss:$16 sps:$4 sm:$0xff]   ;;  %v14094_v12 = vld [vmem:[%s19337_s7 + $0x9e8] ss:$16 sps:$4 sm:$0xff]  }
 0x5c3   : > { %v14097_v15 = vld [vmem:[%s19337_s7 + $0xa68] ss:$16 sps:$4 sm:$0xff]  }
 0x5c5   : > { %6789 = vmatpush2.bf16.msra.mxu0 %v14028_v36  ;;  %6822 = vmatpush2.bf16.msra.mxu1 %v14031_v52  ;;  %v14102_v36 = vld [vmem:[%s19337_s7 + $0x9cc] ss:$16 sps:$4 sm:$0xff]  }
 0x5c6   : > { %6790 = vmatprep.subr.bf16.mxu0 %v14036_v27  ;;  %6823 = vmatprep.subr.bf16.mxu1 %v14039_v24  ;;  %v14105_v52 = vld [vmem:[%s19337_s7 + $0xa4c] ss:$16 sps:$4 sm:$0xff]   ;;  %v14100_v27 = vld [vmem:[%s19337_s7 + $0x9c8] ss:$16 sps:$4 sm:$0xff]  }
 0x5c7   : > { %v14103_v24 = vld [vmem:[%s19337_s7 + $0xa48] ss:$16 sps:$4 sm:$0xff]  }
 0x5c9   : > { %6791 = vmatpush2.bf16.msra.mxu0 %v14034_v9  ;;  %6824 = vmatpush2.bf16.msra.mxu1 %v14037_v47  ;;  %v14108_v9 = vld [vmem:[%s19337_s7 + $0x9ac] ss:$16 sps:$4 sm:$0xff]  }
 0x5ca   : > { %6792 = vmatprep.subr.bf16.mxu0 %v14042_v7  ;;  %6825 = vmatprep.subr.bf16.mxu1 %v14045_v61  ;;  %v14111_v47 = vld [vmem:[%s19337_s7 + $0xa2c] ss:$16 sps:$4 sm:$0xff]   ;;  %v14106_v7 = vld [vmem:[%s19337_s7 + $0x9a8] ss:$16 sps:$4 sm:$0xff]  }
 0x5cb   : > { %v14109_v61 = vld [vmem:[%s19337_s7 + $0xa28] ss:$16 sps:$4 sm:$0xff]  }
 0x5cd   : > { %6793 = vmatpush2.bf16.msra.mxu0 %v14040_v57  ;;  %6826 = vmatpush2.bf16.msra.mxu1 %v14043_v59  ;;  %v14114_v57 = vld [vmem:[%s19337_s7 + $0x98c] ss:$16 sps:$4 sm:$0xff]  }
 0x5ce   : > { %6827 = vmatprep.subr.bf16.mxu1 %v14048_v53  ;;  %6844 = vmatprep.subr.bf16.mxu0 %v14051_v58  ;;  %v14117_v59 = vld [vmem:[%s19337_s7 + $0xa0c] ss:$16 sps:$4 sm:$0xff]   ;;  %v14112_v53 = vld [vmem:[%s19337_s7 + $0x988] ss:$16 sps:$4 sm:$0xff]  }
 0x5cf   : > { %v14115_v58 = vld [vmem:[%s19337_s7 + $0xa08] ss:$16 sps:$4 sm:$0xff]  }
 0x5d0   : > { %v5118_v21 = vpop.f32.mrf.mxu0  ;;  %6795 = vmatmul.mubr.bf16.vlgmr.msra.gmra.mxu0 %v6114_v50 }
 0x5d1   : > { %6828 = vmatpush2.bf16.msra.mxu1 %v14046_v31  ;;  %6845 = vmatpush1.bf16.msra.mxu0 %v14049_v51  ;;  %v14120_v31 = vld [vmem:[%s19337_s7 + $0x96c] ss:$16 sps:$4 sm:$0xff]  }
 0x5d2   : > { %6876 = vmatprep.mubr.bf16.mxu0 %v6115_v6  ;;  %v5120_v60 = vpop.f32.mrf.mxu0  ;;  %6829 = vmatprep.subr.bf16.mxu1 %v14054_v2  ;;  %v14061_v6 = vld [vmem:[%s19337_s7 + $0x8a8] ss:$16 sps:$4 sm:$0xff]   ;;  %v14123_v51 = vld [vmem:[%s19337_s7 + $0xbec] ss:$16 sps:$4 sm:$0xff]  }
 0x5d3   : > { %6846 = vmatprep.subr.bf16.mxu0 %v14057_v13  ;;  %v14118_v2 = vld [vmem:[%s19337_s7 + $0x968] ss:$16 sps:$4 sm:$0xff]  }
 0x5d4   : > { %v5122_v19 = vpop.f32.mrf.mxu0  ;;  %v14121_v13 = vld [vmem:[%s19337_s7 + $0xbe8] ss:$16 sps:$4 sm:$0xff]  }
 0x5d5   : > { %6830 = vmatpush2.bf16.msra.mxu1 %v14052_v44  ;;  %6847 = vmatpush1.bf16.msra.mxu0 %v14055_v40  ;;  %v14129_v44 = vld [vmem:[%s19337_s7 + $0xbcc] ss:$16 sps:$4 sm:$0xff]   ;;  %v14124_v40 = vld [vmem:[%s19337_s7 + $0x948] ss:$16 sps:$4 sm:$0xff]  }
 0x5d6   : > { %v5123_v26 = vpop.f32.mrf.mxu0  ;;  %6831 = vmatprep.subr.bf16.mxu1 %v14060_v54  ;;  %6848 = vmatprep.subr.bf16.mxu0 %v14063_v43  ;;  %v14132_v54 = vld [vmem:[%s19337_s7 + $0x92c] ss:$16 sps:$4 sm:$0xff]   ;;  %v14130_v19 = vld [vmem:[%s19337_s7 + $0x928] ss:$16 sps:$4 sm:$0xff]  }
 0x5d7   : > { %v14135_v43 = vld [vmem:[%s19337_s7 + $0xbac] ss:$16 sps:$4 sm:$0xff]  }
 0x5d8   : > { %v14141_v26 = vld [vmem:[%s19337_s7 + $0xb8c] ss:$16 sps:$4 sm:$0xff]  }
 0x5d9   : > { %6832 = vmatpush2.bf16.msra.mxu1 %v14058_v63  ;;  %6849 = vmatpush1.bf16.msra.mxu0 %v14061_v6  ;;  %v14133_v63 = vld [vmem:[%s19337_s7 + $0xba8] ss:$16 sps:$4 sm:$0xff]   ;;  %v14138_v6 = vld [vmem:[%s19337_s7 + $0x90c] ss:$16 sps:$4 sm:$0xff]  }
 0x5da   : > { %6833 = vmatprep.subr.bf16.mxu1 %v14066_v46  ;;  %6850 = vmatprep.subr.bf16.mxu0 %v14069_v56  ;;  %v14136_v46 = vld [vmem:[%s19337_s7 + $0x908] ss:$16 sps:$4 sm:$0xff]  }
 0x5db   : > { %v14139_v56 = vld [vmem:[%s19337_s7 + $0xb88] ss:$16 sps:$4 sm:$0xff]  }
 0x5dd   : > { %6834 = vmatpush2.bf16.msra.mxu1 %v14064_v20  ;;  %6851 = vmatpush1.bf16.msra.mxu0 %v14067_v49  ;;  %v14144_v20 = vld [vmem:[%s19337_s7 + $0xb6c] ss:$16 sps:$4 sm:$0xff]   ;;  %v14147_v49 = vld [vmem:[%s19337_s7 + $0xce4] ss:$16 sps:$4 sm:$0xff]  }
 0x5de   : > { %6852 = vmatprep.subr.bf16.mxu0 %v14072_v10  ;;  %6885 = vmatprep.subr.bf16.mxu1 %v14075_v62  ;;  %v7063_v10 = vshrl.u32 %v17071_v55, 16  ;;  %v14142_v62 = vld [vmem:[%s19337_s7 + $0xb68] ss:$16 sps:$4 sm:$0xff]   ;;  %v14153_v55 = vld [vmem:[%s19337_s7 + $0xcc4] ss:$16 sps:$4 sm:$0xff]  }
 0x5e0   : > { %v5159_v28 = vpop.f32.mrf.mxu1  ;;  %6836 = vmatmul.mubr.bf16.vlgmr.msra.gmra.mxu1 %v6116_v1 }
 0x5e1   : > { %v17359_v8 = vadd.f32 %v5159_v28, %v5118_v21  ;;  %6853 = vmatpush1.bf16.msra.mxu0 %v14070_v34  ;;  %6886 = vmatpush1.bf16.msra.mxu1 %v14073_v32  ;;  %v14126_v21 = vld [vmem:[%s19337_s7 + $0x94c] ss:$16 sps:$4 sm:$0xff]   ;;  %v14145_v34 = vld [vmem:[%s19337_s7 + $0xce0] ss:$16 sps:$4 sm:$0xff]  }
 0x5e2   : > { %6917 = vmatprep.mubr.bf16.mxu1 %v6117_v3  ;;  %v5161_v45 = vpop.f32.mrf.mxu1  ;;  %6854 = vmatprep.subr.bf16.mxu0 %v14078_v42  ;;  %v14082_v3 = vld [vmem:[%s19337_s7 + $0x828] ss:$16 sps:$4 sm:$0xff]   ;;  %v14150_v32 = vld [vmem:[%s19337_s7 + $0xb4c] ss:$16 sps:$4 sm:$0xff]  }
 0x5e3   : > { %v17375_v17 = vadd.f32 %v5161_v45, %v5120_v60  ;;  %6887 = vmatprep.subr.bf16.mxu1 %v14081_v14  ;;  %v14127_v60 = vld [vmem:[%s19337_s7 + $0xbc8] ss:$16 sps:$4 sm:$0xff]   ;;  %v17512_v14 = vrot.slane %v7063_v10, 1  ;;  %v14208_v10 = vld [vmem:[%s19337_s7 + $0xd80] ss:$16 sps:$4 sm:$0xff]  }
 0x5e4   : > { %v5163_v23 = vpop.f32.mrf.mxu1 }
 0x5e5   : > { %6855 = vmatpush1.bf16.msra.mxu0 %v14076_v16  ;;  %6888 = vmatpush1.bf16.msra.mxu1 %v14079_v30  ;;  %v14148_v16 = vld [vmem:[%s19337_s7 + $0xb48] ss:$16 sps:$4 sm:$0xff]   ;;  %v14151_v30 = vld [vmem:[%s19337_s7 + $0xcc0] ss:$16 sps:$4 sm:$0xff]  }
 0x5e6   : > { %v5164_v18 = vpop.f32.mrf.mxu1  ;;  %6856 = vmatprep.subr.bf16.mxu0 %v14084_v4  ;;  %6889 = vmatprep.subr.bf16.mxu1 %v14087_v25  ;;  %v14154_v23 = vld [vmem:[%s19337_s7 + $0xb28] ss:$16 sps:$4 sm:$0xff]  }
 0x5e7   : > { %v14162_v18 = vld [vmem:[%s19337_s7 + $0xb0c] ss:$16 sps:$4 sm:$0xff]  }
 0x5e9   : > { %6857 = vmatpush1.bf16.msra.mxu0 %v14082_v3  ;;  %6890 = vmatpush1.bf16.msra.mxu1 %v14085_v48  ;;  %v14157_v3 = vld [vmem:[%s19337_s7 + $0xca0] ss:$16 sps:$4 sm:$0xff]  }
 0x5ea   : > { %6858 = vmatprep.subr.bf16.mxu0 %v14090_v39  ;;  %6891 = vmatprep.subr.bf16.mxu1 %v14093_v38  ;;  %v14160_v39 = vld [vmem:[%s19337_s7 + $0xb08] ss:$16 sps:$4 sm:$0xff]   ;;  %v14163_v38 = vld [vmem:[%s19337_s7 + $0xc80] ss:$16 sps:$4 sm:$0xff]  }
 0x5ed   : > { %6859 = vmatpush1.bf16.msra.mxu0 %v14088_v29  ;;  %6892 = vmatpush1.bf16.msra.mxu1 %v14091_v11  ;;  %v14168_v29 = vld [vmem:[%s19337_s7 + $0xc64] ss:$16 sps:$4 sm:$0xff]  }
 0x5ee   : > { %6860 = vmatprep.subr.bf16.mxu0 %v14096_v5  ;;  %6893 = vmatprep.subr.bf16.mxu1 %v14099_v37  ;;  %v14171_v11 = vld [vmem:[%s19337_s7 + $0xee4] ss:$16 sps:$4 sm:$0xff]   ;;  %v7071_v5 = vshrl.u32 %v17129_v35, 16  ;;  %v14166_v37 = vld [vmem:[%s19337_s7 + $0xc60] ss:$16 sps:$4 sm:$0xff]  }
 0x5ef   : > { %v14177_v35 = vld [vmem:[%s19337_s7 + $0xec4] ss:$16 sps:$4 sm:$0xff]  }
 0x5f1   : > { %6861 = vmatpush2.bf16.msra.mxu0 %v14094_v12  ;;  %6894 = vmatpush1.bf16.msra.mxu1 %v14097_v15  ;;  %v14169_v12 = vld [vmem:[%s19337_s7 + $0xee0] ss:$16 sps:$4 sm:$0xff]   ;;  %v14174_v15 = vld [vmem:[%s19337_s7 + $0xc44] ss:$16 sps:$4 sm:$0xff]  }
 0x5f2   : > { %6862 = vmatprep.subr.bf16.mxu0 %v14102_v36  ;;  %6895 = vmatprep.subr.bf16.mxu1 %v14105_v52  ;;  %v17568_v52 = vrot.slane %v7071_v5, 1  ;;  %v14246_v5 = vld [vmem:[%s19337_s7 + $0xf44] ss:$16 sps:$4 sm:$0xff]  }
 0x5f5   : > { %6863 = vmatpush2.bf16.msra.mxu0 %v14100_v27  ;;  %6896 = vmatpush1.bf16.msra.mxu1 %v14103_v24  ;;  %v14172_v24 = vld [vmem:[%s19337_s7 + $0xc40] ss:$16 sps:$4 sm:$0xff]  }
 0x5f6   : > { %6864 = vmatprep.subr.bf16.mxu0 %v14108_v9  ;;  %6897 = vmatprep.subr.bf16.mxu1 %v14111_v47  ;;  %v14175_v9 = vld [vmem:[%s19337_s7 + $0xec0] ss:$16 sps:$4 sm:$0xff]  }
 0x5f9   : > { %6865 = vmatpush2.bf16.msra.mxu0 %v14106_v7  ;;  %6898 = vmatpush1.bf16.msra.mxu1 %v14109_v61  ;;  %v14183_v7 = vld [vmem:[%s19337_s7 + $0xea4] ss:$16 sps:$4 sm:$0xff]  }
 0x5fa   : > { %6866 = vmatprep.subr.bf16.mxu0 %v14114_v57  ;;  %6899 = vmatprep.subr.bf16.mxu1 %v14117_v59  ;;  %v14178_v59 = vld [vmem:[%s19337_s7 + $0xc20] ss:$16 sps:$4 sm:$0xff]  }
 0x5fd   : > { %6867 = vmatpush2.bf16.msra.mxu0 %v14112_v53  ;;  %6900 = vmatpush1.bf16.msra.mxu1 %v14115_v58  ;;  %v14181_v53 = vld [vmem:[%s19337_s7 + $0xea0] ss:$16 sps:$4 sm:$0xff]  }
 0x5fe   : > { %6868 = vmatprep.subr.bf16.mxu0 %v14120_v31  ;;  %6901 = vmatprep.subr.bf16.mxu1 %v14123_v51  ;;  %v14186_v31 = vld [vmem:[%s19337_s7 + $0xc04] ss:$16 sps:$4 sm:$0xff]  }
 0x5ff   : > { %v14189_v51 = vld [vmem:[%s19337_s7 + $0xe84] ss:$16 sps:$4 sm:$0xff]  }
 0x601   : > { %6869 = vmatpush2.bf16.msra.mxu0 %v14118_v2  ;;  %6902 = vmatpush2.bf16.msra.mxu1 %v14121_v13  ;;  %v14184_v2 = vld [vmem:[%s19337_s7 + $0xc00] ss:$16 sps:$4 sm:$0xff]  }
 0x602   : > { %6870 = vmatprep.subr.bf16.mxu0 %v14126_v21  ;;  %6903 = vmatprep.subr.bf16.mxu1 %v14129_v44  ;;  %v14187_v13 = vld [vmem:[%s19337_s7 + $0xe80] ss:$16 sps:$4 sm:$0xff]   ;;  %v14192_v21 = vld [vmem:[%s19337_s7 + $0xde4] ss:$16 sps:$4 sm:$0xff]  }
 0x603   : > { %v14195_v44 = vld [vmem:[%s19337_s7 + $0xe64] ss:$16 sps:$4 sm:$0xff]  }
 0x605   : > { %6871 = vmatpush2.bf16.msra.mxu0 %v14124_v40  ;;  %6904 = vmatpush2.bf16.msra.mxu1 %v14127_v60  ;;  %v14190_v40 = vld [vmem:[%s19337_s7 + $0xde0] ss:$16 sps:$4 sm:$0xff]  }
 0x606   : > { %6872 = vmatprep.subr.bf16.mxu0 %v14132_v54  ;;  %6905 = vmatprep.subr.bf16.mxu1 %v14135_v43  ;;  %v14193_v60 = vld [vmem:[%s19337_s7 + $0xe60] ss:$16 sps:$4 sm:$0xff]   ;;  %v14198_v54 = vld [vmem:[%s19337_s7 + $0xdc4] ss:$16 sps:$4 sm:$0xff]  }
 0x607   : > { %v14201_v43 = vld [vmem:[%s19337_s7 + $0xe44] ss:$16 sps:$4 sm:$0xff]  }
 0x609   : > { %6873 = vmatpush2.bf16.msra.mxu0 %v14130_v19  ;;  %6906 = vmatpush2.bf16.msra.mxu1 %v14133_v63  ;;  %v14196_v19 = vld [vmem:[%s19337_s7 + $0xdc0] ss:$16 sps:$4 sm:$0xff]  }
 0x60a   : > { %6874 = vmatprep.subr.bf16.mxu0 %v14138_v6  ;;  %6907 = vmatprep.subr.bf16.mxu1 %v14141_v26  ;;  %v14199_v63 = vld [vmem:[%s19337_s7 + $0xe40] ss:$16 sps:$4 sm:$0xff]   ;;  %v14204_v6 = vld [vmem:[%s19337_s7 + $0xda4] ss:$16 sps:$4 sm:$0xff]  }
 0x60b   : > { %v14207_v26 = vld [vmem:[%s19337_s7 + $0xe24] ss:$16 sps:$4 sm:$0xff]  }
 0x60d   : > { %6875 = vmatpush2.bf16.msra.mxu0 %v14136_v46  ;;  %6908 = vmatpush2.bf16.msra.mxu1 %v14139_v56  ;;  %v14202_v46 = vld [vmem:[%s19337_s7 + $0xda0] ss:$16 sps:$4 sm:$0xff]  }
 0x60e   : > { %6909 = vmatprep.subr.bf16.mxu1 %v14144_v20  ;;  %7718 = vmatprep.subr.bf16.mxu0 %v14147_v49  ;;  %v14205_v56 = vld [vmem:[%s19337_s7 + $0xe20] ss:$16 sps:$4 sm:$0xff]   ;;  %v14210_v20 = vld [vmem:[%s19337_s7 + $0xd84] ss:$16 sps:$4 sm:$0xff]  }
 0x60f   : > { %v14213_v49 = vld [vmem:[%s19337_s7 + $0xe04] ss:$16 sps:$4 sm:$0xff]  }
 0x610   : > { %v5844_v42 = vpop.f32.mrf.mxu0  ;;  %6877 = vmatmul.mubr.bf16.vlgmr.msra.gmra.mxu0 %v6114_v50  ;;  %v14156_v50 = vld [vmem:[%s19337_s7 + $0xb2c] ss:$16 sps:$4 sm:$0xff]  }
 0x611   : > { %v5845_v28 = vadd.f32 %v5844_v42, %v17145_v33  ;;  %6910 = vmatpush2.bf16.msra.mxu1 %v14142_v62  ;;  %7719 = vmatpush1.bf16.msra.mxu0 %v14145_v34  ;;  %v14159_v33 = vld [vmem:[%s19337_s7 + $0xca4] ss:$16 sps:$4 sm:$0xff]   ;;  %v14211_v62 = vld [vmem:[%s19337_s7 + $0xe00] ss:$16 sps:$4 sm:$0xff]  }
 0x612   : > { %7750 = vmatprep.mubr.bf16.mxu0 %v17512_v14  ;;  %v5846_v45 = vpop.f32.mrf.mxu0  ;;  %6911 = vmatprep.subr.bf16.mxu1 %v14150_v32  ;;  %v14216_v34 = vld [vmem:[%s19337_s7 + $0xd64] ss:$16 sps:$4 sm:$0xff]   ;;  %v14217_v42 = vld [vmem:[%s19337_s7 + $0xfe0] ss:$16 sps:$4 sm:$0xff]  }
 0x613   : > { %v5847_v4 = vadd.f32 %v5846_v45, %v17161_v0  ;;  %7720 = vmatprep.subr.bf16.mxu0 %v14153_v55  ;;  %v14165_v0 = vld [vmem:[%s19337_s7 + $0xc84] ss:$16 sps:$4 sm:$0xff]   ;;  %v14214_v55 = vld [vmem:[%s19337_s7 + $0xd60] ss:$16 sps:$4 sm:$0xff]  }
 0x614   : > { %v5848_v25 = vpop.f32.mrf.mxu0  ;;  %v14219_v32 = vld [vmem:[%s19337_s7 + $0xfe4] ss:$16 sps:$4 sm:$0xff]   ;;  %v14223_v45 = vld [vmem:[%s19337_s7 + $0xfc0] ss:$16 sps:$4 sm:$0xff]  }
 0x615   : > { %6912 = vmatpush2.bf16.msra.mxu1 %v14148_v16  ;;  %7721 = vmatpush1.bf16.msra.mxu0 %v14151_v30  ;;  %v14225_v16 = vld [vmem:[%s19337_s7 + $0xfc4] ss:$16 sps:$4 sm:$0xff]   ;;  %v14220_v30 = vld [vmem:[%s19337_s7 + $0xd40] ss:$16 sps:$4 sm:$0xff]  }
 0x616   : > { %v5849_v48 = vpop.f32.mrf.mxu0  ;;  %6913 = vmatprep.subr.bf16.mxu1 %v14156_v50  ;;  %7722 = vmatprep.subr.bf16.mxu0 %v14159_v33  ;;  %v14228_v50 = vld [vmem:[%s19337_s7 + $0xd24] ss:$16 sps:$4 sm:$0xff]   ;;  %v14229_v25 = vld [vmem:[%s19337_s7 + $0xfa0] ss:$16 sps:$4 sm:$0xff]  }
 0x617   : > { %v14231_v33 = vld [vmem:[%s19337_s7 + $0xfa4] ss:$16 sps:$4 sm:$0xff]   ;;  %v14232_v48 = vld [vmem:[%s19337_s7 + $0xd00] ss:$16 sps:$4 sm:$0xff]  }
 0x619   : > { %6914 = vmatpush2.bf16.msra.mxu1 %v14154_v23  ;;  %7723 = vmatpush1.bf16.msra.mxu0 %v14157_v3  ;;  %v14234_v23 = vld [vmem:[%s19337_s7 + $0xd04] ss:$16 sps:$4 sm:$0xff]  }
 0x61a   : > { %6915 = vmatprep.subr.bf16.mxu1 %v14162_v18  ;;  %7724 = vmatprep.subr.bf16.mxu0 %v14165_v0  ;;  %v14237_v3 = vld [vmem:[%s19337_s7 + $0xf84] ss:$16 sps:$4 sm:$0xff]   ;;  %v14235_v18 = vld [vmem:[%s19337_s7 + $0xf80] ss:$16 sps:$4 sm:$0xff]   ;;  %v7059_v0 = vshrl.u32 %v17279_v41, 16 }
 0x61b   : > { %v14241_v41 = vld [vmem:[%s19337_s7 + $0xce8] ss:$16 sps:$4 sm:$0xff]  }
 0x61d   : > { %6916 = vmatpush2.bf16.msra.mxu1 %v14160_v39  ;;  %7725 = vmatpush1.bf16.msra.mxu0 %v14163_v38  ;;  %v14240_v39 = vld [vmem:[%s19337_s7 + $0xf64] ss:$16 sps:$4 sm:$0xff]   ;;  %v14243_v38 = vld [vmem:[%s19337_s7 + $0xcec] ss:$16 sps:$4 sm:$0xff]  }
 0x61e   : > { %7726 = vmatprep.subr.bf16.mxu0 %v14168_v29  ;;  %7759 = vmatprep.subr.bf16.mxu1 %v14171_v11  ;;  %v14238_v29 = vld [vmem:[%s19337_s7 + $0xf60] ss:$16 sps:$4 sm:$0xff]   ;;  %v17714_v11 = vrot.slane %v7059_v0, 1  ;;  %v14304_v0 = vld [vmem:[%s19337_s7 + $0xd88] ss:$16 sps:$4 sm:$0xff]  }
 0x620   : > { %v5885_v36 = vpop.f32.mrf.mxu1  ;;  %6918 = vmatmul.mubr.bf16.vlgmr.msra.gmra.mxu1 %v6116_v1  ;;  %v14180_v1 = vld [vmem:[%s19337_s7 + $0xc24] ss:$16 sps:$4 sm:$0xff]  }
 0x621   : > { %v17570_v27 = vadd.f32 %v5885_v36, %v5845_v28  ;;  %7727 = vmatpush1.bf16.msra.mxu0 %v14166_v37  ;;  %7760 = vmatpush1.bf16.msra.mxu1 %v14169_v12  ;;  %v14222_v28 = vld [vmem:[%s19337_s7 + $0xd44] ss:$16 sps:$4 sm:$0xff]   ;;  %v14249_v37 = vld [vmem:[%s19337_s7 + $0xccc] ss:$16 sps:$4 sm:$0xff]   ;;  %v14247_v36 = vld [vmem:[%s19337_s7 + $0xcc8] ss:$16 sps:$4 sm:$0xff]  }
 0x622   : > { %7791 = vmatprep.mubr.bf16.mxu1 %v17568_v52  ;;  %v5887_v47 = vpop.f32.mrf.mxu1  ;;  %7728 = vmatprep.subr.bf16.mxu0 %v14174_v15 }
 0x623   : > { %v17585_v61 = vadd.f32 %v5887_v47, %v5847_v4  ;;  %7761 = vmatprep.subr.bf16.mxu1 %v14177_v35  ;;  %v14226_v4 = vld [vmem:[%s19337_s7 + $0xd20] ss:$16 sps:$4 sm:$0xff]  }
 0x624   : > { %v5889_v57 = vpop.f32.mrf.mxu1  ;;  %v14244_v35 = vld [vmem:[%s19337_s7 + $0xf40] ss:$16 sps:$4 sm:$0xff]  }
 0x625   : > { %7729 = vmatpush1.bf16.msra.mxu0 %v14172_v24  ;;  %7762 = vmatpush1.bf16.msra.mxu1 %v14175_v9  ;;  %v14252_v9 = vld [vmem:[%s19337_s7 + $0xf24] ss:$16 sps:$4 sm:$0xff]  }
 0x626   : > { %v5890_v58 = vpop.f32.mrf.mxu1  ;;  %7730 = vmatprep.subr.bf16.mxu0 %v14180_v1  ;;  %7763 = vmatprep.subr.bf16.mxu1 %v14183_v7  ;;  %v14253_v7 = vld [vmem:[%s19337_s7 + $0xca8] ss:$16 sps:$4 sm:$0xff]  }
 0x627   : > { %v14259_v58 = vld [vmem:[%s19337_s7 + $0xc88] ss:$16 sps:$4 sm:$0xff]  }
 0x629   : > { %7731 = vmatpush1.bf16.msra.mxu0 %v14178_v59  ;;  %7764 = vmatpush1.bf16.msra.mxu1 %v14181_v53  ;;  %v14258_v59 = vld [vmem:[%s19337_s7 + $0xf04] ss:$16 sps:$4 sm:$0xff]   ;;  %v14256_v53 = vld [vmem:[%s19337_s7 + $0xf00] ss:$16 sps:$4 sm:$0xff]  }
 0x62a   : > { %7732 = vmatprep.subr.bf16.mxu0 %v14186_v31  ;;  %7765 = vmatprep.subr.bf16.mxu1 %v14189_v51  ;;  %v7067_v31 = vshrl.u32 %v17336_v22, 16  ;;  %v14264_v51 = vld [vmem:[%s19337_s7 + $0xc6c] ss:$16 sps:$4 sm:$0xff]   ;;  %v14265_v22 = vld [vmem:[%s19337_s7 + $0xee8] ss:$16 sps:$4 sm:$0xff]  }
 0x62d   : > { %7733 = vmatpush1.bf16.msra.mxu0 %v14184_v2  ;;  %7766 = vmatpush1.bf16.msra.mxu1 %v14187_v13  ;;  %v14267_v2 = vld [vmem:[%s19337_s7 + $0xeec] ss:$16 sps:$4 sm:$0xff]   ;;  %v14262_v13 = vld [vmem:[%s19337_s7 + $0xc68] ss:$16 sps:$4 sm:$0xff]  }
 0x62e   : > { %7734 = vmatprep.subr.bf16.mxu0 %v14192_v21  ;;  %7767 = vmatprep.subr.bf16.mxu1 %v14195_v44  ;;  %v17769_v21 = vrot.slane %v7067_v31, 1  ;;  %v14270_v44 = vld [vmem:[%s19337_s7 + $0xc4c] ss:$16 sps:$4 sm:$0xff]   ;;  %v14337_v31 = vld [vmem:[%s19337_s7 + $0x10e0] ss:$16 sps:$4 sm:$0xff]  }
 0x631   : > { %7735 = vmatpush2.bf16.msra.mxu0 %v14190_v40  ;;  %7768 = vmatpush1.bf16.msra.mxu1 %v14193_v60  ;;  %v14273_v40 = vld [vmem:[%s19337_s7 + $0xecc] ss:$16 sps:$4 sm:$0xff]  }
 0x632   : > { %7736 = vmatprep.subr.bf16.mxu0 %v14198_v54  ;;  %7769 = vmatprep.subr.bf16.mxu1 %v14201_v43  ;;  %v14268_v43 = vld [vmem:[%s19337_s7 + $0xc48] ss:$16 sps:$4 sm:$0xff]  }
 0x635   : > { %7737 = vmatpush2.bf16.msra.mxu0 %v14196_v19  ;;  %7770 = vmatpush1.bf16.msra.mxu1 %v14199_v63  ;;  %v14271_v19 = vld [vmem:[%s19337_s7 + $0xec8] ss:$16 sps:$4 sm:$0xff]  }
 0x636   : > { %7738 = vmatprep.subr.bf16.mxu0 %v14204_v6  ;;  %7771 = vmatprep.subr.bf16.mxu1 %v14207_v26  ;;  %v14276_v6 = vld [vmem:[%s19337_s7 + $0xc2c] ss:$16 sps:$4 sm:$0xff]  }
 0x637   : > { %v14279_v26 = vld [vmem:[%s19337_s7 + $0xeac] ss:$16 sps:$4 sm:$0xff]  }
 0x639   : > { %7739 = vmatpush2.bf16.msra.mxu0 %v14202_v46  ;;  %7772 = vmatpush1.bf16.msra.mxu1 %v14205_v56 }
 0x63a   : > { %7740 = vmatprep.subr.bf16.mxu0 %v14210_v20  ;;  %7773 = vmatprep.subr.bf16.mxu1 %v14213_v49  ;;  %v14277_v20 = vld [vmem:[%s19337_s7 + $0xea8] ss:$16 sps:$4 sm:$0xff]  }
 0x63d   : > { %7741 = vmatpush2.bf16.msra.mxu0 %v14208_v10  ;;  %7774 = vmatpush1.bf16.msra.mxu1 %v14211_v62  ;;  %v14282_v10 = vld [vmem:[%s19337_s7 + $0xc0c] ss:$16 sps:$4 sm:$0xff]  }
 0x63e   : > { %7742 = vmatprep.subr.bf16.mxu0 %v14216_v34  ;;  %7775 = vmatprep.subr.bf16.mxu1 %v14219_v32  ;;  %v14285_v62 = vld [vmem:[%s19337_s7 + $0xe8c] ss:$16 sps:$4 sm:$0xff]   ;;  %v14280_v34 = vld [vmem:[%s19337_s7 + $0xc08] ss:$16 sps:$4 sm:$0xff]  }
 0x63f   : > { %v14283_v32 = vld [vmem:[%s19337_s7 + $0xe88] ss:$16 sps:$4 sm:$0xff]  }
 0x641   : > { %7743 = vmatpush2.bf16.msra.mxu0 %v14214_v55  ;;  %7776 = vmatpush2.bf16.msra.mxu1 %v14217_v42  ;;  %v14288_v55 = vld [vmem:[%s19337_s7 + $0xdec] ss:$16 sps:$4 sm:$0xff]  }
 0x642   : > { %7744 = vmatprep.subr.bf16.mxu0 %v14222_v28  ;;  %7777 = vmatprep.subr.bf16.mxu1 %v14225_v16  ;;  %v14291_v42 = vld [vmem:[%s19337_s7 + $0xe6c] ss:$16 sps:$4 sm:$0xff]   ;;  %v14286_v28 = vld [vmem:[%s19337_s7 + $0xde8] ss:$16 sps:$4 sm:$0xff]  }
 0x643   : > { %v14289_v16 = vld [vmem:[%s19337_s7 + $0xe68] ss:$16 sps:$4 sm:$0xff]  }
 0x645   : > { %7745 = vmatpush2.bf16.msra.mxu0 %v14220_v30  ;;  %7778 = vmatpush2.bf16.msra.mxu1 %v14223_v45  ;;  %v14294_v30 = vld [vmem:[%s19337_s7 + $0xdcc] ss:$16 sps:$4 sm:$0xff]  }
 0x646   : > { %7746 = vmatprep.subr.bf16.mxu0 %v14228_v50  ;;  %7779 = vmatprep.subr.bf16.mxu1 %v14231_v33  ;;  %v14297_v45 = vld [vmem:[%s19337_s7 + $0xe4c] ss:$16 sps:$4 sm:$0xff]   ;;  %v14292_v50 = vld [vmem:[%s19337_s7 + $0xdc8] ss:$16 sps:$4 sm:$0xff]  }
 0x647   : > { %v14295_v33 = vld [vmem:[%s19337_s7 + $0xe48] ss:$16 sps:$4 sm:$0xff]  }
 0x649   : > { %7747 = vmatpush2.bf16.msra.mxu0 %v14226_v4  ;;  %7780 = vmatpush2.bf16.msra.mxu1 %v14229_v25  ;;  %v14300_v4 = vld [vmem:[%s19337_s7 + $0xdac] ss:$16 sps:$4 sm:$0xff]  }
 0x64a   : > { %7748 = vmatprep.subr.bf16.mxu0 %v14234_v23  ;;  %7781 = vmatprep.subr.bf16.mxu1 %v14237_v3  ;;  %v14303_v25 = vld [vmem:[%s19337_s7 + $0xe2c] ss:$16 sps:$4 sm:$0xff]   ;;  %v14298_v23 = vld [vmem:[%s19337_s7 + $0xda8] ss:$16 sps:$4 sm:$0xff]  }
 0x64b   : > { %v14301_v3 = vld [vmem:[%s19337_s7 + $0xe28] ss:$16 sps:$4 sm:$0xff]  }
 0x64d   : > { %7749 = vmatpush2.bf16.msra.mxu0 %v14232_v48  ;;  %7782 = vmatpush2.bf16.msra.mxu1 %v14235_v18  ;;  %v14306_v48 = vld [vmem:[%s19337_s7 + $0xd8c] ss:$16 sps:$4 sm:$0xff]  }
 0x64e   : > { %7783 = vmatprep.subr.bf16.mxu1 %v14240_v39  ;;  %7800 = vmatprep.subr.bf16.mxu0 %v14243_v38  ;;  %v14309_v18 = vld [vmem:[%s19337_s7 + $0xe0c] ss:$16 sps:$4 sm:$0xff]   ;;  %v14307_v39 = vld [vmem:[%s19337_s7 + $0xe08] ss:$16 sps:$4 sm:$0xff]  }
 0x64f   : > { %v14312_v38 = vld [vmem:[%s19337_s7 + $0xd6c] ss:$16 sps:$4 sm:$0xff]  }
 0x650   : > { %v5926_v12 = vpop.f32.mrf.mxu0  ;;  %7751 = vmatmul.mubr.bf16.vlgmr.msra.gmra.mxu0 %v17714_v11 }
 0x651   : > { %v5927_v15 = vadd.f32 %v5926_v12, %v17359_v8  ;;  %7784 = vmatpush2.bf16.msra.mxu1 %v14238_v29  ;;  %7801 = vmatpush1.bf16.msra.mxu0 %v14241_v41  ;;  %v14255_v8 = vld [vmem:[%s19337_s7 + $0xcac] ss:$16 sps:$4 sm:$0xff]   ;;  %v14310_v41 = vld [vmem:[%s19337_s7 + $0xd68] ss:$16 sps:$4 sm:$0xff]  }
 0x652   : > { %7832 = vmatprep.mubr.bf16.mxu0 %v17512_v14  ;;  %v5928_v24 = vpop.f32.mrf.mxu0  ;;  %7785 = vmatprep.subr.bf16.mxu1 %v14246_v5  ;;  %v14250_v14 = vld [vmem:[%s19337_s7 + $0xf20] ss:$16 sps:$4 sm:$0xff]   ;;  %v14315_v29 = vld [vmem:[%s19337_s7 + $0xfec] ss:$16 sps:$4 sm:$0xff]   ;;  %v14313_v5 = vld [vmem:[%s19337_s7 + $0xfe8] ss:$16 sps:$4 sm:$0xff]  }
 0x653   : > { %v5929_v47 = vadd.f32 %v5928_v24, %v17375_v17  ;;  %7802 = vmatprep.subr.bf16.mxu0 %v14249_v37  ;;  %v14261_v17 = vld [vmem:[%s19337_s7 + $0xc8c] ss:$16 sps:$4 sm:$0xff]  }
 0x654   : > { %v5930_v1 = vpop.f32.mrf.mxu0  ;;  %v14318_v37 = vld [vmem:[%s19337_s7 + $0xd4c] ss:$16 sps:$4 sm:$0xff]  }
 0x655   : > { %7786 = vmatpush2.bf16.msra.mxu1 %v14244_v35  ;;  %7803 = vmatpush1.bf16.msra.mxu0 %v14247_v36  ;;  %v14321_v12 = vld [vmem:[%s19337_s7 + $0xfcc] ss:$16 sps:$4 sm:$0xff]   ;;  %v14319_v35 = vld [vmem:[%s19337_s7 + $0xfc8] ss:$16 sps:$4 sm:$0xff]  }
 0x656   : > { %v5931_v57 = vpop.f32.mrf.mxu0  ;;  %7787 = vmatprep.subr.bf16.mxu1 %v14252_v9  ;;  %7804 = vmatprep.subr.bf16.mxu0 %v14255_v8  ;;  %v14324_v36 = vld [vmem:[%s19337_s7 + $0xd2c] ss:$16 sps:$4 sm:$0xff]   ;;  %v14322_v9 = vld [vmem:[%s19337_s7 + $0xd28] ss:$16 sps:$4 sm:$0xff]  }
 0x657   : > { %v14327_v24 = vld [vmem:[%s19337_s7 + $0xfac] ss:$16 sps:$4 sm:$0xff]   ;;  %v14325_v8 = vld [vmem:[%s19337_s7 + $0xfa8] ss:$16 sps:$4 sm:$0xff]  }
 0x658   : > { %v14333_v1 = vld [vmem:[%s19337_s7 + $0xf8c] ss:$16 sps:$4 sm:$0xff]   ;;  %v17909_v57 = vld [vmem:[#allocation5] sm:$0x44] }
 0x659   : > { %7788 = vmatpush2.bf16.msra.mxu1 %v14250_v14  ;;  %7805 = vmatpush1.bf16.msra.mxu0 %v14253_v7  ;;  %v14328_v14 = vld [vmem:[%s19337_s7 + $0xd08] ss:$16 sps:$4 sm:$0xff]  }
 0x65a   : > { %7789 = vmatprep.subr.bf16.mxu1 %v14258_v59  ;;  %7806 = vmatprep.subr.bf16.mxu0 %v14261_v17  ;;  %v14331_v7 = vld [vmem:[%s19337_s7 + $0xf88] ss:$16 sps:$4 sm:$0xff]   ;;  %v14336_v59 = vld [vmem:[%s19337_s7 + $0xf6c] ss:$16 sps:$4 sm:$0xff]   ;;  %v14339_v17 = vld [vmem:[%s19337_s7 + $0x10e4] ss:$16 sps:$4 sm:$0xff]  }
 0x65d   : > { %7790 = vmatpush2.bf16.msra.mxu1 %v14256_v53  ;;  %7807 = vmatpush1.bf16.msra.mxu0 %v14259_v58  ;;  %v17919_v53 = vcombine.high %v17909_v57, %v17909_v57  ;;  %v14334_v58 = vld [vmem:[%s19337_s7 + $0xf68] ss:$16 sps:$4 sm:$0xff]  }
 0x65e   : > { %7808 = vmatprep.subr.bf16.mxu0 %v14264_v51  ;;  %7841 = vmatprep.subr.bf16.mxu1 %v14267_v2  ;;  %v14344_v51 = vld [vmem:[%s19337_s7 + $0xf4c] ss:$16 sps:$4 sm:$0xff]   ;;  %v14347_v2 = vld [vmem:[%s19337_s7 + $0x10c4] ss:$16 sps:$4 sm:$0xff]  }
 0x660   : > { %v5967_v60 = vpop.f32.mrf.mxu1  ;;  %7792 = vmatmul.mubr.bf16.vlgmr.msra.gmra.mxu1 %v17769_v21 }
 0x661   : > { %v17778_v54 = vadd.f32 %v5967_v60, %v5927_v15  ;;  %7809 = vmatpush1.bf16.msra.mxu0 %v14262_v13  ;;  %7842 = vmatpush1.bf16.msra.mxu1 %v14265_v22  ;;  %v14316_v15 = vld [vmem:[%s19337_s7 + $0xd48] ss:$16 sps:$4 sm:$0xff]   ;;  %v8027_v22 = vrot.slane %v17919_v53, 2 }
 0x662   : > { %7873 = vmatprep.mubr.bf16.mxu1 %v17568_v52  ;;  %v5969_v63 = vpop.f32.mrf.mxu1  ;;  %7810 = vmatprep.subr.bf16.mxu0 %v14270_v44  ;;  %v14274_v52 = vld [vmem:[%s19337_s7 + $0xc28] ss:$16 sps:$4 sm:$0xff]  }
 0x663   : > { %v17793_v46 = vadd.f32 %v5969_v63, %v5929_v47  ;;  %7843 = vmatprep.subr.bf16.mxu1 %v14273_v40  ;;  %v14330_v47 = vld [vmem:[%s19337_s7 + $0xd0c] ss:$16 sps:$4 sm:$0xff]   ;;  %v14342_v44 = vld [vmem:[%s19337_s7 + $0xf48] ss:$16 sps:$4 sm:$0xff]   ;;  %v14345_v40 = vld [vmem:[%s19337_s7 + $0x10c0] ss:$16 sps:$4 sm:$0xff]  }
 0x664   : > { %v5971_v56 = vpop.f32.mrf.mxu1  ;;  %v14348_v63 = vld [vmem:[%s19337_s7 + $0xf28] ss:$16 sps:$4 sm:$0xff]  }
 0x665   : > { %7811 = vmatpush1.bf16.msra.mxu0 %v14268_v43  ;;  %7844 = vmatpush1.bf16.msra.mxu1 %v14271_v19  ;;  %v14353_v43 = vld [vmem:[%s19337_s7 + $0x10a4] ss:$16 sps:$4 sm:$0xff]   ;;  %v14356_v56 = vld [vmem:[%s19337_s7 + $0xf0c] ss:$16 sps:$4 sm:$0xff]  }
 0x666   : > { %v5972_v49 = vpop.f32.mrf.mxu1  ;;  %7812 = vmatprep.subr.bf16.mxu0 %v14276_v6  ;;  %7845 = vmatprep.subr.bf16.mxu1 %v14279_v26  ;;  %v14351_v6 = vld [vmem:[%s19337_s7 + $0x10a0] ss:$16 sps:$4 sm:$0xff]  }
 0x667   : > { %v14357_v49 = vld [vmem:[%s19337_s7 + $0x1080] ss:$16 sps:$4 sm:$0xff]  }
 0x669   : > { %7813 = vmatpush1.bf16.msra.mxu0 %v14274_v52  ;;  %7846 = vmatpush1.bf16.msra.mxu1 %v14277_v20  ;;  %v14359_v52 = vld [vmem:[%s19337_s7 + $0x1084] ss:$16 sps:$4 sm:$0xff]   ;;  %v14354_v20 = vld [vmem:[%s19337_s7 + $0xf08] ss:$16 sps:$4 sm:$0xff]  }
 0x66a   : > { %7814 = vmatprep.subr.bf16.mxu0 %v14282_v10  ;;  %7847 = vmatprep.subr.bf16.mxu1 %v14285_v62  ;;  %v17967_v10 = vld [vmem:[#allocation5 + $0x8] sm:$0x44]  ;;  %v14362_v62 = vld [vmem:[%s19337_s7 + $0x1064] ss:$16 sps:$4 sm:$0xff]  }
 0x66d   : > { %7815 = vmatpush1.bf16.msra.mxu0 %v14280_v34  ;;  %7848 = vmatpush1.bf16.msra.mxu1 %v14283_v32  ;;  %v14365_v34 = vld [vmem:[%s19337_s7 + $0x12e4] ss:$16 sps:$4 sm:$0xff]   ;;  %v17977_v32 = vcombine.high %v17967_v10, %v17967_v10 }
 0x66e   : > { %7816 = vmatprep.subr.bf16.mxu0 %v14288_v55  ;;  %7849 = vmatprep.subr.bf16.mxu1 %v14291_v42  ;;  %v14360_v55 = vld [vmem:[%s19337_s7 + $0x1060] ss:$16 sps:$4 sm:$0xff]  }
 0x66f   : > { %v14363_v42 = vld [vmem:[%s19337_s7 + $0x12e0] ss:$16 sps:$4 sm:$0xff]  }
 0x671   : > { %7817 = vmatpush2.bf16.msra.mxu0 %v14286_v28  ;;  %7850 = vmatpush1.bf16.msra.mxu1 %v14289_v16  ;;  %v14370_v28 = vld [vmem:[%s19337_s7 + $0x1044] ss:$16 sps:$4 sm:$0xff]  }
 0x672   : > { %7818 = vmatprep.subr.bf16.mxu0 %v14294_v30  ;;  %7851 = vmatprep.subr.bf16.mxu1 %v14297_v45  ;;  %v14373_v16 = vld [vmem:[%s19337_s7 + $0x12c4] ss:$16 sps:$4 sm:$0xff]   ;;  %v8029_v45 = vrot.slane %v17977_v32, 2 }
 0x675   : > { %7819 = vmatpush2.bf16.msra.mxu0 %v14292_v50  ;;  %7852 = vmatpush1.bf16.msra.mxu1 %v14295_v33  ;;  %v14368_v33 = vld [vmem:[%s19337_s7 + $0x1040] ss:$16 sps:$4 sm:$0xff]  }
 0x676   : > { %7820 = vmatprep.subr.bf16.mxu0 %v14300_v4  ;;  %7853 = vmatprep.subr.bf16.mxu1 %v14303_v25  ;;  %v14371_v4 = vld [vmem:[%s19337_s7 + $0x12c0] ss:$16 sps:$4 sm:$0xff]  }
 0x679   : > { %7821 = vmatpush2.bf16.msra.mxu0 %v14298_v23  ;;  %7854 = vmatpush1.bf16.msra.mxu1 %v14301_v3  ;;  %v14379_v23 = vld [vmem:[%s19337_s7 + $0x12a4] ss:$16 sps:$4 sm:$0xff]  }
 0x67a   : > { %7822 = vmatprep.subr.bf16.mxu0 %v14306_v48  ;;  %7855 = vmatprep.subr.bf16.mxu1 %v14309_v18 }
 0x67d   : > { %7823 = vmatpush2.bf16.msra.mxu0 %v14304_v0  ;;  %7856 = vmatpush1.bf16.msra.mxu1 %v14307_v39  ;;  %v14374_v39 = vld [vmem:[%s19337_s7 + $0x1020] ss:$16 sps:$4 sm:$0xff]  }
 0x67e   : > { %7824 = vmatprep.subr.bf16.mxu0 %v14312_v38  ;;  %7857 = vmatprep.subr.bf16.mxu1 %v14315_v29  ;;  %v14377_v38 = vld [vmem:[%s19337_s7 + $0x12a0] ss:$16 sps:$4 sm:$0xff]  }
 0x681   : > { %7825 = vmatpush2.bf16.msra.mxu0 %v14310_v41  ;;  %7858 = vmatpush2.bf16.msra.mxu1 %v14313_v5  ;;  %v14380_v41 = vld [vmem:[%s19337_s7 + $0x1000] ss:$16 sps:$4 sm:$0xff]  }
 0x682   : > { %7826 = vmatprep.subr.bf16.mxu0 %v14318_v37  ;;  %7859 = vmatprep.subr.bf16.mxu1 %v14321_v12  ;;  %v14383_v5 = vld [vmem:[%s19337_s7 + $0x1280] ss:$16 sps:$4 sm:$0xff]   ;;  %v14388_v37 = vld [vmem:[%s19337_s7 + $0x11e4] ss:$16 sps:$4 sm:$0xff]  }
 0x683   : > { %v14391_v12 = vld [vmem:[%s19337_s7 + $0x1264] ss:$16 sps:$4 sm:$0xff]  }
 0x685   : > { %7827 = vmatpush2.bf16.msra.mxu0 %v14316_v15  ;;  %7860 = vmatpush2.bf16.msra.mxu1 %v14319_v35  ;;  %v14386_v15 = vld [vmem:[%s19337_s7 + $0x11e0] ss:$16 sps:$4 sm:$0xff]  }
 0x686   : > { %7828 = vmatprep.subr.bf16.mxu0 %v14324_v36  ;;  %7861 = vmatprep.subr.bf16.mxu1 %v14327_v24  ;;  %v14389_v35 = vld [vmem:[%s19337_s7 + $0x1260] ss:$16 sps:$4 sm:$0xff]   ;;  %v14394_v36 = vld [vmem:[%s19337_s7 + $0x11c4] ss:$16 sps:$4 sm:$0xff]  }
 0x687   : > { %v14397_v24 = vld [vmem:[%s19337_s7 + $0x1244] ss:$16 sps:$4 sm:$0xff]  }
 0x689   : > { %7829 = vmatpush2.bf16.msra.mxu0 %v14322_v9  ;;  %7862 = vmatpush2.bf16.msra.mxu1 %v14325_v8  ;;  %v14392_v9 = vld [vmem:[%s19337_s7 + $0x11c0] ss:$16 sps:$4 sm:$0xff]  }
 0x68a   : > { %7830 = vmatprep.subr.bf16.mxu0 %v14330_v47  ;;  %7863 = vmatprep.subr.bf16.mxu1 %v14333_v1  ;;  %v14395_v8 = vld [vmem:[%s19337_s7 + $0x1240] ss:$16 sps:$4 sm:$0xff]   ;;  %v14400_v47 = vld [vmem:[%s19337_s7 + $0x11a4] ss:$16 sps:$4 sm:$0xff]  }
 0x68b   : > { %v14403_v1 = vld [vmem:[%s19337_s7 + $0x1224] ss:$16 sps:$4 sm:$0xff]  }
 0x68d   : > { %7831 = vmatpush2.bf16.msra.mxu0 %v14328_v14  ;;  %7864 = vmatpush2.bf16.msra.mxu1 %v14331_v7  ;;  %v14398_v14 = vld [vmem:[%s19337_s7 + $0x11a0] ss:$16 sps:$4 sm:$0xff]  }
 0x68e   : > { %7865 = vmatprep.subr.bf16.mxu1 %v14336_v59  ;;  %8674 = vmatprep.subr.bf16.mxu0 %v14339_v17  ;;  %v14401_v7 = vld [vmem:[%s19337_s7 + $0x1220] ss:$16 sps:$4 sm:$0xff]   ;;  %v14406_v59 = vld [vmem:[%s19337_s7 + $0x1184] ss:$16 sps:$4 sm:$0xff]  }
 0x68f   : > { %v14409_v17 = vld [vmem:[%s19337_s7 + $0x1204] ss:$16 sps:$4 sm:$0xff]  }
 0x690   : > { %v6796_v13 = vpop.f32.mrf.mxu0  ;;  %7833 = vmatmul.mubr.bf16.vlgmr.msra.gmra.mxu0 %v17714_v11  ;;  %v14350_v11 = vld [vmem:[%s19337_s7 + $0xf2c] ss:$16 sps:$4 sm:$0xff]  }
 0x691   : > { %7866 = vmatpush2.bf16.msra.mxu1 %v14334_v58  ;;  %8675 = vmatpush1.bf16.msra.mxu0 %v14337_v31  ;;  %v14404_v58 = vld [vmem:[%s19337_s7 + $0x1180] ss:$16 sps:$4 sm:$0xff]  }
 0x692   : > { %8706 = vmatprep.mubr.bf16.mxu0 %v8027_v22  ;;  %v6798_v60 = vpop.f32.mrf.mxu0  ;;  %7867 = vmatprep.subr.bf16.mxu1 %v14344_v51  ;;  %v14407_v31 = vld [vmem:[%s19337_s7 + $0x1200] ss:$16 sps:$4 sm:$0xff]   ;;  %v14412_v51 = vld [vmem:[%s19337_s7 + $0x1164] ss:$16 sps:$4 sm:$0xff]  }
 0x693   : > { %8676 = vmatprep.subr.bf16.mxu0 %v14347_v2  ;;  %v14415_v2 = vld [vmem:[%s19337_s7 + $0x13e4] ss:$16 sps:$4 sm:$0xff]  }
 0x694   : > { %v6800_v19 = vpop.f32.mrf.mxu0 }
 0x695   : > { %7868 = vmatpush2.bf16.msra.mxu1 %v14342_v44  ;;  %8677 = vmatpush1.bf16.msra.mxu0 %v14345_v40  ;;  %v14413_v44 = vld [vmem:[%s19337_s7 + $0x13e0] ss:$16 sps:$4 sm:$0xff]   ;;  %v14418_v40 = vld [vmem:[%s19337_s7 + $0x1144] ss:$16 sps:$4 sm:$0xff]  }
 0x696   : > { %v6801_v26 = vpop.f32.mrf.mxu0  ;;  %7869 = vmatprep.subr.bf16.mxu1 %v14350_v11  ;;  %8678 = vmatprep.subr.bf16.mxu0 %v14353_v43  ;;  %v14416_v11 = vld [vmem:[%s19337_s7 + $0x1140] ss:$16 sps:$4 sm:$0xff]   ;;  %v14424_v19 = vld [vmem:[%s19337_s7 + $0x1124] ss:$16 sps:$4 sm:$0xff]  }
 0x697   : > { %v14419_v43 = vld [vmem:[%s19337_s7 + $0x13c0] ss:$16 sps:$4 sm:$0xff]  }
 0x698   : > { %v14425_v26 = vld [vmem:[%s19337_s7 + $0x13a0] ss:$16 sps:$4 sm:$0xff]  }
 0x699   : > { %7870 = vmatpush2.bf16.msra.mxu1 %v14348_v63  ;;  %8679 = vmatpush1.bf16.msra.mxu0 %v14351_v6  ;;  %v14427_v63 = vld [vmem:[%s19337_s7 + $0x13a4] ss:$16 sps:$4 sm:$0xff]   ;;  %v14422_v6 = vld [vmem:[%s19337_s7 + $0x1120] ss:$16 sps:$4 sm:$0xff]  }
 0x69a   : > { %7871 = vmatprep.subr.bf16.mxu1 %v14356_v56  ;;  %8680 = vmatprep.subr.bf16.mxu0 %v14359_v52  ;;  %v14430_v56 = vld [vmem:[%s19337_s7 + $0x1104] ss:$16 sps:$4 sm:$0xff]  }
 0x69b   : > { %v14433_v52 = vld [vmem:[%s19337_s7 + $0x1384] ss:$16 sps:$4 sm:$0xff]  }
 0x69d   : > { %7872 = vmatpush2.bf16.msra.mxu1 %v14354_v20  ;;  %8681 = vmatpush1.bf16.msra.mxu0 %v14357_v49  ;;  %v14428_v20 = vld [vmem:[%s19337_s7 + $0x1100] ss:$16 sps:$4 sm:$0xff]  }
 0x69e   : > { %8682 = vmatprep.subr.bf16.mxu0 %v14362_v62  ;;  %8715 = vmatprep.subr.bf16.mxu1 %v14365_v34  ;;  %v14431_v49 = vld [vmem:[%s19337_s7 + $0x1380] ss:$16 sps:$4 sm:$0xff]   ;;  %v18129_v62 = vcombine.low %v17909_v57, %v17909_v57  ;;  %v14436_v34 = vld [vmem:[%s19337_s7 + $0x1364] ss:$16 sps:$4 sm:$0xff]   ;;  %v14437_v57 = vld [vmem:[%s19337_s7 + $0x10e8] ss:$16 sps:$4 sm:$0xff]  }
 0x6a0   : > { %v6837_v30 = vpop.f32.mrf.mxu1  ;;  %7874 = vmatmul.mubr.bf16.vlgmr.msra.gmra.mxu1 %v17769_v21  ;;  %v14376_v21 = vld [vmem:[%s19337_s7 + $0x1024] ss:$16 sps:$4 sm:$0xff]  }
 0x6a1   : > { %v6838_v50 = vadd.f32 %v6837_v30, %v6796_v13  ;;  %8683 = vmatpush1.bf16.msra.mxu0 %v14360_v55  ;;  %8716 = vmatpush1.bf16.msra.mxu1 %v14363_v42  ;;  %v14410_v13 = vld [vmem:[%s19337_s7 + $0x1160] ss:$16 sps:$4 sm:$0xff]   ;;  %v14439_v55 = vld [vmem:[%s19337_s7 + $0x10ec] ss:$16 sps:$4 sm:$0xff]  }
 0x6a2   : > { %8747 = vmatprep.mubr.bf16.mxu1 %v8029_v45  ;;  %v6839_v25 = vpop.f32.mrf.mxu1  ;;  %8684 = vmatprep.subr.bf16.mxu0 %v14370_v28  ;;  %v14434_v42 = vld [vmem:[%s19337_s7 + $0x1360] ss:$16 sps:$4 sm:$0xff]   ;;  %v8026_v28 = vrot.slane %v18129_v62, 2  ;;  %v14445_v30 = vld [vmem:[%s19337_s7 + $0x10cc] ss:$16 sps:$4 sm:$0xff]  }
 0x6a3   : > { %v18008_v3 = vadd.f32 %v6838_v50, %v17570_v27  ;;  %v6840_v48 = vadd.f32 %v6839_v25, %v6798_v60  ;;  %8717 = vmatprep.subr.bf16.mxu1 %v14373_v16  ;;  %v14382_v27 = vld [vmem:[%s19337_s7 + $0x1004] ss:$16 sps:$4 sm:$0xff]  }
 0x6a4   : > { %v6841_v18 = vpop.f32.mrf.mxu1  ;;  %v14421_v60 = vld [vmem:[%s19337_s7 + $0x13c4] ss:$16 sps:$4 sm:$0xff]  }
 0x6a5   : > { %v18011_v0 = vadd.f32 %v6840_v48, %v17585_v61  ;;  %8685 = vmatpush1.bf16.msra.mxu0 %v14368_v33  ;;  %8718 = vmatpush1.bf16.msra.mxu1 %v14371_v4  ;;  %v14385_v61 = vld [vmem:[%s19337_s7 + $0x1284] ss:$16 sps:$4 sm:$0xff]   ;;  %v14440_v33 = vld [vmem:[%s19337_s7 + $0x1340] ss:$16 sps:$4 sm:$0xff]   ;;  %v14443_v4 = vld [vmem:[%s19337_s7 + $0x10c8] ss:$16 sps:$4 sm:$0xff]  }
 0x6a6   : > { %v6842_v29 = vpop.f32.mrf.mxu1  ;;  %8686 = vmatprep.subr.bf16.mxu0 %v14376_v21  ;;  %8719 = vmatprep.subr.bf16.mxu1 %v14379_v23  ;;  %v14442_v16 = vld [vmem:[%s19337_s7 + $0x1344] ss:$16 sps:$4 sm:$0xff]   ;;  %v14451_v23 = vld [vmem:[%s19337_s7 + $0x10ac] ss:$16 sps:$4 sm:$0xff]   ;;  %v14446_v18 = vld [vmem:[%s19337_s7 + $0x1320] ss:$16 sps:$4 sm:$0xff]  }
 0x6a7   : > { %v14448_v21 = vld [vmem:[%s19337_s7 + $0x1324] ss:$16 sps:$4 sm:$0xff]   ;;  %v14457_v29 = vld [vmem:[%s19337_s7 + $0x108c] ss:$16 sps:$4 sm:$0xff]  }
 0x6a9   : > { %8687 = vmatpush1.bf16.msra.mxu0 %v14374_v39  ;;  %8720 = vmatpush1.bf16.msra.mxu1 %v14377_v38  ;;  %v14454_v38 = vld [vmem:[%s19337_s7 + $0x1304] ss:$16 sps:$4 sm:$0xff]  }
 0x6aa   : > { %8688 = vmatprep.subr.bf16.mxu0 %v14382_v27  ;;  %8721 = vmatprep.subr.bf16.mxu1 %v14385_v61  ;;  %v14452_v27 = vld [vmem:[%s19337_s7 + $0x1300] ss:$16 sps:$4 sm:$0xff]   ;;  %v14455_v61 = vld [vmem:[%s19337_s7 + $0x1088] ss:$16 sps:$4 sm:$0xff]  }
 0x6ad   : > { %8689 = vmatpush1.bf16.msra.mxu0 %v14380_v41  ;;  %8722 = vmatpush1.bf16.msra.mxu1 %v14383_v5  ;;  %v18186_v41 = vcombine.low %v17967_v10, %v17967_v10  ;;  %v14460_v5 = vld [vmem:[%s19337_s7 + $0x106c] ss:$16 sps:$4 sm:$0xff]   ;;  %v14461_v10 = vld [vmem:[%s19337_s7 + $0x12e8] ss:$16 sps:$4 sm:$0xff]  }
 0x6ae   : > { %8690 = vmatprep.subr.bf16.mxu0 %v14388_v37  ;;  %8723 = vmatprep.subr.bf16.mxu1 %v14391_v12  ;;  %v14463_v37 = vld [vmem:[%s19337_s7 + $0x12ec] ss:$16 sps:$4 sm:$0xff]   ;;  %v14458_v12 = vld [vmem:[%s19337_s7 + $0x1068] ss:$16 sps:$4 sm:$0xff]  }
 0x6b1   : > { %8691 = vmatpush2.bf16.msra.mxu0 %v14386_v15  ;;  %8724 = vmatpush1.bf16.msra.mxu1 %v14389_v35  ;;  %v8028_v15 = vrot.slane %v18186_v41, 2  ;;  %v14466_v35 = vld [vmem:[%s19337_s7 + $0x104c] ss:$16 sps:$4 sm:$0xff]  }
 0x6b2   : > { %8692 = vmatprep.subr.bf16.mxu0 %v14394_v36  ;;  %8725 = vmatprep.subr.bf16.mxu1 %v14397_v24  ;;  %v14469_v36 = vld [vmem:[%s19337_s7 + $0x12cc] ss:$16 sps:$4 sm:$0xff]  }
 0x6b5   : > { %8693 = vmatpush2.bf16.msra.mxu0 %v14392_v9  ;;  %8726 = vmatpush1.bf16.msra.mxu1 %v14395_v8  ;;  %v14464_v8 = vld [vmem:[%s19337_s7 + $0x1048] ss:$16 sps:$4 sm:$0xff]  }
 0x6b6   : > { %8694 = vmatprep.subr.bf16.mxu0 %v14400_v47  ;;  %8727 = vmatprep.subr.bf16.mxu1 %v14403_v1  ;;  %v14467_v47 = vld [vmem:[%s19337_s7 + $0x12c8] ss:$16 sps:$4 sm:$0xff]  }
 0x6b9   : > { %8695 = vmatpush2.bf16.msra.mxu0 %v14398_v14  ;;  %8728 = vmatpush1.bf16.msra.mxu1 %v14401_v7  ;;  %v14472_v14 = vld [vmem:[%s19337_s7 + $0x102c] ss:$16 sps:$4 sm:$0xff]  }
 0x6ba   : > { %8696 = vmatprep.subr.bf16.mxu0 %v14406_v59  ;;  %8729 = vmatprep.subr.bf16.mxu1 %v14409_v17  ;;  %v14475_v7 = vld [vmem:[%s19337_s7 + $0x12ac] ss:$16 sps:$4 sm:$0xff]  }
 0x6bd   : > { %8697 = vmatpush2.bf16.msra.mxu0 %v14404_v58  ;;  %8730 = vmatpush1.bf16.msra.mxu1 %v14407_v31 }
 0x6be   : > { %8698 = vmatprep.subr.bf16.mxu0 %v14412_v51  ;;  %8731 = vmatprep.subr.bf16.mxu1 %v14415_v2  ;;  %v14473_v51 = vld [vmem:[%s19337_s7 + $0x12a8] ss:$16 sps:$4 sm:$0xff]  }
 0x6c1   : > { %8699 = vmatpush2.bf16.msra.mxu0 %v14410_v13  ;;  %8732 = vmatpush2.bf16.msra.mxu1 %v14413_v44  ;;  %v14476_v13 = vld [vmem:[%s19337_s7 + $0x1008] ss:$16 sps:$4 sm:$0xff]  }
 0x6c2   : > { %8700 = vmatprep.subr.bf16.mxu0 %v14418_v40  ;;  %8733 = vmatprep.subr.bf16.mxu1 %v14421_v60  ;;  %v14479_v44 = vld [vmem:[%s19337_s7 + $0x1288] ss:$16 sps:$4 sm:$0xff]   ;;  %v14484_v40 = vld [vmem:[%s19337_s7 + $0x11ec] ss:$16 sps:$4 sm:$0xff]  }
 0x6c3   : > { %v14487_v60 = vld [vmem:[%s19337_s7 + $0x126c] ss:$16 sps:$4 sm:$0xff]  }
 0x6c5   : > { %8701 = vmatpush2.bf16.msra.mxu0 %v14416_v11  ;;  %8734 = vmatpush2.bf16.msra.mxu1 %v14419_v43  ;;  %v14482_v11 = vld [vmem:[%s19337_s7 + $0x11e8] ss:$16 sps:$4 sm:$0xff]  }
 0x6c6   : > { %8702 = vmatprep.subr.bf16.mxu0 %v14424_v19  ;;  %8735 = vmatprep.subr.bf16.mxu1 %v14427_v63  ;;  %v14485_v43 = vld [vmem:[%s19337_s7 + $0x1268] ss:$16 sps:$4 sm:$0xff]   ;;  %v14490_v19 = vld [vmem:[%s19337_s7 + $0x11cc] ss:$16 sps:$4 sm:$0xff]  }
 0x6c7   : > { %v14493_v63 = vld [vmem:[%s19337_s7 + $0x124c] ss:$16 sps:$4 sm:$0xff]  }
 0x6c9   : > { %8703 = vmatpush2.bf16.msra.mxu0 %v14422_v6  ;;  %8736 = vmatpush2.bf16.msra.mxu1 %v14425_v26  ;;  %v14488_v6 = vld [vmem:[%s19337_s7 + $0x11c8] ss:$16 sps:$4 sm:$0xff]  }
 0x6ca   : > { %8704 = vmatprep.subr.bf16.mxu0 %v14430_v56  ;;  %8737 = vmatprep.subr.bf16.mxu1 %v14433_v52  ;;  %v14491_v26 = vld [vmem:[%s19337_s7 + $0x1248] ss:$16 sps:$4 sm:$0xff]   ;;  %v14496_v56 = vld [vmem:[%s19337_s7 + $0x11ac] ss:$16 sps:$4 sm:$0xff]  }
 0x6cb   : > { %v14499_v52 = vld [vmem:[%s19337_s7 + $0x122c] ss:$16 sps:$4 sm:$0xff]  }
 0x6cd   : > { %8705 = vmatpush2.bf16.msra.mxu0 %v14428_v20  ;;  %8738 = vmatpush2.bf16.msra.mxu1 %v14431_v49  ;;  %v14494_v20 = vld [vmem:[%s19337_s7 + $0x11a8] ss:$16 sps:$4 sm:$0xff]  }
 0x6ce   : > { %8739 = vmatprep.subr.bf16.mxu1 %v14436_v34  ;;  %8756 = vmatprep.subr.bf16.mxu0 %v14439_v55  ;;  %v14497_v49 = vld [vmem:[%s19337_s7 + $0x1228] ss:$16 sps:$4 sm:$0xff]   ;;  %v14502_v34 = vld [vmem:[%s19337_s7 + $0x118c] ss:$16 sps:$4 sm:$0xff]  }
 0x6cf   : > { %v14505_v55 = vld [vmem:[%s19337_s7 + $0x120c] ss:$16 sps:$4 sm:$0xff]  }
 0x6d0   : > { %v6878_v50 = vpop.f32.mrf.mxu0  ;;  %8707 = vmatmul.mubr.bf16.vlgmr.msra.gmra.mxu0 %v8026_v28 }
 0x6d1   : > { %8740 = vmatpush2.bf16.msra.mxu1 %v14434_v42  ;;  %8757 = vmatpush1.bf16.msra.mxu0 %v14437_v57  ;;  %v14500_v42 = vld [vmem:[%s19337_s7 + $0x1188] ss:$16 sps:$4 sm:$0xff]  }
 0x6d2   : > { %8788 = vmatprep.mubr.bf16.mxu0 %v8027_v22  ;;  %v6880_v25 = vpop.f32.mrf.mxu0  ;;  %8741 = vmatprep.subr.bf16.mxu1 %v14442_v16  ;;  %v14449_v22 = vld [vmem:[%s19337_s7 + $0x10a8] ss:$16 sps:$4 sm:$0xff]   ;;  %v14508_v16 = vld [vmem:[%s19337_s7 + $0x116c] ss:$16 sps:$4 sm:$0xff]  }
 0x6d3   : > { %8758 = vmatprep.subr.bf16.mxu0 %v14445_v30  ;;  %v14503_v57 = vld [vmem:[%s19337_s7 + $0x1208] ss:$16 sps:$4 sm:$0xff]   ;;  %v14511_v30 = vld [vmem:[%s19337_s7 + $0x13ec] ss:$16 sps:$4 sm:$0xff]  }
 0x6d4   : > { %v6882_v48 = vpop.f32.mrf.mxu0 }
 0x6d5   : > { %8742 = vmatpush2.bf16.msra.mxu1 %v14440_v33  ;;  %8759 = vmatpush1.bf16.msra.mxu0 %v14443_v4  ;;  %v14509_v33 = vld [vmem:[%s19337_s7 + $0x13e8] ss:$16 sps:$4 sm:$0xff]   ;;  %v14514_v4 = vld [vmem:[%s19337_s7 + $0x114c] ss:$16 sps:$4 sm:$0xff]  }
 0x6d6   : > { %v6883_v39 = vpop.f32.mrf.mxu0  ;;  %8743 = vmatprep.subr.bf16.mxu1 %v14448_v21  ;;  %8760 = vmatprep.subr.bf16.mxu0 %v14451_v23  ;;  %v14512_v21 = vld [vmem:[%s19337_s7 + $0x1148] ss:$16 sps:$4 sm:$0xff]   ;;  %v14520_v48 = vld [vmem:[%s19337_s7 + $0x112c] ss:$16 sps:$4 sm:$0xff]  }
 0x6d7   : > { %v14515_v23 = vld [vmem:[%s19337_s7 + $0x13c8] ss:$16 sps:$4 sm:$0xff]  }
 0x6d8   : > { %v14521_v39 = vld [vmem:[%s19337_s7 + $0x13a8] ss:$16 sps:$4 sm:$0xff]  }
 0x6d9   : > { %8744 = vmatpush2.bf16.msra.mxu1 %v14446_v18  ;;  %8761 = vmatpush1.bf16.msra.mxu0 %v14449_v22  ;;  %v14523_v18 = vld [vmem:[%s19337_s7 + $0x13ac] ss:$16 sps:$4 sm:$0xff]   ;;  %v14518_v22 = vld [vmem:[%s19337_s7 + $0x1128] ss:$16 sps:$4 sm:$0xff]  }
 0x6da   : > { %8745 = vmatprep.subr.bf16.mxu1 %v14454_v38  ;;  %8762 = vmatprep.subr.bf16.mxu0 %v14457_v29  ;;  %v14526_v38 = vld [vmem:[%s19337_s7 + $0x110c] ss:$16 sps:$4 sm:$0xff]  }
 0x6db   : > { %v14529_v29 = vld [vmem:[%s19337_s7 + $0x138c] ss:$16 sps:$4 sm:$0xff]  }
 0x6dd   : > { %8746 = vmatpush2.bf16.msra.mxu1 %v14452_v27  ;;  %8763 = vmatpush1.bf16.msra.mxu0 %v14455_v61  ;;  %v14524_v27 = vld [vmem:[%s19337_s7 + $0x1108] ss:$16 sps:$4 sm:$0xff]  }
 0x6de   : > { %8764 = vmatprep.subr.bf16.mxu0 %v14460_v5  ;;  %8797 = vmatprep.subr.bf16.mxu1 %v14463_v37  ;;  %v14527_v61 = vld [vmem:[%s19337_s7 + $0x1388] ss:$16 sps:$4 sm:$0xff]   ;;  %v14532_v5 = vld [vmem:[%s19337_s7 + $0x136c] ss:$16 sps:$4 sm:$0xff]   ;;  %v14535_v37 = vld [vmem:[%s19337_s7 + $0x14e4] ss:$16 sps:$4 sm:$0xff]  }
 0x6e0   : > { %v6919_v24 = vpop.f32.mrf.mxu1  ;;  %8748 = vmatmul.mubr.bf16.vlgmr.msra.gmra.mxu1 %v8028_v15 }
 0x6e1   : > { %v6920_v9 = vadd.f32 %v6919_v24, %v6878_v50  ;;  %8765 = vmatpush1.bf16.msra.mxu0 %v14458_v12  ;;  %8798 = vmatpush1.bf16.msra.mxu1 %v14461_v10  ;;  %v14506_v50 = vld [vmem:[%s19337_s7 + $0x1168] ss:$16 sps:$4 sm:$0xff]   ;;  %v8975_v12 = vshrl.u32 %v17919_v53, 16  ;;  %v14541_v53 = vld [vmem:[%s19337_s7 + $0x14c4] ss:$16 sps:$4 sm:$0xff]  }
 0x6e2   : > { %8829 = vmatprep.mubr.bf16.mxu1 %v8029_v45  ;;  %v6921_v1 = vpop.f32.mrf.mxu1  ;;  %8766 = vmatprep.subr.bf16.mxu0 %v14466_v35  ;;  %v14470_v45 = vld [vmem:[%s19337_s7 + $0x1028] ss:$16 sps:$4 sm:$0xff]   ;;  %v14533_v35 = vld [vmem:[%s19337_s7 + $0x14e0] ss:$16 sps:$4 sm:$0xff]  }
 0x6e3   : > { %v18224_v59 = vadd.f32 %v6920_v9, %v17778_v54  ;;  %v6922_v17 = vadd.f32 %v6921_v1, %v6880_v25  ;;  %8799 = vmatprep.subr.bf16.mxu1 %v14469_v36  ;;  %v14478_v54 = vld [vmem:[%s19337_s7 + $0x100c] ss:$16 sps:$4 sm:$0xff]   ;;  %v14530_v10 = vld [vmem:[%s19337_s7 + $0x1368] ss:$16 sps:$4 sm:$0xff]   ;;  %v18364_v9 = vrot.slane %v8975_v12, 2 }
 0x6e4   : > { %v6923_v58 = vpop.f32.mrf.mxu1  ;;  %v14517_v25 = vld [vmem:[%s19337_s7 + $0x13cc] ss:$16 sps:$4 sm:$0xff]   ;;  %v14596_v12 = vld [vmem:[%s19337_s7 + $0x1580] ss:$16 sps:$4 sm:$0xff]  }
 0x6e5   : > { %v18227_v31 = vadd.f32 %v6922_v17, %v17793_v46  ;;  %8767 = vmatpush1.bf16.msra.mxu0 %v14464_v8  ;;  %8800 = vmatpush1.bf16.msra.mxu1 %v14467_v47  ;;  %v14481_v46 = vld [vmem:[%s19337_s7 + $0x128c] ss:$16 sps:$4 sm:$0xff]   ;;  %v14536_v8 = vld [vmem:[%s19337_s7 + $0x1348] ss:$16 sps:$4 sm:$0xff]   ;;  %v14539_v47 = vld [vmem:[%s19337_s7 + $0x14c0] ss:$16 sps:$4 sm:$0xff]  }
 0x6e6   : > { %v6924_v2 = vpop.f32.mrf.mxu1  ;;  %8768 = vmatprep.subr.bf16.mxu0 %v14472_v14  ;;  %8801 = vmatprep.subr.bf16.mxu1 %v14475_v7  ;;  %v14538_v36 = vld [vmem:[%s19337_s7 + $0x134c] ss:$16 sps:$4 sm:$0xff]   ;;  %v14547_v14 = vld [vmem:[%s19337_s7 + $0x14a4] ss:$16 sps:$4 sm:$0xff]   ;;  %v14542_v17 = vld [vmem:[%s19337_s7 + $0x1328] ss:$16 sps:$4 sm:$0xff]  }
 0x6e7   : > { %v14545_v58 = vld [vmem:[%s19337_s7 + $0x14a0] ss:$16 sps:$4 sm:$0xff]   ;;  %v14553_v2 = vld [vmem:[%s19337_s7 + $0x1484] ss:$16 sps:$4 sm:$0xff]  }
 0x6e9   : > { %8769 = vmatpush1.bf16.msra.mxu0 %v14470_v45  ;;  %8802 = vmatpush1.bf16.msra.mxu1 %v14473_v51  ;;  %v14550_v51 = vld [vmem:[%s19337_s7 + $0x130c] ss:$16 sps:$4 sm:$0xff]  }
 0x6ea   : > { %8770 = vmatprep.subr.bf16.mxu0 %v14478_v54  ;;  %8803 = vmatprep.subr.bf16.mxu1 %v14481_v46  ;;  %v14548_v54 = vld [vmem:[%s19337_s7 + $0x1308] ss:$16 sps:$4 sm:$0xff]   ;;  %v14551_v46 = vld [vmem:[%s19337_s7 + $0x1480] ss:$16 sps:$4 sm:$0xff]  }
 0x6ed   : > { %8771 = vmatpush1.bf16.msra.mxu0 %v14476_v13  ;;  %8804 = vmatpush1.bf16.msra.mxu1 %v14479_v44  ;;  %v14556_v13 = vld [vmem:[%s19337_s7 + $0x1464] ss:$16 sps:$4 sm:$0xff]  }
 0x6ee   : > { %8772 = vmatprep.subr.bf16.mxu0 %v14484_v40  ;;  %8805 = vmatprep.subr.bf16.mxu1 %v14487_v60  ;;  %v14559_v44 = vld [vmem:[%s19337_s7 + $0x16e4] ss:$16 sps:$4 sm:$0xff]   ;;  %v8983_v40 = vshrl.u32 %v17977_v32, 16  ;;  %v14554_v60 = vld [vmem:[%s19337_s7 + $0x1460] ss:$16 sps:$4 sm:$0xff]  }
 0x6ef   : > { %v14565_v32 = vld [vmem:[%s19337_s7 + $0x16c4] ss:$16 sps:$4 sm:$0xff]  }
 0x6f1   : > { %8773 = vmatpush2.bf16.msra.mxu0 %v14482_v11  ;;  %8806 = vmatpush1.bf16.msra.mxu1 %v14485_v43  ;;  %v14557_v11 = vld [vmem:[%s19337_s7 + $0x16e0] ss:$16 sps:$4 sm:$0xff]   ;;  %v14562_v43 = vld [vmem:[%s19337_s7 + $0x1444] ss:$16 sps:$4 sm:$0xff]  }
 0x6f2   : > { %8774 = vmatprep.subr.bf16.mxu0 %v14490_v19  ;;  %8807 = vmatprep.subr.bf16.mxu1 %v14493_v63  ;;  %v18418_v63 = vrot.slane %v8983_v40, 2  ;;  %v14626_v40 = vld [vmem:[%s19337_s7 + $0x1760] ss:$16 sps:$4 sm:$0xff]  }
 0x6f5   : > { %8775 = vmatpush2.bf16.msra.mxu0 %v14488_v6  ;;  %8808 = vmatpush1.bf16.msra.mxu1 %v14491_v26  ;;  %v14560_v26 = vld [vmem:[%s19337_s7 + $0x1440] ss:$16 sps:$4 sm:$0xff]  }
 0x6f6   : > { %8776 = vmatprep.subr.bf16.mxu0 %v14496_v56  ;;  %8809 = vmatprep.subr.bf16.mxu1 %v14499_v52  ;;  %v14563_v56 = vld [vmem:[%s19337_s7 + $0x16c0] ss:$16 sps:$4 sm:$0xff]  }
 0x6f9   : > { %8777 = vmatpush2.bf16.msra.mxu0 %v14494_v20  ;;  %8810 = vmatpush1.bf16.msra.mxu1 %v14497_v49  ;;  %v14571_v20 = vld [vmem:[%s19337_s7 + $0x16a4] ss:$16 sps:$4 sm:$0xff]  }
 0x6fa   : > { %8778 = vmatprep.subr.bf16.mxu0 %v14502_v34  ;;  %8811 = vmatprep.subr.bf16.mxu1 %v14505_v55 }
 0x6fd   : > { %8779 = vmatpush2.bf16.msra.mxu0 %v14500_v42  ;;  %8812 = vmatpush1.bf16.msra.mxu1 %v14503_v57  ;;  %v14566_v57 = vld [vmem:[%s19337_s7 + $0x1420] ss:$16 sps:$4 sm:$0xff]  }
 0x6fe   : > { %8780 = vmatprep.subr.bf16.mxu0 %v14508_v16  ;;  %8813 = vmatprep.subr.bf16.mxu1 %v14511_v30  ;;  %v14569_v16 = vld [vmem:[%s19337_s7 + $0x16a0] ss:$16 sps:$4 sm:$0xff]  }
 0x701   : > { %8781 = vmatpush2.bf16.msra.mxu0 %v14506_v50  ;;  %8814 = vmatpush2.bf16.msra.mxu1 %v14509_v33  ;;  %v14572_v50 = vld [vmem:[%s19337_s7 + $0x1400] ss:$16 sps:$4 sm:$0xff]  }
 0x702   : > { %8782 = vmatprep.subr.bf16.mxu0 %v14514_v4  ;;  %8815 = vmatprep.subr.bf16.mxu1 %v14517_v25  ;;  %v14575_v33 = vld [vmem:[%s19337_s7 + $0x1680] ss:$16 sps:$4 sm:$0xff]   ;;  %v14580_v4 = vld [vmem:[%s19337_s7 + $0x15e4] ss:$16 sps:$4 sm:$0xff]  }
 0x703   : > { %v14583_v25 = vld [vmem:[%s19337_s7 + $0x1664] ss:$16 sps:$4 sm:$0xff]  }
 0x705   : > { %8783 = vmatpush2.bf16.msra.mxu0 %v14512_v21  ;;  %8816 = vmatpush2.bf16.msra.mxu1 %v14515_v23  ;;  %v14578_v21 = vld [vmem:[%s19337_s7 + $0x15e0] ss:$16 sps:$4 sm:$0xff]  }
 0x706   : > { %8784 = vmatprep.subr.bf16.mxu0 %v14520_v48  ;;  %8817 = vmatprep.subr.bf16.mxu1 %v14523_v18  ;;  %v14581_v23 = vld [vmem:[%s19337_s7 + $0x1660] ss:$16 sps:$4 sm:$0xff]   ;;  %v14586_v48 = vld [vmem:[%s19337_s7 + $0x15c4] ss:$16 sps:$4 sm:$0xff]  }
 0x707   : > { %v14589_v18 = vld [vmem:[%s19337_s7 + $0x1644] ss:$16 sps:$4 sm:$0xff]  }
 0x709   : > { %8785 = vmatpush2.bf16.msra.mxu0 %v14518_v22  ;;  %8818 = vmatpush2.bf16.msra.mxu1 %v14521_v39  ;;  %v14584_v22 = vld [vmem:[%s19337_s7 + $0x15c0] ss:$16 sps:$4 sm:$0xff]  }
 0x70a   : > { %8786 = vmatprep.subr.bf16.mxu0 %v14526_v38  ;;  %8819 = vmatprep.subr.bf16.mxu1 %v14529_v29  ;;  %v14587_v39 = vld [vmem:[%s19337_s7 + $0x1640] ss:$16 sps:$4 sm:$0xff]   ;;  %v14592_v38 = vld [vmem:[%s19337_s7 + $0x15a4] ss:$16 sps:$4 sm:$0xff]  }
 0x70b   : > { %v14595_v29 = vld [vmem:[%s19337_s7 + $0x1624] ss:$16 sps:$4 sm:$0xff]  }
 0x70d   : > { %8787 = vmatpush2.bf16.msra.mxu0 %v14524_v27  ;;  %8820 = vmatpush2.bf16.msra.mxu1 %v14527_v61  ;;  %v14590_v27 = vld [vmem:[%s19337_s7 + $0x15a0] ss:$16 sps:$4 sm:$0xff]  }
 0x70e   : > { %8821 = vmatprep.subr.bf16.mxu1 %v14532_v5  ;;  %9630 = vmatprep.subr.bf16.mxu0 %v14535_v37  ;;  %v14593_v61 = vld [vmem:[%s19337_s7 + $0x1620] ss:$16 sps:$4 sm:$0xff]   ;;  %v14598_v5 = vld [vmem:[%s19337_s7 + $0x1584] ss:$16 sps:$4 sm:$0xff]  }
 0x70f   : > { %v14601_v37 = vld [vmem:[%s19337_s7 + $0x1604] ss:$16 sps:$4 sm:$0xff]  }
 0x710   : > { %v7752_v24 = vpop.f32.mrf.mxu0  ;;  %8789 = vmatmul.mubr.bf16.vlgmr.msra.gmra.mxu0 %v8026_v28  ;;  %v14544_v28 = vld [vmem:[%s19337_s7 + $0x132c] ss:$16 sps:$4 sm:$0xff]  }
 0x711   : > { %8822 = vmatpush2.bf16.msra.mxu1 %v14530_v10  ;;  %9631 = vmatpush1.bf16.msra.mxu0 %v14533_v35  ;;  %v14599_v10 = vld [vmem:[%s19337_s7 + $0x1600] ss:$16 sps:$4 sm:$0xff]   ;;  %v14604_v35 = vld [vmem:[%s19337_s7 + $0x1564] ss:$16 sps:$4 sm:$0xff]  }
 0x712   : > { %9662 = vmatprep.mubr.bf16.mxu0 %v18364_v9  ;;  %v7754_v1 = vpop.f32.mrf.mxu0  ;;  %8823 = vmatprep.subr.bf16.mxu1 %v14538_v36  ;;  %v14607_v36 = vld [vmem:[%s19337_s7 + $0x17e4] ss:$16 sps:$4 sm:$0xff]  }
 0x713   : > { %9632 = vmatprep.subr.bf16.mxu0 %v14541_v53  ;;  %v14602_v53 = vld [vmem:[%s19337_s7 + $0x1560] ss:$16 sps:$4 sm:$0xff]  }
 0x714   : > { %v7756_v7 = vpop.f32.mrf.mxu0 }
 0x715   : > { %8824 = vmatpush2.bf16.msra.mxu1 %v14536_v8  ;;  %9633 = vmatpush1.bf16.msra.mxu0 %v14539_v47  ;;  %v14610_v8 = vld [vmem:[%s19337_s7 + $0x1544] ss:$16 sps:$4 sm:$0xff]  }
 0x716   : > { %v7757_v45 = vpop.f32.mrf.mxu0  ;;  %8825 = vmatprep.subr.bf16.mxu1 %v14544_v28  ;;  %9634 = vmatprep.subr.bf16.mxu0 %v14547_v14  ;;  %v14613_v47 = vld [vmem:[%s19337_s7 + $0x17c4] ss:$16 sps:$4 sm:$0xff]   ;;  %v14611_v28 = vld [vmem:[%s19337_s7 + $0x17c0] ss:$16 sps:$4 sm:$0xff]  }
 0x717   : > { %v14616_v14 = vld [vmem:[%s19337_s7 + $0x1524] ss:$16 sps:$4 sm:$0xff]  }
 0x718   : > { %v14619_v7 = vld [vmem:[%s19337_s7 + $0x17a4] ss:$16 sps:$4 sm:$0xff]  }
 0x719   : > { %8826 = vmatpush2.bf16.msra.mxu1 %v14542_v17  ;;  %9635 = vmatpush1.bf16.msra.mxu0 %v14545_v58  ;;  %v14614_v17 = vld [vmem:[%s19337_s7 + $0x1520] ss:$16 sps:$4 sm:$0xff]   ;;  %v14622_v45 = vld [vmem:[%s19337_s7 + $0x1504] ss:$16 sps:$4 sm:$0xff]  }
 0x71a   : > { %8827 = vmatprep.subr.bf16.mxu1 %v14550_v51  ;;  %9636 = vmatprep.subr.bf16.mxu0 %v14553_v2  ;;  %v14617_v58 = vld [vmem:[%s19337_s7 + $0x17a0] ss:$16 sps:$4 sm:$0xff]   ;;  %v14625_v51 = vld [vmem:[%s19337_s7 + $0x1784] ss:$16 sps:$4 sm:$0xff]  }
 0x71b   : > { %v14620_v2 = vld [vmem:[%s19337_s7 + $0x1500] ss:$16 sps:$4 sm:$0xff]  }
 0x71d   : > { %8828 = vmatpush2.bf16.msra.mxu1 %v14548_v54  ;;  %9637 = vmatpush1.bf16.msra.mxu0 %v14551_v46  ;;  %v14623_v54 = vld [vmem:[%s19337_s7 + $0x1780] ss:$16 sps:$4 sm:$0xff]   ;;  %v8971_v46 = vshrl.u32 %v18129_v62, 16  ;;  %v14629_v62 = vld [vmem:[%s19337_s7 + $0x14e8] ss:$16 sps:$4 sm:$0xff]  }
 0x71e   : > { %9638 = vmatprep.subr.bf16.mxu0 %v14556_v13  ;;  %9671 = vmatprep.subr.bf16.mxu1 %v14559_v44  ;;  %v14628_v13 = vld [vmem:[%s19337_s7 + $0x1764] ss:$16 sps:$4 sm:$0xff]   ;;  %v14631_v44 = vld [vmem:[%s19337_s7 + $0x14ec] ss:$16 sps:$4 sm:$0xff]  }
 0x720   : > { %v7793_v19 = vpop.f32.mrf.mxu1  ;;  %8830 = vmatmul.mubr.bf16.vlgmr.msra.gmra.mxu1 %v8028_v15  ;;  %v14568_v15 = vld [vmem:[%s19337_s7 + $0x1424] ss:$16 sps:$4 sm:$0xff]  }
 0x721   : > { %v7794_v6 = vadd.f32 %v7793_v19, %v7752_v24  ;;  %9639 = vmatpush1.bf16.msra.mxu0 %v14554_v60  ;;  %9672 = vmatpush1.bf16.msra.mxu1 %v14557_v11  ;;  %v14605_v24 = vld [vmem:[%s19337_s7 + $0x17e0] ss:$16 sps:$4 sm:$0xff]   ;;  %v18566_v60 = vrot.slane %v8971_v46, 2  ;;  %v14634_v11 = vld [vmem:[%s19337_s7 + $0x1744] ss:$16 sps:$4 sm:$0xff]  }
 0x722   : > { %9703 = vmatprep.mubr.bf16.mxu1 %v18418_v63  ;;  %v7795_v52 = vpop.f32.mrf.mxu1  ;;  %9640 = vmatprep.subr.bf16.mxu0 %v14562_v43  ;;  %v14637_v43 = vld [vmem:[%s19337_s7 + $0x14cc] ss:$16 sps:$4 sm:$0xff]   ;;  %v14632_v19 = vld [vmem:[%s19337_s7 + $0x1740] ss:$16 sps:$4 sm:$0xff]   ;;  %v14692_v46 = vld [vmem:[%s19337_s7 + $0x1588] ss:$16 sps:$4 sm:$0xff]  }
 0x723   : > { %v18434_v49 = vadd.f32 %v7794_v6, %v18008_v3  ;;  %v7796_v34 = vadd.f32 %v7795_v52, %v7754_v1  ;;  %9673 = vmatprep.subr.bf16.mxu1 %v14565_v32  ;;  %v14574_v3 = vld [vmem:[%s19337_s7 + $0x1404] ss:$16 sps:$4 sm:$0xff]   ;;  %v14608_v1 = vld [vmem:[%s19337_s7 + $0x1540] ss:$16 sps:$4 sm:$0xff]   ;;  %v14635_v6 = vld [vmem:[%s19337_s7 + $0x14c8] ss:$16 sps:$4 sm:$0xff]  }
 0x724   : > { %v7797_v55 = vpop.f32.mrf.mxu1  ;;  %v14643_v52 = vld [vmem:[%s19337_s7 + $0x14ac] ss:$16 sps:$4 sm:$0xff]  }
 0x725   : > { %v18437_v42 = vadd.f32 %v7796_v34, %v18011_v0  ;;  %9641 = vmatpush1.bf16.msra.mxu0 %v14560_v26  ;;  %9674 = vmatpush1.bf16.msra.mxu1 %v14563_v56  ;;  %v14577_v0 = vld [vmem:[%s19337_s7 + $0x1684] ss:$16 sps:$4 sm:$0xff]  }
 0x726   : > { %v7798_v30 = vpop.f32.mrf.mxu1  ;;  %9642 = vmatprep.subr.bf16.mxu0 %v14568_v15  ;;  %9675 = vmatprep.subr.bf16.mxu1 %v14571_v20  ;;  %v14640_v56 = vld [vmem:[%s19337_s7 + $0x1724] ss:$16 sps:$4 sm:$0xff]   ;;  %v14638_v20 = vld [vmem:[%s19337_s7 + $0x1720] ss:$16 sps:$4 sm:$0xff]  }
 0x727   : > { %v14646_v55 = vld [vmem:[%s19337_s7 + $0x1704] ss:$16 sps:$4 sm:$0xff]   ;;  %v14647_v30 = vld [vmem:[%s19337_s7 + $0x1488] ss:$16 sps:$4 sm:$0xff]  }
 0x729   : > { %9643 = vmatpush1.bf16.msra.mxu0 %v14566_v57  ;;  %9676 = vmatpush1.bf16.msra.mxu1 %v14569_v16  ;;  %v14649_v57 = vld [vmem:[%s19337_s7 + $0x148c] ss:$16 sps:$4 sm:$0xff]   ;;  %v14644_v16 = vld [vmem:[%s19337_s7 + $0x1700] ss:$16 sps:$4 sm:$0xff]  }
 0x72a   : > { %9644 = vmatprep.subr.bf16.mxu0 %v14574_v3  ;;  %9677 = vmatprep.subr.bf16.mxu1 %v14577_v0  ;;  %v8979_v3 = vshrl.u32 %v18186_v41, 16  ;;  %v14652_v0 = vld [vmem:[%s19337_s7 + $0x146c] ss:$16 sps:$4 sm:$0xff]   ;;  %v14653_v41 = vld [vmem:[%s19337_s7 + $0x16e8] ss:$16 sps:$4 sm:$0xff]  }
 0x72d   : > { %9645 = vmatpush1.bf16.msra.mxu0 %v14572_v50  ;;  %9678 = vmatpush1.bf16.msra.mxu1 %v14575_v33  ;;  %v14655_v50 = vld [vmem:[%s19337_s7 + $0x16ec] ss:$16 sps:$4 sm:$0xff]   ;;  %v14650_v33 = vld [vmem:[%s19337_s7 + $0x1468] ss:$16 sps:$4 sm:$0xff]  }
 0x72e   : > { %9646 = vmatprep.subr.bf16.mxu0 %v14580_v4  ;;  %9679 = vmatprep.subr.bf16.mxu1 %v14583_v25  ;;  %v18619_v4 = vrot.slane %v8979_v3, 2  ;;  %v14658_v25 = vld [vmem:[%s19337_s7 + $0x144c] ss:$16 sps:$4 sm:$0xff]  }
 0x731   : > { %9647 = vmatpush2.bf16.msra.mxu0 %v14578_v21  ;;  %9680 = vmatpush1.bf16.msra.mxu1 %v14581_v23  ;;  %v14661_v21 = vld [vmem:[%s19337_s7 + $0x16cc] ss:$16 sps:$4 sm:$0xff]  }
 0x732   : > { %9648 = vmatprep.subr.bf16.mxu0 %v14586_v48  ;;  %9681 = vmatprep.subr.bf16.mxu1 %v14589_v18  ;;  %v14656_v18 = vld [vmem:[%s19337_s7 + $0x1448] ss:$16 sps:$4 sm:$0xff]  }
 0x735   : > { %9649 = vmatpush2.bf16.msra.mxu0 %v14584_v22  ;;  %9682 = vmatpush1.bf16.msra.mxu1 %v14587_v39  ;;  %v14659_v22 = vld [vmem:[%s19337_s7 + $0x16c8] ss:$16 sps:$4 sm:$0xff]  }
 0x736   : > { %9650 = vmatprep.subr.bf16.mxu0 %v14592_v38  ;;  %9683 = vmatprep.subr.bf16.mxu1 %v14595_v29  ;;  %v14664_v38 = vld [vmem:[%s19337_s7 + $0x142c] ss:$16 sps:$4 sm:$0xff]  }
 0x737   : > { %v14667_v29 = vld [vmem:[%s19337_s7 + $0x16ac] ss:$16 sps:$4 sm:$0xff]  }
 0x739   : > { %9651 = vmatpush2.bf16.msra.mxu0 %v14590_v27  ;;  %9684 = vmatpush1.bf16.msra.mxu1 %v14593_v61 }
 0x73a   : > { %9652 = vmatprep.subr.bf16.mxu0 %v14598_v5  ;;  %9685 = vmatprep.subr.bf16.mxu1 %v14601_v37 }
 0x73d   : > { %9653 = vmatpush2.bf16.msra.mxu0 %v14596_v12  ;;  %9686 = vmatpush1.bf16.msra.mxu1 %v14599_v10  ;;  %v14665_v12 = vld [vmem:[%s19337_s7 + $0x16a8] ss:$16 sps:$4 sm:$0xff]  }
 0x73e   : > { %9654 = vmatprep.subr.bf16.mxu0 %v14604_v35  ;;  %9687 = vmatprep.subr.bf16.mxu1 %v14607_v36  ;;  %v14668_v35 = vld [vmem:[%s19337_s7 + $0x1408] ss:$16 sps:$4 sm:$0xff]  }
 0x73f   : > { %v14671_v36 = vld [vmem:[%s19337_s7 + $0x1688] ss:$16 sps:$4 sm:$0xff]  }
 0x741   : > { %9655 = vmatpush2.bf16.msra.mxu0 %v14602_v53  ;;  %9688 = vmatpush2.bf16.msra.mxu1 %v14605_v24  ;;  %v14676_v53 = vld [vmem:[%s19337_s7 + $0x15ec] ss:$16 sps:$4 sm:$0xff]  }
 0x742   : > { %9656 = vmatprep.subr.bf16.mxu0 %v14610_v8  ;;  %9689 = vmatprep.subr.bf16.mxu1 %v14613_v47  ;;  %v14679_v24 = vld [vmem:[%s19337_s7 + $0x166c] ss:$16 sps:$4 sm:$0xff]   ;;  %v14674_v8 = vld [vmem:[%s19337_s7 + $0x15e8] ss:$16 sps:$4 sm:$0xff]  }
 0x743   : > { %v14677_v47 = vld [vmem:[%s19337_s7 + $0x1668] ss:$16 sps:$4 sm:$0xff]  }
 0x745   : > { %9657 = vmatpush2.bf16.msra.mxu0 %v14608_v1  ;;  %9690 = vmatpush2.bf16.msra.mxu1 %v14611_v28  ;;  %v14682_v1 = vld [vmem:[%s19337_s7 + $0x15cc] ss:$16 sps:$4 sm:$0xff]  }
 0x746   : > { %9658 = vmatprep.subr.bf16.mxu0 %v14616_v14  ;;  %9691 = vmatprep.subr.bf16.mxu1 %v14619_v7  ;;  %v14685_v28 = vld [vmem:[%s19337_s7 + $0x164c] ss:$16 sps:$4 sm:$0xff]   ;;  %v14680_v14 = vld [vmem:[%s19337_s7 + $0x15c8] ss:$16 sps:$4 sm:$0xff]  }
 0x747   : > { %v14683_v7 = vld [vmem:[%s19337_s7 + $0x1648] ss:$16 sps:$4 sm:$0xff]  }
 0x749   : > { %9659 = vmatpush2.bf16.msra.mxu0 %v14614_v17  ;;  %9692 = vmatpush2.bf16.msra.mxu1 %v14617_v58  ;;  %v14688_v17 = vld [vmem:[%s19337_s7 + $0x15ac] ss:$16 sps:$4 sm:$0xff]  }
 0x74a   : > { %9660 = vmatprep.subr.bf16.mxu0 %v14622_v45  ;;  %9693 = vmatprep.subr.bf16.mxu1 %v14625_v51  ;;  %v14691_v58 = vld [vmem:[%s19337_s7 + $0x162c] ss:$16 sps:$4 sm:$0xff]   ;;  %v14686_v45 = vld [vmem:[%s19337_s7 + $0x15a8] ss:$16 sps:$4 sm:$0xff]  }
 0x74b   : > { %v14689_v51 = vld [vmem:[%s19337_s7 + $0x1628] ss:$16 sps:$4 sm:$0xff]  }
 0x74d   : > { %9661 = vmatpush2.bf16.msra.mxu0 %v14620_v2  ;;  %9694 = vmatpush2.bf16.msra.mxu1 %v14623_v54  ;;  %v14694_v2 = vld [vmem:[%s19337_s7 + $0x158c] ss:$16 sps:$4 sm:$0xff]  }
 0x74e   : > { %9695 = vmatprep.subr.bf16.mxu1 %v14628_v13  ;;  %9712 = vmatprep.subr.bf16.mxu0 %v14631_v44  ;;  %v14697_v54 = vld [vmem:[%s19337_s7 + $0x160c] ss:$16 sps:$4 sm:$0xff]   ;;  %v14695_v13 = vld [vmem:[%s19337_s7 + $0x1608] ss:$16 sps:$4 sm:$0xff]  }
 0x74f   : > { %v14700_v44 = vld [vmem:[%s19337_s7 + $0x156c] ss:$16 sps:$4 sm:$0xff]  }
 0x750   : > { %v7834_v32 = vpop.f32.mrf.mxu0  ;;  %9663 = vmatmul.mubr.bf16.vlgmr.msra.gmra.mxu0 %v18566_v60 }
 0x751   : > { %9696 = vmatpush2.bf16.msra.mxu1 %v14626_v40  ;;  %9713 = vmatpush1.bf16.msra.mxu0 %v14629_v62  ;;  %v14703_v40 = vld [vmem:[%s19337_s7 + $0x17ec] ss:$16 sps:$4 sm:$0xff]   ;;  %v14698_v62 = vld [vmem:[%s19337_s7 + $0x1568] ss:$16 sps:$4 sm:$0xff]  }
 0x752   : > { %9744 = vmatprep.mubr.bf16.mxu0 %v18364_v9  ;;  %v7836_v26 = vpop.f32.mrf.mxu0  ;;  %9697 = vmatprep.subr.bf16.mxu1 %v14634_v11  ;;  %v14641_v9 = vld [vmem:[%s19337_s7 + $0x14a8] ss:$16 sps:$4 sm:$0xff]  }
 0x753   : > { %9714 = vmatprep.subr.bf16.mxu0 %v14637_v43  ;;  %v14701_v11 = vld [vmem:[%s19337_s7 + $0x17e8] ss:$16 sps:$4 sm:$0xff]   ;;  %v14706_v43 = vld [vmem:[%s19337_s7 + $0x154c] ss:$16 sps:$4 sm:$0xff]  }
 0x754   : > { %v7838_v15 = vpop.f32.mrf.mxu0 }
 0x755   : > { %9698 = vmatpush2.bf16.msra.mxu1 %v14632_v19  ;;  %9715 = vmatpush1.bf16.msra.mxu0 %v14635_v6  ;;  %v14704_v19 = vld [vmem:[%s19337_s7 + $0x1548] ss:$16 sps:$4 sm:$0xff]  }
 0x756   : > { %v7839_v34 = vpop.f32.mrf.mxu0  ;;  %9699 = vmatprep.subr.bf16.mxu1 %v14640_v56  ;;  %9716 = vmatprep.subr.bf16.mxu0 %v14643_v52  ;;  %v14707_v6 = vld [vmem:[%s19337_s7 + $0x17c8] ss:$16 sps:$4 sm:$0xff]   ;;  %v14715_v56 = vld [vmem:[%s19337_s7 + $0x17ac] ss:$16 sps:$4 sm:$0xff]  }
 0x757   : > { %v14710_v52 = vld [vmem:[%s19337_s7 + $0x1528] ss:$16 sps:$4 sm:$0xff]  }
 0x758   : > { %v14713_v15 = vld [vmem:[%s19337_s7 + $0x17a8] ss:$16 sps:$4 sm:$0xff]  }
 0x759   : > { %9700 = vmatpush2.bf16.msra.mxu1 %v14638_v20  ;;  %9717 = vmatpush1.bf16.msra.mxu0 %v14641_v9  ;;  %v14718_v20 = vld [vmem:[%s19337_s7 + $0x150c] ss:$16 sps:$4 sm:$0xff]   ;;  %v14716_v34 = vld [vmem:[%s19337_s7 + $0x1508] ss:$16 sps:$4 sm:$0xff]  }
 0x75a   : > { %9701 = vmatprep.subr.bf16.mxu1 %v14646_v55  ;;  %9718 = vmatprep.subr.bf16.mxu0 %v14649_v57  ;;  %v14721_v9 = vld [vmem:[%s19337_s7 + $0x178c] ss:$16 sps:$4 sm:$0xff]   ;;  %v14719_v55 = vld [vmem:[%s19337_s7 + $0x1788] ss:$16 sps:$4 sm:$0xff]  }
 0x75b   : > { %v18761_v57 = vld [vmem:[#allocation5] sm:$0x88] }
 0x75c   : > { %v12264_v3 = vcombine.high %v18761_v57, %v18761_v57 }
 0x75d   : > { %9702 = vmatpush2.bf16.msra.mxu1 %v14644_v16  ;;  %9719 = vmatpush1.bf16.msra.mxu0 %v14647_v30  ;;  %v14724_v16 = vld [vmem:[%s19337_s7 + $0x176c] ss:$16 sps:$4 sm:$0xff]   ;;  %v14727_v30 = vld [vmem:[%s19337_s7 + $0x18e4] ss:$16 sps:$4 sm:$0xff]  }
 0x75e   : > { %9720 = vmatprep.subr.bf16.mxu0 %v14652_v0  ;;  %9753 = vmatprep.subr.bf16.mxu1 %v14655_v50  ;;  %v14722_v0 = vld [vmem:[%s19337_s7 + $0x1768] ss:$16 sps:$4 sm:$0xff]   ;;  %v14725_v50 = vld [vmem:[%s19337_s7 + $0x18e0] ss:$16 sps:$4 sm:$0xff]  }
 0x760   : > { %v7875_v23 = vpop.f32.mrf.mxu1  ;;  %9704 = vmatmul.mubr.bf16.vlgmr.msra.gmra.mxu1 %v18619_v4 }
 0x761   : > { %v7876_v48 = vadd.f32 %v7875_v23, %v7834_v32  ;;  %9721 = vmatpush1.bf16.msra.mxu0 %v14650_v33  ;;  %9754 = vmatpush1.bf16.msra.mxu1 %v14653_v41  ;;  %v14709_v32 = vld [vmem:[%s19337_s7 + $0x17cc] ss:$16 sps:$4 sm:$0xff]   ;;  %v14735_v41 = vld [vmem:[%s19337_s7 + $0x18c4] ss:$16 sps:$4 sm:$0xff]   ;;  %v14730_v23 = vld [vmem:[%s19337_s7 + $0x1748] ss:$16 sps:$4 sm:$0xff]  }
 0x762   : > { %9785 = vmatprep.mubr.bf16.mxu1 %v18418_v63  ;;  %v7877_v39 = vpop.f32.mrf.mxu1  ;;  %9722 = vmatprep.subr.bf16.mxu0 %v14658_v25  ;;  %v14662_v63 = vld [vmem:[%s19337_s7 + $0x1428] ss:$16 sps:$4 sm:$0xff]   ;;  %v14732_v33 = vld [vmem:[%s19337_s7 + $0x174c] ss:$16 sps:$4 sm:$0xff]  }
 0x763   : > { %v18642_v27 = vadd.f32 %v7876_v48, %v18224_v59  ;;  %v7878_v61 = vadd.f32 %v7877_v39, %v7836_v26  ;;  %9755 = vmatprep.subr.bf16.mxu1 %v14661_v21  ;;  %v14670_v59 = vld [vmem:[%s19337_s7 + $0x140c] ss:$16 sps:$4 sm:$0xff]   ;;  %v18784_v21 = vrot.slane %v12264_v3, 3  ;;  %v14733_v48 = vld [vmem:[%s19337_s7 + $0x18c0] ss:$16 sps:$4 sm:$0xff]  }
 0x764   : > { %v7879_v5 = vpop.f32.mrf.mxu1  ;;  %v14712_v26 = vld [vmem:[%s19337_s7 + $0x152c] ss:$16 sps:$4 sm:$0xff]   ;;  %v14792_v3 = vld [vmem:[%s19337_s7 + $0x1980] ss:$16 sps:$4 sm:$0xff]  }
 0x765   : > { %v18645_v37 = vadd.f32 %v7878_v61, %v18227_v31  ;;  %9723 = vmatpush1.bf16.msra.mxu0 %v14656_v18  ;;  %9756 = vmatpush1.bf16.msra.mxu1 %v14659_v22  ;;  %v14673_v31 = vld [vmem:[%s19337_s7 + $0x168c] ss:$16 sps:$4 sm:$0xff]   ;;  %v14741_v22 = vld [vmem:[%s19337_s7 + $0x18a4] ss:$16 sps:$4 sm:$0xff]  }
 0x766   : > { %v7880_v10 = vpop.f32.mrf.mxu1  ;;  %9724 = vmatprep.subr.bf16.mxu0 %v14664_v38  ;;  %9757 = vmatprep.subr.bf16.mxu1 %v14667_v29  ;;  %v14736_v38 = vld [vmem:[%s19337_s7 + $0x1728] ss:$16 sps:$4 sm:$0xff]   ;;  %v14739_v29 = vld [vmem:[%s19337_s7 + $0x18a0] ss:$16 sps:$4 sm:$0xff]   ;;  %v14744_v5 = vld [vmem:[%s19337_s7 + $0x170c] ss:$16 sps:$4 sm:$0xff]  }
 0x767   : > { %v14745_v10 = vld [vmem:[%s19337_s7 + $0x1880] ss:$16 sps:$4 sm:$0xff]  }
 0x769   : > { %9725 = vmatpush1.bf16.msra.mxu0 %v14662_v63  ;;  %9758 = vmatpush1.bf16.msra.mxu1 %v14665_v12  ;;  %v14747_v63 = vld [vmem:[%s19337_s7 + $0x1884] ss:$16 sps:$4 sm:$0xff]   ;;  %v14742_v12 = vld [vmem:[%s19337_s7 + $0x1708] ss:$16 sps:$4 sm:$0xff]  }
 0x76a   : > { %9726 = vmatprep.subr.bf16.mxu0 %v14670_v59  ;;  %9759 = vmatprep.subr.bf16.mxu1 %v14673_v31  ;;  %v18817_v59 = vld [vmem:[#allocation5 + $0x8] sm:$0x88]  ;;  %v14750_v31 = vld [vmem:[%s19337_s7 + $0x1864] ss:$16 sps:$4 sm:$0xff]  }
 0x76d   : > { %9727 = vmatpush1.bf16.msra.mxu0 %v14668_v35  ;;  %9760 = vmatpush1.bf16.msra.mxu1 %v14671_v36  ;;  %v14753_v35 = vld [vmem:[%s19337_s7 + $0x1ae4] ss:$16 sps:$4 sm:$0xff]   ;;  %v12266_v36 = vcombine.high %v18817_v59, %v18817_v59 }
 0x76e   : > { %9728 = vmatprep.subr.bf16.mxu0 %v14676_v53  ;;  %9761 = vmatprep.subr.bf16.mxu1 %v14679_v24  ;;  %v14748_v53 = vld [vmem:[%s19337_s7 + $0x1860] ss:$16 sps:$4 sm:$0xff]  }
 0x76f   : > { %v14751_v24 = vld [vmem:[%s19337_s7 + $0x1ae0] ss:$16 sps:$4 sm:$0xff]  }
 0x771   : > { %9729 = vmatpush2.bf16.msra.mxu0 %v14674_v8  ;;  %9762 = vmatpush1.bf16.msra.mxu1 %v14677_v47  ;;  %v14758_v8 = vld [vmem:[%s19337_s7 + $0x1844] ss:$16 sps:$4 sm:$0xff]  }
 0x772   : > { %9730 = vmatprep.subr.bf16.mxu0 %v14682_v1  ;;  %9763 = vmatprep.subr.bf16.mxu1 %v14685_v28  ;;  %v14761_v47 = vld [vmem:[%s19337_s7 + $0x1ac4] ss:$16 sps:$4 sm:$0xff]   ;;  %v18840_v28 = vrot.slane %v12266_v36, 3  ;;  %v14822_v36 = vld [vmem:[%s19337_s7 + $0x1b60] ss:$16 sps:$4 sm:$0xff]  }
 0x775   : > { %9731 = vmatpush2.bf16.msra.mxu0 %v14680_v14  ;;  %9764 = vmatpush1.bf16.msra.mxu1 %v14683_v7  ;;  %v14756_v7 = vld [vmem:[%s19337_s7 + $0x1840] ss:$16 sps:$4 sm:$0xff]  }
 0x776   : > { %9732 = vmatprep.subr.bf16.mxu0 %v14688_v17  ;;  %9765 = vmatprep.subr.bf16.mxu1 %v14691_v58  ;;  %v14759_v17 = vld [vmem:[%s19337_s7 + $0x1ac0] ss:$16 sps:$4 sm:$0xff]  }
 0x779   : > { %9733 = vmatpush2.bf16.msra.mxu0 %v14686_v45  ;;  %9766 = vmatpush1.bf16.msra.mxu1 %v14689_v51  ;;  %v14767_v45 = vld [vmem:[%s19337_s7 + $0x1aa4] ss:$16 sps:$4 sm:$0xff]  }
 0x77a   : > { %9734 = vmatprep.subr.bf16.mxu0 %v14694_v2  ;;  %9767 = vmatprep.subr.bf16.mxu1 %v14697_v54 }
 0x77d   : > { %9735 = vmatpush2.bf16.msra.mxu0 %v14692_v46  ;;  %9768 = vmatpush1.bf16.msra.mxu1 %v14695_v13  ;;  %v14762_v13 = vld [vmem:[%s19337_s7 + $0x1820] ss:$16 sps:$4 sm:$0xff]  }
 0x77e   : > { %9736 = vmatprep.subr.bf16.mxu0 %v14700_v44  ;;  %9769 = vmatprep.subr.bf16.mxu1 %v14703_v40  ;;  %v14765_v44 = vld [vmem:[%s19337_s7 + $0x1aa0] ss:$16 sps:$4 sm:$0xff]  }
 0x781   : > { %9737 = vmatpush2.bf16.msra.mxu0 %v14698_v62  ;;  %9770 = vmatpush2.bf16.msra.mxu1 %v14701_v11  ;;  %v14768_v62 = vld [vmem:[%s19337_s7 + $0x1800] ss:$16 sps:$4 sm:$0xff]  }
 0x782   : > { %9738 = vmatprep.subr.bf16.mxu0 %v14706_v43  ;;  %9771 = vmatprep.subr.bf16.mxu1 %v14709_v32  ;;  %v14771_v11 = vld [vmem:[%s19337_s7 + $0x1a80] ss:$16 sps:$4 sm:$0xff]   ;;  %v14776_v43 = vld [vmem:[%s19337_s7 + $0x19e4] ss:$16 sps:$4 sm:$0xff]  }
 0x783   : > { %v14779_v32 = vld [vmem:[%s19337_s7 + $0x1a64] ss:$16 sps:$4 sm:$0xff]  }
 0x785   : > { %9739 = vmatpush2.bf16.msra.mxu0 %v14704_v19  ;;  %9772 = vmatpush2.bf16.msra.mxu1 %v14707_v6  ;;  %v14774_v19 = vld [vmem:[%s19337_s7 + $0x19e0] ss:$16 sps:$4 sm:$0xff]  }
 0x786   : > { %9740 = vmatprep.subr.bf16.mxu0 %v14712_v26  ;;  %9773 = vmatprep.subr.bf16.mxu1 %v14715_v56  ;;  %v14777_v6 = vld [vmem:[%s19337_s7 + $0x1a60] ss:$16 sps:$4 sm:$0xff]   ;;  %v14782_v26 = vld [vmem:[%s19337_s7 + $0x19c4] ss:$16 sps:$4 sm:$0xff]  }
 0x787   : > { %v14785_v56 = vld [vmem:[%s19337_s7 + $0x1a44] ss:$16 sps:$4 sm:$0xff]  }
 0x789   : > { %9741 = vmatpush2.bf16.msra.mxu0 %v14710_v52  ;;  %9774 = vmatpush2.bf16.msra.mxu1 %v14713_v15  ;;  %v14780_v52 = vld [vmem:[%s19337_s7 + $0x19c0] ss:$16 sps:$4 sm:$0xff]  }
 0x78a   : > { %9742 = vmatprep.subr.bf16.mxu0 %v14718_v20  ;;  %9775 = vmatprep.subr.bf16.mxu1 %v14721_v9  ;;  %v14783_v15 = vld [vmem:[%s19337_s7 + $0x1a40] ss:$16 sps:$4 sm:$0xff]   ;;  %v14788_v20 = vld [vmem:[%s19337_s7 + $0x19a4] ss:$16 sps:$4 sm:$0xff]  }
 0x78b   : > { %v14791_v9 = vld [vmem:[%s19337_s7 + $0x1a24] ss:$16 sps:$4 sm:$0xff]  }
 0x78d   : > { %9743 = vmatpush2.bf16.msra.mxu0 %v14716_v34  ;;  %9776 = vmatpush2.bf16.msra.mxu1 %v14719_v55  ;;  %v14786_v34 = vld [vmem:[%s19337_s7 + $0x19a0] ss:$16 sps:$4 sm:$0xff]  }
 0x78e   : > { %9777 = vmatprep.subr.bf16.mxu1 %v14724_v16  ;;  %10586 = vmatprep.subr.bf16.mxu0 %v14727_v30  ;;  %v14789_v55 = vld [vmem:[%s19337_s7 + $0x1a20] ss:$16 sps:$4 sm:$0xff]   ;;  %v14794_v16 = vld [vmem:[%s19337_s7 + $0x1984] ss:$16 sps:$4 sm:$0xff]  }
 0x78f   : > { %v14797_v30 = vld [vmem:[%s19337_s7 + $0x1a04] ss:$16 sps:$4 sm:$0xff]  }
 0x790   : > { %v8708_v25 = vpop.f32.mrf.mxu0  ;;  %9745 = vmatmul.mubr.bf16.vlgmr.msra.gmra.mxu0 %v18566_v60  ;;  %v14738_v60 = vld [vmem:[%s19337_s7 + $0x172c] ss:$16 sps:$4 sm:$0xff]  }
 0x791   : > { %9778 = vmatpush2.bf16.msra.mxu1 %v14722_v0  ;;  %10587 = vmatpush1.bf16.msra.mxu0 %v14725_v50  ;;  %v14795_v0 = vld [vmem:[%s19337_s7 + $0x1a00] ss:$16 sps:$4 sm:$0xff]   ;;  %v14800_v50 = vld [vmem:[%s19337_s7 + $0x1964] ss:$16 sps:$4 sm:$0xff]  }
 0x792   : > { %10618 = vmatprep.mubr.bf16.mxu0 %v18784_v21  ;;  %v8710_v18 = vpop.f32.mrf.mxu0  ;;  %9779 = vmatprep.subr.bf16.mxu1 %v14732_v33  ;;  %v14803_v33 = vld [vmem:[%s19337_s7 + $0x1be4] ss:$16 sps:$4 sm:$0xff]  }
 0x793   : > { %10588 = vmatprep.subr.bf16.mxu0 %v14735_v41  ;;  %v14798_v41 = vld [vmem:[%s19337_s7 + $0x1960] ss:$16 sps:$4 sm:$0xff]  }
 0x794   : > { %v8712_v39 = vpop.f32.mrf.mxu0 }
 0x795   : > { %9780 = vmatpush2.bf16.msra.mxu1 %v14730_v23  ;;  %10589 = vmatpush1.bf16.msra.mxu0 %v14733_v48  ;;  %v14806_v23 = vld [vmem:[%s19337_s7 + $0x1944] ss:$16 sps:$4 sm:$0xff]  }
 0x796   : > { %v8713_v61 = vpop.f32.mrf.mxu0  ;;  %9781 = vmatprep.subr.bf16.mxu1 %v14738_v60  ;;  %10590 = vmatprep.subr.bf16.mxu0 %v14741_v22  ;;  %v14809_v48 = vld [vmem:[%s19337_s7 + $0x1bc4] ss:$16 sps:$4 sm:$0xff]   ;;  %v14807_v60 = vld [vmem:[%s19337_s7 + $0x1bc0] ss:$16 sps:$4 sm:$0xff]  }
 0x797   : > { %v14812_v22 = vld [vmem:[%s19337_s7 + $0x1924] ss:$16 sps:$4 sm:$0xff]  }
 0x798   : > { %v14815_v39 = vld [vmem:[%s19337_s7 + $0x1ba4] ss:$16 sps:$4 sm:$0xff]  }
 0x799   : > { %9782 = vmatpush2.bf16.msra.mxu1 %v14736_v38  ;;  %10591 = vmatpush1.bf16.msra.mxu0 %v14739_v29  ;;  %v14810_v38 = vld [vmem:[%s19337_s7 + $0x1920] ss:$16 sps:$4 sm:$0xff]   ;;  %v14818_v61 = vld [vmem:[%s19337_s7 + $0x1904] ss:$16 sps:$4 sm:$0xff]  }
 0x79a   : > { %9783 = vmatprep.subr.bf16.mxu1 %v14744_v5  ;;  %10592 = vmatprep.subr.bf16.mxu0 %v14747_v63  ;;  %v14813_v29 = vld [vmem:[%s19337_s7 + $0x1ba0] ss:$16 sps:$4 sm:$0xff]   ;;  %v14821_v5 = vld [vmem:[%s19337_s7 + $0x1b84] ss:$16 sps:$4 sm:$0xff]  }
 0x79b   : > { %v14816_v63 = vld [vmem:[%s19337_s7 + $0x1900] ss:$16 sps:$4 sm:$0xff]  }
 0x79d   : > { %9784 = vmatpush2.bf16.msra.mxu1 %v14742_v12  ;;  %10593 = vmatpush1.bf16.msra.mxu0 %v14745_v10  ;;  %v14819_v12 = vld [vmem:[%s19337_s7 + $0x1b80] ss:$16 sps:$4 sm:$0xff]   ;;  %v12263_v10 = vcombine.low %v18761_v57, %v18761_v57  ;;  %v14825_v57 = vld [vmem:[%s19337_s7 + $0x18e8] ss:$16 sps:$4 sm:$0xff]  }
 0x79e   : > { %10594 = vmatprep.subr.bf16.mxu0 %v14750_v31  ;;  %10627 = vmatprep.subr.bf16.mxu1 %v14753_v35  ;;  %v14824_v31 = vld [vmem:[%s19337_s7 + $0x1b64] ss:$16 sps:$4 sm:$0xff]   ;;  %v14827_v35 = vld [vmem:[%s19337_s7 + $0x18ec] ss:$16 sps:$4 sm:$0xff]  }
 0x7a0   : > { %v8749_v1 = vpop.f32.mrf.mxu1  ;;  %9786 = vmatmul.mubr.bf16.vlgmr.msra.gmra.mxu1 %v18619_v4  ;;  %v14764_v4 = vld [vmem:[%s19337_s7 + $0x1824] ss:$16 sps:$4 sm:$0xff]  }
 0x7a1   : > { %v8750_v14 = vadd.f32 %v8749_v1, %v8708_v25  ;;  %10595 = vmatpush1.bf16.msra.mxu0 %v14748_v53  ;;  %10628 = vmatpush1.bf16.msra.mxu1 %v14751_v24  ;;  %v14801_v25 = vld [vmem:[%s19337_s7 + $0x1be0] ss:$16 sps:$4 sm:$0xff]   ;;  %v18989_v53 = vrot.slane %v12263_v10, 3  ;;  %v14830_v24 = vld [vmem:[%s19337_s7 + $0x1b44] ss:$16 sps:$4 sm:$0xff]  }
 0x7a2   : > { %10659 = vmatprep.mubr.bf16.mxu1 %v18840_v28  ;;  %v8751_v58 = vpop.f32.mrf.mxu1  ;;  %10596 = vmatprep.subr.bf16.mxu0 %v14758_v8  ;;  %v14833_v8 = vld [vmem:[%s19337_s7 + $0x18cc] ss:$16 sps:$4 sm:$0xff]   ;;  %v14828_v1 = vld [vmem:[%s19337_s7 + $0x1b40] ss:$16 sps:$4 sm:$0xff]   ;;  %v14888_v10 = vld [vmem:[%s19337_s7 + $0x1988] ss:$16 sps:$4 sm:$0xff]  }
 0x7a3   : > { %v18856_v51 = vadd.f32 %v8750_v14, %v18434_v49  ;;  %v8752_v2 = vadd.f32 %v8751_v58, %v8710_v18  ;;  %10629 = vmatprep.subr.bf16.mxu1 %v14761_v47  ;;  %v14770_v49 = vld [vmem:[%s19337_s7 + $0x1804] ss:$16 sps:$4 sm:$0xff]   ;;  %v14804_v18 = vld [vmem:[%s19337_s7 + $0x1940] ss:$16 sps:$4 sm:$0xff]   ;;  %v14831_v14 = vld [vmem:[%s19337_s7 + $0x18c8] ss:$16 sps:$4 sm:$0xff]  }
 0x7a4   : > { %v8753_v54 = vpop.f32.mrf.mxu1  ;;  %v14839_v58 = vld [vmem:[%s19337_s7 + $0x18ac] ss:$16 sps:$4 sm:$0xff]  }
 0x7a5   : > { %v18859_v46 = vadd.f32 %v8752_v2, %v18437_v42  ;;  %10597 = vmatpush1.bf16.msra.mxu0 %v14756_v7  ;;  %10630 = vmatpush1.bf16.msra.mxu1 %v14759_v17  ;;  %v14773_v42 = vld [vmem:[%s19337_s7 + $0x1a84] ss:$16 sps:$4 sm:$0xff]  }
 0x7a6   : > { %v8754_v40 = vpop.f32.mrf.mxu1  ;;  %10598 = vmatprep.subr.bf16.mxu0 %v14764_v4  ;;  %10631 = vmatprep.subr.bf16.mxu1 %v14767_v45  ;;  %v14836_v17 = vld [vmem:[%s19337_s7 + $0x1b24] ss:$16 sps:$4 sm:$0xff]   ;;  %v14834_v45 = vld [vmem:[%s19337_s7 + $0x1b20] ss:$16 sps:$4 sm:$0xff]  }
 0x7a7   : > { %v14842_v54 = vld [vmem:[%s19337_s7 + $0x1b04] ss:$16 sps:$4 sm:$0xff]   ;;  %v14843_v40 = vld [vmem:[%s19337_s7 + $0x1888] ss:$16 sps:$4 sm:$0xff]  }
 0x7a9   : > { %10599 = vmatpush1.bf16.msra.mxu0 %v14762_v13  ;;  %10632 = vmatpush1.bf16.msra.mxu1 %v14765_v44  ;;  %v14845_v13 = vld [vmem:[%s19337_s7 + $0x188c] ss:$16 sps:$4 sm:$0xff]   ;;  %v14840_v44 = vld [vmem:[%s19337_s7 + $0x1b00] ss:$16 sps:$4 sm:$0xff]  }
 0x7aa   : > { %10600 = vmatprep.subr.bf16.mxu0 %v14770_v49  ;;  %10633 = vmatprep.subr.bf16.mxu1 %v14773_v42  ;;  %v12265_v49 = vcombine.low %v18817_v59, %v18817_v59  ;;  %v14848_v42 = vld [vmem:[%s19337_s7 + $0x186c] ss:$16 sps:$4 sm:$0xff]   ;;  %v14849_v59 = vld [vmem:[%s19337_s7 + $0x1ae8] ss:$16 sps:$4 sm:$0xff]  }
 0x7ad   : > { %10601 = vmatpush1.bf16.msra.mxu0 %v14768_v62  ;;  %10634 = vmatpush1.bf16.msra.mxu1 %v14771_v11  ;;  %v14851_v62 = vld [vmem:[%s19337_s7 + $0x1aec] ss:$16 sps:$4 sm:$0xff]   ;;  %v14846_v11 = vld [vmem:[%s19337_s7 + $0x1868] ss:$16 sps:$4 sm:$0xff]  }
 0x7ae   : > { %10602 = vmatprep.subr.bf16.mxu0 %v14776_v43  ;;  %10635 = vmatprep.subr.bf16.mxu1 %v14779_v32  ;;  %v19043_v43 = vrot.slane %v12265_v49, 3  ;;  %v14854_v32 = vld [vmem:[%s19337_s7 + $0x184c] ss:$16 sps:$4 sm:$0xff]  }
 0x7af   : > { %v14931_v49 = vld [vmem:[%s19339_s9 + $0x38] sm:$0xff]  }
 0x7b1   : > { %10603 = vmatpush2.bf16.msra.mxu0 %v14774_v19  ;;  %10636 = vmatpush1.bf16.msra.mxu1 %v14777_v6  ;;  %v14857_v19 = vld [vmem:[%s19337_s7 + $0x1acc] ss:$16 sps:$4 sm:$0xff]  }
 0x7b2   : > { %10604 = vmatprep.subr.bf16.mxu0 %v14782_v26  ;;  %10637 = vmatprep.subr.bf16.mxu1 %v14785_v56  ;;  %v14852_v56 = vld [vmem:[%s19337_s7 + $0x1848] ss:$16 sps:$4 sm:$0xff]  }
 0x7b5   : > { %10605 = vmatpush2.bf16.msra.mxu0 %v14780_v52  ;;  %10638 = vmatpush1.bf16.msra.mxu1 %v14783_v15  ;;  %v14855_v52 = vld [vmem:[%s19337_s7 + $0x1ac8] ss:$16 sps:$4 sm:$0xff]  }
 0x7b6   : > { %10606 = vmatprep.subr.bf16.mxu0 %v14788_v20  ;;  %10639 = vmatprep.subr.bf16.mxu1 %v14791_v9  ;;  %v14860_v20 = vld [vmem:[%s19337_s7 + $0x182c] ss:$16 sps:$4 sm:$0xff]  }
 0x7b7   : > { %v14863_v9 = vld [vmem:[%s19337_s7 + $0x1aac] ss:$16 sps:$4 sm:$0xff]  }
 0x7b9   : > { %10607 = vmatpush2.bf16.msra.mxu0 %v14786_v34  ;;  %10640 = vmatpush1.bf16.msra.mxu1 %v14789_v55 }
 0x7ba   : > { %10608 = vmatprep.subr.bf16.mxu0 %v14794_v16  ;;  %10641 = vmatprep.subr.bf16.mxu1 %v14797_v30 }
 0x7bd   : > { %10609 = vmatpush2.bf16.msra.mxu0 %v14792_v3  ;;  %10642 = vmatpush1.bf16.msra.mxu1 %v14795_v0  ;;  %v14861_v3 = vld [vmem:[%s19337_s7 + $0x1aa8] ss:$16 sps:$4 sm:$0xff]  }
 0x7be   : > { %10610 = vmatprep.subr.bf16.mxu0 %v14800_v50  ;;  %10643 = vmatprep.subr.bf16.mxu1 %v14803_v33  ;;  %v14864_v50 = vld [vmem:[%s19337_s7 + $0x1808] ss:$16 sps:$4 sm:$0xff]  }
 0x7bf   : > { %v14867_v33 = vld [vmem:[%s19337_s7 + $0x1a88] ss:$16 sps:$4 sm:$0xff]  }
 0x7c1   : > { %10611 = vmatpush2.bf16.msra.mxu0 %v14798_v41  ;;  %10644 = vmatpush2.bf16.msra.mxu1 %v14801_v25  ;;  %v14872_v41 = vld [vmem:[%s19337_s7 + $0x19ec] ss:$16 sps:$4 sm:$0xff]  }
 0x7c2   : > { %10612 = vmatprep.subr.bf16.mxu0 %v14806_v23  ;;  %10645 = vmatprep.subr.bf16.mxu1 %v14809_v48  ;;  %v14875_v25 = vld [vmem:[%s19337_s7 + $0x1a6c] ss:$16 sps:$4 sm:$0xff]   ;;  %v14870_v23 = vld [vmem:[%s19337_s7 + $0x19e8] ss:$16 sps:$4 sm:$0xff]  }
 0x7c3   : > { %v14873_v48 = vld [vmem:[%s19337_s7 + $0x1a68] ss:$16 sps:$4 sm:$0xff]  }
 0x7c5   : > { %10613 = vmatpush2.bf16.msra.mxu0 %v14804_v18  ;;  %10646 = vmatpush2.bf16.msra.mxu1 %v14807_v60  ;;  %v14878_v18 = vld [vmem:[%s19337_s7 + $0x19cc] ss:$16 sps:$4 sm:$0xff]  }
 0x7c6   : > { %10614 = vmatprep.subr.bf16.mxu0 %v14812_v22  ;;  %10647 = vmatprep.subr.bf16.mxu1 %v14815_v39  ;;  %v14881_v60 = vld [vmem:[%s19337_s7 + $0x1a4c] ss:$16 sps:$4 sm:$0xff]   ;;  %v14876_v22 = vld [vmem:[%s19337_s7 + $0x19c8] ss:$16 sps:$4 sm:$0xff]  }
 0x7c7   : > { %v14879_v39 = vld [vmem:[%s19337_s7 + $0x1a48] ss:$16 sps:$4 sm:$0xff]  }
 0x7c9   : > { %10615 = vmatpush2.bf16.msra.mxu0 %v14810_v38  ;;  %10648 = vmatpush2.bf16.msra.mxu1 %v14813_v29  ;;  %v14884_v38 = vld [vmem:[%s19337_s7 + $0x19ac] ss:$16 sps:$4 sm:$0xff]  }
 0x7ca   : > { %10616 = vmatprep.subr.bf16.mxu0 %v14818_v61  ;;  %10649 = vmatprep.subr.bf16.mxu1 %v14821_v5  ;;  %v14887_v29 = vld [vmem:[%s19337_s7 + $0x1a2c] ss:$16 sps:$4 sm:$0xff]   ;;  %v14882_v61 = vld [vmem:[%s19337_s7 + $0x19a8] ss:$16 sps:$4 sm:$0xff]  }
 0x7cb   : > { %v14885_v5 = vld [vmem:[%s19337_s7 + $0x1a28] ss:$16 sps:$4 sm:$0xff]  }
 0x7cd   : > { %10617 = vmatpush2.bf16.msra.mxu0 %v14816_v63  ;;  %10650 = vmatpush2.bf16.msra.mxu1 %v14819_v12  ;;  %v14890_v63 = vld [vmem:[%s19337_s7 + $0x198c] ss:$16 sps:$4 sm:$0xff]  }
 0x7ce   : > { %10651 = vmatprep.subr.bf16.mxu1 %v14824_v31  ;;  %10668 = vmatprep.subr.bf16.mxu0 %v14827_v35  ;;  %v14893_v12 = vld [vmem:[%s19337_s7 + $0x1a0c] ss:$16 sps:$4 sm:$0xff]   ;;  %v14891_v31 = vld [vmem:[%s19337_s7 + $0x1a08] ss:$16 sps:$4 sm:$0xff]  }
 0x7cf   : > { %v14896_v35 = vld [vmem:[%s19337_s7 + $0x196c] ss:$16 sps:$4 sm:$0xff]  }
 0x7d0   : > { %v8790_v47 = vpop.f32.mrf.mxu0  ;;  %10619 = vmatmul.mubr.bf16.vlgmr.msra.gmra.mxu0 %v18989_v53 }
 0x7d1   : > { %10652 = vmatpush2.bf16.msra.mxu1 %v14822_v36  ;;  %10669 = vmatpush1.bf16.msra.mxu0 %v14825_v57  ;;  %v14899_v36 = vld [vmem:[%s19337_s7 + $0x1bec] ss:$16 sps:$4 sm:$0xff]   ;;  %v14894_v57 = vld [vmem:[%s19337_s7 + $0x1968] ss:$16 sps:$4 sm:$0xff]  }
 0x7d2   : > { %10700 = vmatprep.mubr.bf16.mxu0 %v18784_v21  ;;  %v8792_v7 = vpop.f32.mrf.mxu0  ;;  %10653 = vmatprep.subr.bf16.mxu1 %v14830_v24  ;;  %v14837_v21 = vld [vmem:[%s19337_s7 + $0x18a8] ss:$16 sps:$4 sm:$0xff]  }
 0x7d3   : > { %10670 = vmatprep.subr.bf16.mxu0 %v14833_v8  ;;  %v14897_v24 = vld [vmem:[%s19337_s7 + $0x1be8] ss:$16 sps:$4 sm:$0xff]   ;;  %v14902_v8 = vld [vmem:[%s19337_s7 + $0x194c] ss:$16 sps:$4 sm:$0xff]  }
 0x7d4   : > { %v8794_v4 = vpop.f32.mrf.mxu0 }
 0x7d5   : > { %10654 = vmatpush2.bf16.msra.mxu1 %v14828_v1  ;;  %10671 = vmatpush1.bf16.msra.mxu0 %v14831_v14  ;;  %v14900_v1 = vld [vmem:[%s19337_s7 + $0x1948] ss:$16 sps:$4 sm:$0xff]  }
 0x7d6   : > { %v8795_v2 = vpop.f32.mrf.mxu0  ;;  %10655 = vmatprep.subr.bf16.mxu1 %v14836_v17  ;;  %10672 = vmatprep.subr.bf16.mxu0 %v14839_v58  ;;  %v14903_v14 = vld [vmem:[%s19337_s7 + $0x1bc8] ss:$16 sps:$4 sm:$0xff]   ;;  %v14911_v17 = vld [vmem:[%s19337_s7 + $0x1bac] ss:$16 sps:$4 sm:$0xff]  }
 0x7d7   : > { %v14906_v58 = vld [vmem:[%s19337_s7 + $0x1928] ss:$16 sps:$4 sm:$0xff]  }
 0x7d8   : > { %v14909_v4 = vld [vmem:[%s19337_s7 + $0x1ba8] ss:$16 sps:$4 sm:$0xff]  }
 0x7d9   : > { %10656 = vmatpush2.bf16.msra.mxu1 %v14834_v45  ;;  %10673 = vmatpush1.bf16.msra.mxu0 %v14837_v21  ;;  %v14914_v45 = vld [vmem:[%s19337_s7 + $0x190c] ss:$16 sps:$4 sm:$0xff]   ;;  %v14912_v2 = vld [vmem:[%s19337_s7 + $0x1908] ss:$16 sps:$4 sm:$0xff]  }
 0x7da   : > { %10657 = vmatprep.subr.bf16.mxu1 %v14842_v54  ;;  %10674 = vmatprep.subr.bf16.mxu0 %v14845_v13  ;;  %v14917_v21 = vld [vmem:[%s19337_s7 + $0x1b8c] ss:$16 sps:$4 sm:$0xff]   ;;  %v14915_v54 = vld [vmem:[%s19337_s7 + $0x1b88] ss:$16 sps:$4 sm:$0xff]  }
 0x7db   : > { %v14920_v13 = vld [vmem:[%s19337_s7 + $0x1b6c] ss:$16 sps:$4 sm:$0xff]  }
 0x7dd   : > { %10658 = vmatpush2.bf16.msra.mxu1 %v14840_v44  ;;  %10675 = vmatpush1.bf16.msra.mxu0 %v14843_v40  ;;  %v14930_v44 = vld [vmem:[%s19339_s9 + $0x78] sm:$0xff]  }
 0x7de   : > { %10676 = vmatprep.subr.bf16.mxu0 %v14848_v42  ;;  %10709 = vmatprep.subr.bf16.mxu1 %v14851_v62  ;;  %v14918_v40 = vld [vmem:[%s19337_s7 + $0x1b68] ss:$16 sps:$4 sm:$0xff]   ;;  %v14923_v42 = vld [vmem:[%s19337_s7 + $0x1b4c] ss:$16 sps:$4 sm:$0xff]  }
 0x7e0   : > { %v8831_v6 = vpop.f32.mrf.mxu1  ;;  %10660 = vmatmul.mubr.bf16.vlgmr.msra.gmra.mxu1 %v19043_v43 }
 0x7e1   : > { %v8832_v26 = vadd.f32 %v8831_v6, %v8790_v47  ;;  %10677 = vmatpush1.bf16.msra.mxu0 %v14846_v11  ;;  %10710 = vmatpush1.bf16.msra.mxu1 %v14849_v59  ;;  %v14905_v47 = vld [vmem:[%s19337_s7 + $0x1bcc] ss:$16 sps:$4 sm:$0xff]   ;;  %v14921_v11 = vld [vmem:[%s19337_s7 + $0x1b48] ss:$16 sps:$4 sm:$0xff]  }
 0x7e2   : > { %10741 = vmatprep.mubr.bf16.mxu1 %v18840_v28  ;;  %v8833_v15 = vpop.f32.mrf.mxu1  ;;  %10678 = vmatprep.subr.bf16.mxu0 %v14854_v32  ;;  %v14858_v28 = vld [vmem:[%s19337_s7 + $0x1828] ss:$16 sps:$4 sm:$0xff]   ;;  %v14926_v32 = vld [vmem:[%s19337_s7 + $0x1b2c] ss:$16 sps:$4 sm:$0xff]  }
 0x7e3   : > { %v19066_v34 = vadd.f32 %v8832_v26, %v18642_v27  ;;  %v8834_v55 = vadd.f32 %v8833_v15, %v8792_v7  ;;  %10711 = vmatprep.subr.bf16.mxu1 %v14857_v19  ;;  %v14866_v27 = vld [vmem:[%s19337_s7 + $0x180c] ss:$16 sps:$4 sm:$0xff]   ;;  %v14932_v19 = vld [vmem:[%s19339_s9 + $0x70] sm:$0xff]   ;;  %v14924_v26 = vld [vmem:[%s19337_s7 + $0x1b28] ss:$16 sps:$4 sm:$0xff]  }
 0x7e4   : > { %v8835_v16 = vpop.f32.mrf.mxu1  ;;  %v14908_v7 = vld [vmem:[%s19337_s7 + $0x192c] ss:$16 sps:$4 sm:$0xff]  }
 0x7e5   : > { %v19069_v30 = vadd.f32 %v8834_v55, %v18645_v37  ;;  %10679 = vmatpush1.bf16.msra.mxu0 %v14852_v56  ;;  %10712 = vmatpush1.bf16.msra.mxu1 %v14855_v52  ;;  %v14869_v37 = vld [vmem:[%s19337_s7 + $0x1a8c] ss:$16 sps:$4 sm:$0xff]   ;;  %v14927_v55 = vld [vmem:[%s19337_s7 + $0x1b08] ss:$16 sps:$4 sm:$0xff]   ;;  %v14937_v16 = vld [vmem:[%s19339_s9 + $0x20] sm:$0xff]  }
 0x7e6   : > { %v8836_v0 = vpop.f32.mrf.mxu1  ;;  %10680 = vmatprep.subr.bf16.mxu0 %v14860_v20  ;;  %10713 = vmatprep.subr.bf16.mxu1 %v14863_v9  ;;  %v14929_v56 = vld [vmem:[%s19337_s7 + $0x1b0c] ss:$16 sps:$4 sm:$0xff]   ;;  %v14936_v9 = vld [vmem:[%s19339_s9 + $0x60] sm:$0xff]  }
 0x7e7   : > { %v14934_v15 = vld [vmem:[%s19339_s9 + $0x68] sm:$0xff]  }
 0x7e8   : > { %v14935_v20 = vld [vmem:[%s19339_s9 + $0x28] sm:$0xff]  }
 0x7e9   : > { %10681 = vmatpush1.bf16.msra.mxu0 %v14858_v28  ;;  %10714 = vmatpush1.bf16.msra.mxu1 %v14861_v3  ;;  %v14938_v28 = vld [vmem:[%s19339_s9 + $0x58] sm:$0xff]  }
 0x7ea   : > { %10682 = vmatprep.subr.bf16.mxu0 %v14866_v27  ;;  %10715 = vmatprep.subr.bf16.mxu1 %v14869_v37  ;;  %v14939_v3 = vld [vmem:[%s19339_s9 + $0x18] sm:$0xff]  }
 0x7ed   : > { %10683 = vmatpush1.bf16.msra.mxu0 %v14864_v50  ;;  %10716 = vmatpush1.bf16.msra.mxu1 %v14867_v33 }
 0x7ee   : > { %10684 = vmatprep.subr.bf16.mxu0 %v14872_v41  ;;  %10717 = vmatprep.subr.bf16.mxu1 %v14875_v25 }
 0x7f1   : > { %10685 = vmatpush2.bf16.msra.mxu0 %v14870_v23  ;;  %10718 = vmatpush1.bf16.msra.mxu1 %v14873_v48  ;;  %v14940_v48 = vld [vmem:[%s19339_s9 + $0x50] sm:$0xff]  }
 0x7f2   : > { %10686 = vmatprep.subr.bf16.mxu0 %v14878_v18  ;;  %10719 = vmatprep.subr.bf16.mxu1 %v14881_v60  ;;  %v14942_v18 = vld [vmem:[%s19339_s9 + $0x48] sm:$0xff]   ;;  %v14946_v60 = vld [vmem:[%s19339_s9 + $0xf8] sm:$0xff]  }
 0x7f5   : > { %10687 = vmatpush2.bf16.msra.mxu0 %v14876_v22  ;;  %10720 = vmatpush1.bf16.msra.mxu1 %v14879_v39  ;;  %v14947_v22 = vld [vmem:[%s19339_s9 + $0xb8] sm:$0xff]   ;;  %v14945_v39 = vld [vmem:[%s19339_s9] sm:$0xff]  }
 0x7f6   : > { %10688 = vmatprep.subr.bf16.mxu0 %v14884_v38  ;;  %10721 = vmatprep.subr.bf16.mxu1 %v14887_v29 }
 0x7f9   : > { %10689 = vmatpush2.bf16.msra.mxu0 %v14882_v61  ;;  %10722 = vmatpush1.bf16.msra.mxu1 %v14885_v5  ;;  %v14948_v61 = vld [vmem:[%s19339_s9 + $0xf0] sm:$0xff]  }
 0x7fa   : > { %10690 = vmatprep.subr.bf16.mxu0 %v14890_v63  ;;  %10723 = vmatprep.subr.bf16.mxu1 %v14893_v12  ;;  %v14949_v5 = vld [vmem:[%s19339_s9 + $0xb0] sm:$0xff]  }
 0x7fd   : > { %10691 = vmatpush2.bf16.msra.mxu0 %v14888_v10  ;;  %10724 = vmatpush1.bf16.msra.mxu1 %v14891_v31  ;;  %v14950_v10 = vld [vmem:[%s19339_s9 + $0xe8] sm:$0xff]  }
 0x7fe   : > { %10692 = vmatprep.subr.bf16.mxu0 %v14896_v35  ;;  %10725 = vmatprep.subr.bf16.mxu1 %v14899_v36  ;;  %v14951_v31 = vld [vmem:[%s19339_s9 + $0xa8] sm:$0xff]   ;;  %v14952_v35 = vld [vmem:[%s19339_s9 + $0xe0] sm:$0xff]  }
 0x7ff   : > { %v14953_v36 = vld [vmem:[%s19339_s9 + $0xa0] sm:$0xff]  }
 0x801   : > { %10693 = vmatpush2.bf16.msra.mxu0 %v14894_v57  ;;  %10726 = vmatpush2.bf16.msra.mxu1 %v14897_v24  ;;  %v14954_v57 = vld [vmem:[%s19339_s9 + $0xd8] sm:$0xff]  }
 0x802   : > { %10694 = vmatprep.subr.bf16.mxu0 %v14902_v8  ;;  %10727 = vmatprep.subr.bf16.mxu1 %v14905_v47  ;;  %v14955_v24 = vld [vmem:[%s19339_s9 + $0x98] sm:$0xff]  }
 0x805   : > { %10695 = vmatpush2.bf16.msra.mxu0 %v14900_v1  ;;  %10728 = vmatpush2.bf16.msra.mxu1 %v14903_v14 }
 0x806   : > { %10696 = vmatprep.subr.bf16.mxu0 %v14908_v7  ;;  %10729 = vmatprep.subr.bf16.mxu1 %v14911_v17 }
 0x809   : > { %10697 = vmatpush2.bf16.msra.mxu0 %v14906_v58  ;;  %10730 = vmatpush2.bf16.msra.mxu1 %v14909_v4 }
 0x80a   : > { %10698 = vmatprep.subr.bf16.mxu0 %v14914_v45  ;;  %10731 = vmatprep.subr.bf16.mxu1 %v14917_v21  ;;  %v14956_v45 = vld [vmem:[%s19339_s9 + $0xd0] sm:$0xff]  }
 0x80b   : > { %v14957_v21 = vld [vmem:[%s19339_s9 + $0x90] sm:$0xff]  }
 0x80d   : > { %10699 = vmatpush2.bf16.msra.mxu0 %v14912_v2  ;;  %10732 = vmatpush2.bf16.msra.mxu1 %v14915_v54  ;;  %v14958_v2 = vld [vmem:[%s19339_s9 + $0xc8] sm:$0xff]   ;;  %v14961_v54 = vld [vmem:[%s19339_s9 + $0x80] sm:$0xff]  }
 0x80e   : > { %10733 = vmatprep.subr.bf16.mxu1 %v14920_v13  ;;  %12796 = vmatprep.subr.bf16.mxu0 %v14930_v44 }
 0x810   : > { %v9664_v62 = vpop.f32.mrf.mxu0  ;;  %10701 = vmatmul.mubr.bf16.vlgmr.msra.gmra.mxu0 %v18989_v53  ;;  %v14933_v53 = vld [vmem:[%s19339_s9 + $0x30] sm:$0xff]  }
 0x811   : > { %10734 = vmatpush2.bf16.msra.mxu1 %v14918_v40  ;;  %12797 = vmatpush3.bf16.msra.mxu0 %v14931_v49  ;;  %v10756_v49 = vlaneseq }
 0x812   : > { %v9666_v59 = vpop.f32.mrf.mxu0  ;;  %10735 = vmatprep.subr.bf16.mxu1 %v14923_v42  ;;  %12798 = vmatprep.subr.bf16.mxu0 %v14932_v19 }
 0x814   : > { %v9668_v6 = vpop.f32.mrf.mxu0 }
 0x815   : > { %10736 = vmatpush2.bf16.msra.mxu1 %v14921_v11  ;;  %12799 = vmatpush3.bf16.msra.mxu0 %v14933_v53 }
 0x816   : > { %v9669_v52 = vpop.f32.mrf.mxu0  ;;  %10737 = vmatprep.subr.bf16.mxu1 %v14926_v32  ;;  %12800 = vmatprep.subr.bf16.mxu0 %v14934_v15 }
 0x819   : > { %10738 = vmatpush2.bf16.msra.mxu1 %v14924_v26  ;;  %12801 = vmatpush3.bf16.msra.mxu0 %v14935_v20 }
 0x81a   : > { %10739 = vmatprep.subr.bf16.mxu1 %v14929_v56  ;;  %12802 = vmatprep.subr.bf16.mxu0 %v14936_v9 }
 0x81d   : > { %10740 = vmatpush2.bf16.msra.mxu1 %v14927_v55  ;;  %12803 = vmatpush3.bf16.msra.mxu0 %v14937_v16 }
 0x81e   : > { %12804 = vmatprep.subr.bf16.mxu0 %v14938_v28  ;;  %12818 = vmatprep.subr.bf16.mxu1 %v14946_v60 }
 0x820   : > { %v9705_v0 = vpop.f32.mrf.mxu1  ;;  %10742 = vmatmul.mubr.bf16.vlgmr.msra.gmra.mxu1 %v19043_v43  ;;  %v14941_v43 = vld [vmem:[%s19339_s9 + $0x10] sm:$0xff]  }
 0x821   : > { %v9706_v27 = vadd.f32 %v9705_v0, %v9664_v62  ;;  %12805 = vmatpush3.bf16.msra.mxu0 %v14939_v3  ;;  %12819 = vmatpush3.bf16.msra.mxu1 %v14947_v22  ;;  %v10757_v62 = vshrl.u32 %v10756_v49, 7 }
 0x822   : > { %v9707_v37 = vpop.f32.mrf.mxu1  ;;  %12806 = vmatprep.subr.bf16.mxu0 %v14940_v48  ;;  %12820 = vmatprep.subr.bf16.mxu1 %v14948_v61 }
 0x823   : > { %v19242_v50 = vadd.f32 %v9706_v27, %v18856_v51  ;;  %v9708_v33 = vadd.f32 %v9707_v37, %v9666_v59  ;;  %v14943_v51 = vld [vmem:[%s19339_s9 + $0x8] sm:$0xff]   ;;  %v10758_v11 = vsub.s32 0, %v10757_v62  ;;  %v10754_v59 = vld [vmem:[%s19338_s8] sm:$0xf]  ;;  %v10762_v32 = vsub.s32 1, %v10757_v62 }
 0x824   : > { %v9709_v41 = vpop.f32.mrf.mxu1 }
 0x825   : > { %v19245_v25 = vadd.f32 %v9708_v33, %v18859_v46  ;;  %12807 = vmatpush3.bf16.msra.mxu0 %v14941_v43  ;;  %v14944_v46 = vld [vmem:[%s19339_s9 + $0x40] sm:$0xff]   ;;  %12821 = vmatpush3.bf16.msra.mxu1 %v14949_v5  ;;  %v10759_v6 = vrot.slane %v10754_v59, %v10758_v11  ;;  %v10763_v15 = vrot.slane %v10754_v59, %v10762_v32  ;;  %v10766_v43 = vsub.s32 2, %v10757_v62 }
 0x826   : > { %v9710_v23 = vpop.f32.mrf.mxu1  ;;  %12808 = vmatprep.subr.bf16.mxu0 %v14942_v18  ;;  %12822 = vmatprep.subr.bf16.mxu1 %v14950_v10 }
 0x829   : > { %12809 = vmatpush3.bf16.msra.mxu0 %v14943_v51  ;;  %12823 = vmatpush3.bf16.msra.mxu1 %v14951_v31 }
 0x82a   : > { %12810 = vmatprep.subr.bf16.mxu0 %v14944_v46  ;;  %12824 = vmatprep.subr.bf16.mxu1 %v14952_v35  ;;  %v10767_v46 = vrot.slane %v10754_v59, %v10766_v43 }
 0x82d   : > { %12811 = vmatpush3.bf16.msra.mxu0 %v14945_v39  ;;  %12825 = vmatpush3.bf16.msra.mxu1 %v14953_v36 }
 0x82e   : > { %12826 = vmatprep.subr.bf16.mxu1 %v14954_v57 }
 0x831   : > { %12827 = vmatpush3.bf16.msra.mxu1 %v14955_v24 }
 0x832   : > { %12828 = vmatprep.subr.bf16.mxu1 %v14956_v45 }
 0x835   : > { %12829 = vmatpush3.bf16.msra.mxu1 %v14957_v21 }
 0x836   : > { %12830 = vmatprep.subr.bf16.mxu1 %v14958_v2 }
 0x850   : > { %v9746_v38 = vpop.f32.mrf.mxu0 }
 0x852   : > { %v9748_v29 = vpop.f32.mrf.mxu0 }
 0x854   : > { %v9750_v63 = vpop.f32.mrf.mxu0 }
 0x856   : > { %v9751_v12 = vpop.f32.mrf.mxu0 }
 0x860   : > { %v9787_v8 = vpop.f32.mrf.mxu1 }
 0x861   : > { %v9788_v47 = vadd.f32 %v9787_v8, %v9746_v38 }
 0x862   : > { %v9789_v1 = vpop.f32.mrf.mxu1 }
 0x863   : > { %v9796_v14 = vadd.f32 %v9788_v47, %v19066_v34  ;;  %v9790_v7 = vadd.f32 %v9789_v1, %v9748_v29  ;;  %v14959_v34 = vld [vmem:[%s19339_s9 + $0x88] sm:$0xff]   ;;  %v10852_v1 = vld [vmem:[%s19340_s10] sm:$0x1] }
 0x864   : > { %v9791_v17 = vpop.f32.mrf.mxu1  ;;  %12831 = vmatpush3.bf16.msra.mxu1 %v14959_v34 }
 0x865   : > { %v9797_v58 = vadd.f32 %v9790_v7, %v19069_v30  ;;  %v14960_v30 = vld [vmem:[%s19339_s9 + $0xc0] sm:$0xff]  }
 0x866   : > { %v9792_v4 = vpop.f32.mrf.mxu1  ;;  %12832 = vmatprep.subr.bf16.mxu1 %v14960_v30 }
 0x868   : > { %12833 = vmatpush3.bf16.msra.mxu1 %v14961_v54 }
 0x890   : > { %v10620_v13 = vpop.f32.mrf.mxu0 }
 0x892   : > { %v10622_v44 = vpop.f32.mrf.mxu0 }
 0x894   : > { %v10624_v40 = vpop.f32.mrf.mxu0 }
 0x896   : > { %v10625_v42 = vpop.f32.mrf.mxu0 }
 0x8a0   : > { %v10661_v19 = vpop.f32.mrf.mxu1 }
 0x8a1   : > { %v10662_v53 = vadd.f32 %v10661_v19, %v10620_v13 }
 0x8a2   : > { %v10663_v26 = vpop.f32.mrf.mxu1 }
 0x8a3   : > { %v10750_v56 = vadd.f32 %v10662_v53, %v19242_v50  ;;  %v10664_v52 = vadd.f32 %v10663_v26, %v10622_v44  ;;  %v10770_v50 = vsub.s32 3, %v10757_v62 }
 0x8a4   : > { %v10665_v20 = vpop.f32.mrf.mxu1 }
 0x8a5   : > { %v10776_v9 = vadd.f32 %v10759_v6, %v10750_v56  ;;  %v10751_v55 = vadd.f32 %v10664_v52, %v19245_v25  ;;  %v10771_v39 = vrot.slane %v10754_v59, %v10770_v50 }
 0x8a6   : > { %v10666_v16 = vpop.f32.mrf.mxu1 }
 0x8a7   : > { %v10777_v28 = vadd.f32 %v10763_v15, %v10751_v55  ;;  %v10780_v3 = vmax.f32 %v10776_v9, 0.0 }
 0x8a9   : > { %v10781_v0 = vmax.f32 %v10777_v28, 0.0  ;;  %v10784_v37 = vpack.c.bf16 %v10780_v3, %v10780_v3 }
 0x8ab   : > { %v10785_v27 = vpack.c.bf16 %v10781_v0, %v10781_v0 }
 0x8ad   : > { %11077 = vmatprep.mubr.bf16.mxu0 %v10785_v27 }
 0x8ae   : > { %11078 = vmatmul.mubr.bf16.vlgmr.msra.gmra.mxu0 %v10784_v37 }
 0x8d0   : > { %v10702_v33 = vpop.f32.mrf.mxu0 }
 0x8d2   : > { %v10704_v41 = vpop.f32.mrf.mxu0 }
 0x8d4   : > { %v10706_v23 = vpop.f32.mrf.mxu0 }
 0x8d6   : > { %v10707_v48 = vpop.f32.mrf.mxu0 }
 0x8e0   : > { %v10743_v18 = vpop.f32.mrf.mxu1 }
 0x8e1   : > { %v10744_v51 = vadd.f32 %v10743_v18, %v10702_v33 }
 0x8e2   : > { %v10745_v60 = vpop.f32.mrf.mxu1 }
 0x8e3   : > { %v10752_v22 = vadd.f32 %v10744_v51, %v9796_v14  ;;  %v10746_v25 = vadd.f32 %v10745_v60, %v10704_v41 }
 0x8e4   : > { %v10747_v38 = vpop.f32.mrf.mxu1 }
 0x8e5   : > { %v10778_v29 = vadd.f32 %v10767_v46, %v10752_v22  ;;  %v10753_v61 = vadd.f32 %v10746_v25, %v9797_v58 }
 0x8e6   : > { %v10748_v5 = vpop.f32.mrf.mxu1 }
 0x8e7   : > { %v10779_v63 = vadd.f32 %v10771_v39, %v10753_v61  ;;  %v10782_v12 = vmax.f32 %v10778_v29, 0.0 }
 0x8e9   : > { %v10783_v10 = vmax.f32 %v10779_v63, 0.0  ;;  %v10786_v35 = vpack.c.bf16 %v10782_v12, %v10782_v12 }
 0x8eb   : > { %v10787_v31 = vpack.c.bf16 %v10783_v10, %v10783_v10 }
 0x8ed   : > { %11117 = vmatprep.mubr.bf16.mxu1 %v10787_v31 }
 0x8ee   : > { %11118 = vmatmul.mubr.bf16.vlgmr.msra.gmra.mxu1 %v10786_v35 }
 0x96e   : > { %v12812_v36 = vpop.f32.mrf.mxu0 }
 0x970   : > { %v12813_v57 = vpop.f32.mrf.mxu0 }
 0x971   : > { %v12814_v47 = vadd.f32 %v12813_v57, %v12812_v36 }
 0x972   : > { %v12815_v24 = vpop.f32.mrf.mxu0 }
 0x973   : > { %v11080_v17 = vadd.f32 %v12814_v47, %v10852_v1 }
 0x974   : > { %v12816_v8 = vpop.f32.mrf.mxu0 }
 0x9ae   : > { %v12834_v14 = vpop.f32.mrf.mxu1 }
 0x9b0   : > { %v12835_v7 = vpop.f32.mrf.mxu1 }
 0x9b1   : > { %v12836_v58 = vadd.f32 %v12835_v7, %v12834_v14 }
 0x9b2   : > { %v12837_v4 = vpop.f32.mrf.mxu1 }
 0x9b3   : > { %v11120_v45 = vadd.f32 %v12836_v58, %v11080_v17 }
 0x9b4   : > { %v12838_v21 = vpop.f32.mrf.mxu1 }
 0x9b5   : > { %v11128_v2 = vrot.slane %v11120_v45, %v10758_v11 }
 0x9b7   : > { %11129 = vst [vmem:[%s384_s24] sm:$0xff] %v11128_v2 }
 0x9b8 PF: > { %s21_s17 = sadd.s32 1, %s14968_s17  }
 0x9b9   : > { %p18_p4 = scmp.ge.s32.totalorder %s21_s17, 4  }
 0x9bb   :  { %20 = sbr.rel (!%p18_p4) target bundleno = 1 (0x1), region = 94 }

</bundles_post_ra>
